<compile_context>
chip_gen: v7x
topology: tpu7x:2x2x1
jax: 0.10.0
libtpu: 0.0.40
codegen_flags: <defaults>
</compile_context>

<pallas_src>
import jax
import jax.numpy as jnp
from jax.experimental import pallas as pl
from jax.experimental.pallas import tpu as pltpu


# ------------------------------------------------------------- small utils ---

def _halo_pad(W):
    """Halo rows on each side of the flat per-sample activation scratch.
    Must be >= W + 1 (largest |row shift| of a 3x3/pad-1 conv); rounded up to a
    sublane multiple so the main scratch write is aligned."""
    return ((W + 1 + 7) // 8) * 8


def _conv3x3(src_s, w_ref, H, W, C, PAD):
    """conv3x3 (stride 1, pad 1) of one sample stored flat in `src_s`.

    src_s : VMEM scratch (PAD + H*W + PAD, C) bf16; rows [PAD, PAD+H*W) hold
            the activation flattened row-major (i, j); halo rows MUST be zero.
    w_ref : (3, 3, C, Cout) bf16 HWIO weight ref.
    Returns the (H*W, Cout) float32 conv result.

    Fused im2col: 9 shifted (M,C)x(C,Cout) bf16 MXU matmuls with f32
    accumulation.  Row (di) out-of-bounds taps land in the zeroed halo; column
    (dj) wrap-around is removed with two masks computed once per conv."""
    M = H * W
    left_ok = right_ok = None
    if W >= 2:
        jj = jax.lax.broadcasted_iota(jnp.int32, (M, C), 0)
        jj = (jj & (W - 1)) if (W & (W - 1)) == 0 else (jj % W)
        left_ok = jj >= 1            # tap (dj = -1) in bounds
        right_ok = jj <= W - 2       # tap (dj = +1) in bounds

    acc = None
    for di in (-1, 0, 1):
        if di != 0 and H < 2:
            continue                  # tap can never be in-bounds
        for dj in (-1, 0, 1):
            if dj != 0 and W < 2:
                continue
            tap = src_s[pl.ds(PAD + di * W + dj, M), :]
            if dj == -1:
                tap = jnp.where(left_ok, tap, jnp.zeros_like(tap))
            elif dj == 1:
                tap = jnp.where(right_ok, tap, jnp.zeros_like(tap))
            d = jnp.dot(tap, w_ref[di + 1, dj + 1, :, :],
                        preferred_element_type=jnp.float32)
            acc = d if acc is None else acc + d
    return acc


# ------------------------------------------------------------------ kernels ---

def _make_stem_kernel(Hp, Wp, C1):
    """conv7x7/s2 (one patch matmul) + BN + ReLU + maxpool(3,2,1).
    The conv output is written phase-decomposed ((row%2, col%2) major) into a
    VMEM scratch so the stride-2 pool is 9 constant-offset masked maxima."""
    Mp = Hp * Wp

    def kernel(p_ref, w_ref, s_ref, b_ref, o_ref, h_s):
        h = jnp.dot(p_ref[...], w_ref[...], preferred_element_type=jnp.float32)
        h = jnp.maximum(h * s_ref[...] + b_ref[...], 0.0)
        h_s[...] = h.astype(jnp.bfloat16)

        r = jax.lax.broadcasted_iota(jnp.int32, (Mp, C1), 0)
        if (Wp & (Wp - 1)) == 0:
            q = r & (Wp - 1)
            p = r >> (Wp.bit_length() - 1)
        else:
            q = r % Wp
            p = r // Wp
        ok_q = q >= 1
        ok_p = p >= 1
        zero = jnp.zeros((Mp, C1), jnp.bfloat16)   # post-ReLU values are >= 0

        def rd(phase, off):
            return h_s[pl.ds(phase * Mp + off, Mp), :]

        res = rd(0, 0)
        res = jnp.maximum(res, rd(1, 0))
        res = jnp.maximum(res, jnp.where(ok_q, rd(1, -1), zero))
        res = jnp.maximum(res, rd(2, 0))
        res = jnp.maximum(res, jnp.where(ok_p, rd(2, -Wp), zero))
        res = jnp.maximum(res, rd(3, 0))
        res = jnp.maximum(res, jnp.where(ok_q, rd(3, -1), zero))
        res = jnp.maximum(res, jnp.where(ok_p, rd(3, -Wp), zero))
        res = jnp.maximum(res, jnp.where(jnp.logical_and(ok_p, ok_q),
                                         rd(3, -Wp - 1), zero))
        o_ref[...] = res.astype(o_ref.dtype)

    return kernel


def _make_block_s1_kernel(H, W, Cin, Cmid, Cout, has_proj):
    """Whole BasicBlock (stride 1) in one kernel: conv1+bn1+relu -> conv2+bn2
    -> (+shortcut) -> relu.  The intermediate activation lives only in VMEM."""
    M = H * W
    PAD = _halo_pad(W)

    def kernel(*refs):
        if has_proj:
            (x_ref, w1_ref, s1_ref, b1_ref, w2_ref, s2_ref, b2_ref,
             wsc_ref, ssc_ref, bsc_ref, o_ref, x_s, h_s) = refs
        else:
            (x_ref, w1_ref, s1_ref, b1_ref, w2_ref, s2_ref, b2_ref,
             o_ref, x_s, h_s) = refs

        @pl.when(pl.program_id(0) == 0)
        def _():                 # zero halos once; they stay zero across grid
            x_s[...] = jnp.zeros_like(x_s)
            h_s[...] = jnp.zeros_like(h_s)

        x = x_ref[...]                                       # (M, Cin) bf16
        x_s[pl.ds(PAD, M), :] = x

        h = _conv3x3(x_s, w1_ref, H, W, Cin, PAD)
        h = jnp.maximum(h * s1_ref[...] + b1_ref[...], 0.0)
        h_s[pl.ds(PAD, M), :] = h.astype(jnp.bfloat16)

        out = _conv3x3(h_s, w2_ref, H, W, Cmid, PAD)
        out = out * s2_ref[...] + b2_ref[...]

        if has_proj:                                         # 1x1 projection
            sc = jnp.dot(x, wsc_ref[...], preferred_element_type=jnp.float32)
            sc = sc * ssc_ref[...] + bsc_ref[...]
        else:                                                # identity
            sc = x.astype(jnp.float32)

        o_ref[...] = jnp.maximum(out + sc, 0.0).astype(o_ref.dtype)

    return kernel


def _make_block_s2_kernel(OH, OW, Cin, Cmid, Cout):
    """Whole BasicBlock (stride 2) in one kernel: conv1 uses the pre-built
    (tiny) im2col patches, conv2 + 1x1 shortcut + bn + relu all fused."""
    M = OH * OW
    PAD = _halo_pad(OW)

    def kernel(p_ref, xs_ref, w1_ref, s1_ref, b1_ref,
               w2_ref, s2_ref, b2_ref, wsc_ref, ssc_ref, bsc_ref,
               o_ref, h_s):
        @pl.when(pl.program_id(0) == 0)
        def _():
            h_s[...] = jnp.zeros_like(h_s)

        h = jnp.dot(p_ref[...], w1_ref[...], preferred_element_type=jnp.float32)
        h = jnp.maximum(h * s1_ref[...] + b1_ref[...], 0.0)
        h_s[pl.ds(PAD, M), :] = h.astype(jnp.bfloat16)

        out = _conv3x3(h_s, w2_ref, OH, OW, Cmid, PAD)
        out = out * s2_ref[...] + b2_ref[...]

        sc = jnp.dot(xs_ref[...], wsc_ref[...],
                     preferred_element_type=jnp.float32)
        sc = sc * ssc_ref[...] + bsc_ref[...]

        o_ref[...] = jnp.maximum(out + sc, 0.0).astype(o_ref.dtype)

    return kernel


def _tail_kernel(x_ref, w_ref, s_ref, b_ref, o_ref):
    """AdaptiveAvgPool2d((1,1)) + flatten + Linear + BatchNorm1d, fused."""
    xm = jnp.mean(x_ref[...].astype(jnp.float32), axis=1)        # (N, C)
    y = jnp.dot(xm.astype(jnp.bfloat16), w_ref[...],
                preferred_element_type=jnp.float32)
    o_ref[...] = y * s_ref[...] + b_ref[...]


# ----------------------------------------------------------------- wrappers ---

def _resident(shape):
    nd = len(shape)
    return pl.BlockSpec(tuple(shape), lambda *_: (0,) * nd)


def _per_sample(rows, cols):
    return pl.BlockSpec((None, rows, cols), lambda n: (n, 0, 0))


_PARALLEL = pltpu.CompilerParams(dimension_semantics=("parallel",))


def _im2col4(x, kh, kw, stride, padding):
    """NHWC -> (N, OH, OW, kh*kw*C) patch tensor (tap-major, matches HWIO)."""
    N, H, W, C = x.shape
    OH = (H + 2 * padding - kh) // stride + 1
    OW = (W + 2 * padding - kw) // stride + 1
    xp = jnp.pad(x, ((0, 0), (padding, padding), (padding, padding), (0, 0)))
    cols = []
    for i in range(kh):
        for j in range(kw):
            sl = jax.lax.slice(
                xp, (0, i, j, 0),
                (N, i + (OH - 1) * stride + 1, j + (OW - 1) * stride + 1, C),
                (1, stride, stride, 1))
            cols.append(sl)
    return jnp.concatenate(cols, axis=-1), (OH, OW)


def _stem_forward(x_nhwc, sp):
    """conv1(7x7,s2,p3) + bn1 + relu + maxpool(3,2,1) in one pallas_call."""
    N = x_nhwc.shape[0]
    patches4, (Hc, Wc) = _im2col4(x_nhwc, 7, 7, 2, 3)        # (N, Hc, Wc, 49)
    KK = patches4.shape[-1]
    C1 = sp["w"].shape[-1]
    assert Hc % 2 == 0 and Wc % 2 == 0  # TODO(synk): odd conv-output dims
    Hp, Wp = Hc // 2, Wc // 2
    Mp = Hp * Wp
    # phase-decompose the conv-output positions: (row%2, col%2) major
    phases = [patches4[:, a::2, b::2, :]
              for (a, b) in ((0, 0), (0, 1), (1, 0), (1, 1))]
    pp = jnp.stack(phases, axis=1).reshape(N, 4 * Mp, KK)

    out = pl.pallas_call(
        _make_stem_kernel(Hp, Wp, C1),
        grid=(N,),
        in_specs=[_per_sample(4 * Mp, KK),
                  _resident(sp["w"].shape),
                  _resident(sp["s"].shape),
                  _resident(sp["b"].shape)],
        out_specs=_per_sample(Mp, C1),
        out_shape=jax.ShapeDtypeStruct((N, Mp, C1), jnp.bfloat16),
        scratch_shapes=[pltpu.VMEM((4 * Mp, C1), jnp.bfloat16)],
        compiler_params=_PARALLEL,
    )(pp, sp["w"], sp["s"], sp["b"])
    return out, Hp, Wp


def _block_s1_forward(x, H, W, bp):
    N, M, Cin = x.shape
    Cmid = bp["w1"].shape[-1]
    Cout = bp["w2"].shape[-1]
    has_proj = "wsc" in bp
    PAD = _halo_pad(W)

    in_specs = [_per_sample(M, Cin),
                _resident(bp["w1"].shape), _resident(bp["s1"].shape),
                _resident(bp["b1"].shape),
                _resident(bp["w2"].shape), _resident(bp["s2"].shape),
                _resident(bp["b2"].shape)]
    args = [x, bp["w1"], bp["s1"], bp["b1"], bp["w2"], bp["s2"], bp["b2"]]
    if has_proj:
        in_specs += [_resident(bp["wsc"].shape), _resident(bp["ssc"].shape),
                     _resident(bp["bsc"].shape)]
        args += [bp["wsc"], bp["ssc"], bp["bsc"]]

    out = pl.pallas_call(
        _make_block_s1_kernel(H, W, Cin, Cmid, Cout, has_proj),
        grid=(N,),
        in_specs=in_specs,
        out_specs=_per_sample(M, Cout),
        out_shape=jax.ShapeDtypeStruct((N, M, Cout), jnp.bfloat16),
        scratch_shapes=[pltpu.VMEM((M + 2 * PAD, Cin), jnp.bfloat16),
                        pltpu.VMEM((M + 2 * PAD, Cmid), jnp.bfloat16)],
        compiler_params=_PARALLEL,
    )(*args)
    return out, H, W


def _block_s2_forward(x, H, W, bp):
    N, _, Cin = x.shape
    Cmid = bp["w1f"].shape[-1]
    Cout = bp["w2"].shape[-1]
    x4 = x.reshape(N, H, W, Cin)
    patches4, (OH, OW) = _im2col4(x4, 3, 3, 2, 1)           # (N, OH, OW, 9Cin)
    M = OH * OW
    patches = patches4.reshape(N, M, 9 * Cin)
    xsub = x4[:, ::2, ::2, :].reshape(N, M, Cin)            # 1x1/s2 shortcut in
    PAD = _halo_pad(OW)

    out = pl.pallas_call(
        _make_block_s2_kernel(OH, OW, Cin, Cmid, Cout),
        grid=(N,),
        in_specs=[_per_sample(M, 9 * Cin),
                  _per_sample(M, Cin),
                  _resident(bp["w1f"].shape), _resident(bp["s1"].shape),
                  _resident(bp["b1"].shape),
                  _resident(bp["w2"].shape), _resident(bp["s2"].shape),
                  _resident(bp["b2"].shape),
                  _resident(bp["wsc"].shape), _resident(bp["ssc"].shape),
                  _resident(bp["bsc"].shape)],
        out_specs=_per_sample(M, Cout),
        out_shape=jax.ShapeDtypeStruct((N, M, Cout), jnp.bfloat16),
        scratch_shapes=[pltpu.VMEM((M + 2 * PAD, Cmid), jnp.bfloat16)],
        compiler_params=_PARALLEL,
    )(patches, xsub, bp["w1f"], bp["s1"], bp["b1"], bp["w2"], bp["s2"],
      bp["b2"], bp["wsc"], bp["ssc"], bp["bsc"])
    return out, OH, OW


def _tail_forward(x, fp):
    N, _, _ = x.shape
    E = fp["w"].shape[-1]
    return pl.pallas_call(
        _tail_kernel,
        grid=(1,),
        in_specs=[_resident(x.shape), _resident(fp["w"].shape),
                  _resident(fp["s"].shape), _resident(fp["b"].shape)],
        out_specs=_resident((N, E)),
        out_shape=jax.ShapeDtypeStruct((N, E), jnp.float32),
    )(x, fp["w"], fp["s"], fp["b"])


def resnet_forward(x_nchw, params, arch):
    x = jnp.transpose(x_nchw, (0, 2, 3, 1)).astype(jnp.bfloat16)  # NCHW->NHWC
    y, H, W = _stem_forward(x, params["stem"])
    for meta, bp in zip(arch, params["blocks"]):
        if meta["stride"] == 1:
            y, H, W = _block_s1_forward(y, H, W, bp)
        else:
            y, H, W = _block_s2_forward(y, H, W, bp)
    return _tail_forward(y, params["fc"])


# -------------------------------------------------------------- parameters ---

def _fold_bn(gamma, beta, mean, var, eps=1e-5):
    scale = gamma / jnp.sqrt(var + eps)
    return scale, beta - mean * scale


class _KeyGen:
    def __init__(self, key):
        self._key = key

    def __call__(self):
        self._key, k = jax.random.split(self._key)
        return k


def build_arch(config):
    """Static per-block (stride, cin, cmid, cout, proj) description."""
    arch = []
    in_ch = config[1]
    strides = [1, 2, 2, 2]
    cfgs = [config[3:7], config[7:12], config[12:17], config[17:22]]
    for cfg, s in zip(cfgs, strides):
        cin, cmid, cout = in_ch, cfg[0], cfg[1]
        arch.append(dict(stride=s, cin=cin, cmid=cmid, cout=cout,
                         proj=(s != 1 or cin != cout)))
        in_ch = cout
        cin, cmid, cout = in_ch, cfg[2], cfg[3]
        arch.append(dict(stride=1, cin=cin, cmid=cmid, cout=cout,
                         proj=(cin != cout)))
        in_ch = cout
    return arch


def init_params(config, embedding_size, key):
    kg = _KeyGen(key)
    arch = build_arch(config)

    def conv_w(kh, kw, cin, cout):
        fan_in = kh * kw * cin
        return (jax.random.normal(kg(), (kh, kw, cin, cout), jnp.float32)
                / jnp.sqrt(float(fan_in)))

    def bn(c):
        gamma = 1.0 + 0.1 * jax.random.normal(kg(), (c,), jnp.float32)
        beta = 0.1 * jax.random.normal(kg(), (c,), jnp.float32)
        mean = 0.1 * jax.random.normal(kg(), (c,), jnp.float32)
        var = 1.0 + 0.1 * jnp.abs(jax.random.normal(kg(), (c,), jnp.float32))
        s, b = _fold_bn(gamma, beta, mean, var)
        return s.reshape(1, c), b.reshape(1, c)

    c1 = config[1]
    s0, b0 = bn(c1)
    params = {"stem": {"w": conv_w(7, 7, 1, c1).reshape(49, c1)
                       .astype(jnp.bfloat16),
                       "s": s0, "b": b0},
              "blocks": []}

    for meta in arch:
        cin, cmid, cout = meta["cin"], meta["cmid"], meta["cout"]
        w1 = conv_w(3, 3, cin, cmid)
        s1_, b1_ = bn(cmid)
        w2 = conv_w(3, 3, cmid, cout)
        s2_, b2_ = bn(cout)
        bp = {"s1": s1_, "b1": b1_,
              "w2": w2.astype(jnp.bfloat16), "s2": s2_, "b2": b2_}
        if meta["stride"] == 1:
            bp["w1"] = w1.astype(jnp.bfloat16)
        else:
            bp["w1f"] = w1.reshape(9 * cin, cmid).astype(jnp.bfloat16)
        if meta["proj"]:
            ssc, bsc = bn(cout)
            bp["wsc"] = (conv_w(1, 1, cin, cout).reshape(cin, cout)
                         .astype(jnp.bfloat16))
            bp["ssc"] = ssc
            bp["bsc"] = bsc
        params["blocks"].append(bp)

    c_final = config[-2]
    eps = 1e-5
    fc_w = (jax.random.normal(kg(), (c_final, embedding_size), jnp.float32)
            / jnp.sqrt(float(c_final)))
    fc_b = 0.1 * jax.random.normal(kg(), (embedding_size,), jnp.float32)
    g = 1.0 + 0.1 * jax.random.normal(kg(), (embedding_size,), jnp.float32)
    be = 0.1 * jax.random.normal(kg(), (embedding_size,), jnp.float32)
    mu = 0.1 * jax.random.normal(kg(), (embedding_size,), jnp.float32)
    va = 1.0 + 0.1 * jnp.abs(jax.random.normal(kg(), (embedding_size,),
                                               jnp.float32))
    s_bn = g / jnp.sqrt(va + eps)
    params["fc"] = {"w": fc_w.astype(jnp.bfloat16),
                    "s": s_bn.reshape(1, embedding_size),
                    "b": ((fc_b - mu) * s_bn + be).reshape(1, embedding_size)}
    return params, arch


# --------------------------------------------------------------------- main ---

if __name__ == "__main__":
    # pruned-channel config (22 entries, same indexing the PyTorch module uses)
    config = [0, 8, 0,
              8, 8, 8, 8,            # layer1: cfg[0..3]
              16, 16, 16, 16, 0,     # layer2
              16, 16, 16, 16, 0,     # layer3
              32, 32, 32, 32, 0]     # layer4 ; config[-2] feeds fc
    embedding_size = 32

    root = jax.random.PRNGKey(0)
    pkey, xkey = jax.random.split(root)
    params, arch = init_params(config, embedding_size, pkey)

    # input matches nn.Conv2d(1, ...): (batch=2, channels=1, 32, 32) in NCHW
    x = jax.random.normal(xkey, (2, 1, 32, 32), jnp.float32)

    fwd = jax.jit(lambda xx, pp: resnet_forward(xx, pp, arch))
    out = jax.block_until_ready(fwd(x, params))
    assert out.shape == (2, embedding_size), out.shape
    assert bool(jnp.all(jnp.isfinite(out)))
    print("KERNEL_OK")
</pallas_src>

<mosaic_0001>
module attributes {stable_mosaic.version = 11 : i64} {
  func.func @kernel(%arg0: i32, %arg1: memref<1x256x49xbf16, #tpu.memory_space<vmem>>, %arg2: memref<49x8xbf16, #tpu.memory_space<vmem>>, %arg3: memref<1x8xf32, #tpu.memory_space<vmem>>, %arg4: memref<1x8xf32, #tpu.memory_space<vmem>>, %arg5: memref<1x64x8xbf16, #tpu.memory_space<vmem>>, %arg6: memref<256x8xbf16, #tpu.memory_space<vmem>>) attributes {dimension_semantics = [#tpu.dimension_semantics<parallel>], iteration_bounds = array<i64: 2>, scalar_prefetch = 0 : i64, scratch_operands = 1 : i64, tpu.core_type = #tpu.core_type<tc>, window_params = [{transform_indices = @transform_0, window_bounds = array<i64: 1, 256, 49>}, {pipeline_mode = #tpu.pipeline_mode<synchronous>, transform_indices = @transform_1, window_bounds = array<i64: 49, 8>}, {pipeline_mode = #tpu.pipeline_mode<synchronous>, transform_indices = @transform_2, window_bounds = array<i64: 1, 8>}, {pipeline_mode = #tpu.pipeline_mode<synchronous>, transform_indices = @transform_3, window_bounds = array<i64: 1, 8>}, {transform_indices = @transform_4, window_bounds = array<i64: 1, 64, 8>}]} {
    %c0 = arith.constant 0 : index
    %c0_0 = arith.constant 0 : index
    %c0_1 = arith.constant 0 : index
    %0 = vector.load %arg1[%c0, %c0_0, %c0_1] : memref<1x256x49xbf16, #tpu.memory_space<vmem>>, vector<1x256x49xbf16>
    %1 = vector.shape_cast %0 : vector<1x256x49xbf16> to vector<256x49xbf16>
    %c0_2 = arith.constant 0 : index
    %c0_3 = arith.constant 0 : index
    %2 = vector.load %arg2[%c0_2, %c0_3] : memref<49x8xbf16, #tpu.memory_space<vmem>>, vector<49x8xbf16>
    %cst = arith.constant dense<0.000000e+00> : vector<256x8xf32>
    %3 = tpu.matmul %1, %2, %cst {dimension_numbers = #tpu.dot_dimension_numbers<[1], [0], [0], [1], [0, 0, 1, 1], [], []>} : vector<256x49xbf16>, vector<49x8xbf16>, vector<256x8xf32> -> vector<256x8xf32>
    %c0_4 = arith.constant 0 : index
    %c0_5 = arith.constant 0 : index
    %4 = vector.load %arg3[%c0_4, %c0_5] : memref<1x8xf32, #tpu.memory_space<vmem>>, vector<1x8xf32>
    %5 = vector.broadcast %4 : vector<1x8xf32> to vector<256x8xf32>
    %6 = arith.mulf %3, %5 : vector<256x8xf32>
    %c0_6 = arith.constant 0 : index
    %c0_7 = arith.constant 0 : index
    %7 = vector.load %arg4[%c0_6, %c0_7] : memref<1x8xf32, #tpu.memory_space<vmem>>, vector<1x8xf32>
    %8 = vector.broadcast %7 : vector<1x8xf32> to vector<256x8xf32>
    %9 = arith.addf %6, %8 : vector<256x8xf32>
    %cst_8 = arith.constant 0.000000e+00 : f32
    %10 = vector.broadcast %cst_8 : f32 to vector<256x8xf32>
    %11 = arith.maximumf %9, %10 : vector<256x8xf32>
    %12 = arith.truncf %11 : vector<256x8xf32> to vector<256x8xbf16>
    %c0_9 = arith.constant 0 : index
    %c0_10 = arith.constant 0 : index
    %13 = vector.load %arg6[%c0_9, %c0_10] : memref<256x8xbf16, #tpu.memory_space<vmem>>, vector<256x8xbf16>
    tpu.vector_store %arg6[%c0_9, %c0_10], %12 {strides = array<i32>} : memref<256x8xbf16, #tpu.memory_space<vmem>>, vector<256x8xbf16>,
    %14 = tpu.iota {dimensions = array<i32: 0>} : vector<64x8xi32>
    %c7_i32 = arith.constant 7 : i32
    %15 = vector.broadcast %c7_i32 : i32 to vector<64x8xi32>
    %16 = arith.andi %14, %15 : vector<64x8xi32>
    %c3_i32 = arith.constant 3 : i32
    %17 = vector.broadcast %c3_i32 : i32 to vector<64x8xi32>
    %18 = arith.shrsi %14, %17 : vector<64x8xi32>
    %c1_i32 = arith.constant 1 : i32
    %19 = vector.broadcast %c1_i32 : i32 to vector<64x8xi32>
    %20 = arith.cmpi sge, %16, %19 : vector<64x8xi32>
    %c1_i32_11 = arith.constant 1 : i32
    %21 = vector.broadcast %c1_i32_11 : i32 to vector<64x8xi32>
    %22 = arith.cmpi sge, %18, %21 : vector<64x8xi32>
    %cst_12 = arith.constant 0.000000e+00 : bf16
    %23 = vector.broadcast %cst_12 : bf16 to vector<64x8xbf16>
    %c0_13 = arith.constant 0 : index
    %c0_14 = arith.constant 0 : index
    %24 = vector.load %arg6[%c0_13, %c0_14] : memref<256x8xbf16, #tpu.memory_space<vmem>>, vector<64x8xbf16>
    %c64 = arith.constant 64 : index
    %c0_15 = arith.constant 0 : index
    %25 = vector.load %arg6[%c64, %c0_15] : memref<256x8xbf16, #tpu.memory_space<vmem>>, vector<64x8xbf16>
    %26 = arith.maximumf %24, %25 : vector<64x8xbf16>
    %c63 = arith.constant 63 : index
    %c0_16 = arith.constant 0 : index
    %27 = vector.load %arg6[%c63, %c0_16] : memref<256x8xbf16, #tpu.memory_space<vmem>>, vector<64x8xbf16>
    %28 = arith.select %20, %27, %23 : vector<64x8xi1>, vector<64x8xbf16>
    %29 = arith.maximumf %26, %28 : vector<64x8xbf16>
    %c128 = arith.constant 128 : index
    %c0_17 = arith.constant 0 : index
    %30 = vector.load %arg6[%c128, %c0_17] : memref<256x8xbf16, #tpu.memory_space<vmem>>, vector<64x8xbf16>
    %31 = arith.maximumf %29, %30 : vector<64x8xbf16>
    %c120 = arith.constant 120 : index
    %c0_18 = arith.constant 0 : index
    %32 = vector.load %arg6[%c120, %c0_18] : memref<256x8xbf16, #tpu.memory_space<vmem>>, vector<64x8xbf16>
    %33 = arith.select %22, %32, %23 : vector<64x8xi1>, vector<64x8xbf16>
    %34 = arith.maximumf %31, %33 : vector<64x8xbf16>
    %c192 = arith.constant 192 : index
    %c0_19 = arith.constant 0 : index
    %35 = vector.load %arg6[%c192, %c0_19] : memref<256x8xbf16, #tpu.memory_space<vmem>>, vector<64x8xbf16>
    %36 = arith.maximumf %34, %35 : vector<64x8xbf16>
    %c191 = arith.constant 191 : index
    %c0_20 = arith.constant 0 : index
    %37 = vector.load %arg6[%c191, %c0_20] : memref<256x8xbf16, #tpu.memory_space<vmem>>, vector<64x8xbf16>
    %38 = arith.select %20, %37, %23 : vector<64x8xi1>, vector<64x8xbf16>
    %39 = arith.maximumf %36, %38 : vector<64x8xbf16>
    %c184 = arith.constant 184 : index
    %c0_21 = arith.constant 0 : index
    %40 = vector.load %arg6[%c184, %c0_21] : memref<256x8xbf16, #tpu.memory_space<vmem>>, vector<64x8xbf16>
    %41 = arith.select %22, %40, %23 : vector<64x8xi1>, vector<64x8xbf16>
    %42 = arith.maximumf %39, %41 : vector<64x8xbf16>
    %43 = arith.andi %22, %20 : vector<64x8xi1>
    %c183 = arith.constant 183 : index
    %c0_22 = arith.constant 0 : index
    %44 = vector.load %arg6[%c183, %c0_22] : memref<256x8xbf16, #tpu.memory_space<vmem>>, vector<64x8xbf16>
    %45 = arith.select %43, %44, %23 : vector<64x8xi1>, vector<64x8xbf16>
    %46 = arith.maximumf %42, %45 : vector<64x8xbf16>
    %c0_23 = arith.constant 0 : index
    %c0_24 = arith.constant 0 : index
    %c0_25 = arith.constant 0 : index
    %47 = vector.load %arg5[%c0_23, %c0_24, %c0_25] : memref<1x64x8xbf16, #tpu.memory_space<vmem>>, vector<1x64x8xbf16>
    %48 = vector.shape_cast %47 : vector<1x64x8xbf16> to vector<64x8xbf16>
    %49 = vector.shape_cast %46 : vector<64x8xbf16> to vector<1x64x8xbf16>
    tpu.vector_store %arg5[%c0_23, %c0_24, %c0_25], %49 {strides = array<i32>} : memref<1x64x8xbf16, #tpu.memory_space<vmem>>, vector<1x64x8xbf16>,
    return
  }
  func.func @transform_0(%arg0: i32) -> (i32, i32, i32) {
    %c0_i32 = arith.constant 0 : i32
    %c0_i32_0 = arith.constant 0 : i32
    %c0_i32_1 = arith.constant 0 : i32
    return %arg0, %c0_i32, %c0_i32_0 : i32, i32, i32
  }
  func.func @transform_1(%arg0: i32) -> (i32, i32) {
    %c0_i32 = arith.constant 0 : i32
    %c0_i32_0 = arith.constant 0 : i32
    %c0_i32_1 = arith.constant 0 : i32
    return %c0_i32, %c0_i32_0 : i32, i32
  }
  func.func @transform_2(%arg0: i32) -> (i32, i32) {
    %c0_i32 = arith.constant 0 : i32
    %c0_i32_0 = arith.constant 0 : i32
    %c0_i32_1 = arith.constant 0 : i32
    return %c0_i32, %c0_i32_0 : i32, i32
  }
  func.func @transform_3(%arg0: i32) -> (i32, i32) {
    %c0_i32 = arith.constant 0 : i32
    %c0_i32_0 = arith.constant 0 : i32
    %c0_i32_1 = arith.constant 0 : i32
    return %c0_i32, %c0_i32_0 : i32, i32
  }
  func.func @transform_4(%arg0: i32) -> (i32, i32, i32) {
    %c0_i32 = arith.constant 0 : i32
    %c0_i32_0 = arith.constant 0 : i32
    %c0_i32_1 = arith.constant 0 : i32
    return %arg0, %c0_i32, %c0_i32_0 : i32, i32, i32
  }
}

module attributes {stable_mosaic.version = 11 : i64} {
  func.func @kernel(%arg0: i32, %arg1: memref<1x64x8xbf16, #tpu.memory_space<vmem>>, %arg2: memref<3x3x8x8xbf16, #tpu.memory_space<vmem>>, %arg3: memref<1x8xf32, #tpu.memory_space<vmem>>, %arg4: memref<1x8xf32, #tpu.memory_space<vmem>>, %arg5: memref<3x3x8x8xbf16, #tpu.memory_space<vmem>>, %arg6: memref<1x8xf32, #tpu.memory_space<vmem>>, %arg7: memref<1x8xf32, #tpu.memory_space<vmem>>, %arg8: memref<1x64x8xbf16, #tpu.memory_space<vmem>>, %arg9: memref<96x8xbf16, #tpu.memory_space<vmem>>, %arg10: memref<96x8xbf16, #tpu.memory_space<vmem>>) attributes {dimension_semantics = [#tpu.dimension_semantics<parallel>], iteration_bounds = array<i64: 2>, scalar_prefetch = 0 : i64, scratch_operands = 2 : i64, tpu.core_type = #tpu.core_type<tc>, window_params = [{transform_indices = @transform_0, window_bounds = array<i64: 1, 64, 8>}, {pipeline_mode = #tpu.pipeline_mode<synchronous>, transform_indices = @transform_1, window_bounds = array<i64: 3, 3, 8, 8>}, {pipeline_mode = #tpu.pipeline_mode<synchronous>, transform_indices = @transform_2, window_bounds = array<i64: 1, 8>}, {pipeline_mode = #tpu.pipeline_mode<synchronous>, transform_indices = @transform_3, window_bounds = array<i64: 1, 8>}, {pipeline_mode = #tpu.pipeline_mode<synchronous>, transform_indices = @transform_4, window_bounds = array<i64: 3, 3, 8, 8>}, {pipeline_mode = #tpu.pipeline_mode<synchronous>, transform_indices = @transform_5, window_bounds = array<i64: 1, 8>}, {pipeline_mode = #tpu.pipeline_mode<synchronous>, transform_indices = @transform_6, window_bounds = array<i64: 1, 8>}, {transform_indices = @transform_7, window_bounds = array<i64: 1, 64, 8>}]} {
    %c0_i32 = arith.constant 0 : i32
    %0 = arith.cmpi eq, %arg0, %c0_i32 : i32
    %1 = arith.extui %0 : i1 to i32
    %c0_i32_0 = arith.constant 0 : i32
    %2 = arith.cmpi ne, %1, %c0_i32_0 : i32
    scf.if %2 {
      %cst_149 = arith.constant 0.000000e+00 : bf16
      %156 = vector.broadcast %cst_149 : bf16 to vector<96x8xbf16>
      %c0_150 = arith.constant 0 : index
      %c0_151 = arith.constant 0 : index
      %157 = vector.load %arg9[%c0_150, %c0_151] : memref<96x8xbf16, #tpu.memory_space<vmem>>, vector<96x8xbf16>
      tpu.vector_store %arg9[%c0_150, %c0_151], %156 {strides = array<i32>} : memref<96x8xbf16, #tpu.memory_space<vmem>>, vector<96x8xbf16>,
      %cst_152 = arith.constant 0.000000e+00 : bf16
      %158 = vector.broadcast %cst_152 : bf16 to vector<96x8xbf16>
      %c0_153 = arith.constant 0 : index
      %c0_154 = arith.constant 0 : index
      %159 = vector.load %arg10[%c0_153, %c0_154] : memref<96x8xbf16, #tpu.memory_space<vmem>>, vector<96x8xbf16>
      tpu.vector_store %arg10[%c0_153, %c0_154], %158 {strides = array<i32>} : memref<96x8xbf16, #tpu.memory_space<vmem>>, vector<96x8xbf16>,
    } else {
    }
    %c0 = arith.constant 0 : index
    %c0_1 = arith.constant 0 : index
    %c0_2 = arith.constant 0 : index
    %3 = vector.load %arg1[%c0, %c0_1, %c0_2] : memref<1x64x8xbf16, #tpu.memory_space<vmem>>, vector<1x64x8xbf16>
    %4 = vector.shape_cast %3 : vector<1x64x8xbf16> to vector<64x8xbf16>
    %c16 = arith.constant 16 : index
    %c0_3 = arith.constant 0 : index
    %5 = vector.load %arg9[%c16, %c0_3] : memref<96x8xbf16, #tpu.memory_space<vmem>>, vector<64x8xbf16>
    tpu.vector_store %arg9[%c16, %c0_3], %4 {strides = array<i32>} : memref<96x8xbf16, #tpu.memory_space<vmem>>, vector<64x8xbf16>,
    %6 = tpu.iota {dimensions = array<i32: 0>} : vector<64x8xi32>
    %c7_i32 = arith.constant 7 : i32
    %7 = vector.broadcast %c7_i32 : i32 to vector<64x8xi32>
    %8 = arith.andi %6, %7 : vector<64x8xi32>
    %c1_i32 = arith.constant 1 : i32
    %9 = vector.broadcast %c1_i32 : i32 to vector<64x8xi32>
    %10 = arith.cmpi sge, %8, %9 : vector<64x8xi32>
    %c6_i32 = arith.constant 6 : i32
    %11 = vector.broadcast %c6_i32 : i32 to vector<64x8xi32>
    %12 = arith.cmpi sle, %8, %11 : vector<64x8xi32>
    %c7 = arith.constant 7 : index
    %c0_4 = arith.constant 0 : index
    %13 = vector.load %arg9[%c7, %c0_4] : memref<96x8xbf16, #tpu.memory_space<vmem>>, vector<64x8xbf16>
    %cst = arith.constant 0.000000e+00 : bf16
    %14 = vector.broadcast %cst : bf16 to vector<64x8xbf16>
    %15 = arith.select %10, %13, %14 : vector<64x8xi1>, vector<64x8xbf16>
    %c0_5 = arith.constant 0 : index
    %c0_6 = arith.constant 0 : index
    %c0_7 = arith.constant 0 : index
    %c0_8 = arith.constant 0 : index
    %16 = vector.load %arg2[%c0_5, %c0_6, %c0_7, %c0_8] : memref<3x3x8x8xbf16, #tpu.memory_space<vmem>>, vector<1x1x8x8xbf16>
    %17 = vector.shape_cast %16 : vector<1x1x8x8xbf16> to vector<8x8xbf16>
    %cst_9 = arith.constant dense<0.000000e+00> : vector<64x8xf32>
    %18 = tpu.matmul %15, %17, %cst_9 {dimension_numbers = #tpu.dot_dimension_numbers<[1], [0], [0], [1], [0, 0, 1, 1], [], []>} : vector<64x8xbf16>, vector<8x8xbf16>, vector<64x8xf32> -> vector<64x8xf32>
    %c8 = arith.constant 8 : index
    %c0_10 = arith.constant 0 : index
    %19 = vector.load %arg9[%c8, %c0_10] : memref<96x8xbf16, #tpu.memory_space<vmem>>, vector<64x8xbf16>
    %c0_11 = arith.constant 0 : index
    %c1 = arith.constant 1 : index
    %c0_12 = arith.constant 0 : index
    %c0_13 = arith.constant 0 : index
    %20 = vector.load %arg2[%c0_11, %c1, %c0_12, %c0_13] : memref<3x3x8x8xbf16, #tpu.memory_space<vmem>>, vector<1x1x8x8xbf16>
    %21 = vector.shape_cast %20 : vector<1x1x8x8xbf16> to vector<8x8xbf16>
    %cst_14 = arith.constant dense<0.000000e+00> : vector<64x8xf32>
    %22 = tpu.matmul %19, %21, %cst_14 {dimension_numbers = #tpu.dot_dimension_numbers<[1], [0], [0], [1], [0, 0, 1, 1], [], []>} : vector<64x8xbf16>, vector<8x8xbf16>, vector<64x8xf32> -> vector<64x8xf32>
    %23 = arith.addf %18, %22 : vector<64x8xf32>
    %c9 = arith.constant 9 : index
    %c0_15 = arith.constant 0 : index
    %24 = vector.load %arg9[%c9, %c0_15] : memref<96x8xbf16, #tpu.memory_space<vmem>>, vector<64x8xbf16>
    %cst_16 = arith.constant 0.000000e+00 : bf16
    %25 = vector.broadcast %cst_16 : bf16 to vector<64x8xbf16>
    %26 = arith.select %12, %24, %25 : vector<64x8xi1>, vector<64x8xbf16>
    %c0_17 = arith.constant 0 : index
    %c2 = arith.constant 2 : index
    %c0_18 = arith.constant 0 : index
    %c0_19 = arith.constant 0 : index
    %27 = vector.load %arg2[%c0_17, %c2, %c0_18, %c0_19] : memref<3x3x8x8xbf16, #tpu.memory_space<vmem>>, vector<1x1x8x8xbf16>
    %28 = vector.shape_cast %27 : vector<1x1x8x8xbf16> to vector<8x8xbf16>
    %cst_20 = arith.constant dense<0.000000e+00> : vector<64x8xf32>
    %29 = tpu.matmul %26, %28, %cst_20 {dimension_numbers = #tpu.dot_dimension_numbers<[1], [0], [0], [1], [0, 0, 1, 1], [], []>} : vector<64x8xbf16>, vector<8x8xbf16>, vector<64x8xf32> -> vector<64x8xf32>
    %30 = arith.addf %23, %29 : vector<64x8xf32>
    %c15 = arith.constant 15 : index
    %c0_21 = arith.constant 0 : index
    %31 = vector.load %arg9[%c15, %c0_21] : memref<96x8xbf16, #tpu.memory_space<vmem>>, vector<64x8xbf16>
    %cst_22 = arith.constant 0.000000e+00 : bf16
    %32 = vector.broadcast %cst_22 : bf16 to vector<64x8xbf16>
    %33 = arith.select %10, %31, %32 : vector<64x8xi1>, vector<64x8xbf16>
    %c1_23 = arith.constant 1 : index
    %c0_24 = arith.constant 0 : index
    %c0_25 = arith.constant 0 : index
    %c0_26 = arith.constant 0 : index
    %34 = vector.load %arg2[%c1_23, %c0_24, %c0_25, %c0_26] : memref<3x3x8x8xbf16, #tpu.memory_space<vmem>>, vector<1x1x8x8xbf16>
    %35 = vector.shape_cast %34 : vector<1x1x8x8xbf16> to vector<8x8xbf16>
    %cst_27 = arith.constant dense<0.000000e+00> : vector<64x8xf32>
    %36 = tpu.matmul %33, %35, %cst_27 {dimension_numbers = #tpu.dot_dimension_numbers<[1], [0], [0], [1], [0, 0, 1, 1], [], []>} : vector<64x8xbf16>, vector<8x8xbf16>, vector<64x8xf32> -> vector<64x8xf32>
    %37 = arith.addf %30, %36 : vector<64x8xf32>
    %c16_28 = arith.constant 16 : index
    %c0_29 = arith.constant 0 : index
    %38 = vector.load %arg9[%c16_28, %c0_29] : memref<96x8xbf16, #tpu.memory_space<vmem>>, vector<64x8xbf16>
    %c1_30 = arith.constant 1 : index
    %c1_31 = arith.constant 1 : index
    %c0_32 = arith.constant 0 : index
    %c0_33 = arith.constant 0 : index
    %39 = vector.load %arg2[%c1_30, %c1_31, %c0_32, %c0_33] : memref<3x3x8x8xbf16, #tpu.memory_space<vmem>>, vector<1x1x8x8xbf16>
    %40 = vector.shape_cast %39 : vector<1x1x8x8xbf16> to vector<8x8xbf16>
    %cst_34 = arith.constant dense<0.000000e+00> : vector<64x8xf32>
    %41 = tpu.matmul %38, %40, %cst_34 {dimension_numbers = #tpu.dot_dimension_numbers<[1], [0], [0], [1], [0, 0, 1, 1], [], []>} : vector<64x8xbf16>, vector<8x8xbf16>, vector<64x8xf32> -> vector<64x8xf32>
    %42 = arith.addf %37, %41 : vector<64x8xf32>
    %c17 = arith.constant 17 : index
    %c0_35 = arith.constant 0 : index
    %43 = vector.load %arg9[%c17, %c0_35] : memref<96x8xbf16, #tpu.memory_space<vmem>>, vector<64x8xbf16>
    %cst_36 = arith.constant 0.000000e+00 : bf16
    %44 = vector.broadcast %cst_36 : bf16 to vector<64x8xbf16>
    %45 = arith.select %12, %43, %44 : vector<64x8xi1>, vector<64x8xbf16>
    %c1_37 = arith.constant 1 : index
    %c2_38 = arith.constant 2 : index
    %c0_39 = arith.constant 0 : index
    %c0_40 = arith.constant 0 : index
    %46 = vector.load %arg2[%c1_37, %c2_38, %c0_39, %c0_40] : memref<3x3x8x8xbf16, #tpu.memory_space<vmem>>, vector<1x1x8x8xbf16>
    %47 = vector.shape_cast %46 : vector<1x1x8x8xbf16> to vector<8x8xbf16>
    %cst_41 = arith.constant dense<0.000000e+00> : vector<64x8xf32>
    %48 = tpu.matmul %45, %47, %cst_41 {dimension_numbers = #tpu.dot_dimension_numbers<[1], [0], [0], [1], [0, 0, 1, 1], [], []>} : vector<64x8xbf16>, vector<8x8xbf16>, vector<64x8xf32> -> vector<64x8xf32>
    %49 = arith.addf %42, %48 : vector<64x8xf32>
    %c23 = arith.constant 23 : index
    %c0_42 = arith.constant 0 : index
    %50 = vector.load %arg9[%c23, %c0_42] : memref<96x8xbf16, #tpu.memory_space<vmem>>, vector<64x8xbf16>
    %cst_43 = arith.constant 0.000000e+00 : bf16
    %51 = vector.broadcast %cst_43 : bf16 to vector<64x8xbf16>
    %52 = arith.select %10, %50, %51 : vector<64x8xi1>, vector<64x8xbf16>
    %c2_44 = arith.constant 2 : index
    %c0_45 = arith.constant 0 : index
    %c0_46 = arith.constant 0 : index
    %c0_47 = arith.constant 0 : index
    %53 = vector.load %arg2[%c2_44, %c0_45, %c0_46, %c0_47] : memref<3x3x8x8xbf16, #tpu.memory_space<vmem>>, vector<1x1x8x8xbf16>
    %54 = vector.shape_cast %53 : vector<1x1x8x8xbf16> to vector<8x8xbf16>
    %cst_48 = arith.constant dense<0.000000e+00> : vector<64x8xf32>
    %55 = tpu.matmul %52, %54, %cst_48 {dimension_numbers = #tpu.dot_dimension_numbers<[1], [0], [0], [1], [0, 0, 1, 1], [], []>} : vector<64x8xbf16>, vector<8x8xbf16>, vector<64x8xf32> -> vector<64x8xf32>
    %56 = arith.addf %49, %55 : vector<64x8xf32>
    %c24 = arith.constant 24 : index
    %c0_49 = arith.constant 0 : index
    %57 = vector.load %arg9[%c24, %c0_49] : memref<96x8xbf16, #tpu.memory_space<vmem>>, vector<64x8xbf16>
    %c2_50 = arith.constant 2 : index
    %c1_51 = arith.constant 1 : index
    %c0_52 = arith.constant 0 : index
    %c0_53 = arith.constant 0 : index
    %58 = vector.load %arg2[%c2_50, %c1_51, %c0_52, %c0_53] : memref<3x3x8x8xbf16, #tpu.memory_space<vmem>>, vector<1x1x8x8xbf16>
    %59 = vector.shape_cast %58 : vector<1x1x8x8xbf16> to vector<8x8xbf16>
    %cst_54 = arith.constant dense<0.000000e+00> : vector<64x8xf32>
    %60 = tpu.matmul %57, %59, %cst_54 {dimension_numbers = #tpu.dot_dimension_numbers<[1], [0], [0], [1], [0, 0, 1, 1], [], []>} : vector<64x8xbf16>, vector<8x8xbf16>, vector<64x8xf32> -> vector<64x8xf32>
    %61 = arith.addf %56, %60 : vector<64x8xf32>
    %c25 = arith.constant 25 : index
    %c0_55 = arith.constant 0 : index
    %62 = vector.load %arg9[%c25, %c0_55] : memref<96x8xbf16, #tpu.memory_space<vmem>>, vector<64x8xbf16>
    %cst_56 = arith.constant 0.000000e+00 : bf16
    %63 = vector.broadcast %cst_56 : bf16 to vector<64x8xbf16>
    %64 = arith.select %12, %62, %63 : vector<64x8xi1>, vector<64x8xbf16>
    %c2_57 = arith.constant 2 : index
    %c2_58 = arith.constant 2 : index
    %c0_59 = arith.constant 0 : index
    %c0_60 = arith.constant 0 : index
    %65 = vector.load %arg2[%c2_57, %c2_58, %c0_59, %c0_60] : memref<3x3x8x8xbf16, #tpu.memory_space<vmem>>, vector<1x1x8x8xbf16>
    %66 = vector.shape_cast %65 : vector<1x1x8x8xbf16> to vector<8x8xbf16>
    %cst_61 = arith.constant dense<0.000000e+00> : vector<64x8xf32>
    %67 = tpu.matmul %64, %66, %cst_61 {dimension_numbers = #tpu.dot_dimension_numbers<[1], [0], [0], [1], [0, 0, 1, 1], [], []>} : vector<64x8xbf16>, vector<8x8xbf16>, vector<64x8xf32> -> vector<64x8xf32>
    %68 = arith.addf %61, %67 : vector<64x8xf32>
    %c0_62 = arith.constant 0 : index
    %c0_63 = arith.constant 0 : index
    %69 = vector.load %arg3[%c0_62, %c0_63] : memref<1x8xf32, #tpu.memory_space<vmem>>, vector<1x8xf32>
    %70 = vector.broadcast %69 : vector<1x8xf32> to vector<64x8xf32>
    %71 = arith.mulf %68, %70 : vector<64x8xf32>
    %c0_64 = arith.constant 0 : index
    %c0_65 = arith.constant 0 : index
    %72 = vector.load %arg4[%c0_64, %c0_65] : memref<1x8xf32, #tpu.memory_space<vmem>>, vector<1x8xf32>
    %73 = vector.broadcast %72 : vector<1x8xf32> to vector<64x8xf32>
    %74 = arith.addf %71, %73 : vector<64x8xf32>
    %cst_66 = arith.constant 0.000000e+00 : f32
    %75 = vector.broadcast %cst_66 : f32 to vector<64x8xf32>
    %76 = arith.maximumf %74, %75 : vector<64x8xf32>
    %77 = arith.truncf %76 : vector<64x8xf32> to vector<64x8xbf16>
    %c16_67 = arith.constant 16 : index
    %c0_68 = arith.constant 0 : index
    %78 = vector.load %arg10[%c16_67, %c0_68] : memref<96x8xbf16, #tpu.memory_space<vmem>>, vector<64x8xbf16>
    tpu.vector_store %arg10[%c16_67, %c0_68], %77 {strides = array<i32>} : memref<96x8xbf16, #tpu.memory_space<vmem>>, vector<64x8xbf16>,
    %79 = tpu.iota {dimensions = array<i32: 0>} : vector<64x8xi32>
    %c7_i32_69 = arith.constant 7 : i32
    %80 = vector.broadcast %c7_i32_69 : i32 to vector<64x8xi32>
    %81 = arith.andi %79, %80 : vector<64x8xi32>
    %c1_i32_70 = arith.constant 1 : i32
    %82 = vector.broadcast %c1_i32_70 : i32 to vector<64x8xi32>
    %83 = arith.cmpi sge, %81, %82 : vector<64x8xi32>
    %c6_i32_71 = arith.constant 6 : i32
    %84 = vector.broadcast %c6_i32_71 : i32 to vector<64x8xi32>
    %85 = arith.cmpi sle, %81, %84 : vector<64x8xi32>
    %c7_72 = arith.constant 7 : index
    %c0_73 = arith.constant 0 : index
    %86 = vector.load %arg10[%c7_72, %c0_73] : memref<96x8xbf16, #tpu.memory_space<vmem>>, vector<64x8xbf16>
    %cst_74 = arith.constant 0.000000e+00 : bf16
    %87 = vector.broadcast %cst_74 : bf16 to vector<64x8xbf16>
    %88 = arith.select %83, %86, %87 : vector<64x8xi1>, vector<64x8xbf16>
    %c0_75 = arith.constant 0 : index
    %c0_76 = arith.constant 0 : index
    %c0_77 = arith.constant 0 : index
    %c0_78 = arith.constant 0 : index
    %89 = vector.load %arg5[%c0_75, %c0_76, %c0_77, %c0_78] : memref<3x3x8x8xbf16, #tpu.memory_space<vmem>>, vector<1x1x8x8xbf16>
    %90 = vector.shape_cast %89 : vector<1x1x8x8xbf16> to vector<8x8xbf16>
    %cst_79 = arith.constant dense<0.000000e+00> : vector<64x8xf32>
    %91 = tpu.matmul %88, %90, %cst_79 {dimension_numbers = #tpu.dot_dimension_numbers<[1], [0], [0], [1], [0, 0, 1, 1], [], []>} : vector<64x8xbf16>, vector<8x8xbf16>, vector<64x8xf32> -> vector<64x8xf32>
    %c8_80 = arith.constant 8 : index
    %c0_81 = arith.constant 0 : index
    %92 = vector.load %arg10[%c8_80, %c0_81] : memref<96x8xbf16, #tpu.memory_space<vmem>>, vector<64x8xbf16>
    %c0_82 = arith.constant 0 : index
    %c1_83 = arith.constant 1 : index
    %c0_84 = arith.constant 0 : index
    %c0_85 = arith.constant 0 : index
    %93 = vector.load %arg5[%c0_82, %c1_83, %c0_84, %c0_85] : memref<3x3x8x8xbf16, #tpu.memory_space<vmem>>, vector<1x1x8x8xbf16>
    %94 = vector.shape_cast %93 : vector<1x1x8x8xbf16> to vector<8x8xbf16>
    %cst_86 = arith.constant dense<0.000000e+00> : vector<64x8xf32>
    %95 = tpu.matmul %92, %94, %cst_86 {dimension_numbers = #tpu.dot_dimension_numbers<[1], [0], [0], [1], [0, 0, 1, 1], [], []>} : vector<64x8xbf16>, vector<8x8xbf16>, vector<64x8xf32> -> vector<64x8xf32>
    %96 = arith.addf %91, %95 : vector<64x8xf32>
    %c9_87 = arith.constant 9 : index
    %c0_88 = arith.constant 0 : index
    %97 = vector.load %arg10[%c9_87, %c0_88] : memref<96x8xbf16, #tpu.memory_space<vmem>>, vector<64x8xbf16>
    %cst_89 = arith.constant 0.000000e+00 : bf16
    %98 = vector.broadcast %cst_89 : bf16 to vector<64x8xbf16>
    %99 = arith.select %85, %97, %98 : vector<64x8xi1>, vector<64x8xbf16>
    %c0_90 = arith.constant 0 : index
    %c2_91 = arith.constant 2 : index
    %c0_92 = arith.constant 0 : index
    %c0_93 = arith.constant 0 : index
    %100 = vector.load %arg5[%c0_90, %c2_91, %c0_92, %c0_93] : memref<3x3x8x8xbf16, #tpu.memory_space<vmem>>, vector<1x1x8x8xbf16>
    %101 = vector.shape_cast %100 : vector<1x1x8x8xbf16> to vector<8x8xbf16>
    %cst_94 = arith.constant dense<0.000000e+00> : vector<64x8xf32>
    %102 = tpu.matmul %99, %101, %cst_94 {dimension_numbers = #tpu.dot_dimension_numbers<[1], [0], [0], [1], [0, 0, 1, 1], [], []>} : vector<64x8xbf16>, vector<8x8xbf16>, vector<64x8xf32> -> vector<64x8xf32>
    %103 = arith.addf %96, %102 : vector<64x8xf32>
    %c15_95 = arith.constant 15 : index
    %c0_96 = arith.constant 0 : index
    %104 = vector.load %arg10[%c15_95, %c0_96] : memref<96x8xbf16, #tpu.memory_space<vmem>>, vector<64x8xbf16>
    %cst_97 = arith.constant 0.000000e+00 : bf16
    %105 = vector.broadcast %cst_97 : bf16 to vector<64x8xbf16>
    %106 = arith.select %83, %104, %105 : vector<64x8xi1>, vector<64x8xbf16>
    %c1_98 = arith.constant 1 : index
    %c0_99 = arith.constant 0 : index
    %c0_100 = arith.constant 0 : index
    %c0_101 = arith.constant 0 : index
    %107 = vector.load %arg5[%c1_98, %c0_99, %c0_100, %c0_101] : memref<3x3x8x8xbf16, #tpu.memory_space<vmem>>, vector<1x1x8x8xbf16>
    %108 = vector.shape_cast %107 : vector<1x1x8x8xbf16> to vector<8x8xbf16>
    %cst_102 = arith.constant dense<0.000000e+00> : vector<64x8xf32>
    %109 = tpu.matmul %106, %108, %cst_102 {dimension_numbers = #tpu.dot_dimension_numbers<[1], [0], [0], [1], [0, 0, 1, 1], [], []>} : vector<64x8xbf16>, vector<8x8xbf16>, vector<64x8xf32> -> vector<64x8xf32>
    %110 = arith.addf %103, %109 : vector<64x8xf32>
    %c16_103 = arith.constant 16 : index
    %c0_104 = arith.constant 0 : index
    %111 = vector.load %arg10[%c16_103, %c0_104] : memref<96x8xbf16, #tpu.memory_space<vmem>>, vector<64x8xbf16>
    %c1_105 = arith.constant 1 : index
    %c1_106 = arith.constant 1 : index
    %c0_107 = arith.constant 0 : index
    %c0_108 = arith.constant 0 : index
    %112 = vector.load %arg5[%c1_105, %c1_106, %c0_107, %c0_108] : memref<3x3x8x8xbf16, #tpu.memory_space<vmem>>, vector<1x1x8x8xbf16>
    %113 = vector.shape_cast %112 : vector<1x1x8x8xbf16> to vector<8x8xbf16>
    %cst_109 = arith.constant dense<0.000000e+00> : vector<64x8xf32>
    %114 = tpu.matmul %111, %113, %cst_109 {dimension_numbers = #tpu.dot_dimension_numbers<[1], [0], [0], [1], [0, 0, 1, 1], [], []>} : vector<64x8xbf16>, vector<8x8xbf16>, vector<64x8xf32> -> vector<64x8xf32>
    %115 = arith.addf %110, %114 : vector<64x8xf32>
    %c17_110 = arith.constant 17 : index
    %c0_111 = arith.constant 0 : index
    %116 = vector.load %arg10[%c17_110, %c0_111] : memref<96x8xbf16, #tpu.memory_space<vmem>>, vector<64x8xbf16>
    %cst_112 = arith.constant 0.000000e+00 : bf16
    %117 = vector.broadcast %cst_112 : bf16 to vector<64x8xbf16>
    %118 = arith.select %85, %116, %117 : vector<64x8xi1>, vector<64x8xbf16>
    %c1_113 = arith.constant 1 : index
    %c2_114 = arith.constant 2 : index
    %c0_115 = arith.constant 0 : index
    %c0_116 = arith.constant 0 : index
    %119 = vector.load %arg5[%c1_113, %c2_114, %c0_115, %c0_116] : memref<3x3x8x8xbf16, #tpu.memory_space<vmem>>, vector<1x1x8x8xbf16>
    %120 = vector.shape_cast %119 : vector<1x1x8x8xbf16> to vector<8x8xbf16>
    %cst_117 = arith.constant dense<0.000000e+00> : vector<64x8xf32>
    %121 = tpu.matmul %118, %120, %cst_117 {dimension_numbers = #tpu.dot_dimension_numbers<[1], [0], [0], [1], [0, 0, 1, 1], [], []>} : vector<64x8xbf16>, vector<8x8xbf16>, vector<64x8xf32> -> vector<64x8xf32>
    %122 = arith.addf %115, %121 : vector<64x8xf32>
    %c23_118 = arith.constant 23 : index
    %c0_119 = arith.constant 0 : index
    %123 = vector.load %arg10[%c23_118, %c0_119] : memref<96x8xbf16, #tpu.memory_space<vmem>>, vector<64x8xbf16>
    %cst_120 = arith.constant 0.000000e+00 : bf16
    %124 = vector.broadcast %cst_120 : bf16 to vector<64x8xbf16>
    %125 = arith.select %83, %123, %124 : vector<64x8xi1>, vector<64x8xbf16>
    %c2_121 = arith.constant 2 : index
    %c0_122 = arith.constant 0 : index
    %c0_123 = arith.constant 0 : index
    %c0_124 = arith.constant 0 : index
    %126 = vector.load %arg5[%c2_121, %c0_122, %c0_123, %c0_124] : memref<3x3x8x8xbf16, #tpu.memory_space<vmem>>, vector<1x1x8x8xbf16>
    %127 = vector.shape_cast %126 : vector<1x1x8x8xbf16> to vector<8x8xbf16>
    %cst_125 = arith.constant dense<0.000000e+00> : vector<64x8xf32>
    %128 = tpu.matmul %125, %127, %cst_125 {dimension_numbers = #tpu.dot_dimension_numbers<[1], [0], [0], [1], [0, 0, 1, 1], [], []>} : vector<64x8xbf16>, vector<8x8xbf16>, vector<64x8xf32> -> vector<64x8xf32>
    %129 = arith.addf %122, %128 : vector<64x8xf32>
    %c24_126 = arith.constant 24 : index
    %c0_127 = arith.constant 0 : index
    %130 = vector.load %arg10[%c24_126, %c0_127] : memref<96x8xbf16, #tpu.memory_space<vmem>>, vector<64x8xbf16>
    %c2_128 = arith.constant 2 : index
    %c1_129 = arith.constant 1 : index
    %c0_130 = arith.constant 0 : index
    %c0_131 = arith.constant 0 : index
    %131 = vector.load %arg5[%c2_128, %c1_129, %c0_130, %c0_131] : memref<3x3x8x8xbf16, #tpu.memory_space<vmem>>, vector<1x1x8x8xbf16>
    %132 = vector.shape_cast %131 : vector<1x1x8x8xbf16> to vector<8x8xbf16>
    %cst_132 = arith.constant dense<0.000000e+00> : vector<64x8xf32>
    %133 = tpu.matmul %130, %132, %cst_132 {dimension_numbers = #tpu.dot_dimension_numbers<[1], [0], [0], [1], [0, 0, 1, 1], [], []>} : vector<64x8xbf16>, vector<8x8xbf16>, vector<64x8xf32> -> vector<64x8xf32>
    %134 = arith.addf %129, %133 : vector<64x8xf32>
    %c25_133 = arith.constant 25 : index
    %c0_134 = arith.constant 0 : index
    %135 = vector.load %arg10[%c25_133, %c0_134] : memref<96x8xbf16, #tpu.memory_space<vmem>>, vector<64x8xbf16>
    %cst_135 = arith.constant 0.000000e+00 : bf16
    %136 = vector.broadcast %cst_135 : bf16 to vector<64x8xbf16>
    %137 = arith.select %85, %135, %136 : vector<64x8xi1>, vector<64x8xbf16>
    %c2_136 = arith.constant 2 : index
    %c2_137 = arith.constant 2 : index
    %c0_138 = arith.constant 0 : index
    %c0_139 = arith.constant 0 : index
    %138 = vector.load %arg5[%c2_136, %c2_137, %c0_138, %c0_139] : memref<3x3x8x8xbf16, #tpu.memory_space<vmem>>, vector<1x1x8x8xbf16>
    %139 = vector.shape_cast %138 : vector<1x1x8x8xbf16> to vector<8x8xbf16>
    %cst_140 = arith.constant dense<0.000000e+00> : vector<64x8xf32>
    %140 = tpu.matmul %137, %139, %cst_140 {dimension_numbers = #tpu.dot_dimension_numbers<[1], [0], [0], [1], [0, 0, 1, 1], [], []>} : vector<64x8xbf16>, vector<8x8xbf16>, vector<64x8xf32> -> vector<64x8xf32>
    %141 = arith.addf %134, %140 : vector<64x8xf32>
    %c0_141 = arith.constant 0 : index
    %c0_142 = arith.constant 0 : index
    %142 = vector.load %arg6[%c0_141, %c0_142] : memref<1x8xf32, #tpu.memory_space<vmem>>, vector<1x8xf32>
    %143 = vector.broadcast %142 : vector<1x8xf32> to vector<64x8xf32>
    %144 = arith.mulf %141, %143 : vector<64x8xf32>
    %c0_143 = arith.constant 0 : index
    %c0_144 = arith.constant 0 : index
    %145 = vector.load %arg7[%c0_143, %c0_144] : memref<1x8xf32, #tpu.memory_space<vmem>>, vector<1x8xf32>
    %146 = vector.broadcast %145 : vector<1x8xf32> to vector<64x8xf32>
    %147 = arith.addf %144, %146 : vector<64x8xf32>
    %148 = arith.extf %4 : vector<64x8xbf16> to vector<64x8xf32>
    %149 = arith.addf %147, %148 : vector<64x8xf32>
    %cst_145 = arith.constant 0.000000e+00 : f32
    %150 = vector.broadcast %cst_145 : f32 to vector<64x8xf32>
    %151 = arith.maximumf %149, %150 : vector<64x8xf32>
    %152 = arith.truncf %151 : vector<64x8xf32> to vector<64x8xbf16>
    %c0_146 = arith.constant 0 : index
    %c0_147 = arith.constant 0 : index
    %c0_148 = arith.constant 0 : index
    %153 = vector.load %arg8[%c0_146, %c0_147, %c0_148] : memref<1x64x8xbf16, #tpu.memory_space<vmem>>, vector<1x64x8xbf16>
    %154 = vector.shape_cast %153 : vector<1x64x8xbf16> to vector<64x8xbf16>
    %155 = vector.shape_cast %152 : vector<64x8xbf16> to vector<1x64x8xbf16>
    tpu.vector_store %arg8[%c0_146, %c0_147, %c0_148], %155 {strides = array<i32>} : memref<1x64x8xbf16, #tpu.memory_space<vmem>>, vector<1x64x8xbf16>,
    return
  }
  func.func @transform_0(%arg0: i32) -> (i32, i32, i32) {
    %c0_i32 = arith.constant 0 : i32
    %c0_i32_0 = arith.constant 0 : i32
    %c0_i32_1 = arith.constant 0 : i32
    return %arg0, %c0_i32, %c0_i32_0 : i32, i32, i32
  }
  func.func @transform_1(%arg0: i32) -> (i32, i32, i32, i32) {
    %c0_i32 = arith.constant 0 : i32
    %c0_i32_0 = arith.constant 0 : i32
    %c0_i32_1 = arith.constant 0 : i32
    %c0_i32_2 = arith.constant 0 : i32
    %c0_i32_3 = arith.constant 0 : i32
    return %c0_i32, %c0_i32_0, %c0_i32_1, %c0_i32_2 : i32, i32, i32, i32
  }
  func.func @transform_2(%arg0: i32) -> (i32, i32) {
    %c0_i32 = arith.constant 0 : i32
    %c0_i32_0 = arith.constant 0 : i32
    %c0_i32_1 = arith.constant 0 : i32
    return %c0_i32, %c0_i32_0 : i32, i32
  }
  func.func @transform_3(%arg0: i32) -> (i32, i32) {
    %c0_i32 = arith.constant 0 : i32
    %c0_i32_0 = arith.constant 0 : i32
    %c0_i32_1 = arith.constant 0 : i32
    return %c0_i32, %c0_i32_0 : i32, i32
  }
  func.func @transform_4(%arg0: i32) -> (i32, i32, i32, i32) {
    %c0_i32 = arith.constant 0 : i32
    %c0_i32_0 = arith.constant 0 : i32
    %c0_i32_1 = arith.constant 0 : i32
    %c0_i32_2 = arith.constant 0 : i32
    %c0_i32_3 = arith.constant 0 : i32
    return %c0_i32, %c0_i32_0, %c0_i32_1, %c0_i32_2 : i32, i32, i32, i32
  }
  func.func @transform_5(%arg0: i32) -> (i32, i32) {
    %c0_i32 = arith.constant 0 : i32
    %c0_i32_0 = arith.constant 0 : i32
    %c0_i32_1 = arith.constant 0 : i32
    return %c0_i32, %c0_i32_0 : i32, i32
  }
  func.func @transform_6(%arg0: i32) -> (i32, i32) {
    %c0_i32 = arith.constant 0 : i32
    %c0_i32_0 = arith.constant 0 : i32
    %c0_i32_1 = arith.constant 0 : i32
    return %c0_i32, %c0_i32_0 : i32, i32
  }
  func.func @transform_7(%arg0: i32) -> (i32, i32, i32) {
    %c0_i32 = arith.constant 0 : i32
    %c0_i32_0 = arith.constant 0 : i32
    %c0_i32_1 = arith.constant 0 : i32
    return %arg0, %c0_i32, %c0_i32_0 : i32, i32, i32
  }
}

module attributes {stable_mosaic.version = 11 : i64} {
  func.func @kernel(%arg0: i32, %arg1: memref<1x16x72xbf16, #tpu.memory_space<vmem>>, %arg2: memref<1x16x8xbf16, #tpu.memory_space<vmem>>, %arg3: memref<72x16xbf16, #tpu.memory_space<vmem>>, %arg4: memref<1x16xf32, #tpu.memory_space<vmem>>, %arg5: memref<1x16xf32, #tpu.memory_space<vmem>>, %arg6: memref<3x3x16x16xbf16, #tpu.memory_space<vmem>>, %arg7: memref<1x16xf32, #tpu.memory_space<vmem>>, %arg8: memref<1x16xf32, #tpu.memory_space<vmem>>, %arg9: memref<8x16xbf16, #tpu.memory_space<vmem>>, %arg10: memref<1x16xf32, #tpu.memory_space<vmem>>, %arg11: memref<1x16xf32, #tpu.memory_space<vmem>>, %arg12: memref<1x16x16xbf16, #tpu.memory_space<vmem>>, %arg13: memref<32x16xbf16, #tpu.memory_space<vmem>>) attributes {dimension_semantics = [#tpu.dimension_semantics<parallel>], iteration_bounds = array<i64: 2>, scalar_prefetch = 0 : i64, scratch_operands = 1 : i64, tpu.core_type = #tpu.core_type<tc>, window_params = [{transform_indices = @transform_0, window_bounds = array<i64: 1, 16, 72>}, {transform_indices = @transform_1, window_bounds = array<i64: 1, 16, 8>}, {pipeline_mode = #tpu.pipeline_mode<synchronous>, transform_indices = @transform_2, window_bounds = array<i64: 72, 16>}, {pipeline_mode = #tpu.pipeline_mode<synchronous>, transform_indices = @transform_3, window_bounds = array<i64: 1, 16>}, {pipeline_mode = #tpu.pipeline_mode<synchronous>, transform_indices = @transform_4, window_bounds = array<i64: 1, 16>}, {pipeline_mode = #tpu.pipeline_mode<synchronous>, transform_indices = @transform_5, window_bounds = array<i64: 3, 3, 16, 16>}, {pipeline_mode = #tpu.pipeline_mode<synchronous>, transform_indices = @transform_6, window_bounds = array<i64: 1, 16>}, {pipeline_mode = #tpu.pipeline_mode<synchronous>, transform_indices = @transform_7, window_bounds = array<i64: 1, 16>}, {pipeline_mode = #tpu.pipeline_mode<synchronous>, transform_indices = @transform_8, window_bounds = array<i64: 8, 16>}, {pipeline_mode = #tpu.pipeline_mode<synchronous>, transform_indices = @transform_9, window_bounds = array<i64: 1, 16>}, {pipeline_mode = #tpu.pipeline_mode<synchronous>, transform_indices = @transform_10, window_bounds = array<i64: 1, 16>}, {transform_indices = @transform_11, window_bounds = array<i64: 1, 16, 16>}]} {
    %c0_i32 = arith.constant 0 : i32
    %0 = arith.cmpi eq, %arg0, %c0_i32 : i32
    %1 = arith.extui %0 : i1 to i32
    %c0_i32_0 = arith.constant 0 : i32
    %2 = arith.cmpi ne, %1, %c0_i32_0 : i32
    scf.if %2 {
      %cst_88 = arith.constant 0.000000e+00 : bf16
      %103 = vector.broadcast %cst_88 : bf16 to vector<32x16xbf16>
      %c0_89 = arith.constant 0 : index
      %c0_90 = arith.constant 0 : index
      %104 = vector.load %arg13[%c0_89, %c0_90] : memref<32x16xbf16, #tpu.memory_space<vmem>>, vector<32x16xbf16>
      tpu.vector_store %arg13[%c0_89, %c0_90], %103 {strides = array<i32>} : memref<32x16xbf16, #tpu.memory_space<vmem>>, vector<32x16xbf16>,
    } else {
    }
    %c0 = arith.constant 0 : index
    %c0_1 = arith.constant 0 : index
    %c0_2 = arith.constant 0 : index
    %3 = vector.load %arg1[%c0, %c0_1, %c0_2] : memref<1x16x72xbf16, #tpu.memory_space<vmem>>, vector<1x16x72xbf16>
    %4 = vector.shape_cast %3 : vector<1x16x72xbf16> to vector<16x72xbf16>
    %c0_3 = arith.constant 0 : index
    %c0_4 = arith.constant 0 : index
    %5 = vector.load %arg3[%c0_3, %c0_4] : memref<72x16xbf16, #tpu.memory_space<vmem>>, vector<72x16xbf16>
    %cst = arith.constant dense<0.000000e+00> : vector<16x16xf32>
    %6 = tpu.matmul %4, %5, %cst {dimension_numbers = #tpu.dot_dimension_numbers<[1], [0], [0], [1], [0, 0, 1, 1], [], []>} : vector<16x72xbf16>, vector<72x16xbf16>, vector<16x16xf32> -> vector<16x16xf32>
    %c0_5 = arith.constant 0 : index
    %c0_6 = arith.constant 0 : index
    %7 = vector.load %arg4[%c0_5, %c0_6] : memref<1x16xf32, #tpu.memory_space<vmem>>, vector<1x16xf32>
    %8 = vector.broadcast %7 : vector<1x16xf32> to vector<16x16xf32>
    %9 = arith.mulf %6, %8 : vector<16x16xf32>
    %c0_7 = arith.constant 0 : index
    %c0_8 = arith.constant 0 : index
    %10 = vector.load %arg5[%c0_7, %c0_8] : memref<1x16xf32, #tpu.memory_space<vmem>>, vector<1x16xf32>
    %11 = vector.broadcast %10 : vector<1x16xf32> to vector<16x16xf32>
    %12 = arith.addf %9, %11 : vector<16x16xf32>
    %cst_9 = arith.constant 0.000000e+00 : f32
    %13 = vector.broadcast %cst_9 : f32 to vector<16x16xf32>
    %14 = arith.maximumf %12, %13 : vector<16x16xf32>
    %15 = arith.truncf %14 : vector<16x16xf32> to vector<16x16xbf16>
    %c8 = arith.constant 8 : index
    %c0_10 = arith.constant 0 : index
    %16 = vector.load %arg13[%c8, %c0_10] : memref<32x16xbf16, #tpu.memory_space<vmem>>, vector<16x16xbf16>
    tpu.vector_store %arg13[%c8, %c0_10], %15 {strides = array<i32>} : memref<32x16xbf16, #tpu.memory_space<vmem>>, vector<16x16xbf16>,
    %17 = tpu.iota {dimensions = array<i32: 0>} : vector<16x16xi32>
    %c3_i32 = arith.constant 3 : i32
    %18 = vector.broadcast %c3_i32 : i32 to vector<16x16xi32>
    %19 = arith.andi %17, %18 : vector<16x16xi32>
    %c1_i32 = arith.constant 1 : i32
    %20 = vector.broadcast %c1_i32 : i32 to vector<16x16xi32>
    %21 = arith.cmpi sge, %19, %20 : vector<16x16xi32>
    %c2_i32 = arith.constant 2 : i32
    %22 = vector.broadcast %c2_i32 : i32 to vector<16x16xi32>
    %23 = arith.cmpi sle, %19, %22 : vector<16x16xi32>
    %c3 = arith.constant 3 : index
    %c0_11 = arith.constant 0 : index
    %24 = vector.load %arg13[%c3, %c0_11] : memref<32x16xbf16, #tpu.memory_space<vmem>>, vector<16x16xbf16>
    %cst_12 = arith.constant 0.000000e+00 : bf16
    %25 = vector.broadcast %cst_12 : bf16 to vector<16x16xbf16>
    %26 = arith.select %21, %24, %25 : vector<16x16xi1>, vector<16x16xbf16>
    %c0_13 = arith.constant 0 : index
    %c0_14 = arith.constant 0 : index
    %c0_15 = arith.constant 0 : index
    %c0_16 = arith.constant 0 : index
    %27 = vector.load %arg6[%c0_13, %c0_14, %c0_15, %c0_16] : memref<3x3x16x16xbf16, #tpu.memory_space<vmem>>, vector<1x1x16x16xbf16>
    %28 = vector.shape_cast %27 : vector<1x1x16x16xbf16> to vector<16x16xbf16>
    %cst_17 = arith.constant dense<0.000000e+00> : vector<16x16xf32>
    %29 = tpu.matmul %26, %28, %cst_17 {dimension_numbers = #tpu.dot_dimension_numbers<[1], [0], [0], [1], [0, 0, 1, 1], [], []>} : vector<16x16xbf16>, vector<16x16xbf16>, vector<16x16xf32> -> vector<16x16xf32>
    %c4 = arith.constant 4 : index
    %c0_18 = arith.constant 0 : index
    %30 = vector.load %arg13[%c4, %c0_18] : memref<32x16xbf16, #tpu.memory_space<vmem>>, vector<16x16xbf16>
    %c0_19 = arith.constant 0 : index
    %c1 = arith.constant 1 : index
    %c0_20 = arith.constant 0 : index
    %c0_21 = arith.constant 0 : index
    %31 = vector.load %arg6[%c0_19, %c1, %c0_20, %c0_21] : memref<3x3x16x16xbf16, #tpu.memory_space<vmem>>, vector<1x1x16x16xbf16>
    %32 = vector.shape_cast %31 : vector<1x1x16x16xbf16> to vector<16x16xbf16>
    %cst_22 = arith.constant dense<0.000000e+00> : vector<16x16xf32>
    %33 = tpu.matmul %30, %32, %cst_22 {dimension_numbers = #tpu.dot_dimension_numbers<[1], [0], [0], [1], [0, 0, 1, 1], [], []>} : vector<16x16xbf16>, vector<16x16xbf16>, vector<16x16xf32> -> vector<16x16xf32>
    %34 = arith.addf %29, %33 : vector<16x16xf32>
    %c5 = arith.constant 5 : index
    %c0_23 = arith.constant 0 : index
    %35 = vector.load %arg13[%c5, %c0_23] : memref<32x16xbf16, #tpu.memory_space<vmem>>, vector<16x16xbf16>
    %cst_24 = arith.constant 0.000000e+00 : bf16
    %36 = vector.broadcast %cst_24 : bf16 to vector<16x16xbf16>
    %37 = arith.select %23, %35, %36 : vector<16x16xi1>, vector<16x16xbf16>
    %c0_25 = arith.constant 0 : index
    %c2 = arith.constant 2 : index
    %c0_26 = arith.constant 0 : index
    %c0_27 = arith.constant 0 : index
    %38 = vector.load %arg6[%c0_25, %c2, %c0_26, %c0_27] : memref<3x3x16x16xbf16, #tpu.memory_space<vmem>>, vector<1x1x16x16xbf16>
    %39 = vector.shape_cast %38 : vector<1x1x16x16xbf16> to vector<16x16xbf16>
    %cst_28 = arith.constant dense<0.000000e+00> : vector<16x16xf32>
    %40 = tpu.matmul %37, %39, %cst_28 {dimension_numbers = #tpu.dot_dimension_numbers<[1], [0], [0], [1], [0, 0, 1, 1], [], []>} : vector<16x16xbf16>, vector<16x16xbf16>, vector<16x16xf32> -> vector<16x16xf32>
    %41 = arith.addf %34, %40 : vector<16x16xf32>
    %c7 = arith.constant 7 : index
    %c0_29 = arith.constant 0 : index
    %42 = vector.load %arg13[%c7, %c0_29] : memref<32x16xbf16, #tpu.memory_space<vmem>>, vector<16x16xbf16>
    %cst_30 = arith.constant 0.000000e+00 : bf16
    %43 = vector.broadcast %cst_30 : bf16 to vector<16x16xbf16>
    %44 = arith.select %21, %42, %43 : vector<16x16xi1>, vector<16x16xbf16>
    %c1_31 = arith.constant 1 : index
    %c0_32 = arith.constant 0 : index
    %c0_33 = arith.constant 0 : index
    %c0_34 = arith.constant 0 : index
    %45 = vector.load %arg6[%c1_31, %c0_32, %c0_33, %c0_34] : memref<3x3x16x16xbf16, #tpu.memory_space<vmem>>, vector<1x1x16x16xbf16>
    %46 = vector.shape_cast %45 : vector<1x1x16x16xbf16> to vector<16x16xbf16>
    %cst_35 = arith.constant dense<0.000000e+00> : vector<16x16xf32>
    %47 = tpu.matmul %44, %46, %cst_35 {dimension_numbers = #tpu.dot_dimension_numbers<[1], [0], [0], [1], [0, 0, 1, 1], [], []>} : vector<16x16xbf16>, vector<16x16xbf16>, vector<16x16xf32> -> vector<16x16xf32>
    %48 = arith.addf %41, %47 : vector<16x16xf32>
    %c8_36 = arith.constant 8 : index
    %c0_37 = arith.constant 0 : index
    %49 = vector.load %arg13[%c8_36, %c0_37] : memref<32x16xbf16, #tpu.memory_space<vmem>>, vector<16x16xbf16>
    %c1_38 = arith.constant 1 : index
    %c1_39 = arith.constant 1 : index
    %c0_40 = arith.constant 0 : index
    %c0_41 = arith.constant 0 : index
    %50 = vector.load %arg6[%c1_38, %c1_39, %c0_40, %c0_41] : memref<3x3x16x16xbf16, #tpu.memory_space<vmem>>, vector<1x1x16x16xbf16>
    %51 = vector.shape_cast %50 : vector<1x1x16x16xbf16> to vector<16x16xbf16>
    %cst_42 = arith.constant dense<0.000000e+00> : vector<16x16xf32>
    %52 = tpu.matmul %49, %51, %cst_42 {dimension_numbers = #tpu.dot_dimension_numbers<[1], [0], [0], [1], [0, 0, 1, 1], [], []>} : vector<16x16xbf16>, vector<16x16xbf16>, vector<16x16xf32> -> vector<16x16xf32>
    %53 = arith.addf %48, %52 : vector<16x16xf32>
    %c9 = arith.constant 9 : index
    %c0_43 = arith.constant 0 : index
    %54 = vector.load %arg13[%c9, %c0_43] : memref<32x16xbf16, #tpu.memory_space<vmem>>, vector<16x16xbf16>
    %cst_44 = arith.constant 0.000000e+00 : bf16
    %55 = vector.broadcast %cst_44 : bf16 to vector<16x16xbf16>
    %56 = arith.select %23, %54, %55 : vector<16x16xi1>, vector<16x16xbf16>
    %c1_45 = arith.constant 1 : index
    %c2_46 = arith.constant 2 : index
    %c0_47 = arith.constant 0 : index
    %c0_48 = arith.constant 0 : index
    %57 = vector.load %arg6[%c1_45, %c2_46, %c0_47, %c0_48] : memref<3x3x16x16xbf16, #tpu.memory_space<vmem>>, vector<1x1x16x16xbf16>
    %58 = vector.shape_cast %57 : vector<1x1x16x16xbf16> to vector<16x16xbf16>
    %cst_49 = arith.constant dense<0.000000e+00> : vector<16x16xf32>
    %59 = tpu.matmul %56, %58, %cst_49 {dimension_numbers = #tpu.dot_dimension_numbers<[1], [0], [0], [1], [0, 0, 1, 1], [], []>} : vector<16x16xbf16>, vector<16x16xbf16>, vector<16x16xf32> -> vector<16x16xf32>
    %60 = arith.addf %53, %59 : vector<16x16xf32>
    %c11 = arith.constant 11 : index
    %c0_50 = arith.constant 0 : index
    %61 = vector.load %arg13[%c11, %c0_50] : memref<32x16xbf16, #tpu.memory_space<vmem>>, vector<16x16xbf16>
    %cst_51 = arith.constant 0.000000e+00 : bf16
    %62 = vector.broadcast %cst_51 : bf16 to vector<16x16xbf16>
    %63 = arith.select %21, %61, %62 : vector<16x16xi1>, vector<16x16xbf16>
    %c2_52 = arith.constant 2 : index
    %c0_53 = arith.constant 0 : index
    %c0_54 = arith.constant 0 : index
    %c0_55 = arith.constant 0 : index
    %64 = vector.load %arg6[%c2_52, %c0_53, %c0_54, %c0_55] : memref<3x3x16x16xbf16, #tpu.memory_space<vmem>>, vector<1x1x16x16xbf16>
    %65 = vector.shape_cast %64 : vector<1x1x16x16xbf16> to vector<16x16xbf16>
    %cst_56 = arith.constant dense<0.000000e+00> : vector<16x16xf32>
    %66 = tpu.matmul %63, %65, %cst_56 {dimension_numbers = #tpu.dot_dimension_numbers<[1], [0], [0], [1], [0, 0, 1, 1], [], []>} : vector<16x16xbf16>, vector<16x16xbf16>, vector<16x16xf32> -> vector<16x16xf32>
    %67 = arith.addf %60, %66 : vector<16x16xf32>
    %c12 = arith.constant 12 : index
    %c0_57 = arith.constant 0 : index
    %68 = vector.load %arg13[%c12, %c0_57] : memref<32x16xbf16, #tpu.memory_space<vmem>>, vector<16x16xbf16>
    %c2_58 = arith.constant 2 : index
    %c1_59 = arith.constant 1 : index
    %c0_60 = arith.constant 0 : index
    %c0_61 = arith.constant 0 : index
    %69 = vector.load %arg6[%c2_58, %c1_59, %c0_60, %c0_61] : memref<3x3x16x16xbf16, #tpu.memory_space<vmem>>, vector<1x1x16x16xbf16>
    %70 = vector.shape_cast %69 : vector<1x1x16x16xbf16> to vector<16x16xbf16>
    %cst_62 = arith.constant dense<0.000000e+00> : vector<16x16xf32>
    %71 = tpu.matmul %68, %70, %cst_62 {dimension_numbers = #tpu.dot_dimension_numbers<[1], [0], [0], [1], [0, 0, 1, 1], [], []>} : vector<16x16xbf16>, vector<16x16xbf16>, vector<16x16xf32> -> vector<16x16xf32>
    %72 = arith.addf %67, %71 : vector<16x16xf32>
    %c13 = arith.constant 13 : index
    %c0_63 = arith.constant 0 : index
    %73 = vector.load %arg13[%c13, %c0_63] : memref<32x16xbf16, #tpu.memory_space<vmem>>, vector<16x16xbf16>
    %cst_64 = arith.constant 0.000000e+00 : bf16
    %74 = vector.broadcast %cst_64 : bf16 to vector<16x16xbf16>
    %75 = arith.select %23, %73, %74 : vector<16x16xi1>, vector<16x16xbf16>
    %c2_65 = arith.constant 2 : index
    %c2_66 = arith.constant 2 : index
    %c0_67 = arith.constant 0 : index
    %c0_68 = arith.constant 0 : index
    %76 = vector.load %arg6[%c2_65, %c2_66, %c0_67, %c0_68] : memref<3x3x16x16xbf16, #tpu.memory_space<vmem>>, vector<1x1x16x16xbf16>
    %77 = vector.shape_cast %76 : vector<1x1x16x16xbf16> to vector<16x16xbf16>
    %cst_69 = arith.constant dense<0.000000e+00> : vector<16x16xf32>
    %78 = tpu.matmul %75, %77, %cst_69 {dimension_numbers = #tpu.dot_dimension_numbers<[1], [0], [0], [1], [0, 0, 1, 1], [], []>} : vector<16x16xbf16>, vector<16x16xbf16>, vector<16x16xf32> -> vector<16x16xf32>
    %79 = arith.addf %72, %78 : vector<16x16xf32>
    %c0_70 = arith.constant 0 : index
    %c0_71 = arith.constant 0 : index
    %80 = vector.load %arg7[%c0_70, %c0_71] : memref<1x16xf32, #tpu.memory_space<vmem>>, vector<1x16xf32>
    %81 = vector.broadcast %80 : vector<1x16xf32> to vector<16x16xf32>
    %82 = arith.mulf %79, %81 : vector<16x16xf32>
    %c0_72 = arith.constant 0 : index
    %c0_73 = arith.constant 0 : index
    %83 = vector.load %arg8[%c0_72, %c0_73] : memref<1x16xf32, #tpu.memory_space<vmem>>, vector<1x16xf32>
    %84 = vector.broadcast %83 : vector<1x16xf32> to vector<16x16xf32>
    %85 = arith.addf %82, %84 : vector<16x16xf32>
    %c0_74 = arith.constant 0 : index
    %c0_75 = arith.constant 0 : index
    %c0_76 = arith.constant 0 : index
    %86 = vector.load %arg2[%c0_74, %c0_75, %c0_76] : memref<1x16x8xbf16, #tpu.memory_space<vmem>>, vector<1x16x8xbf16>
    %87 = vector.shape_cast %86 : vector<1x16x8xbf16> to vector<16x8xbf16>
    %c0_77 = arith.constant 0 : index
    %c0_78 = arith.constant 0 : index
    %88 = vector.load %arg9[%c0_77, %c0_78] : memref<8x16xbf16, #tpu.memory_space<vmem>>, vector<8x16xbf16>
    %cst_79 = arith.constant dense<0.000000e+00> : vector<16x16xf32>
    %89 = tpu.matmul %87, %88, %cst_79 {dimension_numbers = #tpu.dot_dimension_numbers<[1], [0], [0], [1], [0, 0, 1, 1], [], []>} : vector<16x8xbf16>, vector<8x16xbf16>, vector<16x16xf32> -> vector<16x16xf32>
    %c0_80 = arith.constant 0 : index
    %c0_81 = arith.constant 0 : index
    %90 = vector.load %arg10[%c0_80, %c0_81] : memref<1x16xf32, #tpu.memory_space<vmem>>, vector<1x16xf32>
    %91 = vector.broadcast %90 : vector<1x16xf32> to vector<16x16xf32>
    %92 = arith.mulf %89, %91 : vector<16x16xf32>
    %c0_82 = arith.constant 0 : index
    %c0_83 = arith.constant 0 : index
    %93 = vector.load %arg11[%c0_82, %c0_83] : memref<1x16xf32, #tpu.memory_space<vmem>>, vector<1x16xf32>
    %94 = vector.broadcast %93 : vector<1x16xf32> to vector<16x16xf32>
    %95 = arith.addf %92, %94 : vector<16x16xf32>
    %96 = arith.addf %85, %95 : vector<16x16xf32>
    %cst_84 = arith.constant 0.000000e+00 : f32
    %97 = vector.broadcast %cst_84 : f32 to vector<16x16xf32>
    %98 = arith.maximumf %96, %97 : vector<16x16xf32>
    %99 = arith.truncf %98 : vector<16x16xf32> to vector<16x16xbf16>
    %c0_85 = arith.constant 0 : index
    %c0_86 = arith.constant 0 : index
    %c0_87 = arith.constant 0 : index
    %100 = vector.load %arg12[%c0_85, %c0_86, %c0_87] : memref<1x16x16xbf16, #tpu.memory_space<vmem>>, vector<1x16x16xbf16>
    %101 = vector.shape_cast %100 : vector<1x16x16xbf16> to vector<16x16xbf16>
    %102 = vector.shape_cast %99 : vector<16x16xbf16> to vector<1x16x16xbf16>
    tpu.vector_store %arg12[%c0_85, %c0_86, %c0_87], %102 {strides = array<i32>} : memref<1x16x16xbf16, #tpu.memory_space<vmem>>, vector<1x16x16xbf16>,
    return
  }
  func.func @transform_0(%arg0: i32) -> (i32, i32, i32) {
    %c0_i32 = arith.constant 0 : i32
    %c0_i32_0 = arith.constant 0 : i32
    %c0_i32_1 = arith.constant 0 : i32
    return %arg0, %c0_i32, %c0_i32_0 : i32, i32, i32
  }
  func.func @transform_1(%arg0: i32) -> (i32, i32, i32) {
    %c0_i32 = arith.constant 0 : i32
    %c0_i32_0 = arith.constant 0 : i32
    %c0_i32_1 = arith.constant 0 : i32
    return %arg0, %c0_i32, %c0_i32_0 : i32, i32, i32
  }
  func.func @transform_2(%arg0: i32) -> (i32, i32) {
    %c0_i32 = arith.constant 0 : i32
    %c0_i32_0 = arith.constant 0 : i32
    %c0_i32_1 = arith.constant 0 : i32
    return %c0_i32, %c0_i32_0 : i32, i32
  }
  func.func @transform_3(%arg0: i32) -> (i32, i32) {
    %c0_i32 = arith.constant 0 : i32
    %c0_i32_0 = arith.constant 0 : i32
    %c0_i32_1 = arith.constant 0 : i32
    return %c0_i32, %c0_i32_0 : i32, i32
  }
  func.func @transform_4(%arg0: i32) -> (i32, i32) {
    %c0_i32 = arith.constant 0 : i32
    %c0_i32_0 = arith.constant 0 : i32
    %c0_i32_1 = arith.constant 0 : i32
    return %c0_i32, %c0_i32_0 : i32, i32
  }
  func.func @transform_5(%arg0: i32) -> (i32, i32, i32, i32) {
    %c0_i32 = arith.constant 0 : i32
    %c0_i32_0 = arith.constant 0 : i32
    %c0_i32_1 = arith.constant 0 : i32
    %c0_i32_2 = arith.constant 0 : i32
    %c0_i32_3 = arith.constant 0 : i32
    return %c0_i32, %c0_i32_0, %c0_i32_1, %c0_i32_2 : i32, i32, i32, i32
  }
  func.func @transform_6(%arg0: i32) -> (i32, i32) {
    %c0_i32 = arith.constant 0 : i32
    %c0_i32_0 = arith.constant 0 : i32
    %c0_i32_1 = arith.constant 0 : i32
    return %c0_i32, %c0_i32_0 : i32, i32
  }
  func.func @transform_7(%arg0: i32) -> (i32, i32) {
    %c0_i32 = arith.constant 0 : i32
    %c0_i32_0 = arith.constant 0 : i32
    %c0_i32_1 = arith.constant 0 : i32
    return %c0_i32, %c0_i32_0 : i32, i32
  }
  func.func @transform_8(%arg0: i32) -> (i32, i32) {
    %c0_i32 = arith.constant 0 : i32
    %c0_i32_0 = arith.constant 0 : i32
    %c0_i32_1 = arith.constant 0 : i32
    return %c0_i32, %c0_i32_0 : i32, i32
  }
  func.func @transform_9(%arg0: i32) -> (i32, i32) {
    %c0_i32 = arith.constant 0 : i32
    %c0_i32_0 = arith.constant 0 : i32
    %c0_i32_1 = arith.constant 0 : i32
    return %c0_i32, %c0_i32_0 : i32, i32
  }
  func.func @transform_10(%arg0: i32) -> (i32, i32) {
    %c0_i32 = arith.constant 0 : i32
    %c0_i32_0 = arith.constant 0 : i32
    %c0_i32_1 = arith.constant 0 : i32
    return %c0_i32, %c0_i32_0 : i32, i32
  }
  func.func @transform_11(%arg0: i32) -> (i32, i32, i32) {
    %c0_i32 = arith.constant 0 : i32
    %c0_i32_0 = arith.constant 0 : i32
    %c0_i32_1 = arith.constant 0 : i32
    return %arg0, %c0_i32, %c0_i32_0 : i32, i32, i32
  }
}

module attributes {stable_mosaic.version = 11 : i64} {
  func.func @kernel(%arg0: i32, %arg1: memref<1x16x16xbf16, #tpu.memory_space<vmem>>, %arg2: memref<3x3x16x16xbf16, #tpu.memory_space<vmem>>, %arg3: memref<1x16xf32, #tpu.memory_space<vmem>>, %arg4: memref<1x16xf32, #tpu.memory_space<vmem>>, %arg5: memref<3x3x16x16xbf16, #tpu.memory_space<vmem>>, %arg6: memref<1x16xf32, #tpu.memory_space<vmem>>, %arg7: memref<1x16xf32, #tpu.memory_space<vmem>>, %arg8: memref<1x16x16xbf16, #tpu.memory_space<vmem>>, %arg9: memref<32x16xbf16, #tpu.memory_space<vmem>>, %arg10: memref<32x16xbf16, #tpu.memory_space<vmem>>) attributes {dimension_semantics = [#tpu.dimension_semantics<parallel>], iteration_bounds = array<i64: 2>, scalar_prefetch = 0 : i64, scratch_operands = 2 : i64, tpu.core_type = #tpu.core_type<tc>, window_params = [{transform_indices = @transform_0, window_bounds = array<i64: 1, 16, 16>}, {pipeline_mode = #tpu.pipeline_mode<synchronous>, transform_indices = @transform_1, window_bounds = array<i64: 3, 3, 16, 16>}, {pipeline_mode = #tpu.pipeline_mode<synchronous>, transform_indices = @transform_2, window_bounds = array<i64: 1, 16>}, {pipeline_mode = #tpu.pipeline_mode<synchronous>, transform_indices = @transform_3, window_bounds = array<i64: 1, 16>}, {pipeline_mode = #tpu.pipeline_mode<synchronous>, transform_indices = @transform_4, window_bounds = array<i64: 3, 3, 16, 16>}, {pipeline_mode = #tpu.pipeline_mode<synchronous>, transform_indices = @transform_5, window_bounds = array<i64: 1, 16>}, {pipeline_mode = #tpu.pipeline_mode<synchronous>, transform_indices = @transform_6, window_bounds = array<i64: 1, 16>}, {transform_indices = @transform_7, window_bounds = array<i64: 1, 16, 16>}]} {
    %c0_i32 = arith.constant 0 : i32
    %0 = arith.cmpi eq, %arg0, %c0_i32 : i32
    %1 = arith.extui %0 : i1 to i32
    %c0_i32_0 = arith.constant 0 : i32
    %2 = arith.cmpi ne, %1, %c0_i32_0 : i32
    scf.if %2 {
      %cst_149 = arith.constant 0.000000e+00 : bf16
      %156 = vector.broadcast %cst_149 : bf16 to vector<32x16xbf16>
      %c0_150 = arith.constant 0 : index
      %c0_151 = arith.constant 0 : index
      %157 = vector.load %arg9[%c0_150, %c0_151] : memref<32x16xbf16, #tpu.memory_space<vmem>>, vector<32x16xbf16>
      tpu.vector_store %arg9[%c0_150, %c0_151], %156 {strides = array<i32>} : memref<32x16xbf16, #tpu.memory_space<vmem>>, vector<32x16xbf16>,
      %cst_152 = arith.constant 0.000000e+00 : bf16
      %158 = vector.broadcast %cst_152 : bf16 to vector<32x16xbf16>
      %c0_153 = arith.constant 0 : index
      %c0_154 = arith.constant 0 : index
      %159 = vector.load %arg10[%c0_153, %c0_154] : memref<32x16xbf16, #tpu.memory_space<vmem>>, vector<32x16xbf16>
      tpu.vector_store %arg10[%c0_153, %c0_154], %158 {strides = array<i32>} : memref<32x16xbf16, #tpu.memory_space<vmem>>, vector<32x16xbf16>,
    } else {
    }
    %c0 = arith.constant 0 : index
    %c0_1 = arith.constant 0 : index
    %c0_2 = arith.constant 0 : index
    %3 = vector.load %arg1[%c0, %c0_1, %c0_2] : memref<1x16x16xbf16, #tpu.memory_space<vmem>>, vector<1x16x16xbf16>
    %4 = vector.shape_cast %3 : vector<1x16x16xbf16> to vector<16x16xbf16>
    %c8 = arith.constant 8 : index
    %c0_3 = arith.constant 0 : index
    %5 = vector.load %arg9[%c8, %c0_3] : memref<32x16xbf16, #tpu.memory_space<vmem>>, vector<16x16xbf16>
    tpu.vector_store %arg9[%c8, %c0_3], %4 {strides = array<i32>} : memref<32x16xbf16, #tpu.memory_space<vmem>>, vector<16x16xbf16>,
    %6 = tpu.iota {dimensions = array<i32: 0>} : vector<16x16xi32>
    %c3_i32 = arith.constant 3 : i32
    %7 = vector.broadcast %c3_i32 : i32 to vector<16x16xi32>
    %8 = arith.andi %6, %7 : vector<16x16xi32>
    %c1_i32 = arith.constant 1 : i32
    %9 = vector.broadcast %c1_i32 : i32 to vector<16x16xi32>
    %10 = arith.cmpi sge, %8, %9 : vector<16x16xi32>
    %c2_i32 = arith.constant 2 : i32
    %11 = vector.broadcast %c2_i32 : i32 to vector<16x16xi32>
    %12 = arith.cmpi sle, %8, %11 : vector<16x16xi32>
    %c3 = arith.constant 3 : index
    %c0_4 = arith.constant 0 : index
    %13 = vector.load %arg9[%c3, %c0_4] : memref<32x16xbf16, #tpu.memory_space<vmem>>, vector<16x16xbf16>
    %cst = arith.constant 0.000000e+00 : bf16
    %14 = vector.broadcast %cst : bf16 to vector<16x16xbf16>
    %15 = arith.select %10, %13, %14 : vector<16x16xi1>, vector<16x16xbf16>
    %c0_5 = arith.constant 0 : index
    %c0_6 = arith.constant 0 : index
    %c0_7 = arith.constant 0 : index
    %c0_8 = arith.constant 0 : index
    %16 = vector.load %arg2[%c0_5, %c0_6, %c0_7, %c0_8] : memref<3x3x16x16xbf16, #tpu.memory_space<vmem>>, vector<1x1x16x16xbf16>
    %17 = vector.shape_cast %16 : vector<1x1x16x16xbf16> to vector<16x16xbf16>
    %cst_9 = arith.constant dense<0.000000e+00> : vector<16x16xf32>
    %18 = tpu.matmul %15, %17, %cst_9 {dimension_numbers = #tpu.dot_dimension_numbers<[1], [0], [0], [1], [0, 0, 1, 1], [], []>} : vector<16x16xbf16>, vector<16x16xbf16>, vector<16x16xf32> -> vector<16x16xf32>
    %c4 = arith.constant 4 : index
    %c0_10 = arith.constant 0 : index
    %19 = vector.load %arg9[%c4, %c0_10] : memref<32x16xbf16, #tpu.memory_space<vmem>>, vector<16x16xbf16>
    %c0_11 = arith.constant 0 : index
    %c1 = arith.constant 1 : index
    %c0_12 = arith.constant 0 : index
    %c0_13 = arith.constant 0 : index
    %20 = vector.load %arg2[%c0_11, %c1, %c0_12, %c0_13] : memref<3x3x16x16xbf16, #tpu.memory_space<vmem>>, vector<1x1x16x16xbf16>
    %21 = vector.shape_cast %20 : vector<1x1x16x16xbf16> to vector<16x16xbf16>
    %cst_14 = arith.constant dense<0.000000e+00> : vector<16x16xf32>
    %22 = tpu.matmul %19, %21, %cst_14 {dimension_numbers = #tpu.dot_dimension_numbers<[1], [0], [0], [1], [0, 0, 1, 1], [], []>} : vector<16x16xbf16>, vector<16x16xbf16>, vector<16x16xf32> -> vector<16x16xf32>
    %23 = arith.addf %18, %22 : vector<16x16xf32>
    %c5 = arith.constant 5 : index
    %c0_15 = arith.constant 0 : index
    %24 = vector.load %arg9[%c5, %c0_15] : memref<32x16xbf16, #tpu.memory_space<vmem>>, vector<16x16xbf16>
    %cst_16 = arith.constant 0.000000e+00 : bf16
    %25 = vector.broadcast %cst_16 : bf16 to vector<16x16xbf16>
    %26 = arith.select %12, %24, %25 : vector<16x16xi1>, vector<16x16xbf16>
    %c0_17 = arith.constant 0 : index
    %c2 = arith.constant 2 : index
    %c0_18 = arith.constant 0 : index
    %c0_19 = arith.constant 0 : index
    %27 = vector.load %arg2[%c0_17, %c2, %c0_18, %c0_19] : memref<3x3x16x16xbf16, #tpu.memory_space<vmem>>, vector<1x1x16x16xbf16>
    %28 = vector.shape_cast %27 : vector<1x1x16x16xbf16> to vector<16x16xbf16>
    %cst_20 = arith.constant dense<0.000000e+00> : vector<16x16xf32>
    %29 = tpu.matmul %26, %28, %cst_20 {dimension_numbers = #tpu.dot_dimension_numbers<[1], [0], [0], [1], [0, 0, 1, 1], [], []>} : vector<16x16xbf16>, vector<16x16xbf16>, vector<16x16xf32> -> vector<16x16xf32>
    %30 = arith.addf %23, %29 : vector<16x16xf32>
    %c7 = arith.constant 7 : index
    %c0_21 = arith.constant 0 : index
    %31 = vector.load %arg9[%c7, %c0_21] : memref<32x16xbf16, #tpu.memory_space<vmem>>, vector<16x16xbf16>
    %cst_22 = arith.constant 0.000000e+00 : bf16
    %32 = vector.broadcast %cst_22 : bf16 to vector<16x16xbf16>
    %33 = arith.select %10, %31, %32 : vector<16x16xi1>, vector<16x16xbf16>
    %c1_23 = arith.constant 1 : index
    %c0_24 = arith.constant 0 : index
    %c0_25 = arith.constant 0 : index
    %c0_26 = arith.constant 0 : index
    %34 = vector.load %arg2[%c1_23, %c0_24, %c0_25, %c0_26] : memref<3x3x16x16xbf16, #tpu.memory_space<vmem>>, vector<1x1x16x16xbf16>
    %35 = vector.shape_cast %34 : vector<1x1x16x16xbf16> to vector<16x16xbf16>
    %cst_27 = arith.constant dense<0.000000e+00> : vector<16x16xf32>
    %36 = tpu.matmul %33, %35, %cst_27 {dimension_numbers = #tpu.dot_dimension_numbers<[1], [0], [0], [1], [0, 0, 1, 1], [], []>} : vector<16x16xbf16>, vector<16x16xbf16>, vector<16x16xf32> -> vector<16x16xf32>
    %37 = arith.addf %30, %36 : vector<16x16xf32>
    %c8_28 = arith.constant 8 : index
    %c0_29 = arith.constant 0 : index
    %38 = vector.load %arg9[%c8_28, %c0_29] : memref<32x16xbf16, #tpu.memory_space<vmem>>, vector<16x16xbf16>
    %c1_30 = arith.constant 1 : index
    %c1_31 = arith.constant 1 : index
    %c0_32 = arith.constant 0 : index
    %c0_33 = arith.constant 0 : index
    %39 = vector.load %arg2[%c1_30, %c1_31, %c0_32, %c0_33] : memref<3x3x16x16xbf16, #tpu.memory_space<vmem>>, vector<1x1x16x16xbf16>
    %40 = vector.shape_cast %39 : vector<1x1x16x16xbf16> to vector<16x16xbf16>
    %cst_34 = arith.constant dense<0.000000e+00> : vector<16x16xf32>
    %41 = tpu.matmul %38, %40, %cst_34 {dimension_numbers = #tpu.dot_dimension_numbers<[1], [0], [0], [1], [0, 0, 1, 1], [], []>} : vector<16x16xbf16>, vector<16x16xbf16>, vector<16x16xf32> -> vector<16x16xf32>
    %42 = arith.addf %37, %41 : vector<16x16xf32>
    %c9 = arith.constant 9 : index
    %c0_35 = arith.constant 0 : index
    %43 = vector.load %arg9[%c9, %c0_35] : memref<32x16xbf16, #tpu.memory_space<vmem>>, vector<16x16xbf16>
    %cst_36 = arith.constant 0.000000e+00 : bf16
    %44 = vector.broadcast %cst_36 : bf16 to vector<16x16xbf16>
    %45 = arith.select %12, %43, %44 : vector<16x16xi1>, vector<16x16xbf16>
    %c1_37 = arith.constant 1 : index
    %c2_38 = arith.constant 2 : index
    %c0_39 = arith.constant 0 : index
    %c0_40 = arith.constant 0 : index
    %46 = vector.load %arg2[%c1_37, %c2_38, %c0_39, %c0_40] : memref<3x3x16x16xbf16, #tpu.memory_space<vmem>>, vector<1x1x16x16xbf16>
    %47 = vector.shape_cast %46 : vector<1x1x16x16xbf16> to vector<16x16xbf16>
    %cst_41 = arith.constant dense<0.000000e+00> : vector<16x16xf32>
    %48 = tpu.matmul %45, %47, %cst_41 {dimension_numbers = #tpu.dot_dimension_numbers<[1], [0], [0], [1], [0, 0, 1, 1], [], []>} : vector<16x16xbf16>, vector<16x16xbf16>, vector<16x16xf32> -> vector<16x16xf32>
    %49 = arith.addf %42, %48 : vector<16x16xf32>
    %c11 = arith.constant 11 : index
    %c0_42 = arith.constant 0 : index
    %50 = vector.load %arg9[%c11, %c0_42] : memref<32x16xbf16, #tpu.memory_space<vmem>>, vector<16x16xbf16>
    %cst_43 = arith.constant 0.000000e+00 : bf16
    %51 = vector.broadcast %cst_43 : bf16 to vector<16x16xbf16>
    %52 = arith.select %10, %50, %51 : vector<16x16xi1>, vector<16x16xbf16>
    %c2_44 = arith.constant 2 : index
    %c0_45 = arith.constant 0 : index
    %c0_46 = arith.constant 0 : index
    %c0_47 = arith.constant 0 : index
    %53 = vector.load %arg2[%c2_44, %c0_45, %c0_46, %c0_47] : memref<3x3x16x16xbf16, #tpu.memory_space<vmem>>, vector<1x1x16x16xbf16>
    %54 = vector.shape_cast %53 : vector<1x1x16x16xbf16> to vector<16x16xbf16>
    %cst_48 = arith.constant dense<0.000000e+00> : vector<16x16xf32>
    %55 = tpu.matmul %52, %54, %cst_48 {dimension_numbers = #tpu.dot_dimension_numbers<[1], [0], [0], [1], [0, 0, 1, 1], [], []>} : vector<16x16xbf16>, vector<16x16xbf16>, vector<16x16xf32> -> vector<16x16xf32>
    %56 = arith.addf %49, %55 : vector<16x16xf32>
    %c12 = arith.constant 12 : index
    %c0_49 = arith.constant 0 : index
    %57 = vector.load %arg9[%c12, %c0_49] : memref<32x16xbf16, #tpu.memory_space<vmem>>, vector<16x16xbf16>
    %c2_50 = arith.constant 2 : index
    %c1_51 = arith.constant 1 : index
    %c0_52 = arith.constant 0 : index
    %c0_53 = arith.constant 0 : index
    %58 = vector.load %arg2[%c2_50, %c1_51, %c0_52, %c0_53] : memref<3x3x16x16xbf16, #tpu.memory_space<vmem>>, vector<1x1x16x16xbf16>
    %59 = vector.shape_cast %58 : vector<1x1x16x16xbf16> to vector<16x16xbf16>
    %cst_54 = arith.constant dense<0.000000e+00> : vector<16x16xf32>
    %60 = tpu.matmul %57, %59, %cst_54 {dimension_numbers = #tpu.dot_dimension_numbers<[1], [0], [0], [1], [0, 0, 1, 1], [], []>} : vector<16x16xbf16>, vector<16x16xbf16>, vector<16x16xf32> -> vector<16x16xf32>
    %61 = arith.addf %56, %60 : vector<16x16xf32>
    %c13 = arith.constant 13 : index
    %c0_55 = arith.constant 0 : index
    %62 = vector.load %arg9[%c13, %c0_55] : memref<32x16xbf16, #tpu.memory_space<vmem>>, vector<16x16xbf16>
    %cst_56 = arith.constant 0.000000e+00 : bf16
    %63 = vector.broadcast %cst_56 : bf16 to vector<16x16xbf16>
    %64 = arith.select %12, %62, %63 : vector<16x16xi1>, vector<16x16xbf16>
    %c2_57 = arith.constant 2 : index
    %c2_58 = arith.constant 2 : index
    %c0_59 = arith.constant 0 : index
    %c0_60 = arith.constant 0 : index
    %65 = vector.load %arg2[%c2_57, %c2_58, %c0_59, %c0_60] : memref<3x3x16x16xbf16, #tpu.memory_space<vmem>>, vector<1x1x16x16xbf16>
    %66 = vector.shape_cast %65 : vector<1x1x16x16xbf16> to vector<16x16xbf16>
    %cst_61 = arith.constant dense<0.000000e+00> : vector<16x16xf32>
    %67 = tpu.matmul %64, %66, %cst_61 {dimension_numbers = #tpu.dot_dimension_numbers<[1], [0], [0], [1], [0, 0, 1, 1], [], []>} : vector<16x16xbf16>, vector<16x16xbf16>, vector<16x16xf32> -> vector<16x16xf32>
    %68 = arith.addf %61, %67 : vector<16x16xf32>
    %c0_62 = arith.constant 0 : index
    %c0_63 = arith.constant 0 : index
    %69 = vector.load %arg3[%c0_62, %c0_63] : memref<1x16xf32, #tpu.memory_space<vmem>>, vector<1x16xf32>
    %70 = vector.broadcast %69 : vector<1x16xf32> to vector<16x16xf32>
    %71 = arith.mulf %68, %70 : vector<16x16xf32>
    %c0_64 = arith.constant 0 : index
    %c0_65 = arith.constant 0 : index
    %72 = vector.load %arg4[%c0_64, %c0_65] : memref<1x16xf32, #tpu.memory_space<vmem>>, vector<1x16xf32>
    %73 = vector.broadcast %72 : vector<1x16xf32> to vector<16x16xf32>
    %74 = arith.addf %71, %73 : vector<16x16xf32>
    %cst_66 = arith.constant 0.000000e+00 : f32
    %75 = vector.broadcast %cst_66 : f32 to vector<16x16xf32>
    %76 = arith.maximumf %74, %75 : vector<16x16xf32>
    %77 = arith.truncf %76 : vector<16x16xf32> to vector<16x16xbf16>
    %c8_67 = arith.constant 8 : index
    %c0_68 = arith.constant 0 : index
    %78 = vector.load %arg10[%c8_67, %c0_68] : memref<32x16xbf16, #tpu.memory_space<vmem>>, vector<16x16xbf16>
    tpu.vector_store %arg10[%c8_67, %c0_68], %77 {strides = array<i32>} : memref<32x16xbf16, #tpu.memory_space<vmem>>, vector<16x16xbf16>,
    %79 = tpu.iota {dimensions = array<i32: 0>} : vector<16x16xi32>
    %c3_i32_69 = arith.constant 3 : i32
    %80 = vector.broadcast %c3_i32_69 : i32 to vector<16x16xi32>
    %81 = arith.andi %79, %80 : vector<16x16xi32>
    %c1_i32_70 = arith.constant 1 : i32
    %82 = vector.broadcast %c1_i32_70 : i32 to vector<16x16xi32>
    %83 = arith.cmpi sge, %81, %82 : vector<16x16xi32>
    %c2_i32_71 = arith.constant 2 : i32
    %84 = vector.broadcast %c2_i32_71 : i32 to vector<16x16xi32>
    %85 = arith.cmpi sle, %81, %84 : vector<16x16xi32>
    %c3_72 = arith.constant 3 : index
    %c0_73 = arith.constant 0 : index
    %86 = vector.load %arg10[%c3_72, %c0_73] : memref<32x16xbf16, #tpu.memory_space<vmem>>, vector<16x16xbf16>
    %cst_74 = arith.constant 0.000000e+00 : bf16
    %87 = vector.broadcast %cst_74 : bf16 to vector<16x16xbf16>
    %88 = arith.select %83, %86, %87 : vector<16x16xi1>, vector<16x16xbf16>
    %c0_75 = arith.constant 0 : index
    %c0_76 = arith.constant 0 : index
    %c0_77 = arith.constant 0 : index
    %c0_78 = arith.constant 0 : index
    %89 = vector.load %arg5[%c0_75, %c0_76, %c0_77, %c0_78] : memref<3x3x16x16xbf16, #tpu.memory_space<vmem>>, vector<1x1x16x16xbf16>
    %90 = vector.shape_cast %89 : vector<1x1x16x16xbf16> to vector<16x16xbf16>
    %cst_79 = arith.constant dense<0.000000e+00> : vector<16x16xf32>
    %91 = tpu.matmul %88, %90, %cst_79 {dimension_numbers = #tpu.dot_dimension_numbers<[1], [0], [0], [1], [0, 0, 1, 1], [], []>} : vector<16x16xbf16>, vector<16x16xbf16>, vector<16x16xf32> -> vector<16x16xf32>
    %c4_80 = arith.constant 4 : index
    %c0_81 = arith.constant 0 : index
    %92 = vector.load %arg10[%c4_80, %c0_81] : memref<32x16xbf16, #tpu.memory_space<vmem>>, vector<16x16xbf16>
    %c0_82 = arith.constant 0 : index
    %c1_83 = arith.constant 1 : index
    %c0_84 = arith.constant 0 : index
    %c0_85 = arith.constant 0 : index
    %93 = vector.load %arg5[%c0_82, %c1_83, %c0_84, %c0_85] : memref<3x3x16x16xbf16, #tpu.memory_space<vmem>>, vector<1x1x16x16xbf16>
    %94 = vector.shape_cast %93 : vector<1x1x16x16xbf16> to vector<16x16xbf16>
    %cst_86 = arith.constant dense<0.000000e+00> : vector<16x16xf32>
    %95 = tpu.matmul %92, %94, %cst_86 {dimension_numbers = #tpu.dot_dimension_numbers<[1], [0], [0], [1], [0, 0, 1, 1], [], []>} : vector<16x16xbf16>, vector<16x16xbf16>, vector<16x16xf32> -> vector<16x16xf32>
    %96 = arith.addf %91, %95 : vector<16x16xf32>
    %c5_87 = arith.constant 5 : index
    %c0_88 = arith.constant 0 : index
    %97 = vector.load %arg10[%c5_87, %c0_88] : memref<32x16xbf16, #tpu.memory_space<vmem>>, vector<16x16xbf16>
    %cst_89 = arith.constant 0.000000e+00 : bf16
    %98 = vector.broadcast %cst_89 : bf16 to vector<16x16xbf16>
    %99 = arith.select %85, %97, %98 : vector<16x16xi1>, vector<16x16xbf16>
    %c0_90 = arith.constant 0 : index
    %c2_91 = arith.constant 2 : index
    %c0_92 = arith.constant 0 : index
    %c0_93 = arith.constant 0 : index
    %100 = vector.load %arg5[%c0_90, %c2_91, %c0_92, %c0_93] : memref<3x3x16x16xbf16, #tpu.memory_space<vmem>>, vector<1x1x16x16xbf16>
    %101 = vector.shape_cast %100 : vector<1x1x16x16xbf16> to vector<16x16xbf16>
    %cst_94 = arith.constant dense<0.000000e+00> : vector<16x16xf32>
    %102 = tpu.matmul %99, %101, %cst_94 {dimension_numbers = #tpu.dot_dimension_numbers<[1], [0], [0], [1], [0, 0, 1, 1], [], []>} : vector<16x16xbf16>, vector<16x16xbf16>, vector<16x16xf32> -> vector<16x16xf32>
    %103 = arith.addf %96, %102 : vector<16x16xf32>
    %c7_95 = arith.constant 7 : index
    %c0_96 = arith.constant 0 : index
    %104 = vector.load %arg10[%c7_95, %c0_96] : memref<32x16xbf16, #tpu.memory_space<vmem>>, vector<16x16xbf16>
    %cst_97 = arith.constant 0.000000e+00 : bf16
    %105 = vector.broadcast %cst_97 : bf16 to vector<16x16xbf16>
    %106 = arith.select %83, %104, %105 : vector<16x16xi1>, vector<16x16xbf16>
    %c1_98 = arith.constant 1 : index
    %c0_99 = arith.constant 0 : index
    %c0_100 = arith.constant 0 : index
    %c0_101 = arith.constant 0 : index
    %107 = vector.load %arg5[%c1_98, %c0_99, %c0_100, %c0_101] : memref<3x3x16x16xbf16, #tpu.memory_space<vmem>>, vector<1x1x16x16xbf16>
    %108 = vector.shape_cast %107 : vector<1x1x16x16xbf16> to vector<16x16xbf16>
    %cst_102 = arith.constant dense<0.000000e+00> : vector<16x16xf32>
    %109 = tpu.matmul %106, %108, %cst_102 {dimension_numbers = #tpu.dot_dimension_numbers<[1], [0], [0], [1], [0, 0, 1, 1], [], []>} : vector<16x16xbf16>, vector<16x16xbf16>, vector<16x16xf32> -> vector<16x16xf32>
    %110 = arith.addf %103, %109 : vector<16x16xf32>
    %c8_103 = arith.constant 8 : index
    %c0_104 = arith.constant 0 : index
    %111 = vector.load %arg10[%c8_103, %c0_104] : memref<32x16xbf16, #tpu.memory_space<vmem>>, vector<16x16xbf16>
    %c1_105 = arith.constant 1 : index
    %c1_106 = arith.constant 1 : index
    %c0_107 = arith.constant 0 : index
    %c0_108 = arith.constant 0 : index
    %112 = vector.load %arg5[%c1_105, %c1_106, %c0_107, %c0_108] : memref<3x3x16x16xbf16, #tpu.memory_space<vmem>>, vector<1x1x16x16xbf16>
    %113 = vector.shape_cast %112 : vector<1x1x16x16xbf16> to vector<16x16xbf16>
    %cst_109 = arith.constant dense<0.000000e+00> : vector<16x16xf32>
    %114 = tpu.matmul %111, %113, %cst_109 {dimension_numbers = #tpu.dot_dimension_numbers<[1], [0], [0], [1], [0, 0, 1, 1], [], []>} : vector<16x16xbf16>, vector<16x16xbf16>, vector<16x16xf32> -> vector<16x16xf32>
    %115 = arith.addf %110, %114 : vector<16x16xf32>
    %c9_110 = arith.constant 9 : index
    %c0_111 = arith.constant 0 : index
    %116 = vector.load %arg10[%c9_110, %c0_111] : memref<32x16xbf16, #tpu.memory_space<vmem>>, vector<16x16xbf16>
    %cst_112 = arith.constant 0.000000e+00 : bf16
    %117 = vector.broadcast %cst_112 : bf16 to vector<16x16xbf16>
    %118 = arith.select %85, %116, %117 : vector<16x16xi1>, vector<16x16xbf16>
    %c1_113 = arith.constant 1 : index
    %c2_114 = arith.constant 2 : index
    %c0_115 = arith.constant 0 : index
    %c0_116 = arith.constant 0 : index
    %119 = vector.load %arg5[%c1_113, %c2_114, %c0_115, %c0_116] : memref<3x3x16x16xbf16, #tpu.memory_space<vmem>>, vector<1x1x16x16xbf16>
    %120 = vector.shape_cast %119 : vector<1x1x16x16xbf16> to vector<16x16xbf16>
    %cst_117 = arith.constant dense<0.000000e+00> : vector<16x16xf32>
    %121 = tpu.matmul %118, %120, %cst_117 {dimension_numbers = #tpu.dot_dimension_numbers<[1], [0], [0], [1], [0, 0, 1, 1], [], []>} : vector<16x16xbf16>, vector<16x16xbf16>, vector<16x16xf32> -> vector<16x16xf32>
    %122 = arith.addf %115, %121 : vector<16x16xf32>
    %c11_118 = arith.constant 11 : index
    %c0_119 = arith.constant 0 : index
    %123 = vector.load %arg10[%c11_118, %c0_119] : memref<32x16xbf16, #tpu.memory_space<vmem>>, vector<16x16xbf16>
    %cst_120 = arith.constant 0.000000e+00 : bf16
    %124 = vector.broadcast %cst_120 : bf16 to vector<16x16xbf16>
    %125 = arith.select %83, %123, %124 : vector<16x16xi1>, vector<16x16xbf16>
    %c2_121 = arith.constant 2 : index
    %c0_122 = arith.constant 0 : index
    %c0_123 = arith.constant 0 : index
    %c0_124 = arith.constant 0 : index
    %126 = vector.load %arg5[%c2_121, %c0_122, %c0_123, %c0_124] : memref<3x3x16x16xbf16, #tpu.memory_space<vmem>>, vector<1x1x16x16xbf16>
    %127 = vector.shape_cast %126 : vector<1x1x16x16xbf16> to vector<16x16xbf16>
    %cst_125 = arith.constant dense<0.000000e+00> : vector<16x16xf32>
    %128 = tpu.matmul %125, %127, %cst_125 {dimension_numbers = #tpu.dot_dimension_numbers<[1], [0], [0], [1], [0, 0, 1, 1], [], []>} : vector<16x16xbf16>, vector<16x16xbf16>, vector<16x16xf32> -> vector<16x16xf32>
    %129 = arith.addf %122, %128 : vector<16x16xf32>
    %c12_126 = arith.constant 12 : index
    %c0_127 = arith.constant 0 : index
    %130 = vector.load %arg10[%c12_126, %c0_127] : memref<32x16xbf16, #tpu.memory_space<vmem>>, vector<16x16xbf16>
    %c2_128 = arith.constant 2 : index
    %c1_129 = arith.constant 1 : index
    %c0_130 = arith.constant 0 : index
    %c0_131 = arith.constant 0 : index
    %131 = vector.load %arg5[%c2_128, %c1_129, %c0_130, %c0_131] : memref<3x3x16x16xbf16, #tpu.memory_space<vmem>>, vector<1x1x16x16xbf16>
    %132 = vector.shape_cast %131 : vector<1x1x16x16xbf16> to vector<16x16xbf16>
    %cst_132 = arith.constant dense<0.000000e+00> : vector<16x16xf32>
    %133 = tpu.matmul %130, %132, %cst_132 {dimension_numbers = #tpu.dot_dimension_numbers<[1], [0], [0], [1], [0, 0, 1, 1], [], []>} : vector<16x16xbf16>, vector<16x16xbf16>, vector<16x16xf32> -> vector<16x16xf32>
    %134 = arith.addf %129, %133 : vector<16x16xf32>
    %c13_133 = arith.constant 13 : index
    %c0_134 = arith.constant 0 : index
    %135 = vector.load %arg10[%c13_133, %c0_134] : memref<32x16xbf16, #tpu.memory_space<vmem>>, vector<16x16xbf16>
    %cst_135 = arith.constant 0.000000e+00 : bf16
    %136 = vector.broadcast %cst_135 : bf16 to vector<16x16xbf16>
    %137 = arith.select %85, %135, %136 : vector<16x16xi1>, vector<16x16xbf16>
    %c2_136 = arith.constant 2 : index
    %c2_137 = arith.constant 2 : index
    %c0_138 = arith.constant 0 : index
    %c0_139 = arith.constant 0 : index
    %138 = vector.load %arg5[%c2_136, %c2_137, %c0_138, %c0_139] : memref<3x3x16x16xbf16, #tpu.memory_space<vmem>>, vector<1x1x16x16xbf16>
    %139 = vector.shape_cast %138 : vector<1x1x16x16xbf16> to vector<16x16xbf16>
    %cst_140 = arith.constant dense<0.000000e+00> : vector<16x16xf32>
    %140 = tpu.matmul %137, %139, %cst_140 {dimension_numbers = #tpu.dot_dimension_numbers<[1], [0], [0], [1], [0, 0, 1, 1], [], []>} : vector<16x16xbf16>, vector<16x16xbf16>, vector<16x16xf32> -> vector<16x16xf32>
    %141 = arith.addf %134, %140 : vector<16x16xf32>
    %c0_141 = arith.constant 0 : index
    %c0_142 = arith.constant 0 : index
    %142 = vector.load %arg6[%c0_141, %c0_142] : memref<1x16xf32, #tpu.memory_space<vmem>>, vector<1x16xf32>
    %143 = vector.broadcast %142 : vector<1x16xf32> to vector<16x16xf32>
    %144 = arith.mulf %141, %143 : vector<16x16xf32>
    %c0_143 = arith.constant 0 : index
    %c0_144 = arith.constant 0 : index
    %145 = vector.load %arg7[%c0_143, %c0_144] : memref<1x16xf32, #tpu.memory_space<vmem>>, vector<1x16xf32>
    %146 = vector.broadcast %145 : vector<1x16xf32> to vector<16x16xf32>
    %147 = arith.addf %144, %146 : vector<16x16xf32>
    %148 = arith.extf %4 : vector<16x16xbf16> to vector<16x16xf32>
    %149 = arith.addf %147, %148 : vector<16x16xf32>
    %cst_145 = arith.constant 0.000000e+00 : f32
    %150 = vector.broadcast %cst_145 : f32 to vector<16x16xf32>
    %151 = arith.maximumf %149, %150 : vector<16x16xf32>
    %152 = arith.truncf %151 : vector<16x16xf32> to vector<16x16xbf16>
    %c0_146 = arith.constant 0 : index
    %c0_147 = arith.constant 0 : index
    %c0_148 = arith.constant 0 : index
    %153 = vector.load %arg8[%c0_146, %c0_147, %c0_148] : memref<1x16x16xbf16, #tpu.memory_space<vmem>>, vector<1x16x16xbf16>
    %154 = vector.shape_cast %153 : vector<1x16x16xbf16> to vector<16x16xbf16>
    %155 = vector.shape_cast %152 : vector<16x16xbf16> to vector<1x16x16xbf16>
    tpu.vector_store %arg8[%c0_146, %c0_147, %c0_148], %155 {strides = array<i32>} : memref<1x16x16xbf16, #tpu.memory_space<vmem>>, vector<1x16x16xbf16>,
    return
  }
  func.func @transform_0(%arg0: i32) -> (i32, i32, i32) {
    %c0_i32 = arith.constant 0 : i32
    %c0_i32_0 = arith.constant 0 : i32
    %c0_i32_1 = arith.constant 0 : i32
    return %arg0, %c0_i32, %c0_i32_0 : i32, i32, i32
  }
  func.func @transform_1(%arg0: i32) -> (i32, i32, i32, i32) {
    %c0_i32 = arith.constant 0 : i32
    %c0_i32_0 = arith.constant 0 : i32
    %c0_i32_1 = arith.constant 0 : i32
    %c0_i32_2 = arith.constant 0 : i32
    %c0_i32_3 = arith.constant 0 : i32
    return %c0_i32, %c0_i32_0, %c0_i32_1, %c0_i32_2 : i32, i32, i32, i32
  }
  func.func @transform_2(%arg0: i32) -> (i32, i32) {
    %c0_i32 = arith.constant 0 : i32
    %c0_i32_0 = arith.constant 0 : i32
    %c0_i32_1 = arith.constant 0 : i32
    return %c0_i32, %c0_i32_0 : i32, i32
  }
  func.func @transform_3(%arg0: i32) -> (i32, i32) {
    %c0_i32 = arith.constant 0 : i32
    %c0_i32_0 = arith.constant 0 : i32
    %c0_i32_1 = arith.constant 0 : i32
    return %c0_i32, %c0_i32_0 : i32, i32
  }
  func.func @transform_4(%arg0: i32) -> (i32, i32, i32, i32) {
    %c0_i32 = arith.constant 0 : i32
    %c0_i32_0 = arith.constant 0 : i32
    %c0_i32_1 = arith.constant 0 : i32
    %c0_i32_2 = arith.constant 0 : i32
    %c0_i32_3 = arith.constant 0 : i32
    return %c0_i32, %c0_i32_0, %c0_i32_1, %c0_i32_2 : i32, i32, i32, i32
  }
  func.func @transform_5(%arg0: i32) -> (i32, i32) {
    %c0_i32 = arith.constant 0 : i32
    %c0_i32_0 = arith.constant 0 : i32
    %c0_i32_1 = arith.constant 0 : i32
    return %c0_i32, %c0_i32_0 : i32, i32
  }
  func.func @transform_6(%arg0: i32) -> (i32, i32) {
    %c0_i32 = arith.constant 0 : i32
    %c0_i32_0 = arith.constant 0 : i32
    %c0_i32_1 = arith.constant 0 : i32
    return %c0_i32, %c0_i32_0 : i32, i32
  }
  func.func @transform_7(%arg0: i32) -> (i32, i32, i32) {
    %c0_i32 = arith.constant 0 : i32
    %c0_i32_0 = arith.constant 0 : i32
    %c0_i32_1 = arith.constant 0 : i32
    return %arg0, %c0_i32, %c0_i32_0 : i32, i32, i32
  }
}

module attributes {stable_mosaic.version = 11 : i64} {
  func.func @kernel(%arg0: i32, %arg1: memref<1x4x144xbf16, #tpu.memory_space<vmem>>, %arg2: memref<1x4x16xbf16, #tpu.memory_space<vmem>>, %arg3: memref<144x16xbf16, #tpu.memory_space<vmem>>, %arg4: memref<1x16xf32, #tpu.memory_space<vmem>>, %arg5: memref<1x16xf32, #tpu.memory_space<vmem>>, %arg6: memref<3x3x16x16xbf16, #tpu.memory_space<vmem>>, %arg7: memref<1x16xf32, #tpu.memory_space<vmem>>, %arg8: memref<1x16xf32, #tpu.memory_space<vmem>>, %arg9: memref<16x16xbf16, #tpu.memory_space<vmem>>, %arg10: memref<1x16xf32, #tpu.memory_space<vmem>>, %arg11: memref<1x16xf32, #tpu.memory_space<vmem>>, %arg12: memref<1x4x16xbf16, #tpu.memory_space<vmem>>, %arg13: memref<20x16xbf16, #tpu.memory_space<vmem>>) attributes {dimension_semantics = [#tpu.dimension_semantics<parallel>], iteration_bounds = array<i64: 2>, scalar_prefetch = 0 : i64, scratch_operands = 1 : i64, tpu.core_type = #tpu.core_type<tc>, window_params = [{transform_indices = @transform_0, window_bounds = array<i64: 1, 4, 144>}, {transform_indices = @transform_1, window_bounds = array<i64: 1, 4, 16>}, {pipeline_mode = #tpu.pipeline_mode<synchronous>, transform_indices = @transform_2, window_bounds = array<i64: 144, 16>}, {pipeline_mode = #tpu.pipeline_mode<synchronous>, transform_indices = @transform_3, window_bounds = array<i64: 1, 16>}, {pipeline_mode = #tpu.pipeline_mode<synchronous>, transform_indices = @transform_4, window_bounds = array<i64: 1, 16>}, {pipeline_mode = #tpu.pipeline_mode<synchronous>, transform_indices = @transform_5, window_bounds = array<i64: 3, 3, 16, 16>}, {pipeline_mode = #tpu.pipeline_mode<synchronous>, transform_indices = @transform_6, window_bounds = array<i64: 1, 16>}, {pipeline_mode = #tpu.pipeline_mode<synchronous>, transform_indices = @transform_7, window_bounds = array<i64: 1, 16>}, {pipeline_mode = #tpu.pipeline_mode<synchronous>, transform_indices = @transform_8, window_bounds = array<i64: 16, 16>}, {pipeline_mode = #tpu.pipeline_mode<synchronous>, transform_indices = @transform_9, window_bounds = array<i64: 1, 16>}, {pipeline_mode = #tpu.pipeline_mode<synchronous>, transform_indices = @transform_10, window_bounds = array<i64: 1, 16>}, {transform_indices = @transform_11, window_bounds = array<i64: 1, 4, 16>}]} {
    %c0_i32 = arith.constant 0 : i32
    %0 = arith.cmpi eq, %arg0, %c0_i32 : i32
    %1 = arith.extui %0 : i1 to i32
    %c0_i32_0 = arith.constant 0 : i32
    %2 = arith.cmpi ne, %1, %c0_i32_0 : i32
    scf.if %2 {
      %cst_92 = arith.constant 0.000000e+00 : bf16
      %103 = vector.broadcast %cst_92 : bf16 to vector<20x16xbf16>
      %c0_93 = arith.constant 0 : index
      %c0_94 = arith.constant 0 : index
      %104 = vector.load %arg13[%c0_93, %c0_94] : memref<20x16xbf16, #tpu.memory_space<vmem>>, vector<20x16xbf16>
      tpu.vector_store %arg13[%c0_93, %c0_94], %103 {strides = array<i32>} : memref<20x16xbf16, #tpu.memory_space<vmem>>, vector<20x16xbf16>,
    } else {
    }
    %c0 = arith.constant 0 : index
    %c0_1 = arith.constant 0 : index
    %c0_2 = arith.constant 0 : index
    %3 = vector.load %arg1[%c0, %c0_1, %c0_2] : memref<1x4x144xbf16, #tpu.memory_space<vmem>>, vector<1x4x144xbf16>
    %4 = vector.shape_cast %3 : vector<1x4x144xbf16> to vector<4x144xbf16>
    %c0_3 = arith.constant 0 : index
    %c0_4 = arith.constant 0 : index
    %5 = vector.load %arg3[%c0_3, %c0_4] : memref<144x16xbf16, #tpu.memory_space<vmem>>, vector<144x16xbf16>
    %cst = arith.constant dense<0.000000e+00> : vector<4x16xf32>
    %6 = tpu.matmul %4, %5, %cst {dimension_numbers = #tpu.dot_dimension_numbers<[1], [0], [0], [1], [0, 0, 1, 1], [], []>} : vector<4x144xbf16>, vector<144x16xbf16>, vector<4x16xf32> -> vector<4x16xf32>
    %c0_5 = arith.constant 0 : index
    %c0_6 = arith.constant 0 : index
    %7 = vector.load %arg4[%c0_5, %c0_6] : memref<1x16xf32, #tpu.memory_space<vmem>>, vector<1x16xf32>
    %8 = vector.broadcast %7 : vector<1x16xf32> to vector<4x16xf32>
    %9 = arith.mulf %6, %8 : vector<4x16xf32>
    %c0_7 = arith.constant 0 : index
    %c0_8 = arith.constant 0 : index
    %10 = vector.load %arg5[%c0_7, %c0_8] : memref<1x16xf32, #tpu.memory_space<vmem>>, vector<1x16xf32>
    %11 = vector.broadcast %10 : vector<1x16xf32> to vector<4x16xf32>
    %12 = arith.addf %9, %11 : vector<4x16xf32>
    %cst_9 = arith.constant 0.000000e+00 : f32
    %13 = vector.broadcast %cst_9 : f32 to vector<4x16xf32>
    %14 = arith.maximumf %12, %13 : vector<4x16xf32>
    %15 = arith.truncf %14 : vector<4x16xf32> to vector<4x16xbf16>
    %c8 = arith.constant 8 : index
    %c0_10 = arith.constant 0 : index
    %16 = vector.load %arg13[%c8, %c0_10] : memref<20x16xbf16, #tpu.memory_space<vmem>>, vector<4x16xbf16>
    tpu.vector_store %arg13[%c8, %c0_10], %15 {strides = array<i32>} : memref<20x16xbf16, #tpu.memory_space<vmem>>, vector<4x16xbf16>,
    %17 = tpu.iota {dimensions = array<i32: 0>} : vector<4x16xi32>
    %c1_i32 = arith.constant 1 : i32
    %18 = vector.broadcast %c1_i32 : i32 to vector<4x16xi32>
    %19 = arith.andi %17, %18 : vector<4x16xi32>
    %c1_i32_11 = arith.constant 1 : i32
    %20 = vector.broadcast %c1_i32_11 : i32 to vector<4x16xi32>
    %21 = arith.cmpi sge, %19, %20 : vector<4x16xi32>
    %c0_i32_12 = arith.constant 0 : i32
    %22 = vector.broadcast %c0_i32_12 : i32 to vector<4x16xi32>
    %23 = arith.cmpi sle, %19, %22 : vector<4x16xi32>
    %c5 = arith.constant 5 : index
    %c0_13 = arith.constant 0 : index
    %24 = vector.load %arg13[%c5, %c0_13] : memref<20x16xbf16, #tpu.memory_space<vmem>>, vector<4x16xbf16>
    %cst_14 = arith.constant 0.000000e+00 : bf16
    %25 = vector.broadcast %cst_14 : bf16 to vector<4x16xbf16>
    %26 = arith.select %21, %24, %25 : vector<4x16xi1>, vector<4x16xbf16>
    %c0_15 = arith.constant 0 : index
    %c0_16 = arith.constant 0 : index
    %c0_17 = arith.constant 0 : index
    %c0_18 = arith.constant 0 : index
    %27 = vector.load %arg6[%c0_15, %c0_16, %c0_17, %c0_18] : memref<3x3x16x16xbf16, #tpu.memory_space<vmem>>, vector<1x1x16x16xbf16>
    %28 = vector.shape_cast %27 : vector<1x1x16x16xbf16> to vector<16x16xbf16>
    %cst_19 = arith.constant dense<0.000000e+00> : vector<4x16xf32>
    %29 = tpu.matmul %26, %28, %cst_19 {dimension_numbers = #tpu.dot_dimension_numbers<[1], [0], [0], [1], [0, 0, 1, 1], [], []>} : vector<4x16xbf16>, vector<16x16xbf16>, vector<4x16xf32> -> vector<4x16xf32>
    %c6 = arith.constant 6 : index
    %c0_20 = arith.constant 0 : index
    %30 = vector.load %arg13[%c6, %c0_20] : memref<20x16xbf16, #tpu.memory_space<vmem>>, vector<4x16xbf16>
    %c0_21 = arith.constant 0 : index
    %c1 = arith.constant 1 : index
    %c0_22 = arith.constant 0 : index
    %c0_23 = arith.constant 0 : index
    %31 = vector.load %arg6[%c0_21, %c1, %c0_22, %c0_23] : memref<3x3x16x16xbf16, #tpu.memory_space<vmem>>, vector<1x1x16x16xbf16>
    %32 = vector.shape_cast %31 : vector<1x1x16x16xbf16> to vector<16x16xbf16>
    %cst_24 = arith.constant dense<0.000000e+00> : vector<4x16xf32>
    %33 = tpu.matmul %30, %32, %cst_24 {dimension_numbers = #tpu.dot_dimension_numbers<[1], [0], [0], [1], [0, 0, 1, 1], [], []>} : vector<4x16xbf16>, vector<16x16xbf16>, vector<4x16xf32> -> vector<4x16xf32>
    %34 = arith.addf %29, %33 : vector<4x16xf32>
    %c7 = arith.constant 7 : index
    %c0_25 = arith.constant 0 : index
    %35 = vector.load %arg13[%c7, %c0_25] : memref<20x16xbf16, #tpu.memory_space<vmem>>, vector<4x16xbf16>
    %cst_26 = arith.constant 0.000000e+00 : bf16
    %36 = vector.broadcast %cst_26 : bf16 to vector<4x16xbf16>
    %37 = arith.select %23, %35, %36 : vector<4x16xi1>, vector<4x16xbf16>
    %c0_27 = arith.constant 0 : index
    %c2 = arith.constant 2 : index
    %c0_28 = arith.constant 0 : index
    %c0_29 = arith.constant 0 : index
    %38 = vector.load %arg6[%c0_27, %c2, %c0_28, %c0_29] : memref<3x3x16x16xbf16, #tpu.memory_space<vmem>>, vector<1x1x16x16xbf16>
    %39 = vector.shape_cast %38 : vector<1x1x16x16xbf16> to vector<16x16xbf16>
    %cst_30 = arith.constant dense<0.000000e+00> : vector<4x16xf32>
    %40 = tpu.matmul %37, %39, %cst_30 {dimension_numbers = #tpu.dot_dimension_numbers<[1], [0], [0], [1], [0, 0, 1, 1], [], []>} : vector<4x16xbf16>, vector<16x16xbf16>, vector<4x16xf32> -> vector<4x16xf32>
    %41 = arith.addf %34, %40 : vector<4x16xf32>
    %c7_31 = arith.constant 7 : index
    %c0_32 = arith.constant 0 : index
    %42 = vector.load %arg13[%c7_31, %c0_32] : memref<20x16xbf16, #tpu.memory_space<vmem>>, vector<4x16xbf16>
    %cst_33 = arith.constant 0.000000e+00 : bf16
    %43 = vector.broadcast %cst_33 : bf16 to vector<4x16xbf16>
    %44 = arith.select %21, %42, %43 : vector<4x16xi1>, vector<4x16xbf16>
    %c1_34 = arith.constant 1 : index
    %c0_35 = arith.constant 0 : index
    %c0_36 = arith.constant 0 : index
    %c0_37 = arith.constant 0 : index
    %45 = vector.load %arg6[%c1_34, %c0_35, %c0_36, %c0_37] : memref<3x3x16x16xbf16, #tpu.memory_space<vmem>>, vector<1x1x16x16xbf16>
    %46 = vector.shape_cast %45 : vector<1x1x16x16xbf16> to vector<16x16xbf16>
    %cst_38 = arith.constant dense<0.000000e+00> : vector<4x16xf32>
    %47 = tpu.matmul %44, %46, %cst_38 {dimension_numbers = #tpu.dot_dimension_numbers<[1], [0], [0], [1], [0, 0, 1, 1], [], []>} : vector<4x16xbf16>, vector<16x16xbf16>, vector<4x16xf32> -> vector<4x16xf32>
    %48 = arith.addf %41, %47 : vector<4x16xf32>
    %c8_39 = arith.constant 8 : index
    %c0_40 = arith.constant 0 : index
    %49 = vector.load %arg13[%c8_39, %c0_40] : memref<20x16xbf16, #tpu.memory_space<vmem>>, vector<4x16xbf16>
    %c1_41 = arith.constant 1 : index
    %c1_42 = arith.constant 1 : index
    %c0_43 = arith.constant 0 : index
    %c0_44 = arith.constant 0 : index
    %50 = vector.load %arg6[%c1_41, %c1_42, %c0_43, %c0_44] : memref<3x3x16x16xbf16, #tpu.memory_space<vmem>>, vector<1x1x16x16xbf16>
    %51 = vector.shape_cast %50 : vector<1x1x16x16xbf16> to vector<16x16xbf16>
    %cst_45 = arith.constant dense<0.000000e+00> : vector<4x16xf32>
    %52 = tpu.matmul %49, %51, %cst_45 {dimension_numbers = #tpu.dot_dimension_numbers<[1], [0], [0], [1], [0, 0, 1, 1], [], []>} : vector<4x16xbf16>, vector<16x16xbf16>, vector<4x16xf32> -> vector<4x16xf32>
    %53 = arith.addf %48, %52 : vector<4x16xf32>
    %c9 = arith.constant 9 : index
    %c0_46 = arith.constant 0 : index
    %54 = vector.load %arg13[%c9, %c0_46] : memref<20x16xbf16, #tpu.memory_space<vmem>>, vector<4x16xbf16>
    %cst_47 = arith.constant 0.000000e+00 : bf16
    %55 = vector.broadcast %cst_47 : bf16 to vector<4x16xbf16>
    %56 = arith.select %23, %54, %55 : vector<4x16xi1>, vector<4x16xbf16>
    %c1_48 = arith.constant 1 : index
    %c2_49 = arith.constant 2 : index
    %c0_50 = arith.constant 0 : index
    %c0_51 = arith.constant 0 : index
    %57 = vector.load %arg6[%c1_48, %c2_49, %c0_50, %c0_51] : memref<3x3x16x16xbf16, #tpu.memory_space<vmem>>, vector<1x1x16x16xbf16>
    %58 = vector.shape_cast %57 : vector<1x1x16x16xbf16> to vector<16x16xbf16>
    %cst_52 = arith.constant dense<0.000000e+00> : vector<4x16xf32>
    %59 = tpu.matmul %56, %58, %cst_52 {dimension_numbers = #tpu.dot_dimension_numbers<[1], [0], [0], [1], [0, 0, 1, 1], [], []>} : vector<4x16xbf16>, vector<16x16xbf16>, vector<4x16xf32> -> vector<4x16xf32>
    %60 = arith.addf %53, %59 : vector<4x16xf32>
    %c9_53 = arith.constant 9 : index
    %c0_54 = arith.constant 0 : index
    %61 = vector.load %arg13[%c9_53, %c0_54] : memref<20x16xbf16, #tpu.memory_space<vmem>>, vector<4x16xbf16>
    %cst_55 = arith.constant 0.000000e+00 : bf16
    %62 = vector.broadcast %cst_55 : bf16 to vector<4x16xbf16>
    %63 = arith.select %21, %61, %62 : vector<4x16xi1>, vector<4x16xbf16>
    %c2_56 = arith.constant 2 : index
    %c0_57 = arith.constant 0 : index
    %c0_58 = arith.constant 0 : index
    %c0_59 = arith.constant 0 : index
    %64 = vector.load %arg6[%c2_56, %c0_57, %c0_58, %c0_59] : memref<3x3x16x16xbf16, #tpu.memory_space<vmem>>, vector<1x1x16x16xbf16>
    %65 = vector.shape_cast %64 : vector<1x1x16x16xbf16> to vector<16x16xbf16>
    %cst_60 = arith.constant dense<0.000000e+00> : vector<4x16xf32>
    %66 = tpu.matmul %63, %65, %cst_60 {dimension_numbers = #tpu.dot_dimension_numbers<[1], [0], [0], [1], [0, 0, 1, 1], [], []>} : vector<4x16xbf16>, vector<16x16xbf16>, vector<4x16xf32> -> vector<4x16xf32>
    %67 = arith.addf %60, %66 : vector<4x16xf32>
    %c10 = arith.constant 10 : index
    %c0_61 = arith.constant 0 : index
    %68 = vector.load %arg13[%c10, %c0_61] : memref<20x16xbf16, #tpu.memory_space<vmem>>, vector<4x16xbf16>
    %c2_62 = arith.constant 2 : index
    %c1_63 = arith.constant 1 : index
    %c0_64 = arith.constant 0 : index
    %c0_65 = arith.constant 0 : index
    %69 = vector.load %arg6[%c2_62, %c1_63, %c0_64, %c0_65] : memref<3x3x16x16xbf16, #tpu.memory_space<vmem>>, vector<1x1x16x16xbf16>
    %70 = vector.shape_cast %69 : vector<1x1x16x16xbf16> to vector<16x16xbf16>
    %cst_66 = arith.constant dense<0.000000e+00> : vector<4x16xf32>
    %71 = tpu.matmul %68, %70, %cst_66 {dimension_numbers = #tpu.dot_dimension_numbers<[1], [0], [0], [1], [0, 0, 1, 1], [], []>} : vector<4x16xbf16>, vector<16x16xbf16>, vector<4x16xf32> -> vector<4x16xf32>
    %72 = arith.addf %67, %71 : vector<4x16xf32>
    %c11 = arith.constant 11 : index
    %c0_67 = arith.constant 0 : index
    %73 = vector.load %arg13[%c11, %c0_67] : memref<20x16xbf16, #tpu.memory_space<vmem>>, vector<4x16xbf16>
    %cst_68 = arith.constant 0.000000e+00 : bf16
    %74 = vector.broadcast %cst_68 : bf16 to vector<4x16xbf16>
    %75 = arith.select %23, %73, %74 : vector<4x16xi1>, vector<4x16xbf16>
    %c2_69 = arith.constant 2 : index
    %c2_70 = arith.constant 2 : index
    %c0_71 = arith.constant 0 : index
    %c0_72 = arith.constant 0 : index
    %76 = vector.load %arg6[%c2_69, %c2_70, %c0_71, %c0_72] : memref<3x3x16x16xbf16, #tpu.memory_space<vmem>>, vector<1x1x16x16xbf16>
    %77 = vector.shape_cast %76 : vector<1x1x16x16xbf16> to vector<16x16xbf16>
    %cst_73 = arith.constant dense<0.000000e+00> : vector<4x16xf32>
    %78 = tpu.matmul %75, %77, %cst_73 {dimension_numbers = #tpu.dot_dimension_numbers<[1], [0], [0], [1], [0, 0, 1, 1], [], []>} : vector<4x16xbf16>, vector<16x16xbf16>, vector<4x16xf32> -> vector<4x16xf32>
    %79 = arith.addf %72, %78 : vector<4x16xf32>
    %c0_74 = arith.constant 0 : index
    %c0_75 = arith.constant 0 : index
    %80 = vector.load %arg7[%c0_74, %c0_75] : memref<1x16xf32, #tpu.memory_space<vmem>>, vector<1x16xf32>
    %81 = vector.broadcast %80 : vector<1x16xf32> to vector<4x16xf32>
    %82 = arith.mulf %79, %81 : vector<4x16xf32>
    %c0_76 = arith.constant 0 : index
    %c0_77 = arith.constant 0 : index
    %83 = vector.load %arg8[%c0_76, %c0_77] : memref<1x16xf32, #tpu.memory_space<vmem>>, vector<1x16xf32>
    %84 = vector.broadcast %83 : vector<1x16xf32> to vector<4x16xf32>
    %85 = arith.addf %82, %84 : vector<4x16xf32>
    %c0_78 = arith.constant 0 : index
    %c0_79 = arith.constant 0 : index
    %c0_80 = arith.constant 0 : index
    %86 = vector.load %arg2[%c0_78, %c0_79, %c0_80] : memref<1x4x16xbf16, #tpu.memory_space<vmem>>, vector<1x4x16xbf16>
    %87 = vector.shape_cast %86 : vector<1x4x16xbf16> to vector<4x16xbf16>
    %c0_81 = arith.constant 0 : index
    %c0_82 = arith.constant 0 : index
    %88 = vector.load %arg9[%c0_81, %c0_82] : memref<16x16xbf16, #tpu.memory_space<vmem>>, vector<16x16xbf16>
    %cst_83 = arith.constant dense<0.000000e+00> : vector<4x16xf32>
    %89 = tpu.matmul %87, %88, %cst_83 {dimension_numbers = #tpu.dot_dimension_numbers<[1], [0], [0], [1], [0, 0, 1, 1], [], []>} : vector<4x16xbf16>, vector<16x16xbf16>, vector<4x16xf32> -> vector<4x16xf32>
    %c0_84 = arith.constant 0 : index
    %c0_85 = arith.constant 0 : index
    %90 = vector.load %arg10[%c0_84, %c0_85] : memref<1x16xf32, #tpu.memory_space<vmem>>, vector<1x16xf32>
    %91 = vector.broadcast %90 : vector<1x16xf32> to vector<4x16xf32>
    %92 = arith.mulf %89, %91 : vector<4x16xf32>
    %c0_86 = arith.constant 0 : index
    %c0_87 = arith.constant 0 : index
    %93 = vector.load %arg11[%c0_86, %c0_87] : memref<1x16xf32, #tpu.memory_space<vmem>>, vector<1x16xf32>
    %94 = vector.broadcast %93 : vector<1x16xf32> to vector<4x16xf32>
    %95 = arith.addf %92, %94 : vector<4x16xf32>
    %96 = arith.addf %85, %95 : vector<4x16xf32>
    %cst_88 = arith.constant 0.000000e+00 : f32
    %97 = vector.broadcast %cst_88 : f32 to vector<4x16xf32>
    %98 = arith.maximumf %96, %97 : vector<4x16xf32>
    %99 = arith.truncf %98 : vector<4x16xf32> to vector<4x16xbf16>
    %c0_89 = arith.constant 0 : index
    %c0_90 = arith.constant 0 : index
    %c0_91 = arith.constant 0 : index
    %100 = vector.load %arg12[%c0_89, %c0_90, %c0_91] : memref<1x4x16xbf16, #tpu.memory_space<vmem>>, vector<1x4x16xbf16>
    %101 = vector.shape_cast %100 : vector<1x4x16xbf16> to vector<4x16xbf16>
    %102 = vector.shape_cast %99 : vector<4x16xbf16> to vector<1x4x16xbf16>
    tpu.vector_store %arg12[%c0_89, %c0_90, %c0_91], %102 {strides = array<i32>} : memref<1x4x16xbf16, #tpu.memory_space<vmem>>, vector<1x4x16xbf16>,
    return
  }
  func.func @transform_0(%arg0: i32) -> (i32, i32, i32) {
    %c0_i32 = arith.constant 0 : i32
    %c0_i32_0 = arith.constant 0 : i32
    %c0_i32_1 = arith.constant 0 : i32
    return %arg0, %c0_i32, %c0_i32_0 : i32, i32, i32
  }
  func.func @transform_1(%arg0: i32) -> (i32, i32, i32) {
    %c0_i32 = arith.constant 0 : i32
    %c0_i32_0 = arith.constant 0 : i32
    %c0_i32_1 = arith.constant 0 : i32
    return %arg0, %c0_i32, %c0_i32_0 : i32, i32, i32
  }
  func.func @transform_2(%arg0: i32) -> (i32, i32) {
    %c0_i32 = arith.constant 0 : i32
    %c0_i32_0 = arith.constant 0 : i32
    %c0_i32_1 = arith.constant 0 : i32
    return %c0_i32, %c0_i32_0 : i32, i32
  }
  func.func @transform_3(%arg0: i32) -> (i32, i32) {
    %c0_i32 = arith.constant 0 : i32
    %c0_i32_0 = arith.constant 0 : i32
    %c0_i32_1 = arith.constant 0 : i32
    return %c0_i32, %c0_i32_0 : i32, i32
  }
  func.func @transform_4(%arg0: i32) -> (i32, i32) {
    %c0_i32 = arith.constant 0 : i32
    %c0_i32_0 = arith.constant 0 : i32
    %c0_i32_1 = arith.constant 0 : i32
    return %c0_i32, %c0_i32_0 : i32, i32
  }
  func.func @transform_5(%arg0: i32) -> (i32, i32, i32, i32) {
    %c0_i32 = arith.constant 0 : i32
    %c0_i32_0 = arith.constant 0 : i32
    %c0_i32_1 = arith.constant 0 : i32
    %c0_i32_2 = arith.constant 0 : i32
    %c0_i32_3 = arith.constant 0 : i32
    return %c0_i32, %c0_i32_0, %c0_i32_1, %c0_i32_2 : i32, i32, i32, i32
  }
  func.func @transform_6(%arg0: i32) -> (i32, i32) {
    %c0_i32 = arith.constant 0 : i32
    %c0_i32_0 = arith.constant 0 : i32
    %c0_i32_1 = arith.constant 0 : i32
    return %c0_i32, %c0_i32_0 : i32, i32
  }
  func.func @transform_7(%arg0: i32) -> (i32, i32) {
    %c0_i32 = arith.constant 0 : i32
    %c0_i32_0 = arith.constant 0 : i32
    %c0_i32_1 = arith.constant 0 : i32
    return %c0_i32, %c0_i32_0 : i32, i32
  }
  func.func @transform_8(%arg0: i32) -> (i32, i32) {
    %c0_i32 = arith.constant 0 : i32
    %c0_i32_0 = arith.constant 0 : i32
    %c0_i32_1 = arith.constant 0 : i32
    return %c0_i32, %c0_i32_0 : i32, i32
  }
  func.func @transform_9(%arg0: i32) -> (i32, i32) {
    %c0_i32 = arith.constant 0 : i32
    %c0_i32_0 = arith.constant 0 : i32
    %c0_i32_1 = arith.constant 0 : i32
    return %c0_i32, %c0_i32_0 : i32, i32
  }
  func.func @transform_10(%arg0: i32) -> (i32, i32) {
    %c0_i32 = arith.constant 0 : i32
    %c0_i32_0 = arith.constant 0 : i32
    %c0_i32_1 = arith.constant 0 : i32
    return %c0_i32, %c0_i32_0 : i32, i32
  }
  func.func @transform_11(%arg0: i32) -> (i32, i32, i32) {
    %c0_i32 = arith.constant 0 : i32
    %c0_i32_0 = arith.constant 0 : i32
    %c0_i32_1 = arith.constant 0 : i32
    return %arg0, %c0_i32, %c0_i32_0 : i32, i32, i32
  }
}

module attributes {stable_mosaic.version = 11 : i64} {
  func.func @kernel(%arg0: i32, %arg1: memref<1x1x144xbf16, #tpu.memory_space<vmem>>, %arg2: memref<1x1x16xbf16, #tpu.memory_space<vmem>>, %arg3: memref<144x32xbf16, #tpu.memory_space<vmem>>, %arg4: memref<1x32xf32, #tpu.memory_space<vmem>>, %arg5: memref<1x32xf32, #tpu.memory_space<vmem>>, %arg6: memref<3x3x32x32xbf16, #tpu.memory_space<vmem>>, %arg7: memref<1x32xf32, #tpu.memory_space<vmem>>, %arg8: memref<1x32xf32, #tpu.memory_space<vmem>>, %arg9: memref<16x32xbf16, #tpu.memory_space<vmem>>, %arg10: memref<1x32xf32, #tpu.memory_space<vmem>>, %arg11: memref<1x32xf32, #tpu.memory_space<vmem>>, %arg12: memref<1x1x32xbf16, #tpu.memory_space<vmem>>, %arg13: memref<17x32xbf16, #tpu.memory_space<vmem>>) attributes {dimension_semantics = [#tpu.dimension_semantics<parallel>], iteration_bounds = array<i64: 2>, scalar_prefetch = 0 : i64, scratch_operands = 1 : i64, tpu.core_type = #tpu.core_type<tc>, window_params = [{transform_indices = @transform_0, window_bounds = array<i64: 1, 1, 144>}, {transform_indices = @transform_1, window_bounds = array<i64: 1, 1, 16>}, {pipeline_mode = #tpu.pipeline_mode<synchronous>, transform_indices = @transform_2, window_bounds = array<i64: 144, 32>}, {pipeline_mode = #tpu.pipeline_mode<synchronous>, transform_indices = @transform_3, window_bounds = array<i64: 1, 32>}, {pipeline_mode = #tpu.pipeline_mode<synchronous>, transform_indices = @transform_4, window_bounds = array<i64: 1, 32>}, {pipeline_mode = #tpu.pipeline_mode<synchronous>, transform_indices = @transform_5, window_bounds = array<i64: 3, 3, 32, 32>}, {pipeline_mode = #tpu.pipeline_mode<synchronous>, transform_indices = @transform_6, window_bounds = array<i64: 1, 32>}, {pipeline_mode = #tpu.pipeline_mode<synchronous>, transform_indices = @transform_7, window_bounds = array<i64: 1, 32>}, {pipeline_mode = #tpu.pipeline_mode<synchronous>, transform_indices = @transform_8, window_bounds = array<i64: 16, 32>}, {pipeline_mode = #tpu.pipeline_mode<synchronous>, transform_indices = @transform_9, window_bounds = array<i64: 1, 32>}, {pipeline_mode = #tpu.pipeline_mode<synchronous>, transform_indices = @transform_10, window_bounds = array<i64: 1, 32>}, {transform_indices = @transform_11, window_bounds = array<i64: 1, 1, 32>}]} {
    %c0_i32 = arith.constant 0 : i32
    %0 = arith.cmpi eq, %arg0, %c0_i32 : i32
    %1 = arith.extui %0 : i1 to i32
    %c0_i32_0 = arith.constant 0 : i32
    %2 = arith.cmpi ne, %1, %c0_i32_0 : i32
    scf.if %2 {
      %cst_35 = arith.constant 0.000000e+00 : bf16
      %38 = vector.broadcast %cst_35 : bf16 to vector<17x32xbf16>
      %c0_36 = arith.constant 0 : index
      %c0_37 = arith.constant 0 : index
      %39 = vector.load %arg13[%c0_36, %c0_37] : memref<17x32xbf16, #tpu.memory_space<vmem>>, vector<17x32xbf16>
      tpu.vector_store %arg13[%c0_36, %c0_37], %38 {strides = array<i32>} : memref<17x32xbf16, #tpu.memory_space<vmem>>, vector<17x32xbf16>,
    } else {
    }
    %c0 = arith.constant 0 : index
    %c0_1 = arith.constant 0 : index
    %c0_2 = arith.constant 0 : index
    %3 = vector.load %arg1[%c0, %c0_1, %c0_2] : memref<1x1x144xbf16, #tpu.memory_space<vmem>>, vector<1x1x144xbf16>
    %4 = vector.shape_cast %3 : vector<1x1x144xbf16> to vector<1x144xbf16>
    %c0_3 = arith.constant 0 : index
    %c0_4 = arith.constant 0 : index
    %5 = vector.load %arg3[%c0_3, %c0_4] : memref<144x32xbf16, #tpu.memory_space<vmem>>, vector<144x32xbf16>
    %cst = arith.constant dense<0.000000e+00> : vector<1x32xf32>
    %6 = tpu.matmul %4, %5, %cst {dimension_numbers = #tpu.dot_dimension_numbers<[1], [0], [0], [1], [0, 0, 1, 1], [], []>} : vector<1x144xbf16>, vector<144x32xbf16>, vector<1x32xf32> -> vector<1x32xf32>
    %c0_5 = arith.constant 0 : index
    %c0_6 = arith.constant 0 : index
    %7 = vector.load %arg4[%c0_5, %c0_6] : memref<1x32xf32, #tpu.memory_space<vmem>>, vector<1x32xf32>
    %8 = arith.mulf %6, %7 : vector<1x32xf32>
    %c0_7 = arith.constant 0 : index
    %c0_8 = arith.constant 0 : index
    %9 = vector.load %arg5[%c0_7, %c0_8] : memref<1x32xf32, #tpu.memory_space<vmem>>, vector<1x32xf32>
    %10 = arith.addf %8, %9 : vector<1x32xf32>
    %cst_9 = arith.constant 0.000000e+00 : f32
    %11 = vector.broadcast %cst_9 : f32 to vector<1x32xf32>
    %12 = arith.maximumf %10, %11 : vector<1x32xf32>
    %13 = arith.truncf %12 : vector<1x32xf32> to vector<1x32xbf16>
    %c8 = arith.constant 8 : index
    %c0_10 = arith.constant 0 : index
    %14 = vector.load %arg13[%c8, %c0_10] : memref<17x32xbf16, #tpu.memory_space<vmem>>, vector<1x32xbf16>
    tpu.vector_store %arg13[%c8, %c0_10], %13 {strides = array<i32>} : memref<17x32xbf16, #tpu.memory_space<vmem>>, vector<1x32xbf16>,
    %c8_11 = arith.constant 8 : index
    %c0_12 = arith.constant 0 : index
    %15 = vector.load %arg13[%c8_11, %c0_12] : memref<17x32xbf16, #tpu.memory_space<vmem>>, vector<1x32xbf16>
    %c1 = arith.constant 1 : index
    %c1_13 = arith.constant 1 : index
    %c0_14 = arith.constant 0 : index
    %c0_15 = arith.constant 0 : index
    %16 = vector.load %arg6[%c1, %c1_13, %c0_14, %c0_15] : memref<3x3x32x32xbf16, #tpu.memory_space<vmem>>, vector<1x1x32x32xbf16>
    %17 = vector.shape_cast %16 : vector<1x1x32x32xbf16> to vector<32x32xbf16>
    %cst_16 = arith.constant dense<0.000000e+00> : vector<1x32xf32>
    %18 = tpu.matmul %15, %17, %cst_16 {dimension_numbers = #tpu.dot_dimension_numbers<[1], [0], [0], [1], [0, 0, 1, 1], [], []>} : vector<1x32xbf16>, vector<32x32xbf16>, vector<1x32xf32> -> vector<1x32xf32>
    %c0_17 = arith.constant 0 : index
    %c0_18 = arith.constant 0 : index
    %19 = vector.load %arg7[%c0_17, %c0_18] : memref<1x32xf32, #tpu.memory_space<vmem>>, vector<1x32xf32>
    %20 = arith.mulf %18, %19 : vector<1x32xf32>
    %c0_19 = arith.constant 0 : index
    %c0_20 = arith.constant 0 : index
    %21 = vector.load %arg8[%c0_19, %c0_20] : memref<1x32xf32, #tpu.memory_space<vmem>>, vector<1x32xf32>
    %22 = arith.addf %20, %21 : vector<1x32xf32>
    %c0_21 = arith.constant 0 : index
    %c0_22 = arith.constant 0 : index
    %c0_23 = arith.constant 0 : index
    %23 = vector.load %arg2[%c0_21, %c0_22, %c0_23] : memref<1x1x16xbf16, #tpu.memory_space<vmem>>, vector<1x1x16xbf16>
    %24 = vector.shape_cast %23 : vector<1x1x16xbf16> to vector<1x16xbf16>
    %c0_24 = arith.constant 0 : index
    %c0_25 = arith.constant 0 : index
    %25 = vector.load %arg9[%c0_24, %c0_25] : memref<16x32xbf16, #tpu.memory_space<vmem>>, vector<16x32xbf16>
    %cst_26 = arith.constant dense<0.000000e+00> : vector<1x32xf32>
    %26 = tpu.matmul %24, %25, %cst_26 {dimension_numbers = #tpu.dot_dimension_numbers<[1], [0], [0], [1], [0, 0, 1, 1], [], []>} : vector<1x16xbf16>, vector<16x32xbf16>, vector<1x32xf32> -> vector<1x32xf32>
    %c0_27 = arith.constant 0 : index
    %c0_28 = arith.constant 0 : index
    %27 = vector.load %arg10[%c0_27, %c0_28] : memref<1x32xf32, #tpu.memory_space<vmem>>, vector<1x32xf32>
    %28 = arith.mulf %26, %27 : vector<1x32xf32>
    %c0_29 = arith.constant 0 : index
    %c0_30 = arith.constant 0 : index
    %29 = vector.load %arg11[%c0_29, %c0_30] : memref<1x32xf32, #tpu.memory_space<vmem>>, vector<1x32xf32>
    %30 = arith.addf %28, %29 : vector<1x32xf32>
    %31 = arith.addf %22, %30 : vector<1x32xf32>
    %cst_31 = arith.constant 0.000000e+00 : f32
    %32 = vector.broadcast %cst_31 : f32 to vector<1x32xf32>
    %33 = arith.maximumf %31, %32 : vector<1x32xf32>
    %34 = arith.truncf %33 : vector<1x32xf32> to vector<1x32xbf16>
    %c0_32 = arith.constant 0 : index
    %c0_33 = arith.constant 0 : index
    %c0_34 = arith.constant 0 : index
    %35 = vector.load %arg12[%c0_32, %c0_33, %c0_34] : memref<1x1x32xbf16, #tpu.memory_space<vmem>>, vector<1x1x32xbf16>
    %36 = vector.shape_cast %35 : vector<1x1x32xbf16> to vector<1x32xbf16>
    %37 = vector.shape_cast %34 : vector<1x32xbf16> to vector<1x1x32xbf16>
    tpu.vector_store %arg12[%c0_32, %c0_33, %c0_34], %37 {strides = array<i32>} : memref<1x1x32xbf16, #tpu.memory_space<vmem>>, vector<1x1x32xbf16>,
    return
  }
  func.func @transform_0(%arg0: i32) -> (i32, i32, i32) {
    %c0_i32 = arith.constant 0 : i32
    %c0_i32_0 = arith.constant 0 : i32
    %c0_i32_1 = arith.constant 0 : i32
    return %arg0, %c0_i32, %c0_i32_0 : i32, i32, i32
  }
  func.func @transform_1(%arg0: i32) -> (i32, i32, i32) {
    %c0_i32 = arith.constant 0 : i32
    %c0_i32_0 = arith.constant 0 : i32
    %c0_i32_1 = arith.constant 0 : i32
    return %arg0, %c0_i32, %c0_i32_0 : i32, i32, i32
  }
  func.func @transform_2(%arg0: i32) -> (i32, i32) {
    %c0_i32 = arith.constant 0 : i32
    %c0_i32_0 = arith.constant 0 : i32
    %c0_i32_1 = arith.constant 0 : i32
    return %c0_i32, %c0_i32_0 : i32, i32
  }
  func.func @transform_3(%arg0: i32) -> (i32, i32) {
    %c0_i32 = arith.constant 0 : i32
    %c0_i32_0 = arith.constant 0 : i32
    %c0_i32_1 = arith.constant 0 : i32
    return %c0_i32, %c0_i32_0 : i32, i32
  }
  func.func @transform_4(%arg0: i32) -> (i32, i32) {
    %c0_i32 = arith.constant 0 : i32
    %c0_i32_0 = arith.constant 0 : i32
    %c0_i32_1 = arith.constant 0 : i32
    return %c0_i32, %c0_i32_0 : i32, i32
  }
  func.func @transform_5(%arg0: i32) -> (i32, i32, i32, i32) {
    %c0_i32 = arith.constant 0 : i32
    %c0_i32_0 = arith.constant 0 : i32
    %c0_i32_1 = arith.constant 0 : i32
    %c0_i32_2 = arith.constant 0 : i32
    %c0_i32_3 = arith.constant 0 : i32
    return %c0_i32, %c0_i32_0, %c0_i32_1, %c0_i32_2 : i32, i32, i32, i32
  }
  func.func @transform_6(%arg0: i32) -> (i32, i32) {
    %c0_i32 = arith.constant 0 : i32
    %c0_i32_0 = arith.constant 0 : i32
    %c0_i32_1 = arith.constant 0 : i32
    return %c0_i32, %c0_i32_0 : i32, i32
  }
  func.func @transform_7(%arg0: i32) -> (i32, i32) {
    %c0_i32 = arith.constant 0 : i32
    %c0_i32_0 = arith.constant 0 : i32
    %c0_i32_1 = arith.constant 0 : i32
    return %c0_i32, %c0_i32_0 : i32, i32
  }
  func.func @transform_8(%arg0: i32) -> (i32, i32) {
    %c0_i32 = arith.constant 0 : i32
    %c0_i32_0 = arith.constant 0 : i32
    %c0_i32_1 = arith.constant 0 : i32
    return %c0_i32, %c0_i32_0 : i32, i32
  }
  func.func @transform_9(%arg0: i32) -> (i32, i32) {
    %c0_i32 = arith.constant 0 : i32
    %c0_i32_0 = arith.constant 0 : i32
    %c0_i32_1 = arith.constant 0 : i32
    return %c0_i32, %c0_i32_0 : i32, i32
  }
  func.func @transform_10(%arg0: i32) -> (i32, i32) {
    %c0_i32 = arith.constant 0 : i32
    %c0_i32_0 = arith.constant 0 : i32
    %c0_i32_1 = arith.constant 0 : i32
    return %c0_i32, %c0_i32_0 : i32, i32
  }
  func.func @transform_11(%arg0: i32) -> (i32, i32, i32) {
    %c0_i32 = arith.constant 0 : i32
    %c0_i32_0 = arith.constant 0 : i32
    %c0_i32_1 = arith.constant 0 : i32
    return %arg0, %c0_i32, %c0_i32_0 : i32, i32, i32
  }
}

module attributes {stable_mosaic.version = 11 : i64} {
  func.func @kernel(%arg0: i32, %arg1: memref<1x1x32xbf16, #tpu.memory_space<vmem>>, %arg2: memref<3x3x32x32xbf16, #tpu.memory_space<vmem>>, %arg3: memref<1x32xf32, #tpu.memory_space<vmem>>, %arg4: memref<1x32xf32, #tpu.memory_space<vmem>>, %arg5: memref<3x3x32x32xbf16, #tpu.memory_space<vmem>>, %arg6: memref<1x32xf32, #tpu.memory_space<vmem>>, %arg7: memref<1x32xf32, #tpu.memory_space<vmem>>, %arg8: memref<1x1x32xbf16, #tpu.memory_space<vmem>>, %arg9: memref<17x32xbf16, #tpu.memory_space<vmem>>, %arg10: memref<17x32xbf16, #tpu.memory_space<vmem>>) attributes {dimension_semantics = [#tpu.dimension_semantics<parallel>], iteration_bounds = array<i64: 2>, scalar_prefetch = 0 : i64, scratch_operands = 2 : i64, tpu.core_type = #tpu.core_type<tc>, window_params = [{transform_indices = @transform_0, window_bounds = array<i64: 1, 1, 32>}, {pipeline_mode = #tpu.pipeline_mode<synchronous>, transform_indices = @transform_1, window_bounds = array<i64: 3, 3, 32, 32>}, {pipeline_mode = #tpu.pipeline_mode<synchronous>, transform_indices = @transform_2, window_bounds = array<i64: 1, 32>}, {pipeline_mode = #tpu.pipeline_mode<synchronous>, transform_indices = @transform_3, window_bounds = array<i64: 1, 32>}, {pipeline_mode = #tpu.pipeline_mode<synchronous>, transform_indices = @transform_4, window_bounds = array<i64: 3, 3, 32, 32>}, {pipeline_mode = #tpu.pipeline_mode<synchronous>, transform_indices = @transform_5, window_bounds = array<i64: 1, 32>}, {pipeline_mode = #tpu.pipeline_mode<synchronous>, transform_indices = @transform_6, window_bounds = array<i64: 1, 32>}, {transform_indices = @transform_7, window_bounds = array<i64: 1, 1, 32>}]} {
    %c0_i32 = arith.constant 0 : i32
    %0 = arith.cmpi eq, %arg0, %c0_i32 : i32
    %1 = arith.extui %0 : i1 to i32
    %c0_i32_0 = arith.constant 0 : i32
    %2 = arith.cmpi ne, %1, %c0_i32_0 : i32
    scf.if %2 {
      %cst_31 = arith.constant 0.000000e+00 : bf16
      %34 = vector.broadcast %cst_31 : bf16 to vector<17x32xbf16>
      %c0_32 = arith.constant 0 : index
      %c0_33 = arith.constant 0 : index
      %35 = vector.load %arg9[%c0_32, %c0_33] : memref<17x32xbf16, #tpu.memory_space<vmem>>, vector<17x32xbf16>
      tpu.vector_store %arg9[%c0_32, %c0_33], %34 {strides = array<i32>} : memref<17x32xbf16, #tpu.memory_space<vmem>>, vector<17x32xbf16>,
      %cst_34 = arith.constant 0.000000e+00 : bf16
      %36 = vector.broadcast %cst_34 : bf16 to vector<17x32xbf16>
      %c0_35 = arith.constant 0 : index
      %c0_36 = arith.constant 0 : index
      %37 = vector.load %arg10[%c0_35, %c0_36] : memref<17x32xbf16, #tpu.memory_space<vmem>>, vector<17x32xbf16>
      tpu.vector_store %arg10[%c0_35, %c0_36], %36 {strides = array<i32>} : memref<17x32xbf16, #tpu.memory_space<vmem>>, vector<17x32xbf16>,
    } else {
    }
    %c0 = arith.constant 0 : index
    %c0_1 = arith.constant 0 : index
    %c0_2 = arith.constant 0 : index
    %3 = vector.load %arg1[%c0, %c0_1, %c0_2] : memref<1x1x32xbf16, #tpu.memory_space<vmem>>, vector<1x1x32xbf16>
    %4 = vector.shape_cast %3 : vector<1x1x32xbf16> to vector<1x32xbf16>
    %c8 = arith.constant 8 : index
    %c0_3 = arith.constant 0 : index
    %5 = vector.load %arg9[%c8, %c0_3] : memref<17x32xbf16, #tpu.memory_space<vmem>>, vector<1x32xbf16>
    tpu.vector_store %arg9[%c8, %c0_3], %4 {strides = array<i32>} : memref<17x32xbf16, #tpu.memory_space<vmem>>, vector<1x32xbf16>,
    %c8_4 = arith.constant 8 : index
    %c0_5 = arith.constant 0 : index
    %6 = vector.load %arg9[%c8_4, %c0_5] : memref<17x32xbf16, #tpu.memory_space<vmem>>, vector<1x32xbf16>
    %c1 = arith.constant 1 : index
    %c1_6 = arith.constant 1 : index
    %c0_7 = arith.constant 0 : index
    %c0_8 = arith.constant 0 : index
    %7 = vector.load %arg2[%c1, %c1_6, %c0_7, %c0_8] : memref<3x3x32x32xbf16, #tpu.memory_space<vmem>>, vector<1x1x32x32xbf16>
    %8 = vector.shape_cast %7 : vector<1x1x32x32xbf16> to vector<32x32xbf16>
    %cst = arith.constant dense<0.000000e+00> : vector<1x32xf32>
    %9 = tpu.matmul %6, %8, %cst {dimension_numbers = #tpu.dot_dimension_numbers<[1], [0], [0], [1], [0, 0, 1, 1], [], []>} : vector<1x32xbf16>, vector<32x32xbf16>, vector<1x32xf32> -> vector<1x32xf32>
    %c0_9 = arith.constant 0 : index
    %c0_10 = arith.constant 0 : index
    %10 = vector.load %arg3[%c0_9, %c0_10] : memref<1x32xf32, #tpu.memory_space<vmem>>, vector<1x32xf32>
    %11 = arith.mulf %9, %10 : vector<1x32xf32>
    %c0_11 = arith.constant 0 : index
    %c0_12 = arith.constant 0 : index
    %12 = vector.load %arg4[%c0_11, %c0_12] : memref<1x32xf32, #tpu.memory_space<vmem>>, vector<1x32xf32>
    %13 = arith.addf %11, %12 : vector<1x32xf32>
    %cst_13 = arith.constant 0.000000e+00 : f32
    %14 = vector.broadcast %cst_13 : f32 to vector<1x32xf32>
    %15 = arith.maximumf %13, %14 : vector<1x32xf32>
    %16 = arith.truncf %15 : vector<1x32xf32> to vector<1x32xbf16>
    %c8_14 = arith.constant 8 : index
    %c0_15 = arith.constant 0 : index
    %17 = vector.load %arg10[%c8_14, %c0_15] : memref<17x32xbf16, #tpu.memory_space<vmem>>, vector<1x32xbf16>
    tpu.vector_store %arg10[%c8_14, %c0_15], %16 {strides = array<i32>} : memref<17x32xbf16, #tpu.memory_space<vmem>>, vector<1x32xbf16>,
    %c8_16 = arith.constant 8 : index
    %c0_17 = arith.constant 0 : index
    %18 = vector.load %arg10[%c8_16, %c0_17] : memref<17x32xbf16, #tpu.memory_space<vmem>>, vector<1x32xbf16>
    %c1_18 = arith.constant 1 : index
    %c1_19 = arith.constant 1 : index
    %c0_20 = arith.constant 0 : index
    %c0_21 = arith.constant 0 : index
    %19 = vector.load %arg5[%c1_18, %c1_19, %c0_20, %c0_21] : memref<3x3x32x32xbf16, #tpu.memory_space<vmem>>, vector<1x1x32x32xbf16>
    %20 = vector.shape_cast %19 : vector<1x1x32x32xbf16> to vector<32x32xbf16>
    %cst_22 = arith.constant dense<0.000000e+00> : vector<1x32xf32>
    %21 = tpu.matmul %18, %20, %cst_22 {dimension_numbers = #tpu.dot_dimension_numbers<[1], [0], [0], [1], [0, 0, 1, 1], [], []>} : vector<1x32xbf16>, vector<32x32xbf16>, vector<1x32xf32> -> vector<1x32xf32>
    %c0_23 = arith.constant 0 : index
    %c0_24 = arith.constant 0 : index
    %22 = vector.load %arg6[%c0_23, %c0_24] : memref<1x32xf32, #tpu.memory_space<vmem>>, vector<1x32xf32>
    %23 = arith.mulf %21, %22 : vector<1x32xf32>
    %c0_25 = arith.constant 0 : index
    %c0_26 = arith.constant 0 : index
    %24 = vector.load %arg7[%c0_25, %c0_26] : memref<1x32xf32, #tpu.memory_space<vmem>>, vector<1x32xf32>
    %25 = arith.addf %23, %24 : vector<1x32xf32>
    %26 = arith.extf %4 : vector<1x32xbf16> to vector<1x32xf32>
    %27 = arith.addf %25, %26 : vector<1x32xf32>
    %cst_27 = arith.constant 0.000000e+00 : f32
    %28 = vector.broadcast %cst_27 : f32 to vector<1x32xf32>
    %29 = arith.maximumf %27, %28 : vector<1x32xf32>
    %30 = arith.truncf %29 : vector<1x32xf32> to vector<1x32xbf16>
    %c0_28 = arith.constant 0 : index
    %c0_29 = arith.constant 0 : index
    %c0_30 = arith.constant 0 : index
    %31 = vector.load %arg8[%c0_28, %c0_29, %c0_30] : memref<1x1x32xbf16, #tpu.memory_space<vmem>>, vector<1x1x32xbf16>
    %32 = vector.shape_cast %31 : vector<1x1x32xbf16> to vector<1x32xbf16>
    %33 = vector.shape_cast %30 : vector<1x32xbf16> to vector<1x1x32xbf16>
    tpu.vector_store %arg8[%c0_28, %c0_29, %c0_30], %33 {strides = array<i32>} : memref<1x1x32xbf16, #tpu.memory_space<vmem>>, vector<1x1x32xbf16>,
    return
  }
  func.func @transform_0(%arg0: i32) -> (i32, i32, i32) {
    %c0_i32 = arith.constant 0 : i32
    %c0_i32_0 = arith.constant 0 : i32
    %c0_i32_1 = arith.constant 0 : i32
    return %arg0, %c0_i32, %c0_i32_0 : i32, i32, i32
  }
  func.func @transform_1(%arg0: i32) -> (i32, i32, i32, i32) {
    %c0_i32 = arith.constant 0 : i32
    %c0_i32_0 = arith.constant 0 : i32
    %c0_i32_1 = arith.constant 0 : i32
    %c0_i32_2 = arith.constant 0 : i32
    %c0_i32_3 = arith.constant 0 : i32
    return %c0_i32, %c0_i32_0, %c0_i32_1, %c0_i32_2 : i32, i32, i32, i32
  }
  func.func @transform_2(%arg0: i32) -> (i32, i32) {
    %c0_i32 = arith.constant 0 : i32
    %c0_i32_0 = arith.constant 0 : i32
    %c0_i32_1 = arith.constant 0 : i32
    return %c0_i32, %c0_i32_0 : i32, i32
  }
  func.func @transform_3(%arg0: i32) -> (i32, i32) {
    %c0_i32 = arith.constant 0 : i32
    %c0_i32_0 = arith.constant 0 : i32
    %c0_i32_1 = arith.constant 0 : i32
    return %c0_i32, %c0_i32_0 : i32, i32
  }
  func.func @transform_4(%arg0: i32) -> (i32, i32, i32, i32) {
    %c0_i32 = arith.constant 0 : i32
    %c0_i32_0 = arith.constant 0 : i32
    %c0_i32_1 = arith.constant 0 : i32
    %c0_i32_2 = arith.constant 0 : i32
    %c0_i32_3 = arith.constant 0 : i32
    return %c0_i32, %c0_i32_0, %c0_i32_1, %c0_i32_2 : i32, i32, i32, i32
  }
  func.func @transform_5(%arg0: i32) -> (i32, i32) {
    %c0_i32 = arith.constant 0 : i32
    %c0_i32_0 = arith.constant 0 : i32
    %c0_i32_1 = arith.constant 0 : i32
    return %c0_i32, %c0_i32_0 : i32, i32
  }
  func.func @transform_6(%arg0: i32) -> (i32, i32) {
    %c0_i32 = arith.constant 0 : i32
    %c0_i32_0 = arith.constant 0 : i32
    %c0_i32_1 = arith.constant 0 : i32
    return %c0_i32, %c0_i32_0 : i32, i32
  }
  func.func @transform_7(%arg0: i32) -> (i32, i32, i32) {
    %c0_i32 = arith.constant 0 : i32
    %c0_i32_0 = arith.constant 0 : i32
    %c0_i32_1 = arith.constant 0 : i32
    return %arg0, %c0_i32, %c0_i32_0 : i32, i32, i32
  }
}

module attributes {stable_mosaic.version = 11 : i64} {
  func.func @kernel(%arg0: i32, %arg1: memref<1x4x16xbf16, #tpu.memory_space<vmem>>, %arg2: memref<3x3x16x16xbf16, #tpu.memory_space<vmem>>, %arg3: memref<1x16xf32, #tpu.memory_space<vmem>>, %arg4: memref<1x16xf32, #tpu.memory_space<vmem>>, %arg5: memref<3x3x16x16xbf16, #tpu.memory_space<vmem>>, %arg6: memref<1x16xf32, #tpu.memory_space<vmem>>, %arg7: memref<1x16xf32, #tpu.memory_space<vmem>>, %arg8: memref<1x4x16xbf16, #tpu.memory_space<vmem>>, %arg9: memref<20x16xbf16, #tpu.memory_space<vmem>>, %arg10: memref<20x16xbf16, #tpu.memory_space<vmem>>) attributes {dimension_semantics = [#tpu.dimension_semantics<parallel>], iteration_bounds = array<i64: 2>, scalar_prefetch = 0 : i64, scratch_operands = 2 : i64, tpu.core_type = #tpu.core_type<tc>, window_params = [{transform_indices = @transform_0, window_bounds = array<i64: 1, 4, 16>}, {pipeline_mode = #tpu.pipeline_mode<synchronous>, transform_indices = @transform_1, window_bounds = array<i64: 3, 3, 16, 16>}, {pipeline_mode = #tpu.pipeline_mode<synchronous>, transform_indices = @transform_2, window_bounds = array<i64: 1, 16>}, {pipeline_mode = #tpu.pipeline_mode<synchronous>, transform_indices = @transform_3, window_bounds = array<i64: 1, 16>}, {pipeline_mode = #tpu.pipeline_mode<synchronous>, transform_indices = @transform_4, window_bounds = array<i64: 3, 3, 16, 16>}, {pipeline_mode = #tpu.pipeline_mode<synchronous>, transform_indices = @transform_5, window_bounds = array<i64: 1, 16>}, {pipeline_mode = #tpu.pipeline_mode<synchronous>, transform_indices = @transform_6, window_bounds = array<i64: 1, 16>}, {transform_indices = @transform_7, window_bounds = array<i64: 1, 4, 16>}]} {
    %c0_i32 = arith.constant 0 : i32
    %0 = arith.cmpi eq, %arg0, %c0_i32 : i32
    %1 = arith.extui %0 : i1 to i32
    %c0_i32_0 = arith.constant 0 : i32
    %2 = arith.cmpi ne, %1, %c0_i32_0 : i32
    scf.if %2 {
      %cst_153 = arith.constant 0.000000e+00 : bf16
      %156 = vector.broadcast %cst_153 : bf16 to vector<20x16xbf16>
      %c0_154 = arith.constant 0 : index
      %c0_155 = arith.constant 0 : index
      %157 = vector.load %arg9[%c0_154, %c0_155] : memref<20x16xbf16, #tpu.memory_space<vmem>>, vector<20x16xbf16>
      tpu.vector_store %arg9[%c0_154, %c0_155], %156 {strides = array<i32>} : memref<20x16xbf16, #tpu.memory_space<vmem>>, vector<20x16xbf16>,
      %cst_156 = arith.constant 0.000000e+00 : bf16
      %158 = vector.broadcast %cst_156 : bf16 to vector<20x16xbf16>
      %c0_157 = arith.constant 0 : index
      %c0_158 = arith.constant 0 : index
      %159 = vector.load %arg10[%c0_157, %c0_158] : memref<20x16xbf16, #tpu.memory_space<vmem>>, vector<20x16xbf16>
      tpu.vector_store %arg10[%c0_157, %c0_158], %158 {strides = array<i32>} : memref<20x16xbf16, #tpu.memory_space<vmem>>, vector<20x16xbf16>,
    } else {
    }
    %c0 = arith.constant 0 : index
    %c0_1 = arith.constant 0 : index
    %c0_2 = arith.constant 0 : index
    %3 = vector.load %arg1[%c0, %c0_1, %c0_2] : memref<1x4x16xbf16, #tpu.memory_space<vmem>>, vector<1x4x16xbf16>
    %4 = vector.shape_cast %3 : vector<1x4x16xbf16> to vector<4x16xbf16>
    %c8 = arith.constant 8 : index
    %c0_3 = arith.constant 0 : index
    %5 = vector.load %arg9[%c8, %c0_3] : memref<20x16xbf16, #tpu.memory_space<vmem>>, vector<4x16xbf16>
    tpu.vector_store %arg9[%c8, %c0_3], %4 {strides = array<i32>} : memref<20x16xbf16, #tpu.memory_space<vmem>>, vector<4x16xbf16>,
    %6 = tpu.iota {dimensions = array<i32: 0>} : vector<4x16xi32>
    %c1_i32 = arith.constant 1 : i32
    %7 = vector.broadcast %c1_i32 : i32 to vector<4x16xi32>
    %8 = arith.andi %6, %7 : vector<4x16xi32>
    %c1_i32_4 = arith.constant 1 : i32
    %9 = vector.broadcast %c1_i32_4 : i32 to vector<4x16xi32>
    %10 = arith.cmpi sge, %8, %9 : vector<4x16xi32>
    %c0_i32_5 = arith.constant 0 : i32
    %11 = vector.broadcast %c0_i32_5 : i32 to vector<4x16xi32>
    %12 = arith.cmpi sle, %8, %11 : vector<4x16xi32>
    %c5 = arith.constant 5 : index
    %c0_6 = arith.constant 0 : index
    %13 = vector.load %arg9[%c5, %c0_6] : memref<20x16xbf16, #tpu.memory_space<vmem>>, vector<4x16xbf16>
    %cst = arith.constant 0.000000e+00 : bf16
    %14 = vector.broadcast %cst : bf16 to vector<4x16xbf16>
    %15 = arith.select %10, %13, %14 : vector<4x16xi1>, vector<4x16xbf16>
    %c0_7 = arith.constant 0 : index
    %c0_8 = arith.constant 0 : index
    %c0_9 = arith.constant 0 : index
    %c0_10 = arith.constant 0 : index
    %16 = vector.load %arg2[%c0_7, %c0_8, %c0_9, %c0_10] : memref<3x3x16x16xbf16, #tpu.memory_space<vmem>>, vector<1x1x16x16xbf16>
    %17 = vector.shape_cast %16 : vector<1x1x16x16xbf16> to vector<16x16xbf16>
    %cst_11 = arith.constant dense<0.000000e+00> : vector<4x16xf32>
    %18 = tpu.matmul %15, %17, %cst_11 {dimension_numbers = #tpu.dot_dimension_numbers<[1], [0], [0], [1], [0, 0, 1, 1], [], []>} : vector<4x16xbf16>, vector<16x16xbf16>, vector<4x16xf32> -> vector<4x16xf32>
    %c6 = arith.constant 6 : index
    %c0_12 = arith.constant 0 : index
    %19 = vector.load %arg9[%c6, %c0_12] : memref<20x16xbf16, #tpu.memory_space<vmem>>, vector<4x16xbf16>
    %c0_13 = arith.constant 0 : index
    %c1 = arith.constant 1 : index
    %c0_14 = arith.constant 0 : index
    %c0_15 = arith.constant 0 : index
    %20 = vector.load %arg2[%c0_13, %c1, %c0_14, %c0_15] : memref<3x3x16x16xbf16, #tpu.memory_space<vmem>>, vector<1x1x16x16xbf16>
    %21 = vector.shape_cast %20 : vector<1x1x16x16xbf16> to vector<16x16xbf16>
    %cst_16 = arith.constant dense<0.000000e+00> : vector<4x16xf32>
    %22 = tpu.matmul %19, %21, %cst_16 {dimension_numbers = #tpu.dot_dimension_numbers<[1], [0], [0], [1], [0, 0, 1, 1], [], []>} : vector<4x16xbf16>, vector<16x16xbf16>, vector<4x16xf32> -> vector<4x16xf32>
    %23 = arith.addf %18, %22 : vector<4x16xf32>
    %c7 = arith.constant 7 : index
    %c0_17 = arith.constant 0 : index
    %24 = vector.load %arg9[%c7, %c0_17] : memref<20x16xbf16, #tpu.memory_space<vmem>>, vector<4x16xbf16>
    %cst_18 = arith.constant 0.000000e+00 : bf16
    %25 = vector.broadcast %cst_18 : bf16 to vector<4x16xbf16>
    %26 = arith.select %12, %24, %25 : vector<4x16xi1>, vector<4x16xbf16>
    %c0_19 = arith.constant 0 : index
    %c2 = arith.constant 2 : index
    %c0_20 = arith.constant 0 : index
    %c0_21 = arith.constant 0 : index
    %27 = vector.load %arg2[%c0_19, %c2, %c0_20, %c0_21] : memref<3x3x16x16xbf16, #tpu.memory_space<vmem>>, vector<1x1x16x16xbf16>
    %28 = vector.shape_cast %27 : vector<1x1x16x16xbf16> to vector<16x16xbf16>
    %cst_22 = arith.constant dense<0.000000e+00> : vector<4x16xf32>
    %29 = tpu.matmul %26, %28, %cst_22 {dimension_numbers = #tpu.dot_dimension_numbers<[1], [0], [0], [1], [0, 0, 1, 1], [], []>} : vector<4x16xbf16>, vector<16x16xbf16>, vector<4x16xf32> -> vector<4x16xf32>
    %30 = arith.addf %23, %29 : vector<4x16xf32>
    %c7_23 = arith.constant 7 : index
    %c0_24 = arith.constant 0 : index
    %31 = vector.load %arg9[%c7_23, %c0_24] : memref<20x16xbf16, #tpu.memory_space<vmem>>, vector<4x16xbf16>
    %cst_25 = arith.constant 0.000000e+00 : bf16
    %32 = vector.broadcast %cst_25 : bf16 to vector<4x16xbf16>
    %33 = arith.select %10, %31, %32 : vector<4x16xi1>, vector<4x16xbf16>
    %c1_26 = arith.constant 1 : index
    %c0_27 = arith.constant 0 : index
    %c0_28 = arith.constant 0 : index
    %c0_29 = arith.constant 0 : index
    %34 = vector.load %arg2[%c1_26, %c0_27, %c0_28, %c0_29] : memref<3x3x16x16xbf16, #tpu.memory_space<vmem>>, vector<1x1x16x16xbf16>
    %35 = vector.shape_cast %34 : vector<1x1x16x16xbf16> to vector<16x16xbf16>
    %cst_30 = arith.constant dense<0.000000e+00> : vector<4x16xf32>
    %36 = tpu.matmul %33, %35, %cst_30 {dimension_numbers = #tpu.dot_dimension_numbers<[1], [0], [0], [1], [0, 0, 1, 1], [], []>} : vector<4x16xbf16>, vector<16x16xbf16>, vector<4x16xf32> -> vector<4x16xf32>
    %37 = arith.addf %30, %36 : vector<4x16xf32>
    %c8_31 = arith.constant 8 : index
    %c0_32 = arith.constant 0 : index
    %38 = vector.load %arg9[%c8_31, %c0_32] : memref<20x16xbf16, #tpu.memory_space<vmem>>, vector<4x16xbf16>
    %c1_33 = arith.constant 1 : index
    %c1_34 = arith.constant 1 : index
    %c0_35 = arith.constant 0 : index
    %c0_36 = arith.constant 0 : index
    %39 = vector.load %arg2[%c1_33, %c1_34, %c0_35, %c0_36] : memref<3x3x16x16xbf16, #tpu.memory_space<vmem>>, vector<1x1x16x16xbf16>
    %40 = vector.shape_cast %39 : vector<1x1x16x16xbf16> to vector<16x16xbf16>
    %cst_37 = arith.constant dense<0.000000e+00> : vector<4x16xf32>
    %41 = tpu.matmul %38, %40, %cst_37 {dimension_numbers = #tpu.dot_dimension_numbers<[1], [0], [0], [1], [0, 0, 1, 1], [], []>} : vector<4x16xbf16>, vector<16x16xbf16>, vector<4x16xf32> -> vector<4x16xf32>
    %42 = arith.addf %37, %41 : vector<4x16xf32>
    %c9 = arith.constant 9 : index
    %c0_38 = arith.constant 0 : index
    %43 = vector.load %arg9[%c9, %c0_38] : memref<20x16xbf16, #tpu.memory_space<vmem>>, vector<4x16xbf16>
    %cst_39 = arith.constant 0.000000e+00 : bf16
    %44 = vector.broadcast %cst_39 : bf16 to vector<4x16xbf16>
    %45 = arith.select %12, %43, %44 : vector<4x16xi1>, vector<4x16xbf16>
    %c1_40 = arith.constant 1 : index
    %c2_41 = arith.constant 2 : index
    %c0_42 = arith.constant 0 : index
    %c0_43 = arith.constant 0 : index
    %46 = vector.load %arg2[%c1_40, %c2_41, %c0_42, %c0_43] : memref<3x3x16x16xbf16, #tpu.memory_space<vmem>>, vector<1x1x16x16xbf16>
    %47 = vector.shape_cast %46 : vector<1x1x16x16xbf16> to vector<16x16xbf16>
    %cst_44 = arith.constant dense<0.000000e+00> : vector<4x16xf32>
    %48 = tpu.matmul %45, %47, %cst_44 {dimension_numbers = #tpu.dot_dimension_numbers<[1], [0], [0], [1], [0, 0, 1, 1], [], []>} : vector<4x16xbf16>, vector<16x16xbf16>, vector<4x16xf32> -> vector<4x16xf32>
    %49 = arith.addf %42, %48 : vector<4x16xf32>
    %c9_45 = arith.constant 9 : index
    %c0_46 = arith.constant 0 : index
    %50 = vector.load %arg9[%c9_45, %c0_46] : memref<20x16xbf16, #tpu.memory_space<vmem>>, vector<4x16xbf16>
    %cst_47 = arith.constant 0.000000e+00 : bf16
    %51 = vector.broadcast %cst_47 : bf16 to vector<4x16xbf16>
    %52 = arith.select %10, %50, %51 : vector<4x16xi1>, vector<4x16xbf16>
    %c2_48 = arith.constant 2 : index
    %c0_49 = arith.constant 0 : index
    %c0_50 = arith.constant 0 : index
    %c0_51 = arith.constant 0 : index
    %53 = vector.load %arg2[%c2_48, %c0_49, %c0_50, %c0_51] : memref<3x3x16x16xbf16, #tpu.memory_space<vmem>>, vector<1x1x16x16xbf16>
    %54 = vector.shape_cast %53 : vector<1x1x16x16xbf16> to vector<16x16xbf16>
    %cst_52 = arith.constant dense<0.000000e+00> : vector<4x16xf32>
    %55 = tpu.matmul %52, %54, %cst_52 {dimension_numbers = #tpu.dot_dimension_numbers<[1], [0], [0], [1], [0, 0, 1, 1], [], []>} : vector<4x16xbf16>, vector<16x16xbf16>, vector<4x16xf32> -> vector<4x16xf32>
    %56 = arith.addf %49, %55 : vector<4x16xf32>
    %c10 = arith.constant 10 : index
    %c0_53 = arith.constant 0 : index
    %57 = vector.load %arg9[%c10, %c0_53] : memref<20x16xbf16, #tpu.memory_space<vmem>>, vector<4x16xbf16>
    %c2_54 = arith.constant 2 : index
    %c1_55 = arith.constant 1 : index
    %c0_56 = arith.constant 0 : index
    %c0_57 = arith.constant 0 : index
    %58 = vector.load %arg2[%c2_54, %c1_55, %c0_56, %c0_57] : memref<3x3x16x16xbf16, #tpu.memory_space<vmem>>, vector<1x1x16x16xbf16>
    %59 = vector.shape_cast %58 : vector<1x1x16x16xbf16> to vector<16x16xbf16>
    %cst_58 = arith.constant dense<0.000000e+00> : vector<4x16xf32>
    %60 = tpu.matmul %57, %59, %cst_58 {dimension_numbers = #tpu.dot_dimension_numbers<[1], [0], [0], [1], [0, 0, 1, 1], [], []>} : vector<4x16xbf16>, vector<16x16xbf16>, vector<4x16xf32> -> vector<4x16xf32>
    %61 = arith.addf %56, %60 : vector<4x16xf32>
    %c11 = arith.constant 11 : index
    %c0_59 = arith.constant 0 : index
    %62 = vector.load %arg9[%c11, %c0_59] : memref<20x16xbf16, #tpu.memory_space<vmem>>, vector<4x16xbf16>
    %cst_60 = arith.constant 0.000000e+00 : bf16
    %63 = vector.broadcast %cst_60 : bf16 to vector<4x16xbf16>
    %64 = arith.select %12, %62, %63 : vector<4x16xi1>, vector<4x16xbf16>
    %c2_61 = arith.constant 2 : index
    %c2_62 = arith.constant 2 : index
    %c0_63 = arith.constant 0 : index
    %c0_64 = arith.constant 0 : index
    %65 = vector.load %arg2[%c2_61, %c2_62, %c0_63, %c0_64] : memref<3x3x16x16xbf16, #tpu.memory_space<vmem>>, vector<1x1x16x16xbf16>
    %66 = vector.shape_cast %65 : vector<1x1x16x16xbf16> to vector<16x16xbf16>
    %cst_65 = arith.constant dense<0.000000e+00> : vector<4x16xf32>
    %67 = tpu.matmul %64, %66, %cst_65 {dimension_numbers = #tpu.dot_dimension_numbers<[1], [0], [0], [1], [0, 0, 1, 1], [], []>} : vector<4x16xbf16>, vector<16x16xbf16>, vector<4x16xf32> -> vector<4x16xf32>
    %68 = arith.addf %61, %67 : vector<4x16xf32>
    %c0_66 = arith.constant 0 : index
    %c0_67 = arith.constant 0 : index
    %69 = vector.load %arg3[%c0_66, %c0_67] : memref<1x16xf32, #tpu.memory_space<vmem>>, vector<1x16xf32>
    %70 = vector.broadcast %69 : vector<1x16xf32> to vector<4x16xf32>
    %71 = arith.mulf %68, %70 : vector<4x16xf32>
    %c0_68 = arith.constant 0 : index
    %c0_69 = arith.constant 0 : index
    %72 = vector.load %arg4[%c0_68, %c0_69] : memref<1x16xf32, #tpu.memory_space<vmem>>, vector<1x16xf32>
    %73 = vector.broadcast %72 : vector<1x16xf32> to vector<4x16xf32>
    %74 = arith.addf %71, %73 : vector<4x16xf32>
    %cst_70 = arith.constant 0.000000e+00 : f32
    %75 = vector.broadcast %cst_70 : f32 to vector<4x16xf32>
    %76 = arith.maximumf %74, %75 : vector<4x16xf32>
    %77 = arith.truncf %76 : vector<4x16xf32> to vector<4x16xbf16>
    %c8_71 = arith.constant 8 : index
    %c0_72 = arith.constant 0 : index
    %78 = vector.load %arg10[%c8_71, %c0_72] : memref<20x16xbf16, #tpu.memory_space<vmem>>, vector<4x16xbf16>
    tpu.vector_store %arg10[%c8_71, %c0_72], %77 {strides = array<i32>} : memref<20x16xbf16, #tpu.memory_space<vmem>>, vector<4x16xbf16>,
    %79 = tpu.iota {dimensions = array<i32: 0>} : vector<4x16xi32>
    %c1_i32_73 = arith.constant 1 : i32
    %80 = vector.broadcast %c1_i32_73 : i32 to vector<4x16xi32>
    %81 = arith.andi %79, %80 : vector<4x16xi32>
    %c1_i32_74 = arith.constant 1 : i32
    %82 = vector.broadcast %c1_i32_74 : i32 to vector<4x16xi32>
    %83 = arith.cmpi sge, %81, %82 : vector<4x16xi32>
    %c0_i32_75 = arith.constant 0 : i32
    %84 = vector.broadcast %c0_i32_75 : i32 to vector<4x16xi32>
    %85 = arith.cmpi sle, %81, %84 : vector<4x16xi32>
    %c5_76 = arith.constant 5 : index
    %c0_77 = arith.constant 0 : index
    %86 = vector.load %arg10[%c5_76, %c0_77] : memref<20x16xbf16, #tpu.memory_space<vmem>>, vector<4x16xbf16>
    %cst_78 = arith.constant 0.000000e+00 : bf16
    %87 = vector.broadcast %cst_78 : bf16 to vector<4x16xbf16>
    %88 = arith.select %83, %86, %87 : vector<4x16xi1>, vector<4x16xbf16>
    %c0_79 = arith.constant 0 : index
    %c0_80 = arith.constant 0 : index
    %c0_81 = arith.constant 0 : index
    %c0_82 = arith.constant 0 : index
    %89 = vector.load %arg5[%c0_79, %c0_80, %c0_81, %c0_82] : memref<3x3x16x16xbf16, #tpu.memory_space<vmem>>, vector<1x1x16x16xbf16>
    %90 = vector.shape_cast %89 : vector<1x1x16x16xbf16> to vector<16x16xbf16>
    %cst_83 = arith.constant dense<0.000000e+00> : vector<4x16xf32>
    %91 = tpu.matmul %88, %90, %cst_83 {dimension_numbers = #tpu.dot_dimension_numbers<[1], [0], [0], [1], [0, 0, 1, 1], [], []>} : vector<4x16xbf16>, vector<16x16xbf16>, vector<4x16xf32> -> vector<4x16xf32>
    %c6_84 = arith.constant 6 : index
    %c0_85 = arith.constant 0 : index
    %92 = vector.load %arg10[%c6_84, %c0_85] : memref<20x16xbf16, #tpu.memory_space<vmem>>, vector<4x16xbf16>
    %c0_86 = arith.constant 0 : index
    %c1_87 = arith.constant 1 : index
    %c0_88 = arith.constant 0 : index
    %c0_89 = arith.constant 0 : index
    %93 = vector.load %arg5[%c0_86, %c1_87, %c0_88, %c0_89] : memref<3x3x16x16xbf16, #tpu.memory_space<vmem>>, vector<1x1x16x16xbf16>
    %94 = vector.shape_cast %93 : vector<1x1x16x16xbf16> to vector<16x16xbf16>
    %cst_90 = arith.constant dense<0.000000e+00> : vector<4x16xf32>
    %95 = tpu.matmul %92, %94, %cst_90 {dimension_numbers = #tpu.dot_dimension_numbers<[1], [0], [0], [1], [0, 0, 1, 1], [], []>} : vector<4x16xbf16>, vector<16x16xbf16>, vector<4x16xf32> -> vector<4x16xf32>
    %96 = arith.addf %91, %95 : vector<4x16xf32>
    %c7_91 = arith.constant 7 : index
    %c0_92 = arith.constant 0 : index
    %97 = vector.load %arg10[%c7_91, %c0_92] : memref<20x16xbf16, #tpu.memory_space<vmem>>, vector<4x16xbf16>
    %cst_93 = arith.constant 0.000000e+00 : bf16
    %98 = vector.broadcast %cst_93 : bf16 to vector<4x16xbf16>
    %99 = arith.select %85, %97, %98 : vector<4x16xi1>, vector<4x16xbf16>
    %c0_94 = arith.constant 0 : index
    %c2_95 = arith.constant 2 : index
    %c0_96 = arith.constant 0 : index
    %c0_97 = arith.constant 0 : index
    %100 = vector.load %arg5[%c0_94, %c2_95, %c0_96, %c0_97] : memref<3x3x16x16xbf16, #tpu.memory_space<vmem>>, vector<1x1x16x16xbf16>
    %101 = vector.shape_cast %100 : vector<1x1x16x16xbf16> to vector<16x16xbf16>
    %cst_98 = arith.constant dense<0.000000e+00> : vector<4x16xf32>
    %102 = tpu.matmul %99, %101, %cst_98 {dimension_numbers = #tpu.dot_dimension_numbers<[1], [0], [0], [1], [0, 0, 1, 1], [], []>} : vector<4x16xbf16>, vector<16x16xbf16>, vector<4x16xf32> -> vector<4x16xf32>
    %103 = arith.addf %96, %102 : vector<4x16xf32>
    %c7_99 = arith.constant 7 : index
    %c0_100 = arith.constant 0 : index
    %104 = vector.load %arg10[%c7_99, %c0_100] : memref<20x16xbf16, #tpu.memory_space<vmem>>, vector<4x16xbf16>
    %cst_101 = arith.constant 0.000000e+00 : bf16
    %105 = vector.broadcast %cst_101 : bf16 to vector<4x16xbf16>
    %106 = arith.select %83, %104, %105 : vector<4x16xi1>, vector<4x16xbf16>
    %c1_102 = arith.constant 1 : index
    %c0_103 = arith.constant 0 : index
    %c0_104 = arith.constant 0 : index
    %c0_105 = arith.constant 0 : index
    %107 = vector.load %arg5[%c1_102, %c0_103, %c0_104, %c0_105] : memref<3x3x16x16xbf16, #tpu.memory_space<vmem>>, vector<1x1x16x16xbf16>
    %108 = vector.shape_cast %107 : vector<1x1x16x16xbf16> to vector<16x16xbf16>
    %cst_106 = arith.constant dense<0.000000e+00> : vector<4x16xf32>
    %109 = tpu.matmul %106, %108, %cst_106 {dimension_numbers = #tpu.dot_dimension_numbers<[1], [0], [0], [1], [0, 0, 1, 1], [], []>} : vector<4x16xbf16>, vector<16x16xbf16>, vector<4x16xf32> -> vector<4x16xf32>
    %110 = arith.addf %103, %109 : vector<4x16xf32>
    %c8_107 = arith.constant 8 : index
    %c0_108 = arith.constant 0 : index
    %111 = vector.load %arg10[%c8_107, %c0_108] : memref<20x16xbf16, #tpu.memory_space<vmem>>, vector<4x16xbf16>
    %c1_109 = arith.constant 1 : index
    %c1_110 = arith.constant 1 : index
    %c0_111 = arith.constant 0 : index
    %c0_112 = arith.constant 0 : index
    %112 = vector.load %arg5[%c1_109, %c1_110, %c0_111, %c0_112] : memref<3x3x16x16xbf16, #tpu.memory_space<vmem>>, vector<1x1x16x16xbf16>
    %113 = vector.shape_cast %112 : vector<1x1x16x16xbf16> to vector<16x16xbf16>
    %cst_113 = arith.constant dense<0.000000e+00> : vector<4x16xf32>
    %114 = tpu.matmul %111, %113, %cst_113 {dimension_numbers = #tpu.dot_dimension_numbers<[1], [0], [0], [1], [0, 0, 1, 1], [], []>} : vector<4x16xbf16>, vector<16x16xbf16>, vector<4x16xf32> -> vector<4x16xf32>
    %115 = arith.addf %110, %114 : vector<4x16xf32>
    %c9_114 = arith.constant 9 : index
    %c0_115 = arith.constant 0 : index
    %116 = vector.load %arg10[%c9_114, %c0_115] : memref<20x16xbf16, #tpu.memory_space<vmem>>, vector<4x16xbf16>
    %cst_116 = arith.constant 0.000000e+00 : bf16
    %117 = vector.broadcast %cst_116 : bf16 to vector<4x16xbf16>
    %118 = arith.select %85, %116, %117 : vector<4x16xi1>, vector<4x16xbf16>
    %c1_117 = arith.constant 1 : index
    %c2_118 = arith.constant 2 : index
    %c0_119 = arith.constant 0 : index
    %c0_120 = arith.constant 0 : index
    %119 = vector.load %arg5[%c1_117, %c2_118, %c0_119, %c0_120] : memref<3x3x16x16xbf16, #tpu.memory_space<vmem>>, vector<1x1x16x16xbf16>
    %120 = vector.shape_cast %119 : vector<1x1x16x16xbf16> to vector<16x16xbf16>
    %cst_121 = arith.constant dense<0.000000e+00> : vector<4x16xf32>
    %121 = tpu.matmul %118, %120, %cst_121 {dimension_numbers = #tpu.dot_dimension_numbers<[1], [0], [0], [1], [0, 0, 1, 1], [], []>} : vector<4x16xbf16>, vector<16x16xbf16>, vector<4x16xf32> -> vector<4x16xf32>
    %122 = arith.addf %115, %121 : vector<4x16xf32>
    %c9_122 = arith.constant 9 : index
    %c0_123 = arith.constant 0 : index
    %123 = vector.load %arg10[%c9_122, %c0_123] : memref<20x16xbf16, #tpu.memory_space<vmem>>, vector<4x16xbf16>
    %cst_124 = arith.constant 0.000000e+00 : bf16
    %124 = vector.broadcast %cst_124 : bf16 to vector<4x16xbf16>
    %125 = arith.select %83, %123, %124 : vector<4x16xi1>, vector<4x16xbf16>
    %c2_125 = arith.constant 2 : index
    %c0_126 = arith.constant 0 : index
    %c0_127 = arith.constant 0 : index
    %c0_128 = arith.constant 0 : index
    %126 = vector.load %arg5[%c2_125, %c0_126, %c0_127, %c0_128] : memref<3x3x16x16xbf16, #tpu.memory_space<vmem>>, vector<1x1x16x16xbf16>
    %127 = vector.shape_cast %126 : vector<1x1x16x16xbf16> to vector<16x16xbf16>
    %cst_129 = arith.constant dense<0.000000e+00> : vector<4x16xf32>
    %128 = tpu.matmul %125, %127, %cst_129 {dimension_numbers = #tpu.dot_dimension_numbers<[1], [0], [0], [1], [0, 0, 1, 1], [], []>} : vector<4x16xbf16>, vector<16x16xbf16>, vector<4x16xf32> -> vector<4x16xf32>
    %129 = arith.addf %122, %128 : vector<4x16xf32>
    %c10_130 = arith.constant 10 : index
    %c0_131 = arith.constant 0 : index
    %130 = vector.load %arg10[%c10_130, %c0_131] : memref<20x16xbf16, #tpu.memory_space<vmem>>, vector<4x16xbf16>
    %c2_132 = arith.constant 2 : index
    %c1_133 = arith.constant 1 : index
    %c0_134 = arith.constant 0 : index
    %c0_135 = arith.constant 0 : index
    %131 = vector.load %arg5[%c2_132, %c1_133, %c0_134, %c0_135] : memref<3x3x16x16xbf16, #tpu.memory_space<vmem>>, vector<1x1x16x16xbf16>
    %132 = vector.shape_cast %131 : vector<1x1x16x16xbf16> to vector<16x16xbf16>
    %cst_136 = arith.constant dense<0.000000e+00> : vector<4x16xf32>
    %133 = tpu.matmul %130, %132, %cst_136 {dimension_numbers = #tpu.dot_dimension_numbers<[1], [0], [0], [1], [0, 0, 1, 1], [], []>} : vector<4x16xbf16>, vector<16x16xbf16>, vector<4x16xf32> -> vector<4x16xf32>
    %134 = arith.addf %129, %133 : vector<4x16xf32>
    %c11_137 = arith.constant 11 : index
    %c0_138 = arith.constant 0 : index
    %135 = vector.load %arg10[%c11_137, %c0_138] : memref<20x16xbf16, #tpu.memory_space<vmem>>, vector<4x16xbf16>
    %cst_139 = arith.constant 0.000000e+00 : bf16
    %136 = vector.broadcast %cst_139 : bf16 to vector<4x16xbf16>
    %137 = arith.select %85, %135, %136 : vector<4x16xi1>, vector<4x16xbf16>
    %c2_140 = arith.constant 2 : index
    %c2_141 = arith.constant 2 : index
    %c0_142 = arith.constant 0 : index
    %c0_143 = arith.constant 0 : index
    %138 = vector.load %arg5[%c2_140, %c2_141, %c0_142, %c0_143] : memref<3x3x16x16xbf16, #tpu.memory_space<vmem>>, vector<1x1x16x16xbf16>
    %139 = vector.shape_cast %138 : vector<1x1x16x16xbf16> to vector<16x16xbf16>
    %cst_144 = arith.constant dense<0.000000e+00> : vector<4x16xf32>
    %140 = tpu.matmul %137, %139, %cst_144 {dimension_numbers = #tpu.dot_dimension_numbers<[1], [0], [0], [1], [0, 0, 1, 1], [], []>} : vector<4x16xbf16>, vector<16x16xbf16>, vector<4x16xf32> -> vector<4x16xf32>
    %141 = arith.addf %134, %140 : vector<4x16xf32>
    %c0_145 = arith.constant 0 : index
    %c0_146 = arith.constant 0 : index
    %142 = vector.load %arg6[%c0_145, %c0_146] : memref<1x16xf32, #tpu.memory_space<vmem>>, vector<1x16xf32>
    %143 = vector.broadcast %142 : vector<1x16xf32> to vector<4x16xf32>
    %144 = arith.mulf %141, %143 : vector<4x16xf32>
    %c0_147 = arith.constant 0 : index
    %c0_148 = arith.constant 0 : index
    %145 = vector.load %arg7[%c0_147, %c0_148] : memref<1x16xf32, #tpu.memory_space<vmem>>, vector<1x16xf32>
    %146 = vector.broadcast %145 : vector<1x16xf32> to vector<4x16xf32>
    %147 = arith.addf %144, %146 : vector<4x16xf32>
    %148 = arith.extf %4 : vector<4x16xbf16> to vector<4x16xf32>
    %149 = arith.addf %147, %148 : vector<4x16xf32>
    %cst_149 = arith.constant 0.000000e+00 : f32
    %150 = vector.broadcast %cst_149 : f32 to vector<4x16xf32>
    %151 = arith.maximumf %149, %150 : vector<4x16xf32>
    %152 = arith.truncf %151 : vector<4x16xf32> to vector<4x16xbf16>
    %c0_150 = arith.constant 0 : index
    %c0_151 = arith.constant 0 : index
    %c0_152 = arith.constant 0 : index
    %153 = vector.load %arg8[%c0_150, %c0_151, %c0_152] : memref<1x4x16xbf16, #tpu.memory_space<vmem>>, vector<1x4x16xbf16>
    %154 = vector.shape_cast %153 : vector<1x4x16xbf16> to vector<4x16xbf16>
    %155 = vector.shape_cast %152 : vector<4x16xbf16> to vector<1x4x16xbf16>
    tpu.vector_store %arg8[%c0_150, %c0_151, %c0_152], %155 {strides = array<i32>} : memref<1x4x16xbf16, #tpu.memory_space<vmem>>, vector<1x4x16xbf16>,
    return
  }
  func.func @transform_0(%arg0: i32) -> (i32, i32, i32) {
    %c0_i32 = arith.constant 0 : i32
    %c0_i32_0 = arith.constant 0 : i32
    %c0_i32_1 = arith.constant 0 : i32
    return %arg0, %c0_i32, %c0_i32_0 : i32, i32, i32
  }
  func.func @transform_1(%arg0: i32) -> (i32, i32, i32, i32) {
    %c0_i32 = arith.constant 0 : i32
    %c0_i32_0 = arith.constant 0 : i32
    %c0_i32_1 = arith.constant 0 : i32
    %c0_i32_2 = arith.constant 0 : i32
    %c0_i32_3 = arith.constant 0 : i32
    return %c0_i32, %c0_i32_0, %c0_i32_1, %c0_i32_2 : i32, i32, i32, i32
  }
  func.func @transform_2(%arg0: i32) -> (i32, i32) {
    %c0_i32 = arith.constant 0 : i32
    %c0_i32_0 = arith.constant 0 : i32
    %c0_i32_1 = arith.constant 0 : i32
    return %c0_i32, %c0_i32_0 : i32, i32
  }
  func.func @transform_3(%arg0: i32) -> (i32, i32) {
    %c0_i32 = arith.constant 0 : i32
    %c0_i32_0 = arith.constant 0 : i32
    %c0_i32_1 = arith.constant 0 : i32
    return %c0_i32, %c0_i32_0 : i32, i32
  }
  func.func @transform_4(%arg0: i32) -> (i32, i32, i32, i32) {
    %c0_i32 = arith.constant 0 : i32
    %c0_i32_0 = arith.constant 0 : i32
    %c0_i32_1 = arith.constant 0 : i32
    %c0_i32_2 = arith.constant 0 : i32
    %c0_i32_3 = arith.constant 0 : i32
    return %c0_i32, %c0_i32_0, %c0_i32_1, %c0_i32_2 : i32, i32, i32, i32
  }
  func.func @transform_5(%arg0: i32) -> (i32, i32) {
    %c0_i32 = arith.constant 0 : i32
    %c0_i32_0 = arith.constant 0 : i32
    %c0_i32_1 = arith.constant 0 : i32
    return %c0_i32, %c0_i32_0 : i32, i32
  }
  func.func @transform_6(%arg0: i32) -> (i32, i32) {
    %c0_i32 = arith.constant 0 : i32
    %c0_i32_0 = arith.constant 0 : i32
    %c0_i32_1 = arith.constant 0 : i32
    return %c0_i32, %c0_i32_0 : i32, i32
  }
  func.func @transform_7(%arg0: i32) -> (i32, i32, i32) {
    %c0_i32 = arith.constant 0 : i32
    %c0_i32_0 = arith.constant 0 : i32
    %c0_i32_1 = arith.constant 0 : i32
    return %arg0, %c0_i32, %c0_i32_0 : i32, i32, i32
  }
}

module attributes {stable_mosaic.version = 11 : i64} {
  func.func @_tail_kernel(%arg0: i32, %arg1: memref<2x1x32xbf16, #tpu.memory_space<vmem>>, %arg2: memref<32x32xbf16, #tpu.memory_space<vmem>>, %arg3: memref<1x32xf32, #tpu.memory_space<vmem>>, %arg4: memref<1x32xf32, #tpu.memory_space<vmem>>, %arg5: memref<2x32xf32, #tpu.memory_space<vmem>>) attributes {dimension_semantics = [#tpu.dimension_semantics<arbitrary>], iteration_bounds = array<i64: 1>, scalar_prefetch = 0 : i64, scratch_operands = 0 : i64, tpu.core_type = #tpu.core_type<tc>, window_params = [{pipeline_mode = #tpu.pipeline_mode<synchronous>, transform_indices = @transform_0, window_bounds = array<i64: 2, 1, 32>}, {pipeline_mode = #tpu.pipeline_mode<synchronous>, transform_indices = @transform_1, window_bounds = array<i64: 32, 32>}, {pipeline_mode = #tpu.pipeline_mode<synchronous>, transform_indices = @transform_2, window_bounds = array<i64: 1, 32>}, {pipeline_mode = #tpu.pipeline_mode<synchronous>, transform_indices = @transform_3, window_bounds = array<i64: 1, 32>}, {pipeline_mode = #tpu.pipeline_mode<synchronous>, transform_indices = @transform_4, window_bounds = array<i64: 2, 32>}]} {
    %c0 = arith.constant 0 : index
    %c0_0 = arith.constant 0 : index
    %c0_1 = arith.constant 0 : index
    %0 = vector.load %arg1[%c0, %c0_0, %c0_1] : memref<2x1x32xbf16, #tpu.memory_space<vmem>>, vector<2x1x32xbf16>
    %1 = arith.extf %0 : vector<2x1x32xbf16> to vector<2x1x32xf32>
    %cst = arith.constant dense<0.000000e+00> : vector<2x32xf32>
    %2 = vector.multi_reduction <add>, %1, %cst [1] : vector<2x1x32xf32> to vector<2x32xf32>
    %cst_2 = arith.constant 1.000000e+00 : f32
    %3 = vector.broadcast %cst_2 : f32 to vector<2x32xf32>
    %4 = arith.divf %2, %3 : vector<2x32xf32>
    %5 = arith.truncf %4 : vector<2x32xf32> to vector<2x32xbf16>
    %c0_3 = arith.constant 0 : index
    %c0_4 = arith.constant 0 : index
    %6 = vector.load %arg2[%c0_3, %c0_4] : memref<32x32xbf16, #tpu.memory_space<vmem>>, vector<32x32xbf16>
    %cst_5 = arith.constant dense<0.000000e+00> : vector<2x32xf32>
    %7 = tpu.matmul %5, %6, %cst_5 {dimension_numbers = #tpu.dot_dimension_numbers<[1], [0], [0], [1], [0, 0, 1, 1], [], []>} : vector<2x32xbf16>, vector<32x32xbf16>, vector<2x32xf32> -> vector<2x32xf32>
    %c0_6 = arith.constant 0 : index
    %c0_7 = arith.constant 0 : index
    %8 = vector.load %arg3[%c0_6, %c0_7] : memref<1x32xf32, #tpu.memory_space<vmem>>, vector<1x32xf32>
    %9 = vector.broadcast %8 : vector<1x32xf32> to vector<2x32xf32>
    %10 = arith.mulf %7, %9 : vector<2x32xf32>
    %c0_8 = arith.constant 0 : index
    %c0_9 = arith.constant 0 : index
    %11 = vector.load %arg4[%c0_8, %c0_9] : memref<1x32xf32, #tpu.memory_space<vmem>>, vector<1x32xf32>
    %12 = vector.broadcast %11 : vector<1x32xf32> to vector<2x32xf32>
    %13 = arith.addf %10, %12 : vector<2x32xf32>
    %c0_10 = arith.constant 0 : index
    %c0_11 = arith.constant 0 : index
    %14 = vector.load %arg5[%c0_10, %c0_11] : memref<2x32xf32, #tpu.memory_space<vmem>>, vector<2x32xf32>
    tpu.vector_store %arg5[%c0_10, %c0_11], %13 {strides = array<i32>} : memref<2x32xf32, #tpu.memory_space<vmem>>, vector<2x32xf32>,
    return
  }
  func.func @transform_0(%arg0: i32) -> (i32, i32, i32) {
    %c0_i32 = arith.constant 0 : i32
    %c0_i32_0 = arith.constant 0 : i32
    %c0_i32_1 = arith.constant 0 : i32
    %c0_i32_2 = arith.constant 0 : i32
    return %c0_i32, %c0_i32_0, %c0_i32_1 : i32, i32, i32
  }
  func.func @transform_1(%arg0: i32) -> (i32, i32) {
    %c0_i32 = arith.constant 0 : i32
    %c0_i32_0 = arith.constant 0 : i32
    %c0_i32_1 = arith.constant 0 : i32
    return %c0_i32, %c0_i32_0 : i32, i32
  }
  func.func @transform_2(%arg0: i32) -> (i32, i32) {
    %c0_i32 = arith.constant 0 : i32
    %c0_i32_0 = arith.constant 0 : i32
    %c0_i32_1 = arith.constant 0 : i32
    return %c0_i32, %c0_i32_0 : i32, i32
  }
  func.func @transform_3(%arg0: i32) -> (i32, i32) {
    %c0_i32 = arith.constant 0 : i32
    %c0_i32_0 = arith.constant 0 : i32
    %c0_i32_1 = arith.constant 0 : i32
    return %c0_i32, %c0_i32_0 : i32, i32
  }
  func.func @transform_4(%arg0: i32) -> (i32, i32) {
    %c0_i32 = arith.constant 0 : i32
    %c0_i32_0 = arith.constant 0 : i32
    %c0_i32_1 = arith.constant 0 : i32
    return %c0_i32, %c0_i32_0 : i32, i32
  }
}

</mosaic_0001>

<bundles_post_ra>
// kernel: _lambda_.10
= control target key start
LH: loop header
LB: loop body
LE: loop exit
PB: predicated region body
PF: predicated region fallthrough
CT: control target
= control target key end

     0   :  { %s1459_s15 = smov 0   ;;  %s2225_s0 = inlined_call_operand.vmem [shape: bf16[2,256,49], index: 0, kind: input, shape index: {}]   ;;  %s2226_s1 = inlined_call_operand.vmem [shape: bf16[49,8], index: 1, kind: input, shape index: {}]   ;;  %s2227_s2 = inlined_call_operand.vmem [shape: f32[1,8], index: 2, kind: input, shape index: {}]   ;;  %s2228_s3 = inlined_call_operand.vmem [shape: f32[1,8], index: 3, kind: input, shape index: {}]   ;;  %s2229_s4 = inlined_call_operand.vmem [shape: bf16[2,64,8], index: 4, kind: output, shape index: {}]  }
   0x1 LB: > { %s1256_s16 = sadd.s32 4294967295, %s1431_s15   ;;  %p1260_p0 = scmp.ge.s32.totalorder %s1431_s15, 1  ;;  %s1431_s15 = sphi %s1459_s15, %s14_s15  }
   0x2   : > { %p162_p1 = scmp.lt.s32.totalorder %s1431_s15, 3 }
   0x4   : > { %p163_p2 = pnand %p1260_p0, %p162_p1 }
   0x5   : > { %v1405_v0 = vld [vmem:[%s2226_s1] sm:$0xff] (!%p163_p2)   ;;  %v1406_v1 = vld [vmem:[%s2226_s1 + $0x8] sm:$0xff] (!%p163_p2)   ;;  %vm390_vm0 = vcmask (!%p163_p2), 1040384   ;;  %p188_p3 = scmp.lt.s32.totalorder (!%p163_p2), %s1256_s16, 1  ;;  %v1407_v2 = vld [vmem:[%s2226_s1 + $0x10] sm:$0xff] (!%p163_p2)   ;;  %v1433_v4 = vmov (!%p163_p2), 0   ;;  %v700_v23 = vlaneseq (!%p163_p2) }
   0x6   : > { %166 = sbr.rel (%p163_p2) target bundleno = 320 (0x140), region = 36  ;;  %1348 = vmatprep.subr.bf16.mxu0 (!%p163_p2), %v1405_v0  ;;  %1388 = vmatprep.subr.bf16.mxu1 (!%p163_p2), %v1405_v0  ;;  %v1408_v3 = vld [vmem:[%s2226_s1 + $0x18] ss:$0 sps:$4 sm:$0x11] (!%p163_p2)   ;;  %v392_v5 = vsel (!%p163_p2), %vm390_vm0, 65535, %v1433_v4  ;;  %vm341_vm1 = vcmask (!%p163_p2), 400384  }
   0x7   : > { %1349 = vmatpush3.bf16.msra.mxu0 (!%p163_p2), %v1405_v0  ;;  %1392 = vmatpush3.bf16.msra.mxu1 (!%p163_p2), %v1405_v0  ;;  %v394_v6 = vand.u32 (!%p163_p2), %v1408_v3, %v392_v5  ;;  %v701_v24 = vshrl.u32 (!%p163_p2), %v700_v23, 7  ;;  %v1773_v44 = vld [vmem:[%s2228_s3] ss:$0 sm:$0xff] (!%p163_p2) }
   0x8   : > { %1350 = vmatprep.subr.bf16.mxu0 (!%p163_p2), %v1406_v1  ;;  %1389 = vmatprep.subr.bf16.mxu1 (!%p163_p2), %v1406_v1 }
   0x9   : > { %v704_v25 = vadd.s32 (!%p163_p2), 24, %v701_v24  ;;  %v705_v27 = vadd.s32 (!%p163_p2), 32, %v701_v24  ;;  %v703_v29 = vadd.s32 (!%p163_p2), 16, %v701_v24  ;;  %v709_v30 = vand.u32 (!%p163_p2), 7, %v701_v24 }
   0xa   : > { %v702_v32 = vadd.s32 (!%p163_p2), 8, %v701_v24  ;;  %v717_v42 = vshra.s32 (!%p163_p2), %v701_v24, 3  ;;  %v708_v50 = vadd.s32 (!%p163_p2), 56, %v701_v24  ;;  %v706_v51 = vadd.s32 (!%p163_p2), 40, %v701_v24 }
   0xb   : > { %1351 = vmatpush3.bf16.msra.mxu0 (!%p163_p2), %v1406_v1  ;;  %1393 = vmatpush3.bf16.msra.mxu1 (!%p163_p2), %v1406_v1  ;;  %v712_v26 = vand.u32 (!%p163_p2), 7, %v704_v25  ;;  %v720_v28 = vshra.s32 (!%p163_p2), %v704_v25, 3  ;;  %v711_v33 = vand.u32 (!%p163_p2), 7, %v703_v29  ;;  %v721_v34 = vshra.s32 (!%p163_p2), %v705_v27, 3 }
   0xc   : > { %1352 = vmatprep.subr.bf16.mxu0 (!%p163_p2), %v1407_v2  ;;  %1390 = vmatprep.subr.bf16.mxu1 (!%p163_p2), %v1407_v2  ;;  %v718_v36 = vshra.s32 (!%p163_p2), %v702_v32, 3  ;;  %v719_v37 = vshra.s32 (!%p163_p2), %v703_v29, 3  ;;  %vm1532_vm5 = vcmp.ge.s32.totalorder (!%p163_p2), %v709_v30, 1  ;;  %v710_v39 = vand.u32 (!%p163_p2), 7, %v702_v32 }
   0xd   : > { %s2288_s16 = smov (!%p188_p3, %s1256_s16), 1  ;;  %vm1520_vm2 = vcmp.ge.s32.totalorder %v712_v26, 1  ;;  %vm1524_vm3 = vcmp.ge.s32.totalorder %v720_v28, 1  ;;  %vm1536_vm6 = vcmp.ge.s32.totalorder %v711_v33, 1  ;;  %vm1540_vm7 = vcmp.ge.s32.totalorder %v721_v34, 1 }
   0xe   : > { %s1326_s25 = sshll.u32 %s2288_s16, 7  ;;  %vm1031_vm4 = vmand %vm1524_vm3, %vm1520_vm2  ;;  %v713_v43 = vand.u32 7, %v705_v27  ;;  %vm1551_vm10 = vcmp.ge.s32.totalorder %v718_v36, 1  ;;  %vm1555_vm11 = vcmp.ge.s32.totalorder %v719_v37, 1  ;;  %vm1572_vm0 = vcmp.ge.s32.totalorder %v710_v39, 1  ;;  %s1327_s7 = sshll.u32 %s2288_s16, 5 }
   0xf   : > { %s1486_s28 = scalar_lea.vmem %s2225_s0, %s1326_s25  ;;  %1353 = vmatpush3.bf16.msra.mxu0 %v1407_v2  ;;  %1394 = vmatpush3.bf16.msra.mxu1 %v1407_v2  ;;  %vm1547_vm9 = vmpackc.low %vm1031_vm4, %vm1031_vm4  ;;  %vm1583_vm12 = vcmp.ge.s32.totalorder %v717_v42, 1  ;;  %v714_v57 = vand.u32 7, %v706_v51  ;;  %v724_v59 = vshra.s32 %v708_v50, 3  ;;  %v716_v61 = vand.u32 7, %v708_v50  ;;  %v1743_v33 = vld [vmem:[%s2227_s2] ss:$0 sm:$0xff]  ;;  %s2170_s10 = scalar_lea.vmem %s2229_s4, %s1327_s7 }
  0x10   : > { %v1409_v7 = vld [vmem:[%s1486_s28] sm:$0xff]   ;;  %1354 = vmatprep.subr.bf16.mxu0 %v394_v6  ;;  %1391 = vmatprep.subr.bf16.mxu1 %v394_v6  ;;  %v1411_v9 = vld [vmem:[%s1486_s28 + $0x8] sm:$0xff]   ;;  %v1413_v11 = vld [vmem:[%s1486_s28 + $0x10] sm:$0xff]   ;;  %vm1587_vm14 = vcmp.ge.s32.totalorder %v713_v43, 1  ;;  %v1048_v54 = vsel %vm1547_vm9, 65537, %v1433_v4  ;;  %v707_v1 = vadd.s32 48, %v701_v24 }
  0x11   : > { %v1410_v8 = vld [vmem:[%s1486_s28 + $0x40] sm:$0xff]   ;;  %1356 = vmatprep.mubr.msk.bf16.mxu0 %vm341_vm1, %v1409_v7  ;;  %v1412_v10 = vld [vmem:[%s1486_s28 + $0x48] sm:$0xff]   ;;  %v1414_v12 = vld [vmem:[%s1486_s28 + $0x50] sm:$0xff]  }
  0x12   : > { %1372 = vmatprep.mubr.msk.bf16.mxu1 %vm341_vm1, %v1410_v8  ;;  %v1415_v13 = vld [vmem:[%s1486_s28 + $0x18] sm:$0xff]   ;;  %v1417_v15 = vld [vmem:[%s1486_s28 + $0x20] sm:$0xff]   ;;  %v1419_v17 = vld [vmem:[%s1486_s28 + $0x28] sm:$0xff]  }
  0x13   : > { %1355 = vmatpush3.bf16.msra.mxu0 %v394_v6  ;;  %1395 = vmatpush3.bf16.msra.mxu1 %v394_v6  ;;  %v1416_v14 = vld [vmem:[%s1486_s28 + $0x58] sm:$0xff]   ;;  %v1418_v16 = vld [vmem:[%s1486_s28 + $0x60] sm:$0xff]   ;;  %v1420_v18 = vld [vmem:[%s1486_s28 + $0x68] sm:$0xff]  }
  0x14   : > { %v1421_v19 = vld [vmem:[%s1486_s28 + $0x30] sm:$0xff]   ;;  %v1423_v21 = vld [vmem:[%s1486_s28 + $0x38] sm:$0xff]   ;;  %vm1030_vm13 = vmand %vm1555_vm11, %vm1536_vm6 }
  0x15   : > { %v1422_v20 = vld [vmem:[%s1486_s28 + $0x70] sm:$0xff]   ;;  %v1424_v22 = vld [vmem:[%s1486_s28 + $0x78] sm:$0xff]   ;;  %vm1029_vm4 = vmand %vm1551_vm10, %vm1572_vm0 }
  0x16   : > { %1357 = vmatmul.mubr.msk.bf16.vlgmr.msra.gmra.mrb[0].mxu0 %vm341_vm1, %v1411_v9  ;;  %1373 = vmatmul.mubr.msk.bf16.vlgmr.msra.gmra.mrb[0].mxu1 %vm341_vm1, %v1412_v10  ;;  %vm1039_vm15 = vmpackc.low %vm1030_vm13, %vm1030_vm13 }
  0x17   : > { %1360 = vmatprep.mubr.msk.bf16.mxu0 %vm341_vm1, %v1413_v11  ;;  %1376 = vmatprep.mubr.msk.bf16.mxu1 %vm341_vm1, %v1414_v12  ;;  %vm1028_vm13 = vmand %vm1583_vm12, %vm1532_vm5  ;;  %v1047_v56 = vsel %vm1039_vm15, 65537, %v1433_v4 }
  0x18   : > { %vm1609_vm8 = vmpackc.low %vm1029_vm4, %vm1029_vm4  ;;  %v1313_v60 = vcombine.low %v1047_v56, %v1048_v54  ;;  %vm1637_vm4 = vcmp.ge.s32.totalorder %v714_v57, 1 }
  0x19   : > { %vm2255_vm9 = vmand %vm1540_vm7, %vm1587_vm14  ;;  %v1046_v3 = vsel %vm1609_vm8, 65537, %v1433_v4 }
  0x1a   : > { %vm1626_vm15 = vmpackc.low %vm2255_vm9, %vm2255_vm9  ;;  %v1075_v10 = vshrl.u32 %v1313_v60, 16  ;;  %v1078_v11 = vshll.u32 %v1313_v60, 16 }
  0x1b   : > { %vm881_vm8 = vmpackc.low %vm1555_vm11, %vm1555_vm11  ;;  %v1049_v34 = vsel %vm1626_vm15, 65537, %v1433_v4 }
  0x1c   : > { %vm879_vm9 = vmpackc.low %vm1583_vm12, %vm1583_vm12  ;;  %v1077_v25 = vrot.slane %v1075_v10, 4  ;;  %v1080_v26 = vrot.slane %v1078_v11, 5 }
  0x1d   : > { %v1724_v28 = vsel %vm879_vm9, 65537, %v1433_v4 }
  0x1e   : > { %1361 = vmatmul.mubr.msk.bf16.gmra.mrb[4].mxu0 %vm341_vm1, %v1415_v13  ;;  %1377 = vmatmul.mubr.msk.bf16.gmra.mrb[4].mxu1 %vm341_vm1, %v1416_v14  ;;  %v1307_v41 = vcombine.low %v1724_v28, %v1724_v28  ;;  %v1779_v48 = vor.u32 %v1080_v26, %v1077_v25 }
  0x1f   : > { %1364 = vmatprep.mubr.msk.bf16.mxu0 %vm341_vm1, %v1417_v15  ;;  %1380 = vmatprep.mubr.msk.bf16.mxu1 %vm341_vm1, %v1418_v16  ;;  %v722_v15 = vshra.s32 %v706_v51, 3  ;;  %v723_v16 = vshra.s32 %v707_v1, 3 }
  0x26   : > { %1365 = vmatmul.mubr.msk.bf16.gmra.mrb[8].mxu0 %vm341_vm1, %v1419_v17  ;;  %1381 = vmatmul.mubr.msk.bf16.gmra.mrb[8].mxu1 %vm341_vm1, %v1420_v18 }
  0x27   : > { %1368 = vmatprep.mubr.msk.bf16.mxu0 %vm341_vm1, %v1421_v19  ;;  %1384 = vmatprep.mubr.msk.bf16.mxu1 %vm341_vm1, %v1422_v20  ;;  %v715_v20 = vand.u32 7, %v707_v1 }
  0x2e   : > { %1369 = vmatmul.mubr.msk.bf16.gmra.mrb[12].mxu0 %vm341_vm1, %v1423_v21  ;;  %1385 = vmatmul.mubr.msk.bf16.gmra.mrb[12].mxu1 %vm341_vm1, %v1424_v22  ;;  %vm756_vm1 = vmpackc.low %vm1536_vm6, %vm1536_vm6  ;;  %v1708_v21 = vsel %vm881_vm8, 65537, %v1433_v4 }
  0x2f   : > { %vm2252_vm6 = vmpackc.low %vm1520_vm2, %vm1520_vm2  ;;  %v764_v53 = vsel %vm756_vm1, 65537, %v1433_v4 }
  0x30   : > { %v765_v52 = vsel %vm2252_vm6, 65537, %v1433_v4  ;;  %vm755_vm2 = vmpackc.low %vm1572_vm0, %vm1572_vm0 }
  0x31   : > { %v1304_v58 = vcombine.low %v764_v53, %v765_v52  ;;  %vm1037_vm1 = vmpackc.low %vm1028_vm13, %vm1028_vm13  ;;  %v763_v0 = vsel %vm755_vm2, 65537, %v1433_v4 }
  0x32   : > { %vm758_vm6 = vmpackc.low %vm1587_vm14, %vm1587_vm14  ;;  %v1045_v5 = vsel %vm1037_vm1, 65537, %v1433_v4  ;;  %vm1667_vm1 = vcmp.ge.s32.totalorder %v724_v59, 1  ;;  %vm1732_vm14 = vcmp.ge.s32.totalorder %v722_v15, 1 }
  0x33   : > { %vm2258_vm0 = vmpackc.low %vm1532_vm5, %vm1532_vm5  ;;  %v791_v9 = vshll.u32 %v1304_v58, 16  ;;  %v1312_v14 = vcombine.low %v1045_v5, %v1046_v3  ;;  %v766_v17 = vsel %vm758_vm6, 65537, %v1433_v4  ;;  %v795_v24 = vshrl.u32 %v1304_v58, 16 }
  0x34   : > { %v762_v63 = vsel %vm2258_vm0, 65537, %v1433_v4  ;;  %vm880_vm13 = vmpackc.low %vm1551_vm10, %vm1551_vm10  ;;  %vm1736_vm6 = vcmp.ge.s32.totalorder %v723_v16, 1 }
  0x35   : > { %vm2261_vm5 = vmpackc.low %vm1524_vm3, %vm1524_vm3  ;;  %v1671_v12 = vcombine.low %v762_v63, %v763_v0  ;;  %vm1673_vm3 = vcmp.ge.s32.totalorder %v716_v61, 1  ;;  %v1697_v19 = vsel %vm880_vm13, 65537, %v1433_v4  ;;  %v1715_v23 = vrot.slane %v791_v9, 1 }
  0x36   : > { %v1654_v6 = vsel %vm2261_vm5, 65537, %v1433_v4  ;;  %vm2262_vm2 = vmpackc.low %vm1540_vm7, %vm1540_vm7  ;;  %v1067_v30 = vshrl.u32 %v1312_v14, 16  ;;  %v1070_v36 = vshll.u32 %v1312_v14, 16  ;;  %vm1752_vm13 = vcmp.ge.s32.totalorder %v715_v20, 1 }
  0x37   : > { %v1662_v7 = vsel %vm2262_vm2, 65537, %v1433_v4  ;;  %vm759_vm7 = vmpackc.low %vm1637_vm4, %vm1637_vm4  ;;  %v784_v27 = vshll.u32 %v1671_v12, 16  ;;  %v1308_v39 = vcombine.low %v1697_v19, %v1708_v21  ;;  %v787_v40 = vshrl.u32 %v1671_v12, 16 }
  0x38   : > { %v1309_v18 = vcombine.low %v1654_v6, %v1662_v7  ;;  %vm886_vm0 = vmpackc.low %vm1667_vm1, %vm1667_vm1  ;;  %v767_v22 = vsel %vm759_vm7, 65537, %v1433_v4  ;;  %v1768_v42 = vor.u32 %v795_v24, %v1715_v23  ;;  %vm683_vm5 = vcmask 64512  }
  0x39   : > { %vm1035_vm10 = vmand %vm1667_vm1, %vm1673_vm3  ;;  %v1730_v29 = vsel %vm886_vm0, 65537, %v1433_v4  ;;  %v1756_v38 = vcombine.low %v766_v17, %v767_v22  ;;  %v1775_v46 = vrot.slane %v784_v27, 1  ;;  %v1796_v55 = vrot.slane %v1067_v30, 4 }
  0x3a   : > { %vm761_vm11 = vmpackc.low %vm1673_vm3, %vm1673_vm3  ;;  %v1311_v47 = vcombine.low %v1730_v29, %v1730_v29  ;;  %v1804_v60 = vrot.slane %v1070_v36, 5  ;;  %vm782_vm1 = vsmask.f32 7424  ;;  %vm1883_vm0 = vcmp.ne.s16.totalorder %v1309_v18, 0 }
  0x3b   : > { %vm1748_vm12 = vmpackc.low %vm1035_vm10, %vm1035_vm10  ;;  %v1787_v49 = vsel %vm761_vm11, 65537, %v1433_v4  ;;  %v799_v62 = vshll.u32 %v1756_v38, 16  ;;  %vm1890_vm10 = vcmp.ne.s16.totalorder %v1308_v39, 0  ;;  %vm1065_vm11 = vsmask.f32 3328 }
  0x3c   : > { %vm1033_vm15 = vmand %vm1732_vm14, %vm1637_vm4  ;;  %v1794_v54 = vsel %vm1748_vm12, 65537, %v1433_v4  ;;  %vm814_vm12 = vcmp.ne.s16.totalorder %v1775_v46, 0 }
  0x3d   : > { %vm1034_vm2 = vmand %vm1736_vm6, %vm1752_vm13  ;;  %v1838_v24 = vrot.slane %v799_v62, 1 }
  0x3e   : > { %vm1812_vm8 = vmpackc.low %vm1033_vm15, %vm1033_vm15 }
  0x3f   : > { %vm1043_vm4 = vmpackc.low %vm1034_vm2, %vm1034_vm2  ;;  %v1050_v16 = vsel %vm1812_vm8, 65537, %v1433_v4  ;;  %v1933_v31 = vsel %vm782_vm1, %v1768_v42, %v1838_v24  ;;  %vm1971_vm2 = vcmp.ne.s16.totalorder %v1307_v41, 0 }
  0x40   : > { %v1051_v30 = vsel %vm1043_vm4, 65537, %v1433_v4  ;;  %vm760_vm3 = vmpackc.low %vm1752_vm13, %vm1752_vm13  ;;  %vm816_vm15 = vcmp.ne.s16.totalorder %v1933_v31, 0 }
  0x41   : > { %v768_v37 = vsel %vm760_vm3, 65537, %v1433_v4  ;;  %vm884_vm7 = vmpackc.low %vm1732_vm14, %vm1732_vm14  ;;  %vm1939_vm14 = vcmp.ne.s16.totalorder %v1311_v47, 0 }
  0x42   : > { %vm885_vm9 = vmpackc.low %vm1736_vm6, %vm1736_vm6  ;;  %v1903_v39 = vcombine.low %v768_v37, %v1787_v49  ;;  %vm923_vm6 = vcmask 1043456   ;;  %v803_v37 = vshrl.u32 %v1756_v38, 16 }
  0x43   : > { %v1925_v49 = vsel %vm885_vm9, 65537, %v1433_v4 }
  0x44   : > { %v811_v28 = vshrl.u32 %v1903_v39, 16 }
  0xe9   : > { %v1358_v43 = vpop.f32.mrb[0].mxu0  ;;  %v1374_v45 = vpop.f32.mrb[0].mxu1 }
  0xea   : > { %v566_v50 = vmul.f32 %v1358_v43, %v1743_v33  ;;  %v430_v51 = vpop.f32.mrb[1].mxu0  ;;  %v582_v52 = vmul.f32 %v1374_v45, %v1743_v33  ;;  %v494_v53 = vpop.f32.mrb[1].mxu1 }
  0xeb   : > { %v564_v56 = vmul.f32 %v1743_v33, %v430_v51  ;;  %v1359_v57 = vpop.f32.mrb[2].mxu0  ;;  %v580_v58 = vmul.f32 %v1743_v33, %v494_v53  ;;  %v1375_v59 = vpop.f32.mrb[2].mxu1  ;;  %v1841_v51 = vcombine.low %v1049_v34, %v1050_v16 }
  0xec   : > { %v605_v63 = vadd.f32 %v1773_v44, %v566_v50  ;;  %v567_v0 = vmul.f32 %v1359_v57, %v1743_v33  ;;  %v433_v1 = vpop.f32.mrb[3].mxu0  ;;  %v621_v3 = vadd.f32 %v1773_v44, %v582_v52  ;;  %v583_v5 = vmul.f32 %v1375_v59, %v1743_v33  ;;  %v497_v8 = vpop.f32.mrb[3].mxu1 }
  0xed   : > { %v603_v2 = vadd.f32 %v1773_v44, %v564_v56  ;;  %v565_v9 = vmul.f32 %v1743_v33, %v433_v1  ;;  %v619_v10 = vadd.f32 %v1773_v44, %v580_v58  ;;  %v581_v11 = vmul.f32 %v1743_v33, %v497_v8 }
  0xee   : > { %v606_v13 = vadd.f32 %v1773_v44, %v567_v0  ;;  %v653_v14 = vmax.f32 %v621_v3, 0.0  ;;  %v622_v15 = vadd.f32 %v1773_v44, %v583_v5  ;;  %v637_v25 = vmax.f32 %v605_v63, 0.0 }
  0xef   : > { %v604_v17 = vadd.f32 %v1773_v44, %v565_v9  ;;  %v651_v20 = vmax.f32 %v619_v10, 0.0  ;;  %v620_v22 = vadd.f32 %v1773_v44, %v581_v11  ;;  %v635_v35 = vmax.f32 %v603_v2, 0.0 }
  0xf0   : > { %v638_v26 = vmax.f32 %v606_v13, 0.0  ;;  %v654_v27 = vmax.f32 %v622_v15, 0.0 }
  0xf1   : > { %v636_v36 = vmax.f32 %v604_v17, 0.0  ;;  %v652_v43 = vmax.f32 %v620_v22, 0.0  ;;  %v1362_v45 = vpop.f32.mrb[4].mxu0  ;;  %v1378_v50 = vpop.f32.mrb[4].mxu1  ;;  %v1084_v22 = vshrl.u32 %v1841_v51, 16 }
  0xf2   : > { %v668_v52 = vpack.c.bf16 %v638_v26, %v637_v25  ;;  %v676_v53 = vpack.c.bf16 %v654_v27, %v653_v14  ;;  %v570_v56 = vmul.f32 %v1362_v45, %v1743_v33  ;;  %v586_v57 = vmul.f32 %v1378_v50, %v1743_v33  ;;  %v446_v58 = vpop.f32.mrb[5].mxu0  ;;  %v510_v59 = vpop.f32.mrb[5].mxu1 }
  0xf3   : > { %v667_v61 = vpack.c.bf16 %v636_v36, %v635_v35  ;;  %v675_v62 = vpack.c.bf16 %v652_v43, %v651_v20  ;;  %v568_v63 = vmul.f32 %v1743_v33, %v446_v58  ;;  %v584_v0 = vmul.f32 %v1743_v33, %v510_v59  ;;  %v1363_v1 = vpop.f32.mrb[6].mxu0  ;;  %v1379_v3 = vpop.f32.mrb[6].mxu1 }
  0xf4   : > { %685 = vst.msk [vmem:[#allocation2 + $0x8] sm:$0xff] %vm683_vm5, %v668_v52  ;;  %693 = vst.msk [vmem:[#allocation2 + $0x48] sm:$0xff] %vm683_vm5, %v676_v53  ;;  %v609_v34 = vadd.f32 %v1773_v44, %v570_v56  ;;  %v625_v5 = vadd.f32 %v1773_v44, %v586_v57  ;;  %v571_v8 = vmul.f32 %v1363_v1, %v1743_v33  ;;  %v449_v9 = vpop.f32.mrb[7].mxu0  ;;  %v513_v10 = vpop.f32.mrb[7].mxu1  ;;  %v1087_v35 = vshll.u32 %v1841_v51, 16 }
  0xf5   : > { %v587_v2 = vmul.f32 %v1379_v3, %v1743_v33  ;;  %684 = vst.msk [vmem:[#allocation2] sm:$0xff] %vm683_vm5, %v667_v61  ;;  %692 = vst.msk [vmem:[#allocation2 + $0x40] sm:$0xff] %vm683_vm5, %v675_v62  ;;  %v607_v11 = vadd.f32 %v1773_v44, %v568_v63  ;;  %v623_v13 = vadd.f32 %v1773_v44, %v584_v0 }
  0xf6   : > { %v569_v14 = vmul.f32 %v1743_v33, %v449_v9  ;;  %v585_v15 = vmul.f32 %v1743_v33, %v513_v10  ;;  %v657_v16 = vmax.f32 %v625_v5, 0.0  ;;  %v610_v17 = vadd.f32 %v1773_v44, %v571_v8 }
  0xf7   : > { %v626_v20 = vadd.f32 %v1773_v44, %v587_v2  ;;  %v655_v25 = vmax.f32 %v623_v13, 0.0  ;;  %v641_v36 = vmax.f32 %v609_v34, 0.0  ;;  %v639_v50 = vmax.f32 %v607_v11, 0.0 }
  0xf8   : > { %v608_v26 = vadd.f32 %v1773_v44, %v569_v14  ;;  %v624_v27 = vadd.f32 %v1773_v44, %v585_v15  ;;  %v642_v43 = vmax.f32 %v610_v17, 0.0  ;;  %v1873_v58 = vcombine.low %v1051_v30, %v1794_v54 }
  0xf9   : > { %v658_v45 = vmax.f32 %v626_v20, 0.0  ;;  %v1366_v56 = vpop.f32.mrb[8].mxu0  ;;  %v1382_v57 = vpop.f32.mrb[8].mxu1  ;;  %v789_v30 = vor.u32 %v787_v40, %v1775_v46  ;;  %v1086_v5 = vrot.slane %v1084_v22, 4  ;;  %v1089_v7 = vrot.slane %v1087_v35, 5 }
  0xfa   : > { %v640_v52 = vmax.f32 %v608_v26, 0.0  ;;  %v656_v53 = vmax.f32 %v624_v27, 0.0  ;;  %v670_v59 = vpack.c.bf16 %v642_v43, %v641_v36  ;;  %v574_v51 = vmul.f32 %v1366_v56, %v1743_v33  ;;  %v462_v63 = vpop.f32.mrb[9].mxu0  ;;  %v526_v0 = vpop.f32.mrb[9].mxu1 }
  0xfb   : > { %v678_v61 = vpack.c.bf16 %v658_v45, %v657_v16  ;;  %v590_v62 = vmul.f32 %v1382_v57, %v1743_v33  ;;  %v1367_v8 = vpop.f32.mrb[10].mxu0  ;;  %v1383_v6 = vpop.f32.mrb[10].mxu1  ;;  %v1907_v40 = vor.u32 %v1804_v60, %v1796_v55  ;;  %v1917_v2 = vsel %vm884_vm7, 65537, %v1433_v4 }
  0xfc   : > { %v669_v3 = vpack.c.bf16 %v640_v52, %v639_v50  ;;  %v677_v34 = vpack.c.bf16 %v656_v53, %v655_v25  ;;  %687 = vst.msk [vmem:[#allocation2 + $0x18] sm:$0xff] %vm683_vm5, %v670_v59  ;;  %v613_v18 = vadd.f32 %v1773_v44, %v574_v51  ;;  %v575_v19 = vmul.f32 %v1367_v8, %v1743_v33  ;;  %v465_v21 = vpop.f32.mrb[11].mxu0  ;;  %v529_v12 = vpop.f32.mrb[11].mxu1  ;;  %v1961_v50 = vld [vmem:[#allocation2 + $0x48] sm:$0xff]  ;;  %v1963_v52 = vld [vmem:[#allocation2 + $0x40] sm:$0xff] }
  0xfd   : > { %695 = vst.msk [vmem:[#allocation2 + $0x58] sm:$0xff] %vm683_vm5, %v678_v61  ;;  %v629_v55 = vadd.f32 %v1773_v44, %v590_v62  ;;  %v572_v60 = vmul.f32 %v1743_v33, %v462_v63  ;;  %v1093_v10 = vshrl.u32 %v1873_v58, 16  ;;  %v588_v4 = vmul.f32 %v1743_v33, %v526_v0 }
  0xfe   : > { %686 = vst.msk [vmem:[#allocation2 + $0x10] sm:$0xff] %vm683_vm5, %v669_v3  ;;  %694 = vst.msk [vmem:[#allocation2 + $0x50] sm:$0xff] %vm683_vm5, %v677_v34  ;;  %v614_v9 = vadd.f32 %v1773_v44, %v575_v19  ;;  %v591_v11 = vmul.f32 %v1383_v6, %v1743_v33  ;;  %v573_v13 = vmul.f32 %v1743_v33, %v465_v21  ;;  %v1096_v14 = vshll.u32 %v1873_v58, 16 }
  0xff   : > { %v645_v15 = vmax.f32 %v613_v18, 0.0  ;;  %v1947_v16 = vor.u32 %v1089_v7, %v1086_v5  ;;  %v807_v17 = vshll.u32 %v1903_v39, 16  ;;  %v661_v20 = vmax.f32 %v629_v55, 0.0 }
 0x100   : > { %v646_v42 = vmax.f32 %v614_v9, 0.0  ;;  %v630_v29 = vadd.f32 %v1773_v44, %v591_v11  ;;  %v612_v47 = vadd.f32 %v1773_v44, %v573_v13  ;;  %v589_v22 = vmul.f32 %v1743_v33, %v529_v12 }
 0x101   : > { %v1370_v25 = vpop.f32.mrb[12].mxu0  ;;  %v1386_v26 = vpop.f32.mrb[12].mxu1  ;;  %v611_v27 = vadd.f32 %v1773_v44, %v572_v60  ;;  %v1956_v36 = vsel %vm782_vm1, %v789_v30, %v1715_v23  ;;  %vm1101_vm13 = vcmp.ne.s16.totalorder %v1907_v40, 0  ;;  %v627_v53 = vadd.f32 %v1773_v44, %v588_v4 }
 0x102   : > { %v672_v35 = vpack.c.bf16 %v646_v42, %v645_v15  ;;  %v478_v43 = vpop.f32.mrb[13].mxu0  ;;  %v1958_v45 = vpop.f32.mrb[13].mxu1  ;;  %v662_v56 = vmax.f32 %v630_v29, 0.0  ;;  %v1979_v38 = vsel %vm1065_vm11, %v1779_v48, %v1947_v16  ;;  %v644_v58 = vmax.f32 %v612_v47, 0.0 }
 0x103   : > { %v753_v57 = vld [vmem:[#allocation2 + $0x18] sm:$0x80]  ;;  %v1095_v59 = vrot.slane %v1093_v10, 4  ;;  %v1098_v61 = vrot.slane %v1096_v14, 5  ;;  %v628_v62 = vadd.f32 %v1773_v44, %v589_v22  ;;  %v809_v63 = vrot.slane %v807_v17, 1  ;;  %v1387_v18 = vpop.f32.mrb[14].mxu1 }
 0x104   : > { %689 = vst.msk [vmem:[#allocation2 + $0x28] sm:$0xff] %vm683_vm5, %v672_v35  ;;  %v680_v51 = vpack.c.bf16 %v662_v56, %v661_v20  ;;  %v915_v41 = vsel %vm1883_vm0, %v1961_v50, 0  ;;  %v914_v0 = vsel %vm1890_vm10, %v1963_v52, 0  ;;  %v643_v30 = vmax.f32 %v611_v27, 0.0  ;;  %v878_v5 = vld [vmem:[#allocation2 + $0x58] sm:$0xf] }
 0x105   : > { %v805_v3 = vor.u32 %v803_v37, %v1838_v24  ;;  %v819_v34 = vsel %vm814_vm12, %v753_v57, 0  ;;  %v1310_v8 = vcombine.low %v1917_v2, %v1925_v49  ;;  %v659_v6 = vmax.f32 %v627_v53, 0.0  ;;  %v1371_v24 = vpop.f32.mrb[14].mxu0  ;;  %v949_v19 = vld [vmem:[#allocation2 + $0x58] sm:$0x80]  ;;  %v545_v9 = vpop.f32.mrb[15].mxu1 }
 0x106   : > { %697 = vst.msk [vmem:[#allocation2 + $0x68] sm:$0xff] %vm683_vm5, %v680_v51  ;;  %vm1103_vm8 = vcmp.ne.s16.totalorder %v1979_v38, 0  ;;  %vm815_vm4 = vcmp.ne.s16.totalorder %v1956_v36, 0  ;;  %v2000_v7 = vsel %vm1065_vm11, %v1907_v40, %v1779_v48  ;;  %v671_v21 = vpack.c.bf16 %v644_v58, %v643_v30  ;;  %v481_v60 = vpop.f32.mrb[15].mxu0  ;;  %v1036_v11 = vld [vmem:[#allocation2 + $0x58] sm:$0xf8] }
 0x107   : > { %v578_v12 = vmul.f32 %v1370_v25, %v1743_v33  ;;  %v594_v39 = vmul.f32 %v1386_v26, %v1743_v33  ;;  %v2004_v55 = vor.u32 %v1098_v61, %v1095_v59  ;;  %v2006_v10 = vrot.slane %v915_v41, 4  ;;  %v2028_v26 = vld [vmem:[#allocation2 + $0x58] sm:$0xf0] }
 0x108   : > { %v2008_v4 = vrot.slane %v914_v0, 4  ;;  %v660_v13 = vmax.f32 %v628_v62, 0.0  ;;  %v2010_v48 = vor.u32 %v811_v28, %v809_v63  ;;  %v826_v14 = vshrl.u32 %v819_v34, 16  ;;  %688 = vst.msk [vmem:[#allocation2 + $0x20] sm:$0xff] %vm683_vm5, %v671_v21 }
 0x109   : > { %v917_v15 = vsel %vm1939_vm14, %v878_v5, 0  ;;  %v576_v42 = vmul.f32 %v1743_v33, %v478_v43  ;;  %v2017_v17 = vsel %vm782_vm1, %v805_v3, %v809_v63  ;;  %v2021_v20 = vsel %vm814_vm12, %v949_v19, 0 }
 0x10a   : > { %v679_v47 = vpack.c.bf16 %v660_v13, %v659_v6  ;;  %vm1102_vm3 = vcmp.ne.s16.totalorder %v2000_v7, 0  ;;  %v579_v22 = vmul.f32 %v1371_v24, %v1743_v33  ;;  %v595_v25 = vmul.f32 %v1387_v18, %v1743_v33 }
 0x10b   : > { %v2023_v29 = vld [vmem:[#allocation2 + $0x28] sm:$0xff]  ;;  %v2032_v27 = vsel %vm1101_vm13, %v1036_v11, 0  ;;  %vm824_vm1 = vsmask.f32 256  ;;  %v617_v35 = vadd.f32 %v1773_v44, %v578_v12  ;;  %v633_v43 = vadd.f32 %v1773_v44, %v594_v39 }
 0x10c   : > { %v821_v46 = vsel %vm816_vm15, %v2023_v29, 0  ;;  %v2042_v37 = vsel %vm923_vm6, %v2008_v4, %v2006_v10  ;;  %696 = vst.msk [vmem:[#allocation2 + $0x60] sm:$0xff] %vm683_vm5, %v679_v47  ;;  %v618_v40 = vadd.f32 %v1773_v44, %v579_v22  ;;  %v2049_v56 = vsel %vm1065_vm11, %v1947_v16, %v2004_v55  ;;  %v742_v12 = vld [vmem:[#allocation2 + $0x8] sm:$0xff] }
 0x10d   : > { %v838_v53 = vshrl.u32 %v821_v46, 16  ;;  %v2051_v57 = vrot.slane %v917_v15, 4  ;;  %v956_v58 = vshrl.u32 %v2021_v20, 16  ;;  %v2054_v59 = vld [vmem:[#allocation2 + $0x68] sm:$0xff]  ;;  %v592_v61 = vmul.f32 %v1743_v33, %v1958_v45 }
 0x10e   : > { %v634_v51 = vadd.f32 %v1773_v44, %v595_v25  ;;  %v828_v62 = vrot.slane %v826_v14, 7  ;;  %v1001_v63 = vsel %vm1971_vm2, %v2028_v26, 0  ;;  %v1113_v28 = vshrl.u32 %v2032_v27, 16 }
 0x10f   : > { %v2063_v16 = vrot.slane %v838_v53, 7  ;;  %v952_v41 = vsel %vm816_vm15, %v2054_v59, 0  ;;  %v649_v0 = vmax.f32 %v617_v35, 0.0  ;;  %v665_v30 = vmax.f32 %v633_v43, 0.0  ;;  %v745_v34 = vld [vmem:[#allocation2 + $0x20] sm:$0xff] }
 0x110   : > { %v615_v3 = vadd.f32 %v1773_v44, %v576_v42  ;;  %v841_v45 = vshll.u32 %v821_v46, 16  ;;  %v650_v5 = vmax.f32 %v618_v40, 0.0  ;;  %v666_v6 = vmax.f32 %v634_v51, 0.0 }
 0x111   : > { %v577_v24 = vmul.f32 %v1743_v33, %v481_v60  ;;  %v1116_v18 = vshll.u32 %v2032_v27, 16  ;;  %v1108_v19 = vsel %vm1103_vm8, %v2054_v59, 0  ;;  %v820_v31 = vsel %vm815_vm4, %v745_v34, 0 }
 0x112   : > { %v2077_v21 = vadd.f32 %v1773_v44, %v592_v61  ;;  %vm818_vm7 = vcmp.ne.s16.totalorder %v2010_v48, 0  ;;  %v843_v39 = vor.u32 %v841_v45, %v2063_v16  ;;  %v968_v11 = vshrl.u32 %v952_v41, 16 }
 0x113   : > { %v830_v13 = vshrl.u32 %v820_v31, 16  ;;  %v674_v60 = vpack.c.bf16 %v650_v5, %v649_v0  ;;  %v750_v14 = vmax.bf16 %v2023_v29, %v742_v12  ;;  %v2082_v15 = vld [vmem:[#allocation2 + $0x60] sm:$0xff]  ;;  %v647_v38 = vmax.f32 %v615_v3, 0.0 }
 0x114   : > { %v682_v42 = vpack.c.bf16 %v666_v6, %v665_v30  ;;  %v593_v47 = vmul.f32 %v1743_v33, %v545_v9  ;;  %vm2088_vm9 = vcmp.ne.s16.totalorder %v1310_v8, 0  ;;  %v833_v46 = vshll.u32 %v820_v31, 16  ;;  %v741_v8 = vld [vmem:[#allocation2] sm:$0xff] }
 0x115   : > { %v832_v25 = vrot.slane %v830_v13, 7  ;;  %v951_v35 = vsel %vm815_vm4, %v2082_v15, 0  ;;  %691 = vst.msk [vmem:[#allocation2 + $0x38] sm:$0xff] %vm683_vm5, %v674_v60  ;;  %v616_v29 = vadd.f32 %v1773_v44, %v577_v24  ;;  %v971_v43 = vshll.u32 %v952_v41, 16  ;;  %v2122_v60 = vld [vmem:[#allocation2 + $0x50] sm:$0xff] }
 0x116   : > { %v1003_v33 = vsel %vm1883_vm0, %v2054_v59, 0  ;;  %v1130_v2 = vshrl.u32 %v1108_v19, 16  ;;  %v1107_v49 = vsel %vm1102_vm3, %v2082_v15, 0  ;;  %699 = vst.msk [vmem:[#allocation2 + $0x78] sm:$0xff] %vm683_vm5, %v682_v42  ;;  %v2104_v9 = vrot.slane %v968_v11, 7 }
 0x117   : > { %v1133_v36 = vshll.u32 %v1108_v19, 16  ;;  %v835_v53 = vor.u32 %v833_v46, %v832_v25  ;;  %v844_v40 = vsel %vm824_vm1, %v832_v25, %v843_v39  ;;  %v749_v61 = vmax.bf16 %v745_v34, %v741_v8 }
 0x118   : > { %v866_v51 = vmax.bf16 %v844_v40, %v750_v14  ;;  %v960_v41 = vshrl.u32 %v951_v35, 16  ;;  %v1002_v1 = vsel %vm1890_vm10, %v2082_v15, 0  ;;  %v1121_v7 = vshrl.u32 %v1107_v49, 16 }
 0x119   : > { %v836_v0 = vsel %vm824_vm1, %v828_v62, %v835_v53  ;;  %v1124_v30 = vshll.u32 %v1107_v49, 16  ;;  %vm1105_vm0 = vcmp.ne.s16.totalorder %v2004_v55, 0  ;;  %v648_v3 = vmax.f32 %v616_v29, 0.0 }
 0x11a   : > { %v1132_v45 = vrot.slane %v1130_v2, 3  ;;  %v865_v5 = vmax.bf16 %v836_v0, %v749_v61  ;;  %v874_v6 = vmax.bf16 %v1961_v50, %v866_v51  ;;  %vm1111_vm11 = vsmask.f32 4352 }
 0x11b   : > { %v663_v34 = vmax.f32 %v2077_v21, 0.0  ;;  %vm817_vm12 = vcmp.ne.s16.totalorder %v2017_v17, 0  ;;  %v973_v24 = vor.u32 %v971_v43, %v2104_v9  ;;  %v1135_v54 = vrot.slane %v1133_v36, 4 }
 0x11c   : > { %v673_v19 = vpack.c.bf16 %v648_v3, %v647_v38  ;;  %v632_v62 = vadd.f32 %v1773_v44, %v593_v47  ;;  %v2117_v31 = vrot.slane %v1003_v33, 4  ;;  %v938_v12 = vmax.bf16 %v2042_v37, %v874_v6  ;;  %v2120_v13 = vld [vmem:[#allocation2 + $0x38] sm:$0xff] }
 0x11d   : > { %v963_v39 = vshll.u32 %v951_v35, 16  ;;  %v1012_v11 = vrot.slane %v1002_v1, 4  ;;  %v877_v50 = vld [vmem:[#allocation2 + $0x38] sm:$0xf0]  ;;  %v962_v21 = vrot.slane %v960_v41, 7  ;;  %v1123_v14 = vrot.slane %v1121_v7, 3 }
 0x11e   : > { %v1126_v42 = vrot.slane %v1124_v30, 4  ;;  %vm1192_vm10 = vcmask 60416   ;;  %v823_v38 = vsel %vm818_vm7, %v2120_v13, 0  ;;  %690 = vst.msk [vmem:[#allocation2 + $0x30] sm:$0xff] %vm683_vm5, %v673_v19  ;;  %v873_v44 = vmax.bf16 %v1963_v52, %v865_v5  ;;  %v2135_v43 = vld [vmem:[#allocation2 + $0x78] sm:$0xff] }
 0x11f   : > { %v946_v37 = vmax.bf16 %v2054_v59, %v938_v12  ;;  %v854_v47 = vshrl.u32 %v823_v38, 16  ;;  %v913_v25 = vsel %vm1971_vm2, %v877_v50, 0  ;;  %v2132_v46 = vor.u32 %v1135_v54, %v1132_v45  ;;  %v2146_v61 = vld [vmem:[#allocation2 + $0x78] sm:$0xf] }
 0x120   : > { %v974_v35 = vsel %vm824_vm1, %v962_v21, %v973_v24  ;;  %v924_v29 = vrot.slane %v913_v25, 4  ;;  %v664_v33 = vmax.f32 %v632_v62, 0.0  ;;  %v958_v2 = vrot.slane %v956_v58, 7  ;;  %v744_v19 = vld [vmem:[#allocation2 + $0x18] sm:$0xff] }
 0x121   : > { %v916_v52 = vsel %vm2088_vm9, %v2122_v60, 0  ;;  %v996_v59 = vmax.bf16 %v974_v35, %v946_v37  ;;  %v1015_v49 = vsel %vm923_vm6, %v1012_v11, %v2117_v31  ;;  %v965_v8 = vor.u32 %v963_v39, %v962_v21 }
 0x122   : > { %v1127_v36 = vor.u32 %v1126_v42, %v1123_v14  ;;  %v856_v53 = vrot.slane %v854_v47, 7  ;;  %v926_v40 = vsel %vm923_vm6, %v924_v29, %v2008_v4  ;;  %v1115_v20 = vrot.slane %v1113_v28, 3 }
 0x123   : > { %v1025_v58 = vmax.bf16 %v1015_v49, %v996_v59  ;;  %v937_v51 = vmax.bf16 %v926_v40, %v873_v44  ;;  %v954_v41 = vsel %vm818_vm7, %v2135_v43, 0  ;;  %v1118_v1 = vrot.slane %v1116_v18, 4  ;;  %v743_v44 = vld [vmem:[#allocation2 + $0x10] sm:$0xff] }
 0x124   : > { %v1137_v0 = vsel %vm1111_vm11, %v1127_v36, %v2132_v46  ;;  %v857_v7 = vshll.u32 %v823_v38, 16  ;;  %v681_v4 = vpack.c.bf16 %v664_v33, %v663_v34  ;;  %vm1104_vm13 = vcmp.ne.s16.totalorder %v2049_v56, 0 }
 0x125   : > { %v1011_v28 = vrot.slane %v1001_v63, 4  ;;  %v1161_v30 = vmax.bf16 %v1137_v0, %v1025_v58  ;;  %v945_v3 = vmax.bf16 %v2082_v15, %v937_v51  ;;  %v1110_v48 = vsel %vm1105_vm0, %v2146_v61, 0  ;;  %v747_v27 = vld [vmem:[#allocation2 + $0x30] sm:$0xff] }
 0x126   : > { %v966_v23 = vsel %vm824_vm1, %v958_v2, %v965_v8  ;;  %v859_v18 = vor.u32 %v857_v7, %v856_v53  ;;  %v984_v26 = vshrl.u32 %v954_v41, 16  ;;  %v822_v63 = vsel %vm817_vm12, %v747_v27, 0  ;;  %698 = vst.msk [vmem:[#allocation2 + $0x70] sm:$0xff] %vm683_vm5, %v681_v4 }
 0x127   : > { %v1318_v15 = vcombine.low %v1161_v30, %v1161_v30  ;;  %v1319_v55 = vcombine.high %v1161_v30, %v1161_v30  ;;  %v995_v45 = vmax.bf16 %v966_v23, %v945_v3  ;;  %v846_v5 = vshrl.u32 %v822_v63, 16 }
 0x128   : > { %v1119_v6 = vor.u32 %v1118_v1, %v1115_v20  ;;  %v929_v34 = vrot.slane %v916_v52, 4  ;;  %v1013_v24 = vsel %vm923_vm6, %v1011_v28, %v1012_v11  ;;  %v1148_v54 = vshrl.u32 %v1110_v48, 16 }
 0x129   : > { %1195 = vst.msk [vmem:[%s2170_s10 + $0x8] sm:$0xf] %vm1192_vm10, %v1318_v15  ;;  %1196 = vst.msk [vmem:[%s2170_s10 + $0xc] sm:$0xf] %vm1192_vm10, %v1319_v55  ;;  %v1024_v62 = vmax.bf16 %v1013_v24, %v995_v45  ;;  %v1151_v12 = vshll.u32 %v1110_v48, 16  ;;  %v848_v39 = vrot.slane %v846_v5, 7  ;;  %v752_v14 = vmax.bf16 %v2120_v13, %v744_v19 }
 0x12a   : > { %v849_v50 = vshll.u32 %v822_v63, 16  ;;  %v1128_v21 = vsel %vm1111_vm11, %v1119_v6, %v1127_v36  ;;  %v986_v42 = vrot.slane %v984_v26, 7  ;;  %v987_v38 = vshll.u32 %v954_v41, 16  ;;  %v872_v13 = vld [vmem:[#allocation2 + $0x58] sm:$0xff] }
 0x12b   : > { %v932_v11 = vsel %vm923_vm6, %v929_v34, %v2051_v57  ;;  %v1160_v37 = vmax.bf16 %v1128_v21, %v1024_v62  ;;  %v860_v25 = vsel %vm824_vm1, %v848_v39, %v859_v18  ;;  %v1005_v35 = vsel %vm1939_vm14, %v2146_v61, 0 }
 0x12c   : > { %v851_v47 = vor.u32 %v849_v50, %v848_v39  ;;  %v1150_v29 = vrot.slane %v1148_v54, 3  ;;  %v751_v33 = vmax.bf16 %v747_v27, %v743_v44  ;;  %v868_v2 = vmax.bf16 %v860_v25, %v752_v14 }
 0x12d   : > { %v1316_v52 = vcombine.low %v1160_v37, %v1160_v37  ;;  %v1317_v59 = vcombine.high %v1160_v37, %v1160_v37  ;;  %v1153_v49 = vrot.slane %v1151_v12, 4  ;;  %v943_v8 = vld [vmem:[#allocation2 + $0x70] sm:$0xff]  ;;  %v989_v36 = vor.u32 %v987_v38, %v986_v42 }
 0x12e   : > { %v852_v57 = vsel %vm824_vm1, %v2063_v16, %v851_v47  ;;  %v876_v40 = vmax.bf16 %v872_v13, %v868_v2  ;;  %v953_v20 = vsel %vm817_vm12, %v943_v8, 0  ;;  %v1004_v58 = vsel %vm2088_vm9, %v943_v8, 0 }
 0x12f   : > { %v867_v53 = vmax.bf16 %v852_v57, %v751_v33  ;;  %1193 = vst.msk [vmem:[%s2170_s10] sm:$0xf] %vm1192_vm10, %v1316_v52  ;;  %1194 = vst.msk [vmem:[%s2170_s10 + $0x4] sm:$0xf] %vm1192_vm10, %v1317_v59  ;;  %v976_v32 = vshrl.u32 %v953_v20, 16  ;;  %v979_v61 = vshll.u32 %v953_v20, 16  ;;  %v930_v17 = vsel %vm923_vm6, %v2006_v10, %v929_v34 }
 0x130   : > { %v1109_v51 = vsel %vm1104_vm13, %v943_v8, 0  ;;  %v940_v41 = vmax.bf16 %v932_v11, %v876_v40  ;;  %v1018_v7 = vrot.slane %v1005_v35, 4  ;;  %v1154_v22 = vor.u32 %v1153_v49, %v1150_v29 }
 0x131   : > { %v875_v16 = vmax.bf16 %v2122_v60, %v867_v53  ;;  %v1139_v1 = vshrl.u32 %v1109_v51, 16  ;;  %v1142_v0 = vshll.u32 %v1109_v51, 16  ;;  %v978_v4 = vrot.slane %v976_v32, 7 }
 0x132   : > { %v948_v30 = vmax.bf16 %v2135_v43, %v940_v41  ;;  %v1016_v23 = vrot.slane %v1004_v58, 4 }
 0x133   : > { %v939_v28 = vmax.bf16 %v930_v17, %v875_v16  ;;  %v1141_v3 = vrot.slane %v1139_v1, 3  ;;  %v1144_v48 = vrot.slane %v1142_v0, 4  ;;  %v981_v27 = vor.u32 %v979_v61, %v978_v4 }
 0x134   : > { %v990_v56 = vsel %vm824_vm1, %v978_v4, %v989_v36  ;;  %v1019_v10 = vsel %vm923_vm6, %v1016_v23, %v1018_v7  ;;  %v1017_v55 = vsel %vm923_vm6, %v2117_v31, %v1016_v23 }
 0x135   : > { %v947_v18 = vmax.bf16 %v943_v8, %v939_v28  ;;  %v998_v60 = vmax.bf16 %v990_v56, %v948_v30  ;;  %v982_v26 = vsel %vm824_vm1, %v2104_v9, %v981_v27  ;;  %v1145_v63 = vor.u32 %v1144_v48, %v1141_v3 }
 0x137   : > { %v997_v43 = vmax.bf16 %v982_v26, %v947_v18  ;;  %v1027_v15 = vmax.bf16 %v1019_v10, %v998_v60  ;;  %v1155_v45 = vsel %vm1111_vm11, %v1145_v63, %v1154_v22  ;;  %v1146_v34 = vsel %vm1111_vm11, %v2132_v46, %v1145_v63 }
 0x139   : > { %v1026_v5 = vmax.bf16 %v1017_v55, %v997_v43  ;;  %v1163_v6 = vmax.bf16 %v1155_v45, %v1027_v15 }
 0x13b   : > { %v1162_v24 = vmax.bf16 %v1146_v34, %v1026_v5  ;;  %v1322_v9 = vcombine.low %v1163_v6, %v1163_v6  ;;  %v1323_v54 = vcombine.high %v1163_v6, %v1163_v6 }
 0x13d   : > { %v1320_v19 = vcombine.low %v1162_v24, %v1162_v24  ;;  %v1321_v62 = vcombine.high %v1162_v24, %v1162_v24  ;;  %1199 = vst.msk [vmem:[%s2170_s10 + $0x18] sm:$0xf] %vm1192_vm10, %v1322_v9  ;;  %1200 = vst.msk [vmem:[%s2170_s10 + $0x1c] sm:$0xf] %vm1192_vm10, %v1323_v54 }
 0x13f   : > { %1197 = vst.msk [vmem:[%s2170_s10 + $0x10] sm:$0xf] %vm1192_vm10, %v1320_v19  ;;  %1198 = vst.msk [vmem:[%s2170_s10 + $0x14] sm:$0xf] %vm1192_vm10, %v1321_v62 }
 0x140 PF: > { %s14_s15 = sadd.s32 1, %s1431_s15  }
 0x141   : > { %p11_p4 = scmp.ge.s32.totalorder %s14_s15, 4  }
 0x143   :  { %13 = sbr.rel (!%p11_p4) target bundleno = 1 (0x1), region = 66 }

// kernel: _lambda_.13
= control target key start
LH: loop header
LB: loop body
LE: loop exit
PB: predicated region body
PF: predicated region fallthrough
CT: control target
= control target key end

     0   :  { %s1710_s17 = smov 0   ;;  %s1897_s0 = inlined_call_operand.vmem [shape: bf16[2,16,72], index: 0, kind: input, shape index: {}]   ;;  %s1898_s1 = inlined_call_operand.vmem [shape: bf16[2,16,8], index: 1, kind: input, shape index: {}]   ;;  %s1899_s2 = inlined_call_operand.vmem [shape: bf16[72,16], index: 2, kind: input, shape index: {}]   ;;  %s1900_s3 = inlined_call_operand.vmem [shape: f32[1,16], index: 3, kind: input, shape index: {}]   ;;  %s1901_s4 = inlined_call_operand.vmem [shape: f32[1,16], index: 4, kind: input, shape index: {}]   ;;  %s1902_s5 = inlined_call_operand.vmem [shape: bf16[3,3,16,16], index: 5, kind: input, shape index: {}]   ;;  %s1903_s6 = inlined_call_operand.vmem [shape: f32[1,16], index: 6, kind: input, shape index: {}]   ;;  %s1904_s7 = inlined_call_operand.vmem [shape: f32[1,16], index: 7, kind: input, shape index: {}]   ;;  %s1905_s8 = inlined_call_operand.vmem [shape: bf16[8,16], index: 8, kind: input, shape index: {}]   ;;  %s1906_s9 = inlined_call_operand.vmem [shape: f32[1,16], index: 9, kind: input, shape index: {}]   ;;  %s1907_s10 = inlined_call_operand.vmem [shape: f32[1,16], index: 10, kind: input, shape index: {}]   ;;  %s1908_s11 = inlined_call_operand.vmem [shape: bf16[2,16,16], index: 11, kind: output, shape index: {}]  }
   0x1 LB: > { %s1408_s18 = sadd.s32 4294967295, %s1644_s17   ;;  %p1412_p0 = scmp.ge.s32.totalorder %s1644_s17, 1  ;;  %s1644_s17 = sphi %s1710_s17, %s21_s17  }
   0x2   : > { %p347_p1 = scmp.lt.s32.totalorder %s1644_s17, 3 }
   0x4   : > { %p348_p2 = pnand %p1412_p0, %p347_p1 }
   0x5   : > { %p392_p3 = scmp.lt.s32.totalorder (!%p348_p2), %s1408_s18, 1  ;;  %p1419_p4 = scmp.ne.s32.totalorder (!%p348_p2), %s1408_s18, 0 }
   0x6   : > { %351 = sbr.rel (%p348_p2) target bundleno = 583 (0x247), region = 64 }
   0xd   : > { %s393_s19 = scalar_select %p392_p3, %s1408_s18, 1 }
   0xe   : > { %413 = sbr.rel (%p1419_p4) target bundleno = 21 (0x15), region = 68  ;;  %vm414_vm0 = vcmask (!%p1419_p4), 130048   ;;  %v1646_v0 = vmov (!%p1419_p4), 0  }
   0xf   : > { %s1718_s20 = sshll.u32 %s393_s19, 3  ;;  %415 = vst.msk [vmem:[#allocation2] sm:$0xff] (!%p1419_p4), %vm414_vm0, %v1646_v0  ;;  %416 = vst.msk [vmem:[#allocation2 + $0x8] sm:$0xff] (!%p1419_p4), %vm414_vm0, %v1646_v0 }
  0x10   : > { %s396_s23 = scalar_lea.vmem %s1897_s0, %s1718_s20  ;;  %s401_s26 = scalar_lea.vmem %s1898_s1, %s1718_s20 }
  0x11   : > { %s1732_s29 = scalar_lea.vmem %s1908_s11, %s1718_s20 }
  0x15 PF: > { %v1622_v1 = vld [vmem:[%s1899_s2] sm:$0xff]   ;;  %v1647_v2 = vmov 0.0   ;;  %v1623_v3 = vld [vmem:[%s1899_s2 + $0x8] sm:$0xff]   ;;  %vm1648_vm1 = vmmov 0   ;;  %v1624_v4 = vld [vmem:[%s1899_s2 + $0x10] sm:$0xff]   ;;  %vm464_vm2 = vcmask 1043456   ;;  %v537_v9 = vlaneseq }
  0x16   : > { %1506 = vmatprep.subr.bf16.mxu0 %v1647_v2  ;;  %1532 = vmatprep.subr.bf16.mxu1 %v1647_v2  ;;  %v1625_v5 = vld [vmem:[%s1899_s2 + $0x18] sm:$0xff]   ;;  %v1626_v6 = vld [vmem:[%s1899_s2 + $0x20] ss:$0 sps:$4 sm:$0xff]   ;;  %vm460_vm3 = vcmask 588800   ;;  %v1628_v14 = vld [vmem:[%s1902_s5 + $0x8] sm:$0xff]   ;;  %v1649_v15 = vmov 0  }
  0x17   : > { %1507 = vmatpush3.bf16.msra.mxu0 %v1622_v1  ;;  %1516 = vmatprep.mubr.msk.bf16.mxu0 %vm1648_vm1, %v1647_v2  ;;  %v466_v7 = vsel %vm464_vm2, %v1626_v6, 0  ;;  %v1627_v8 = vld [vmem:[%s396_s23] sm:$0xff]   ;;  %v538_v10 = vshrl.u32 %v537_v9, 7  ;;  %v1629_v18 = vld [vmem:[%s1902_s5 + $0x10] sm:$0xff]   ;;  %vm533_vm12 = vcmask 130052   ;;  %vm535_vm13 = vcmask 125952  }
  0x18   : > { %1508 = vmatprep.subr.bf16.mxu0 %v1647_v2  ;;  %1534 = vmatprep.mubr.msk.bf16.mxu1 %vm1648_vm1, %v1647_v2  ;;  %v1427_v25 = vld [vmem:[%s1900_s3] ss:$0 sm:$0xff]  ;;  %vm574_vm0 = vcmask 1045504  }
  0x19   : > { %v539_v11 = vadd.s32 8, %v538_v10  ;;  %v540_v12 = vand.u32 3, %v538_v10  ;;  %1533 = vmatpush3.bf16.msra.mxu1 %v1629_v18  ;;  %v1428_v29 = vld [vmem:[%s1901_s4] ss:$0 sm:$0xff] }
  0x1a   : > { %1538 = vmatprep.subr.bf16.mxu1 %v1647_v2  ;;  %v1631_v53 = vld [vmem:[%s1902_s5] sm:$0xff]  }
  0x1b   : > { %1509 = vmatpush3.bf16.msra.mxu0 %v1623_v3  ;;  %v541_v13 = vand.u32 3, %v539_v11  ;;  %vm544_vm4 = vcmp.le.s32.totalorder %v540_v12, 2  ;;  %vm542_vm8 = vcmp.ge.s32.totalorder %v540_v12, 1 }
  0x1c   : > { %1510 = vmatprep.subr.bf16.mxu0 %v1647_v2  ;;  %vm698_vm6 = vmpackc.low %vm544_vm4, %vm544_vm4 }
  0x1d   : > { %vm545_vm5 = vcmp.le.s32.totalorder %v541_v13, 2  ;;  %v700_v16 = vsel %vm698_vm6, 65537, %v1649_v15  ;;  %vm543_vm9 = vcmp.ge.s32.totalorder %v541_v13, 1  ;;  %vm548_vm10 = vmpackc.low %vm542_vm8, %vm542_vm8  ;;  %vm629_vm6 = vsmask.f32 6400 }
  0x1e   : > { %vm699_vm7 = vmpackc.low %vm545_vm5, %vm545_vm5  ;;  %v550_v26 = vsel %vm548_vm10, 65537, %v1649_v15  ;;  %vm719_vm5 = vsmask.f32 5376  ;;  %vm1261_vm8 = vcmask 64512  }
  0x1f   : > { %1511 = vmatpush3.bf16.msra.mxu0 %v1624_v4  ;;  %v701_v17 = vsel %vm699_vm7, 65537, %v1649_v15  ;;  %vm549_vm11 = vmpackc.low %vm543_vm9, %vm543_vm9  ;;  %vm800_vm7 = vsmask.f32 4352 }
  0x20   : > { %1512 = vmatprep.subr.bf16.mxu0 %v1647_v2  ;;  %v1436_v19 = vcombine.low %v700_v16, %v701_v17  ;;  %v551_v27 = vsel %vm549_vm11, 65537, %v1649_v15  ;;  %vm1023_vm11 = vsmask.f32 2304 }
  0x21   : > { %v1429_v33 = vcombine.low %v550_v26, %v551_v27 }
  0x22   : > { %v1776_v20 = vshrl.u32 %v1436_v19, 16  ;;  %v1778_v21 = vshll.u32 %v1436_v19, 16 }
  0x23   : > { %1513 = vmatpush3.bf16.msra.mxu0 %v1625_v5  ;;  %v1790_v38 = vshrl.u32 %v1429_v33, 16  ;;  %v1792_v39 = vshll.u32 %v1429_v33, 16 }
  0x24   : > { %1514 = vmatprep.subr.bf16.mxu0 %v1647_v2  ;;  %v1156_v22 = vrot.slane %v1776_v20, 1  ;;  %v1157_v23 = vrot.slane %v1778_v21, 2  ;;  %v708_v45 = vrot.slane %v1776_v20, 5  ;;  %v711_v46 = vrot.slane %v1778_v21, 6 }
  0x25   : > { %v558_v43 = vrot.slane %v1790_v38, 6  ;;  %v561_v44 = vrot.slane %v1792_v39, 7  ;;  %v791_v48 = vrot.slane %v1790_v38, 4  ;;  %v792_v49 = vrot.slane %v1792_v39, 5 }
  0x26   : > { %v1782_v24 = vor.u32 %v1157_v23, %v1156_v22  ;;  %v712_v51 = vor.u32 %v711_v46, %v708_v45  ;;  %v1630_v23 = vld [vmem:[%s1902_s5 + $0x18] sm:$0xff]   ;;  %v1632_v46 = vld [vmem:[%s1902_s5 + $0x20] sm:$0xff]  }
  0x27   : > { %1515 = vmatpush3.bf16.msra.mxu0 %v466_v7  ;;  %v562_v50 = vor.u32 %v561_v44, %v558_v43  ;;  %v793_v52 = vor.u32 %v792_v49, %v791_v48  ;;  %v934_v48 = vrot.slane %v1778_v21, 4  ;;  %v1637_v49 = vld [vmem:[%s401_s26] sm:$0xff]  }
  0x28   : > { %1520 = vmatprep.subr.bf16.mxu0 %v1647_v2  ;;  %vm713_vm15 = vcmp.ne.s16.totalorder %v712_v51, 0 }
  0x29   : > { %vm563_vm14 = vcmp.ne.s16.totalorder %v562_v50, 0  ;;  %vm794_vm4 = vcmp.ne.s16.totalorder %v793_v52, 0 }
  0x2a   : > { %1517 = vmatmul.mubr.msk.bf16.vlgmr.msra.gmra.mrb[0].mxu0 %vm460_vm3, %v1627_v8  ;;  %vm584_vm3 = vcmask 130048  }
  0x2b   : > { %1522 = vmatprep.mubr.msk.bf16.mxu0 %vm1648_vm1, %v1647_v2  ;;  %1521 = vmatpush3.bf16.msra.mxu0 %v1628_v14 }
  0x2c   : > { %1526 = vmatprep.subr.bf16.mxu0 %v1647_v2 }
  0xfd   : > { %v502_v28 = vpop.f32.mrb[0].mxu0 }
  0xfe   : > { %v516_v30 = vmul.f32 %v1427_v25, %v502_v28  ;;  %v1518_v31 = vpop.f32.mrb[1].mxu0 }
  0xff   : > { %v505_v32 = vpop.f32.mrb[2].mxu0 }
 0x100   : > { %v525_v34 = vadd.f32 %v1428_v29, %v516_v30  ;;  %v517_v35 = vmul.f32 %v1427_v25, %v505_v32  ;;  %v1519_v36 = vpop.f32.mrb[3].mxu0 }
 0x102   : > { %v526_v37 = vadd.f32 %v1428_v29, %v517_v35  ;;  %v527_v40 = vmax.f32 %v525_v34, 0.0  ;;  %v1255_v35 = vld [vmem:[%s1905_s8] sm:$0xf] }
 0x104   : > { %v528_v41 = vmax.f32 %v526_v37, 0.0 }
 0x106   : > { %v529_v42 = vpack.c.bf16 %v528_v41, %v527_v40 }
 0x108   : > { %v531_v47 = vrot.slane %v529_v42, 4  ;;  %v1266_v42 = vsel %vm464_vm2, %v1255_v35, 0 }
 0x10a   : > { %534 = vst.msk [vmem:[#allocation2] sm:$0xf0] %vm533_vm12, %v531_v47  ;;  %vm1159_vm12 = vcmp.ne.s16.totalorder %v1782_v24, 0 }
 0x10b   : > { %536 = vst.msk [vmem:[#allocation2 + $0x8] sm:$0xf] %vm535_vm13, %v531_v47  ;;  %v933_v47 = vrot.slane %v1776_v20, 3 }
 0x10d   : > { %v935_v51 = vor.u32 %v934_v48, %v933_v47 }
 0x10f   : > { %vm936_vm9 = vcmp.ne.s16.totalorder %v935_v51, 0 }
 0x111   : > { %v568_v55 = vld [vmem:[#allocation2] sm:$0xfc] }
 0x112   : > { %v547_v54 = vld [vmem:[#allocation2 + $0x8] sm:$0x3]  ;;  %v575_v58 = vrot.slane %v568_v55, 2  ;;  %v714_v60 = vsel %vm713_vm15, %v568_v55, 0  ;;  %v546_v61 = vld [vmem:[#allocation2] sm:$0xfe] }
 0x113   : > { %v697_v56 = vld [vmem:[#allocation2 + $0x8] sm:$0x7]  ;;  %v565_v57 = vsel %vm563_vm14, %v547_v54, 0  ;;  %v576_v59 = vrot.slane %v547_v54, 2  ;;  %v721_v63 = vshrl.u32 %v714_v60, 16  ;;  %v724_v0 = vshll.u32 %v714_v60, 16 }
 0x114   : > { %v715_v62 = vsel %vm713_vm15, %v697_v56, 0  ;;  %v564_v1 = vsel %vm563_vm14, %v546_v61, 0  ;;  %v789_v7 = vld [vmem:[#allocation2] sm:$0xf8]  ;;  %v639_v11 = vshrl.u32 %v565_v57, 16  ;;  %v642_v15 = vshll.u32 %v565_v57, 16 }
 0x115   : > { %v577_v3 = vsel %vm574_vm0, %v575_v58, %v576_v59  ;;  %v729_v4 = vshrl.u32 %v715_v62, 16  ;;  %v732_v5 = vshll.u32 %v715_v62, 16  ;;  %v631_v6 = vshrl.u32 %v564_v1, 16  ;;  %v1808_v12 = vld [vmem:[#allocation2 + $0x8] sm:$0xf] }
 0x116   : > { %1523 = vmatmul.mubr.msk.bf16.vlgmr.msra.gmra.mrb[4].mxu0 %vm584_vm3, %v577_v3  ;;  %v723_v8 = vrot.slane %v721_v63, 2  ;;  %v726_v9 = vrot.slane %v724_v0, 3  ;;  %v634_v10 = vshll.u32 %v564_v1, 16  ;;  %v795_v19 = vsel %vm794_vm4, %v789_v7, 0  ;;  %v870_v20 = vld [vmem:[#allocation2] sm:$0xf0] }
 0x117   : > { %v731_v13 = vrot.slane %v729_v4, 2  ;;  %v734_v14 = vrot.slane %v732_v5, 3  ;;  %1527 = vmatpush3.bf16.msra.mxu0 %v1631_v53  ;;  %1528 = vmatprep.mubr.msk.bf16.mxu0 %vm1648_vm1, %v1647_v2  ;;  %v633_v17 = vrot.slane %v631_v6, 1  ;;  %v641_v25 = vrot.slane %v639_v11, 1  ;;  %v932_v21 = vld [vmem:[#allocation2 + $0x8] sm:$0x1f] }
 0x118   : > { %v727_v16 = vor.u32 %v726_v9, %v723_v8  ;;  %v636_v18 = vrot.slane %v634_v10, 2  ;;  %1574 = vmatprep.subr.bf16.mxu0 %v1647_v2  ;;  %v644_v26 = vrot.slane %v642_v15, 2  ;;  %v796_v27 = vsel %vm794_vm4, %v1808_v12, 0  ;;  %v1633_v58 = vld [vmem:[%s1902_s5 + $0x28] sm:$0xff]   ;;  %v1012_v4 = vld [vmem:[#allocation2] sm:$0xe0] }
 0x119   : > { %v735_v22 = vor.u32 %v734_v14, %v731_v13  ;;  %v802_v28 = vshrl.u32 %v795_v19, 16  ;;  %v805_v30 = vshll.u32 %v795_v19, 16  ;;  %v810_v31 = vshrl.u32 %v796_v27, 16  ;;  %v1013_v5 = vld [vmem:[#allocation2 + $0x8] sm:$0x3f]  ;;  %v1634_v10 = vld [vmem:[%s1902_s5 + $0x30] sm:$0xff]  }
 0x11a   : > { %v813_v32 = vshll.u32 %v796_v27, 16  ;;  %v637_v33 = vor.u32 %v636_v18, %v633_v17  ;;  %v645_v34 = vor.u32 %v644_v26, %v641_v25  ;;  %v877_v52 = vrot.slane %v870_v20, 4  ;;  %v1635_v25 = vld [vmem:[%s1902_s5 + $0x38] sm:$0xff]   ;;  %v1093_v27 = vld [vmem:[#allocation2] sm:$0xc0] }
 0x11b   : > { %v736_v29 = vsel %vm719_vm5, %v727_v16, %v735_v22  ;;  %v804_v36 = vrot.slane %v802_v28, 3  ;;  %v807_v37 = vrot.slane %v805_v30, 4  ;;  %v812_v40 = vrot.slane %v810_v31, 3  ;;  %v1155_v28 = vld [vmem:[#allocation2 + $0x8] sm:$0x7f] }
 0x11c   : > { %1535 = vmatmul.mubr.msk.bf16.vlgmr.msra.gmra.mrb[0].mxu1 %vm584_vm3, %v736_v29  ;;  %v815_v41 = vrot.slane %v813_v32, 4  ;;  %v646_v43 = vsel %vm629_vm6, %v637_v33, %v645_v34  ;;  %v878_v53 = vrot.slane %v1808_v12, 4  ;;  %v937_v54 = vsel %vm936_vm9, %v870_v20, 0  ;;  %v1636_v33 = vld [vmem:[%s1902_s5 + $0x40] sm:$0xff]  }
 0x11d   : > { %1539 = vmatpush3.bf16.msra.mxu1 %v1630_v23  ;;  %1540 = vmatprep.mubr.msk.bf16.mxu1 %vm1648_vm1, %v1647_v2  ;;  %v808_v44 = vor.u32 %v807_v37, %v804_v36  ;;  %v938_v55 = vsel %vm936_vm9, %v932_v21, 0  ;;  %v1014_v56 = vrot.slane %v1790_v38, 2  ;;  %v1015_v57 = vrot.slane %v1792_v39, 3 }
 0x11e   : > { %1544 = vmatprep.subr.bf16.mxu1 %v1647_v2  ;;  %v816_v45 = vor.u32 %v815_v41, %v812_v40  ;;  %v879_v59 = vsel %vm464_vm2, %v877_v52, %v878_v53  ;;  %v944_v60 = vshrl.u32 %v937_v54, 16  ;;  %v947_v61 = vshll.u32 %v937_v54, 16  ;;  %v1470_v54 = vld [vmem:[%s1907_s10] ss:$0 sm:$0xff] }
 0x11f   : > { %v952_v62 = vshrl.u32 %v938_v55, 16  ;;  %v955_v63 = vshll.u32 %v938_v55, 16  ;;  %v1016_v0 = vor.u32 %v1015_v57, %v1014_v56  ;;  %vm942_vm2 = vsmask.f32 3328  ;;  %v1465_v56 = vld [vmem:[%s1903_s6] ss:$0 sm:$0xff] }
 0x120   : > { %v817_v50 = vsel %vm800_vm7, %v808_v44, %v816_v45  ;;  %v946_v38 = vrot.slane %v944_v60, 4  ;;  %v949_v39 = vrot.slane %v947_v61, 5  ;;  %v1100_v29 = vrot.slane %v1093_v27, 6 }
 0x121   : > { %v954_v1 = vrot.slane %v952_v62, 4  ;;  %v957_v3 = vrot.slane %v955_v63, 5  ;;  %vm1017_vm10 = vcmp.ne.s16.totalorder %v1016_v0, 0  ;;  %v1101_v30 = vrot.slane %v1013_v5, 6 }
 0x122   : > { %1529 = vmatmul.mubr.msk.bf16.vlgmr.msra.gmra.mrb[4].mxu0 %vm584_vm3, %v646_v43  ;;  %v950_v6 = vor.u32 %v949_v39, %v946_v38  ;;  %v1018_v8 = vsel %vm1017_vm10, %v1012_v4, 0  ;;  %v1019_v9 = vsel %vm1017_vm10, %v1013_v5, 0  ;;  %vm1099_vm14 = vcmask 1041408  }
 0x123   : > { %1575 = vmatpush3.bf16.msra.mxu0 %v1266_v42  ;;  %1576 = vmatprep.mubr.msk.bf16.mxu0 %vm1648_vm1, %v1647_v2  ;;  %v958_v7 = vor.u32 %v957_v3, %v954_v1  ;;  %v1025_v11 = vshrl.u32 %v1018_v8, 16  ;;  %v1028_v13 = vshll.u32 %v1018_v8, 16  ;;  %v1033_v14 = vshrl.u32 %v1019_v9, 16 }
 0x124   : > { %v1036_v15 = vshll.u32 %v1019_v9, 16  ;;  %v1160_v31 = vsel %vm1159_vm12, %v1093_v27, 0  ;;  %v1161_v32 = vsel %vm1159_vm12, %v1155_v28, 0  ;;  %v1102_v34 = vsel %vm1099_vm14, %v1100_v29, %v1101_v30 }
 0x125   : > { %v959_v12 = vsel %vm942_vm2, %v950_v6, %v958_v7  ;;  %v1027_v16 = vrot.slane %v1025_v11, 5  ;;  %v1030_v17 = vrot.slane %v1028_v13, 6  ;;  %v1035_v18 = vrot.slane %v1033_v14, 5 }
 0x126   : > { %v1038_v19 = vrot.slane %v1036_v15, 6  ;;  %v1167_v35 = vshrl.u32 %v1160_v31, 16  ;;  %v1170_v36 = vshll.u32 %v1160_v31, 16  ;;  %v1175_v37 = vshrl.u32 %v1161_v32, 16 }
 0x127   : > { %v1031_v22 = vor.u32 %v1030_v17, %v1027_v16  ;;  %v1178_v40 = vshll.u32 %v1161_v32, 16  ;;  %vm1165_vm15 = vsmask.f32 1280 }
 0x128   : > { %1541 = vmatmul.mubr.msk.bf16.vlgmr.msra.gmra.mrb[0].mxu1 %vm584_vm3, %v817_v50  ;;  %v1039_v23 = vor.u32 %v1038_v19, %v1035_v18  ;;  %v1169_v24 = vrot.slane %v1167_v35, 6  ;;  %v1172_v41 = vrot.slane %v1170_v36, 7  ;;  %v1177_v42 = vrot.slane %v1175_v37, 6 }
 0x129   : > { %1545 = vmatpush3.bf16.msra.mxu1 %v1632_v46  ;;  %1546 = vmatprep.mubr.msk.bf16.mxu1 %vm1648_vm1, %v1647_v2  ;;  %v1180_v43 = vrot.slane %v1178_v40, 7 }
 0x12a   : > { %1550 = vmatprep.subr.bf16.mxu1 %v1647_v2  ;;  %1577 = vmatmul.mubr.msk.bf16.vlgmr.msra.gmra.mrb[8].mxu0 %vm1261_vm8, %v1637_v49  ;;  %v1040_v26 = vsel %vm1023_vm11, %v1031_v22, %v1039_v23  ;;  %v1173_v44 = vor.u32 %v1172_v41, %v1169_v24 }
 0x12b   : > { %v1181_v45 = vor.u32 %v1180_v43, %v1177_v42 }
 0x12d   : > { %v1182_v46 = vsel %vm1165_vm15, %v1173_v44, %v1181_v45 }
 0x134   : > { %1547 = vmatmul.mubr.msk.bf16.vlgmr.msra.gmra.mrb[0].mxu1 %vm584_vm3, %v879_v59  ;;  %v1466_v59 = vld [vmem:[%s1904_s7] ss:$0 sm:$0xff] }
 0x135   : > { %1551 = vmatpush3.bf16.msra.mxu1 %v1633_v58  ;;  %1552 = vmatprep.mubr.msk.bf16.mxu1 %vm1648_vm1, %v1647_v2 }
 0x136   : > { %1556 = vmatprep.subr.bf16.mxu1 %v1647_v2 }
 0x140   : > { %1553 = vmatmul.mubr.msk.bf16.vlgmr.msra.gmra.mrb[0].mxu1 %vm584_vm3, %v959_v12 }
 0x141   : > { %1557 = vmatpush3.bf16.msra.mxu1 %v1634_v10  ;;  %1558 = vmatprep.mubr.msk.bf16.mxu1 %vm1648_vm1, %v1647_v2 }
 0x142   : > { %1562 = vmatprep.subr.bf16.mxu1 %v1647_v2 }
 0x14c   : > { %1559 = vmatmul.mubr.msk.bf16.vlgmr.msra.gmra.mrb[0].mxu1 %vm584_vm3, %v1040_v26 }
 0x14d   : > { %1563 = vmatpush3.bf16.msra.mxu1 %v1635_v25  ;;  %1564 = vmatprep.mubr.msk.bf16.mxu1 %vm1648_vm1, %v1647_v2 }
 0x14e   : > { %1568 = vmatprep.subr.bf16.mxu1 %v1647_v2 }
 0x158   : > { %1565 = vmatmul.mubr.msk.bf16.vlgmr.msra.gmra.mrb[0].mxu1 %vm584_vm3, %v1102_v34 }
 0x159   : > { %1569 = vmatpush3.bf16.msra.mxu1 %v1636_v33  ;;  %1570 = vmatprep.mubr.msk.bf16.mxu1 %vm1648_vm1, %v1647_v2  ;;  %v1469_v2 = vld [vmem:[%s1906_s9] ss:$0 sm:$0xff] }
 0x164   : > { %1571 = vmatmul.mubr.msk.bf16.vlgmr.msra.gmra.mrb[0].mxu1 %vm584_vm3, %v1182_v46 }
 0x1f5   : > { %v690_v47 = vpop.f32.mrb[4].mxu0 }
 0x1f6   : > { %v1530_v48 = vpop.f32.mrb[5].mxu0 }
 0x1f7   : > { %v693_v49 = vpop.f32.mrb[6].mxu0 }
 0x1f8   : > { %v1531_v50 = vpop.f32.mrb[7].mxu0 }
 0x1fd   : > { %v1302_v51 = vpop.f32.mrb[8].mxu0 }
 0x1fe   : > { %v1578_v20 = vpop.f32.mrb[9].mxu0  ;;  %v1316_v53 = vmul.f32 %v1469_v2, %v1302_v51 }
 0x1ff   : > { %v1305_v21 = vpop.f32.mrb[10].mxu0 }
 0x200   : > { %v1579_v52 = vpop.f32.mrb[11].mxu0  ;;  %v1325_v61 = vadd.f32 %v1470_v54, %v1316_v53  ;;  %v1317_v63 = vmul.f32 %v1469_v2, %v1305_v21 }
 0x202   : > { %v1326_v4 = vadd.f32 %v1470_v54, %v1317_v63 }
 0x237   : > { %v1226_v55 = vpop.f32.mrb[0].mxu1 }
 0x238   : > { %v1580_v57 = vadd.f32 %v1226_v55, %v690_v47  ;;  %v1572_v58 = vpop.f32.mrb[1].mxu1 }
 0x239   : > { %v1229_v60 = vpop.f32.mrb[2].mxu1 }
 0x23a   : > { %v1242_v62 = vmul.f32 %v1580_v57, %v1465_v56  ;;  %v1581_v0 = vadd.f32 %v1229_v60, %v693_v49  ;;  %v1573_v38 = vpop.f32.mrb[3].mxu1 }
 0x23c   : > { %v1251_v39 = vadd.f32 %v1466_v59, %v1242_v62  ;;  %v1243_v1 = vmul.f32 %v1581_v0, %v1465_v56 }
 0x23e   : > { %v1327_v3 = vadd.f32 %v1325_v61, %v1251_v39  ;;  %v1252_v5 = vadd.f32 %v1466_v59, %v1243_v1 }
 0x240   : > { %v1329_v6 = vmax.f32 %v1327_v3, 0.0  ;;  %v1328_v7 = vadd.f32 %v1326_v4, %v1252_v5 }
 0x242   : > { %v1478_v8 = vpack.c.bf16 %v1329_v6, %v1329_v6  ;;  %v1330_v9 = vmax.f32 %v1328_v7, 0.0 }
 0x244   : > { %1339 = vst.msk [vmem:[%s1732_s29] sm:$0xf] %vm535_vm13, %v1478_v8  ;;  %v1479_v10 = vpack.c.bf16 %v1330_v9, %v1330_v9 }
 0x246   : > { %1340 = vst.msk [vmem:[%s1732_s29 + $0x4] sm:$0xf] %vm535_vm13, %v1479_v10 }
 0x247 PF: > { %s21_s17 = sadd.s32 1, %s1644_s17  }
 0x248   : > { %p18_p5 = scmp.ge.s32.totalorder %s21_s17, 4  }
 0x24a   :  { %20 = sbr.rel (!%p18_p5) target bundleno = 1 (0x1), region = 109 }

// kernel: _lambda_.11
= control target key start
LH: loop header
LB: loop body
LE: loop exit
PB: predicated region body
PF: predicated region fallthrough
CT: control target
= control target key end

     0   :  { %s3595_s24 = smov 0   ;;  %s4442_s0 = inlined_call_operand.vmem [shape: bf16[2,64,8], index: 0, kind: input, shape index: {}]   ;;  %s4443_s1 = inlined_call_operand.vmem [shape: bf16[3,3,8,8], index: 1, kind: input, shape index: {}]   ;;  %s4444_s2 = inlined_call_operand.vmem [shape: f32[1,8], index: 2, kind: input, shape index: {}]   ;;  %s4445_s3 = inlined_call_operand.vmem [shape: f32[1,8], index: 3, kind: input, shape index: {}]   ;;  %s4446_s4 = inlined_call_operand.vmem [shape: bf16[3,3,8,8], index: 4, kind: input, shape index: {}]   ;;  %s4447_s5 = inlined_call_operand.vmem [shape: f32[1,8], index: 5, kind: input, shape index: {}]   ;;  %s4448_s6 = inlined_call_operand.vmem [shape: f32[1,8], index: 6, kind: input, shape index: {}]   ;;  %s4449_s7 = inlined_call_operand.vmem [shape: bf16[2,64,8], index: 7, kind: output, shape index: {}]  }
   0x1 LB: > { %s2973_s25 = sadd.s32 4294967295, %s3551_s24   ;;  %p2977_p0 = scmp.ge.s32.totalorder %s3551_s24, 1  ;;  %s3551_s24 = sphi %s3595_s24, %s17_s24  }
   0x2   : > { %p237_p1 = scmp.lt.s32.totalorder %s3551_s24, 3 }
   0x4   : > { %p238_p2 = pnand %p2977_p0, %p237_p1 }
   0x5   : > { %p269_p3 = scmp.lt.s32.totalorder (!%p238_p2), %s2973_s25, 1  ;;  %p2982_p4 = scmp.ne.s32.totalorder (!%p238_p2), %s2973_s25, 0 }
   0x6   : > { %241 = sbr.rel (%p238_p2) target bundleno = 772 (0x304), region = 48 }
   0xd   : > { %s270_s26 = scalar_select %p269_p3, %s2973_s25, 1 }
   0xe   : > { %285 = sbr.rel (%p2982_p4) target bundleno = 21 (0x15), region = 52  ;;  %vm286_vm0 = vcmask (!%p2982_p4), 64512   ;;  %v3553_v0 = vmov (!%p2982_p4), 0  }
   0xf   : > { %s3097_s27 = sshll.u32 %s270_s26, 5  ;;  %287 = vst.msk [vmem:[#allocation2] sm:$0xff] (!%p2982_p4), %vm286_vm0, %v3553_v0  ;;  %288 = vst.msk [vmem:[#allocation2 + $0x8] sm:$0xff] (!%p2982_p4), %vm286_vm0, %v3553_v0 }
  0x10   : > { %s3606_s30 = scalar_lea.vmem %s4442_s0, %s3097_s27  ;;  %s3611_s10 = scalar_lea.vmem %s4449_s7, %s3097_s27  ;;  %289 = vst.msk [vmem:[#allocation2 + $0x10] sm:$0xff] (!%p2982_p4), %vm286_vm0, %v3553_v0  ;;  %290 = vst.msk [vmem:[#allocation2 + $0x18] sm:$0xff] (!%p2982_p4), %vm286_vm0, %v3553_v0 }
  0x11   : > { %291 = vst.msk [vmem:[#allocation2 + $0x20] sm:$0xff] (!%p2982_p4), %vm286_vm0, %v3553_v0  ;;  %292 = vst.msk [vmem:[#allocation2 + $0x28] sm:$0xff] (!%p2982_p4), %vm286_vm0, %v3553_v0 }
  0x12   : > { %293 = vst.msk [vmem:[#allocation3] sm:$0xff] (!%p2982_p4), %vm286_vm0, %v3553_v0  ;;  %294 = vst.msk [vmem:[#allocation3 + $0x8] sm:$0xff] (!%p2982_p4), %vm286_vm0, %v3553_v0 }
  0x13   : > { %295 = vst.msk [vmem:[#allocation3 + $0x10] sm:$0xff] (!%p2982_p4), %vm286_vm0, %v3553_v0  ;;  %296 = vst.msk [vmem:[#allocation3 + $0x18] sm:$0xff] (!%p2982_p4), %vm286_vm0, %v3553_v0 }
  0x14   : > { %297 = vst.msk [vmem:[#allocation3 + $0x20] sm:$0xff] (!%p2982_p4), %vm286_vm0, %v3553_v0  ;;  %298 = vst.msk [vmem:[#allocation3 + $0x28] sm:$0xff] (!%p2982_p4), %vm286_vm0, %v3553_v0 }
  0x15 PF: > { %v2991_v1 = vld [vmem:[%s4443_s1 + $0x4] sm:$0xf]  ;;  %vm457_vm1 = vcmask 1043456   ;;  %vm331_vm2 = vcmask 64512   ;;  %v336_v3 = vlaneseq  ;;  %v448_v5 = vld [vmem:[%s4443_s1] sm:$0xf] }
  0x16   : > { %v299_v2 = vld [vmem:[%s3606_s30] sm:$0xff]   ;;  %3505 = vmatprep.subr.msk.bf16.mxu0 %vm457_vm1, %v2991_v1  ;;  %v481_v4 = vsel %vm457_vm1, %v2991_v1, 0  ;;  %v301_v6 = vld [vmem:[%s3606_s30 + $0x8] sm:$0xff]   ;;  %v303_v8 = vld [vmem:[%s3606_s30 + $0x10] sm:$0xff]   ;;  %v3554_v27 = vmov 0   ;;  %v606_v31 = vsel %vm457_vm1, %v448_v5, 0 }
  0x17   : > { %3198 = vmatpush3.bf16.msra.mxu0 %v481_v4  ;;  %v337_v7 = vshrl.u32 %v336_v3, 7  ;;  %v305_v9 = vld [vmem:[%s3606_s30 + $0x18] sm:$0xff]   ;;  %332 = vst.msk [vmem:[#allocation2 + $0x8] sm:$0xff] %vm331_vm2, %v299_v2  ;;  %333 = vst.msk [vmem:[#allocation2 + $0x10] sm:$0xff] %vm331_vm2, %v301_v6  ;;  %v3632_v14 = vld [vmem:[#allocation2] sm:$0xf0] }
  0x18   : > { %3506 = vmatprep.subr.msk.bf16.mxu0 %vm457_vm1, %v448_v5  ;;  %334 = vst.msk [vmem:[#allocation2 + $0x18] sm:$0xff] %vm331_vm2, %v303_v8  ;;  %335 = vst.msk [vmem:[#allocation2 + $0x20] sm:$0xff] %vm331_vm2, %v305_v9  ;;  %v458_v26 = vrot.slane %v3632_v14, 4  ;;  %v3004_v57 = vld [vmem:[%s4443_s1 + $0x8] sm:$0xf] }
  0x19   : > { %v338_v10 = vadd.s32 8, %v337_v7  ;;  %v345_v11 = vand.u32 7, %v337_v7  ;;  %v3628_v12 = vadd.s32 48, %v337_v7  ;;  %v3630_v13 = vadd.s32 56, %v337_v7 }
  0x1a   : > { %v3636_v15 = vadd.s32 16, %v337_v7  ;;  %v3638_v16 = vadd.s32 24, %v337_v7  ;;  %v3640_v17 = vadd.s32 32, %v337_v7  ;;  %v3642_v18 = vadd.s32 40, %v337_v7 }
  0x1b   : > { %v346_v19 = vand.u32 7, %v338_v10  ;;  %vm3644_vm3 = vcmp.ge.s32.totalorder %v345_v11, 1  ;;  %vm361_vm4 = vcmp.le.s32.totalorder %v345_v11, 6  ;;  %v351_v21 = vand.u32 7, %v3628_v12 }
  0x1c   : > { %vm674_vm5 = vmpackc.low %vm361_vm4, %vm361_vm4  ;;  %v352_v22 = vand.u32 7, %v3630_v13  ;;  %v347_v23 = vand.u32 7, %v3636_v15  ;;  %v348_v24 = vand.u32 7, %v3638_v16  ;;  %v349_v25 = vand.u32 7, %v3640_v17 }
  0x1d   : > { %vm362_vm6 = vcmp.le.s32.totalorder %v346_v19, 6  ;;  %v682_v28 = vsel %vm674_vm5, 65537, %v3554_v27  ;;  %vm3657_vm7 = vcmp.ge.s32.totalorder %v351_v21, 1  ;;  %vm374_vm8 = vmpackc.low %vm3644_vm3, %vm3644_vm3  ;;  %vm3664_vm9 = vcmp.ge.s32.totalorder %v346_v19, 1 }
  0x1e   : > { %vm675_vm10 = vmpackc.low %vm362_vm6, %vm362_vm6  ;;  %vm3671_vm11 = vcmp.ge.s32.totalorder %v352_v22, 1  ;;  %vm3677_vm12 = vcmp.ge.s32.totalorder %v347_v23, 1  ;;  %v3681_v34 = vld [vmem:[#allocation2 + $0x8] sm:$0xff]  ;;  %vm3689_vm14 = vcmp.ge.s32.totalorder %v348_v24, 1  ;;  %v382_v37 = vsel %vm374_vm8, 65537, %v3554_v27  ;;  %v3698_v41 = vld [vmem:[#allocation2 + $0x10] sm:$0xff] }
  0x1f   : > { %v683_v35 = vsel %vm675_vm10, 65537, %v3554_v27  ;;  %vm380_vm13 = vmpackc.low %vm3657_vm7, %vm3657_vm7  ;;  %v350_v38 = vand.u32 7, %v3642_v18  ;;  %v459_v39 = vrot.slane %v3681_v34, 4  ;;  %vm3706_vm0 = vcmp.ge.s32.totalorder %v349_v25, 1  ;;  %v3713_v45 = vld [vmem:[#allocation2 + $0x18] sm:$0xff] }
  0x20   : > { %v3696_v40 = vcombine.low %v682_v28, %v683_v35  ;;  %vm381_vm15 = vmpackc.low %vm3671_vm11, %vm3671_vm11  ;;  %v388_v42 = vsel %vm380_vm13, 65537, %v3554_v27  ;;  %v3711_v44 = vrot.slane %v3698_v41, 4  ;;  %v373_v46 = vld [vmem:[#allocation2 + $0x20] sm:$0xf]  ;;  %v3729_v52 = vrot.slane %v3713_v45, 4 }
  0x21   : > { %v389_v47 = vsel %vm381_vm15, 65537, %v3554_v27  ;;  %vm375_vm3 = vmpackc.low %vm3664_vm9, %vm3664_vm9  ;;  %vm3721_vm4 = vcmp.ge.s32.totalorder %v350_v38, 1  ;;  %v460_v49 = vsel %vm457_vm1, %v458_v26, %v459_v39  ;;  %v465_v55 = vrot.slane %v373_v46, 4 }
  0x22   : > { %v703_v50 = vshrl.u32 %v3696_v40, 16  ;;  %v706_v51 = vshll.u32 %v3696_v40, 16  ;;  %vm376_vm5 = vmpackc.low %vm3677_vm12, %vm3677_vm12  ;;  %3199 = vmatprep.mubr.msk.bf16.mxu0 %vm331_vm2, %v460_v49  ;;  %v462_v53 = vsel %vm457_vm1, %v459_v39, %v3711_v44  ;;  %v3737_v54 = vcombine.low %v388_v42, %v389_v47  ;;  %v369_v39 = vld [vmem:[#allocation2] sm:$0xf8] }
  0x23   : > { %vm377_vm6 = vmpackc.low %vm3689_vm14, %vm3689_vm14  ;;  %v383_v56 = vsel %vm375_vm3, 65537, %v3554_v27  ;;  %3200 = vmatmul.mubr.msk.bf16.vlgmr.msra.gmra.mrb[0].mxu0 %vm331_vm2, %v462_v53  ;;  %v3754_v60 = vsel %vm457_vm1, %v3711_v44, %v3729_v52  ;;  %v384_v61 = vsel %vm376_vm5, 65537, %v3554_v27  ;;  %v466_v7 = vsel %vm457_vm1, %v3729_v52, %v465_v55 }
  0x24   : > { %v705_v58 = vrot.slane %v703_v50, 3  ;;  %v708_v59 = vrot.slane %v706_v51, 4  ;;  %vm378_vm7 = vmpackc.low %vm3706_vm0, %vm3706_vm0  ;;  %3208 = vmatpush3.bf16.msra.mxu0 %v606_v31  ;;  %3203 = vmatprep.mubr.msk.bf16.mxu0 %vm331_vm2, %v3754_v60  ;;  %v430_v62 = vshrl.u32 %v3737_v54, 16  ;;  %v433_v63 = vshll.u32 %v3737_v54, 16  ;;  %v4015_v54 = vld [vmem:[#allocation2 + $0x20] sm:$0xff] }
  0x25   : > { %v385_v0 = vsel %vm377_vm6, 65537, %v3554_v27  ;;  %vm379_vm8 = vmpackc.low %vm3721_vm4, %vm3721_vm4  ;;  %v3770_v2 = vcombine.low %v382_v37, %v383_v56  ;;  %3507 = vmatprep.subr.msk.bf16.mxu0 %vm457_vm1, %v3004_v57  ;;  %v386_v4 = vsel %vm378_vm7, 65537, %v3554_v27  ;;  %vm402_vm10 = vsmask.f32 3328 }
  0x26   : > { %v3768_v1 = vor.u32 %v708_v59, %v705_v58  ;;  %v3772_v3 = vcombine.low %v384_v61, %v385_v0  ;;  %v432_v5 = vrot.slane %v430_v62, 4  ;;  %v435_v6 = vrot.slane %v433_v63, 5 }
  0x27   : > { %v387_v8 = vsel %vm379_vm8, 65537, %v3554_v27  ;;  %v404_v9 = vshrl.u32 %v3770_v2, 16  ;;  %v407_v10 = vshll.u32 %v3770_v2, 16  ;;  %vm3811_vm12 = vcmp.le.s32.totalorder %v351_v21, 6 }
  0x28   : > { %vm4450_vm9 = vcmp.ne.s16.totalorder %v3768_v1, 0  ;;  %v412_v11 = vshrl.u32 %v3772_v3, 16  ;;  %v3792_v20 = vor.u32 %v435_v6, %v432_v5  ;;  %v415_v26 = vshll.u32 %v3772_v3, 16 }
  0x29   : > { %v3790_v19 = vsel %vm4450_vm9, %v3632_v14, 0  ;;  %v3795_v28 = vcombine.low %v386_v4, %v387_v8  ;;  %v406_v30 = vrot.slane %v404_v9, 4  ;;  %v409_v31 = vrot.slane %v407_v10, 5 }
  0x2a   : > { %v750_v29 = vshrl.u32 %v3790_v19, 16  ;;  %vm4462_vm11 = vcmp.ne.s16.totalorder %v3792_v20, 0  ;;  %v414_v14 = vrot.slane %v412_v11, 4  ;;  %v417_v32 = vrot.slane %v415_v26, 5 }
  0x2b   : > { %v421_v33 = vshrl.u32 %v3795_v28, 16  ;;  %v753_v35 = vshll.u32 %v3790_v19, 16  ;;  %v447_v37 = vsel %vm4462_vm11, %v373_v46, 0  ;;  %3204 = vmatmul.mubr.msk.bf16.gmra.mrb[4].mxu0 %vm331_vm2, %v466_v7  ;;  %v3818_v42 = vor.u32 %v409_v31, %v406_v30 }
  0x2c   : > { %v3821_v43 = vsel %vm457_vm1, %v3004_v57, 0  ;;  %vm3825_vm13 = vcmp.le.s32.totalorder %v352_v22, 6  ;;  %v418_v12 = vor.u32 %v417_v32, %v414_v14  ;;  %vm548_vm14 = vsmask.f32 4352 }
  0x2d   : > { %v423_v21 = vrot.slane %v421_v33, 4  ;;  %v424_v46 = vshll.u32 %v3795_v28, 16  ;;  %v585_v48 = vshrl.u32 %v447_v37, 16  ;;  %v3832_v49 = vrot.slane %v750_v29, 4 }
  0x2e   : > { %vm438_vm15 = vcmp.ne.s16.totalorder %v3818_v42, 0  ;;  %vm363_vm0 = vcmp.le.s32.totalorder %v347_v23, 6  ;;  %vm364_vm3 = vcmp.le.s32.totalorder %v348_v24, 6  ;;  %v3841_v13 = vsel %vm402_vm10, %v3818_v42, %v418_v12 }
  0x2f   : > { %v443_v22 = vsel %vm438_vm15, %v369_v39, 0  ;;  %v426_v53 = vrot.slane %v424_v46, 5  ;;  %v588_v55 = vshll.u32 %v447_v37, 16  ;;  %vm676_vm4 = vmpackc.low %vm363_vm0, %vm363_vm0  ;;  %vm439_vm5 = vcmp.ne.s16.totalorder %v3841_v13, 0 }
  0x30   : > { %v550_v56 = vshrl.u32 %v443_v22, 16  ;;  %v553_v15 = vshll.u32 %v443_v22, 16  ;;  %v3848_v23 = vrot.slane %v585_v48, 3  ;;  %vm677_vm6 = vmpackc.low %vm364_vm3, %vm364_vm3  ;;  %v444_v16 = vsel %vm439_vm5, %v3681_v34, 0 }
  0x31   : > { %v427_v24 = vor.u32 %v426_v53, %v423_v21  ;;  %v684_v57 = vsel %vm676_vm4, 65537, %v3554_v27  ;;  %v685_v58 = vsel %vm677_vm6, 65537, %v3554_v27  ;;  %v558_v0 = vshrl.u32 %v444_v16, 16  ;;  %vm680_vm0 = vmpackc.low %vm3811_vm12, %vm3811_vm12 }
  0x32   : > { %v552_v59 = vrot.slane %v550_v56, 3  ;;  %v555_v61 = vrot.slane %v553_v15, 4  ;;  %v561_v4 = vshll.u32 %v444_v16, 16  ;;  %v3862_v7 = vrot.slane %v588_v55, 4  ;;  %vm681_vm3 = vmpackc.low %vm3825_vm13, %vm3825_vm13 }
  0x33   : > { %v3856_v5 = vsel %vm402_vm10, %v418_v12, %v427_v24  ;;  %v3860_v6 = vsel %vm402_vm10, %v427_v24, %v3792_v20  ;;  %v3864_v8 = vcombine.low %v684_v57, %v685_v58  ;;  %v560_v29 = vrot.slane %v558_v0, 3 }
  0x34   : > { %v556_v19 = vor.u32 %v555_v61, %v552_v59  ;;  %v563_v30 = vrot.slane %v561_v4, 4  ;;  %vm440_vm7 = vcmp.ne.s16.totalorder %v3856_v5, 0  ;;  %vm441_vm8 = vcmp.ne.s16.totalorder %v3860_v6, 0  ;;  %v2438_v5 = vld [vmem:[#allocation3 + $0x28] sm:$0xf] }
  0x35   : > { %v445_v31 = vsel %vm440_vm7, %v3698_v41, 0  ;;  %v711_v14 = vshrl.u32 %v3864_v8, 16  ;;  %v714_v32 = vshll.u32 %v3864_v8, 16  ;;  %v446_v21 = vsel %vm441_vm8, %v3713_v45, 0 }
  0x36   : > { %v564_v37 = vor.u32 %v563_v30, %v560_v29  ;;  %v567_v39 = vshrl.u32 %v445_v31, 16  ;;  %v570_v12 = vshll.u32 %v445_v31, 16  ;;  %v576_v48 = vshrl.u32 %v446_v21, 16 }
  0x37   : > { %v579_v22 = vshll.u32 %v446_v21, 16  ;;  %v713_v53 = vrot.slane %v711_v14, 3  ;;  %v716_v55 = vrot.slane %v714_v32, 4  ;;  %v755_v56 = vrot.slane %v753_v35, 5 }
  0x38   : > { %v565_v15 = vsel %vm548_vm14, %v556_v19, %v564_v37  ;;  %v569_v16 = vrot.slane %v567_v39, 3  ;;  %v572_v24 = vrot.slane %v570_v12, 4  ;;  %v578_v57 = vrot.slane %v576_v48, 3 }
  0x39   : > { %3209 = vmatprep.mubr.msk.bf16.mxu0 %vm331_vm2, %v565_v15  ;;  %v581_v58 = vrot.slane %v579_v22, 4  ;;  %v717_v59 = vor.u32 %v716_v55, %v713_v53  ;;  %vm365_vm4 = vcmp.le.s32.totalorder %v349_v25, 6  ;;  %v591_v35 = vor.u32 %v3862_v7, %v3848_v23 }
  0x3a   : > { %v573_v61 = vor.u32 %v572_v24, %v569_v16  ;;  %vm366_vm6 = vcmp.le.s32.totalorder %v350_v38, 6  ;;  %vm678_vm9 = vmpackc.low %vm365_vm4, %vm365_vm4  ;;  %v688_v47 = vsel %vm680_vm0, 65537, %v3554_v27  ;;  %v689_v23 = vsel %vm681_vm3, 65537, %v3554_v27  ;;  %v3009_v38 = vld [vmem:[%s4443_s1 + $0xc] sm:$0xf] }
  0x3b   : > { %v582_v0 = vor.u32 %v581_v58, %v578_v57  ;;  %v3902_v17 = vsel %vm548_vm14, %v3768_v1, %v717_v59  ;;  %vm679_vm13 = vmpackc.low %vm366_vm6, %vm366_vm6  ;;  %v686_v25 = vsel %vm678_vm9, 65537, %v3554_v27  ;;  %v3912_v4 = vcombine.low %v688_v47, %v689_v23  ;;  %v673_v58 = vld [vmem:[#allocation2 + $0x20] sm:$0x1f]  ;;  %v881_v47 = vld [vmem:[#allocation2] sm:$0x80] }
  0x3c   : > { %v574_v18 = vsel %vm548_vm14, %v564_v37, %v573_v61  ;;  %vm4461_vm4 = vcmp.ne.s16.totalorder %v3902_v17, 0  ;;  %v687_v36 = vsel %vm679_vm13, 65537, %v3554_v27  ;;  %v756_v29 = vor.u32 %v755_v56, %v3832_v49 }
  0x3d   : > { %3210 = vmatmul.mubr.msk.bf16.vlgmr.msra.gmra.mrb[0].mxu0 %vm331_vm2, %v574_v18  ;;  %v583_v7 = vsel %vm548_vm14, %v573_v61, %v582_v0  ;;  %v743_v19 = vsel %vm4461_vm4, %v3681_v34, 0  ;;  %v3920_v30 = vcombine.low %v686_v25, %v687_v36  ;;  %v729_v37 = vshrl.u32 %v3912_v4, 16 }
  0x3e   : > { %3218 = vmatpush3.bf16.msra.mxu0 %v3821_v43  ;;  %3213 = vmatprep.mubr.msk.bf16.mxu0 %vm331_vm2, %v583_v7  ;;  %v758_v31 = vshrl.u32 %v743_v19, 16  ;;  %v761_v27 = vshll.u32 %v743_v19, 16  ;;  %v732_v39 = vshll.u32 %v3912_v4, 16  ;;  %vm883_vm9 = vsmask.f32 7424 }
  0x3f   : > { %3508 = vmatprep.subr.msk.bf16.mxu0 %vm457_vm1, %v3009_v38  ;;  %v720_v12 = vshrl.u32 %v3920_v30, 16  ;;  %v723_v21 = vshll.u32 %v3920_v30, 16  ;;  %v3931_v49 = vrot.slane %v407_v10, 1  ;;  %v731_v22 = vrot.slane %v729_v37, 3  ;;  %v3024_v4 = vld [vmem:[%s4443_s1 + $0x18] sm:$0xf] }
  0x40   : > { %v760_v43 = vrot.slane %v758_v31, 4  ;;  %v763_v48 = vrot.slane %v761_v27, 5  ;;  %v734_v53 = vrot.slane %v732_v39, 4  ;;  %v886_v10 = vrot.slane %v415_v26, 1 }
  0x41   : > { %v722_v55 = vrot.slane %v720_v12, 3  ;;  %v725_v56 = vrot.slane %v723_v21, 4  ;;  %v885_v15 = vor.u32 %v3931_v49, %v404_v9  ;;  %v592_v16 = vsel %vm548_vm14, %v582_v0, %v591_v35 }
  0x42   : > { %v764_v24 = vor.u32 %v763_v48, %v760_v43  ;;  %v3947_v57 = vor.u32 %v734_v53, %v731_v22  ;;  %vm4451_vm12 = vcmp.ne.s16.totalorder %v3931_v49, 0  ;;  %v888_v43 = vor.u32 %v886_v10, %v412_v11 }
  0x43   : > { %v726_v61 = vor.u32 %v725_v56, %v722_v55  ;;  %v3950_v25 = vsel %vm883_vm9, %v885_v15, %v886_v10  ;;  %v900_v0 = vsel %vm4451_vm12, %v881_v47, 0  ;;  %v957_v15 = vsel %vm457_vm1, %v3009_v38, 0 }
  0x44   : > { %v765_v2 = vsel %vm402_vm10, %v756_v29, %v764_v24  ;;  %vm4454_vm0 = vcmp.ne.s16.totalorder %v3947_v57, 0  ;;  %vm4452_vm3 = vcmp.ne.s16.totalorder %v3950_v25, 0 }
  0x45   : > { %3214 = vmatmul.mubr.msk.bf16.gmra.mrb[4].mxu0 %vm331_vm2, %v592_v16  ;;  %v3958_v9 = vsel %vm548_vm14, %v717_v59, %v726_v61  ;;  %v3962_v26 = vsel %vm548_vm14, %v726_v61, %v3947_v57  ;;  %v746_v35 = vsel %vm4454_vm0, %v673_v58, 0  ;;  %v901_v59 = vsel %vm4452_vm3, %v3681_v34, 0 }
  0x46   : > { %3219 = vmatprep.mubr.msk.bf16.mxu0 %vm331_vm2, %v765_v2  ;;  %vm739_vm6 = vcmp.ne.s16.totalorder %v3958_v9, 0  ;;  %vm740_vm13 = vcmp.ne.s16.totalorder %v3962_v26, 0  ;;  %v785_v36 = vshrl.u32 %v746_v35, 16  ;;  %v788_v7 = vshll.u32 %v746_v35, 16 }
  0x47   : > { %v744_v23 = vsel %vm739_vm6, %v3698_v41, 0  ;;  %v745_v18 = vsel %vm740_vm13, %v3713_v45, 0  ;;  %v913_v48 = vshrl.u32 %v901_v59, 16  ;;  %v909_v58 = vshrl.u32 %v900_v0, 16 }
  0x48   : > { %v767_v19 = vshrl.u32 %v744_v23, 16  ;;  %v770_v29 = vshll.u32 %v744_v23, 16  ;;  %v776_v31 = vshrl.u32 %v745_v18, 16  ;;  %v779_v27 = vshll.u32 %v745_v18, 16 }
  0x49   : > { %v787_v16 = vrot.slane %v785_v36, 4  ;;  %v889_v61 = vrot.slane %v424_v46, 1  ;;  %v790_v35 = vrot.slane %v788_v7, 5  ;;  %v892_v23 = vrot.slane %v433_v63, 1  ;;  %v3014_v46 = vld [vmem:[%s4443_s1 + $0x10] sm:$0xf] }
  0x4a   : > { %v769_v22 = vrot.slane %v767_v19, 4  ;;  %v772_v53 = vrot.slane %v770_v29, 5  ;;  %v778_v55 = vrot.slane %v776_v31, 4  ;;  %v781_v56 = vrot.slane %v779_v27, 5 }
  0x4b   : > { %v915_v3 = vrot.slane %v913_v48, 7  ;;  %v916_v11 = vshll.u32 %v901_v59, 16  ;;  %v3988_v10 = vsel %vm883_vm9, %v888_v43, %v889_v61  ;;  %v891_v18 = vor.u32 %v889_v61, %v421_v33 }
  0x4c   : > { %v773_v47 = vor.u32 %v772_v53, %v769_v22  ;;  %v782_v2 = vor.u32 %v781_v56, %v778_v55  ;;  %vm4453_vm12 = vcmp.ne.s16.totalorder %v3988_v10, 0  ;;  %v4007_v28 = vor.u32 %v892_v23, %v430_v62 }
  0x4d   : > { %v902_v63 = vsel %vm4453_vm12, %v3698_v41, 0  ;;  %v4003_v59 = vsel %vm883_vm9, %v891_v18, %v892_v23  ;;  %v791_v33 = vor.u32 %v790_v35, %v787_v16  ;;  %v911_v36 = vrot.slane %v909_v58, 7 }
  0x4e   : > { %v774_v38 = vsel %vm402_vm10, %v764_v24, %v773_v47  ;;  %v783_v0 = vsel %vm402_vm10, %v773_v47, %v782_v2  ;;  %v921_v24 = vshrl.u32 %v902_v63, 16  ;;  %vm4456_vm3 = vcmp.ne.s16.totalorder %v4003_v59, 0 }
  0x4f   : > { %3220 = vmatmul.mubr.msk.bf16.vlgmr.msra.gmra.mrb[0].mxu0 %vm331_vm2, %v774_v38  ;;  %v918_v7 = vor.u32 %v916_v11, %v915_v3  ;;  %v903_v19 = vsel %vm4456_vm3, %v3713_v45, 0  ;;  %vm4459_vm12 = vsmask.f32 256  ;;  %vm4455_vm0 = vcmp.ne.s16.totalorder %v4007_v28, 0  ;;  %v3019_v11 = vld [vmem:[%s4443_s1 + $0x14] sm:$0xf] }
  0x50   : > { %3228 = vmatpush3.bf16.msra.mxu0 %v957_v15  ;;  %3223 = vmatprep.mubr.msk.bf16.mxu0 %vm331_vm2, %v783_v0  ;;  %v929_v29 = vshrl.u32 %v903_v19, 16  ;;  %v792_v62 = vsel %vm402_vm10, %v782_v2, %v791_v33  ;;  %v923_v31 = vrot.slane %v921_v24, 7  ;;  %v924_v27 = vshll.u32 %v902_v63, 16 }
  0x51   : > { %3509 = vmatprep.subr.msk.bf16.mxu0 %vm457_vm1, %v3014_v46  ;;  %v919_v43 = vsel %vm4459_vm12, %v911_v36, %v918_v7  ;;  %v932_v22 = vshll.u32 %v903_v19, 16  ;;  %v904_v53 = vsel %vm4455_vm0, %v4015_v54, 0  ;;  %v1127_v16 = vrot.slane %v703_v50, 7  ;;  %v1274_v19 = vld [vmem:[#allocation2 + $0x8] sm:$0xf8] }
  0x52   : > { %v931_v48 = vrot.slane %v929_v29, 7  ;;  %v926_v55 = vor.u32 %v924_v27, %v923_v31  ;;  %v937_v56 = vshrl.u32 %v904_v53, 16  ;;  %v940_v47 = vshll.u32 %v904_v53, 16 }
  0x53   : > { %v1129_v2 = vrot.slane %v711_v14, 7  ;;  %v1047_v35 = vsel %vm457_vm1, %v3014_v46, 0  ;;  %v4038_v50 = vor.u32 %v1127_v16, %v706_v51  ;;  %v1132_v18 = vrot.slane %v720_v12, 7 }
  0x54   : > { %v934_v15 = vor.u32 %v932_v22, %v931_v48  ;;  %v927_v58 = vsel %vm4459_vm12, %v915_v3, %v926_v55  ;;  %v939_v61 = vrot.slane %v937_v56, 7  ;;  %v4053_v51 = vrot.slane %v729_v37, 7 }
  0x55   : > { %v1130_v14 = vor.u32 %v1129_v2, %v714_v32  ;;  %vm4457_vm0 = vcmp.ne.s16.totalorder %v4038_v50, 0  ;;  %v1133_v32 = vor.u32 %v1132_v18, %v723_v21  ;;  %v1199_v30 = vsel %vm457_vm1, %v3019_v11, 0 }
  0x56   : > { %v935_v23 = vsel %vm4459_vm12, %v923_v31, %v934_v15  ;;  %v942_v3 = vor.u32 %v940_v47, %v939_v61  ;;  %v1143_v8 = vsel %vm4457_vm0, %v3681_v34, 0  ;;  %v1136_v12 = vor.u32 %v4053_v51, %v732_v39 }
  0x57   : > { %3224 = vmatmul.mubr.msk.bf16.gmra.mrb[4].mxu0 %vm331_vm2, %v792_v62  ;;  %v4049_v40 = vsel %vm4459_vm12, %v1127_v16, %v1130_v14  ;;  %v1153_v37 = vshll.u32 %v1143_v8, 16  ;;  %v4071_v46 = vsel %vm4459_vm12, %v1129_v2, %v1133_v32  ;;  %v1151_v63 = vshrl.u32 %v1143_v8, 16 }
  0x58   : > { %3229 = vmatprep.mubr.msk.bf16.mxu0 %vm331_vm2, %v919_v43  ;;  %v943_v38 = vsel %vm4459_vm12, %v931_v48, %v942_v3  ;;  %vm4458_vm3 = vcmp.ne.s16.totalorder %v4049_v40, 0  ;;  %v4075_v21 = vsel %vm4459_vm12, %v1132_v18, %v1136_v12  ;;  %vm1140_vm0 = vcmp.ne.s16.totalorder %v4071_v46, 0  ;;  %v1126_v48 = vld [vmem:[#allocation2 + $0x28] sm:$0x1] }
  0x59   : > { %v1144_v0 = vsel %vm4458_vm3, %v3698_v41, 0  ;;  %v1155_v33 = vrot.slane %v1153_v37, 1  ;;  %vm1141_vm3 = vcmp.ne.s16.totalorder %v4075_v21, 0  ;;  %v1145_v39 = vsel %vm1140_vm0, %v3713_v45, 0 }
  0x5a   : > { %v1146_v7 = vsel %vm1141_vm3, %v4015_v54, 0  ;;  %v1166_v29 = vshll.u32 %v1145_v39, 16  ;;  %v1162_v62 = vshrl.u32 %v1144_v0, 16  ;;  %vm4460_vm12 = vcmp.ne.s16.totalorder %v4053_v51, 0 }
  0x5b   : > { %v1156_v24 = vor.u32 %v1155_v33, %v1151_v63  ;;  %v1170_v27 = vshrl.u32 %v1145_v39, 16  ;;  %v1174_v43 = vshll.u32 %v1146_v7, 16  ;;  %v1276_v22 = vsel %vm438_vm15, %v1274_v19, 0  ;;  %v1275_v19 = vld [vmem:[#allocation2 + $0x28] sm:$0xf] }
  0x5c   : > { %v1277_v53 = vsel %vm439_vm5, %v3698_v41, 0  ;;  %v1168_v55 = vrot.slane %v1166_v29, 1  ;;  %v1147_v15 = vsel %vm4460_vm12, %v1126_v48, 0  ;;  %v1284_v16 = vshrl.u32 %v1276_v22, 16 }
  0x5d   : > { %v1176_v47 = vrot.slane %v1174_v43, 1  ;;  %v1292_v2 = vshrl.u32 %v1277_v53, 16  ;;  %v1178_v14 = vshrl.u32 %v1146_v7, 16  ;;  %v1278_v37 = vsel %vm440_vm7, %v3713_v45, 0 }
  0x5e   : > { %v1172_v61 = vor.u32 %v1170_v27, %v1168_v55  ;;  %v1286_v18 = vrot.slane %v1284_v16, 3  ;;  %vm4483_vm12 = vcmp.ne.s16.totalorder %v3768_v1, 0 }
  0x5f   : > { %3230 = vmatmul.mubr.msk.bf16.vlgmr.msra.gmra.mrb[0].mxu0 %vm331_vm2, %v927_v58  ;;  %v1287_v58 = vshll.u32 %v1276_v22, 16  ;;  %v1294_v32 = vrot.slane %v1292_v2, 3  ;;  %v1180_v63 = vor.u32 %v1178_v14, %v1176_v47  ;;  %v1280_v22 = vsel %vm4462_vm11, %v1275_v19, 0 }
  0x60   : > { %3238 = vmatpush3.bf16.msra.mxu0 %v1047_v35  ;;  %3233 = vmatprep.mubr.msk.bf16.mxu0 %vm331_vm2, %v935_v23  ;;  %v1295_v35 = vshll.u32 %v1277_v53, 16  ;;  %v1340_v23 = vsel %vm457_vm1, %v3024_v4, 0  ;;  %v1177_v8 = vsel %vm883_vm9, %v1172_v61, %v1176_v47 }
  0x61   : > { %3510 = vmatprep.subr.msk.bf16.mxu0 %vm457_vm1, %v3019_v11  ;;  %v1182_v11 = vshll.u32 %v1147_v15, 16 }
  0x62   : > { %v1297_v12 = vrot.slane %v1295_v35, 4  ;;  %v1415_v35 = vld [vmem:[#allocation2 + $0x8] sm:$0xf0] }
  0x63   : > { %v1184_v33 = vrot.slane %v1182_v11, 1 }
  0x65   : > { %v1185_v29 = vsel %vm883_vm9, %v1180_v63, %v1184_v33 }
  0x67   : > { %3234 = vmatmul.mubr.msk.bf16.gmra.mrb[4].mxu0 %vm331_vm2, %v943_v38  ;;  %v1289_v38 = vrot.slane %v1287_v58, 4 }
  0x68   : > { %3239 = vmatprep.mubr.msk.bf16.mxu0 %vm331_vm2, %v3681_v34  ;;  %v1158_v34 = vshll.u32 %v1144_v0, 16  ;;  %v3029_v0 = vld [vmem:[%s4443_s1 + $0x1c] sm:$0xf] }
  0x69   : > { %v1290_v39 = vor.u32 %v1289_v38, %v1286_v18  ;;  %v1445_v47 = vsel %vm457_vm1, %v3029_v0, 0  ;;  %v1521_v38 = vsel %vm4483_vm12, %v1415_v35, 0  ;;  %vm4484_vm12 = vcmp.ne.s16.totalorder %v3947_v57, 0 }
  0x6a   : > { %v1160_v36 = vrot.slane %v1158_v34, 1  ;;  %v1301_v34 = vshrl.u32 %v1278_v37, 16 }
  0x6c   : > { %v1161_v31 = vsel %vm883_vm9, %v1156_v24, %v1160_v36  ;;  %v1164_v56 = vor.u32 %v1162_v62, %v1160_v36  ;;  %v1298_v24 = vor.u32 %v1297_v12, %v1294_v32  ;;  %v1303_v62 = vrot.slane %v1301_v34, 3 }
  0x6d   : > { %v1428_v32 = vrot.slane %v4015_v54, 4  ;;  %v1529_v12 = vshrl.u32 %v1521_v38, 16 }
  0x6e   : > { %v1169_v3 = vsel %vm883_vm9, %v1164_v56, %v1168_v55  ;;  %v1299_v27 = vsel %vm548_vm14, %v1290_v39, %v1298_v24  ;;  %v1319_v55 = vshrl.u32 %v1280_v22, 16  ;;  %v1322_v56 = vshll.u32 %v1280_v22, 16 }
  0x6f   : > { %3240 = vmatmul.mubr.msk.bf16.vlgmr.msra.gmra.mrb[0].mxu0 %vm331_vm2, %v3698_v41  ;;  %v1531_v33 = vrot.slane %v1529_v12, 4 }
  0x70   : > { %3248 = vmatpush3.bf16.msra.mxu0 %v1199_v30  ;;  %3243 = vmatprep.mubr.msk.bf16.mxu0 %vm331_vm2, %v3713_v45  ;;  %v1279_v30 = vsel %vm441_vm8, %v4015_v54, 0  ;;  %v1321_v58 = vrot.slane %v1319_v55, 3  ;;  %v1324_v61 = vrot.slane %v1322_v56, 4 }
  0x71   : > { %3511 = vmatprep.subr.msk.bf16.mxu0 %vm457_vm1, %v3024_v4  ;;  %v1304_v4 = vshll.u32 %v1278_v37, 16  ;;  %v1310_v36 = vshrl.u32 %v1279_v30, 16  ;;  %v1313_v7 = vshll.u32 %v1279_v30, 16  ;;  %v1532_v37 = vshll.u32 %v1521_v38, 16 }
  0x72   : > { %v1325_v11 = vor.u32 %v1324_v61, %v1321_v58 }
  0x73   : > { %v1312_v43 = vrot.slane %v1310_v36, 3  ;;  %v1315_v48 = vrot.slane %v1313_v7, 4  ;;  %v1534_v34 = vrot.slane %v1532_v37, 5  ;;  %v1430_v36 = vrot.slane %v1275_v19, 4 }
  0x75   : > { %v1316_v15 = vor.u32 %v1315_v48, %v1312_v43  ;;  %v1520_v43 = vld [vmem:[#allocation2 + $0x28] sm:$0x1f] }
  0x77   : > { %3244 = vmatmul.mubr.msk.bf16.gmra.mrb[4].mxu0 %vm331_vm2, %v4015_v54  ;;  %v1326_v14 = vsel %vm548_vm14, %v1316_v15, %v1325_v11  ;;  %v3041_v11 = vld [vmem:[%s4446_s4 + $0x4] sm:$0xf] }
  0x78   : > { %3249 = vmatprep.mubr.msk.bf16.mxu0 %vm331_vm2, %v1161_v31  ;;  %v1306_v31 = vrot.slane %v1304_v4, 4  ;;  %3514 = vmatprep.subr.msk.bf16.mxu1 %vm457_vm1, %v3041_v11 }
  0x7a   : > { %v1307_v53 = vor.u32 %v1306_v31, %v1303_v62 }
  0x7c   : > { %v1308_v16 = vsel %vm548_vm14, %v1298_v24, %v1307_v53  ;;  %v1317_v2 = vsel %vm548_vm14, %v1307_v53, %v1316_v15  ;;  %v1524_v24 = vsel %vm740_vm13, %v4015_v54, 0 }
  0x7d   : > { %v1555_v31 = vshrl.u32 %v1524_v24, 16 }
  0x7f   : > { %3250 = vmatmul.mubr.msk.bf16.vlgmr.msra.gmra.mrb[0].mxu0 %vm331_vm2, %v1169_v3  ;;  %v1423_v3 = vrot.slane %v1415_v35, 4  ;;  %v1557_v53 = vrot.slane %v1555_v31, 4 }
  0x80   : > { %3258 = vmatpush3.bf16.msra.mxu0 %v1340_v23  ;;  %3253 = vmatprep.mubr.msk.bf16.mxu0 %vm331_vm2, %v1177_v8  ;;  %v3034_v23 = vld [vmem:[%s4443_s1 + $0x20] sm:$0xf]  ;;  %v1522_v8 = vsel %vm4461_vm4, %v3698_v41, 0  ;;  %v1523_v41 = vsel %vm739_vm6, %v3713_v45, 0  ;;  %v1431_v45 = vsel %vm457_vm1, %v1428_v32, %v1430_v36 }
  0x81   : > { %3512 = vmatprep.subr.msk.bf16.mxu0 %vm457_vm1, %v3029_v0  ;;  %v1425_v18 = vsel %vm457_vm1, %v1423_v3, %v3711_v44  ;;  %v1537_v0 = vshrl.u32 %v1522_v8, 16  ;;  %v1540_v30 = vshll.u32 %v1522_v8, 16  ;;  %v1585_v63 = vsel %vm457_vm1, %v3034_v23, 0  ;;  %v3040_v8 = vld [vmem:[%s4445_s3] ss:$0 sm:$0xff] }
  0x82   : > { %v1429_v44 = vsel %vm457_vm1, %v3729_v52, %v1428_v32  ;;  %v1546_v52 = vshrl.u32 %v1523_v41, 16  ;;  %v1549_v7 = vshll.u32 %v1523_v41, 16  ;;  %v1747_v3 = vsel %vm457_vm1, %v3041_v11, 0 }
  0x83   : > { %v1539_v4 = vrot.slane %v1537_v0, 4  ;;  %v1542_v39 = vrot.slane %v1540_v30, 5  ;;  %3288 = vmatpush3.bf16.msra.mxu1 %v1747_v3 }
  0x84   : > { %v1548_v48 = vrot.slane %v1546_v52, 4  ;;  %v1551_v22 = vrot.slane %v1549_v7, 5 }
  0x85   : > { %v1543_v62 = vor.u32 %v1542_v39, %v1539_v4 }
  0x86   : > { %v1552_v19 = vor.u32 %v1551_v22, %v1548_v48 }
  0x87   : > { %3254 = vmatmul.mubr.msk.bf16.gmra.mrb[4].mxu0 %vm331_vm2, %v1185_v29  ;;  %v1535_v29 = vor.u32 %v1534_v34, %v1531_v33 }
  0x88   : > { %3259 = vmatprep.mubr.msk.bf16.mxu0 %vm331_vm2, %v1299_v27  ;;  %v1558_v27 = vshll.u32 %v1524_v24, 16  ;;  %v1553_v58 = vsel %vm402_vm10, %v1543_v62, %v1552_v19 }
  0x89   : > { %v1544_v54 = vsel %vm402_vm10, %v1535_v29, %v1543_v62 }
  0x8a   : > { %v1560_v55 = vrot.slane %v1558_v27, 5 }
  0x8f   : > { %3260 = vmatmul.mubr.msk.bf16.vlgmr.msra.gmra.mrb[0].mxu0 %vm331_vm2, %v1308_v16  ;;  %v1561_v16 = vor.u32 %v1560_v55, %v1557_v53 }
  0x90   : > { %3268 = vmatpush3.bf16.msra.mxu0 %v1445_v47  ;;  %3263 = vmatprep.mubr.msk.bf16.mxu0 %vm331_vm2, %v1317_v2 }
  0x91   : > { %3513 = vmatprep.subr.msk.bf16.mxu0 %vm457_vm1, %v3034_v23  ;;  %v1562_v2 = vsel %vm402_vm10, %v1552_v19, %v1561_v16  ;;  %v1706_v19 = vld [vmem:[#allocation3] sm:$0xf8] }
  0x97   : > { %3264 = vmatmul.mubr.msk.bf16.gmra.mrb[4].mxu0 %vm331_vm2, %v1326_v14  ;;  %v1716_v14 = vld [vmem:[%s4446_s4] sm:$0xf] }
  0x98   : > { %3269 = vmatprep.mubr.msk.bf16.mxu0 %vm331_vm2, %v1425_v18  ;;  %3515 = vmatprep.subr.msk.bf16.mxu1 %vm457_vm1, %v1716_v14  ;;  %v3039_v18 = vld [vmem:[%s4444_s2] ss:$0 sm:$0xff] }
  0x9f   : > { %3270 = vmatmul.mubr.msk.bf16.vlgmr.msra.gmra.mrb[0].mxu0 %vm331_vm2, %v3754_v60  ;;  %v1525_v60 = vsel %vm4484_vm12, %v1520_v43, 0  ;;  %vm4485_vm12 = vcmp.ne.s16.totalorder %v3768_v1, 0 }
  0xa0   : > { %3278 = vmatpush3.bf16.msra.mxu0 %v1585_v63  ;;  %3273 = vmatprep.mubr.msk.bf16.mxu0 %vm331_vm2, %v1429_v44  ;;  %v1564_v56 = vshrl.u32 %v1525_v60, 16  ;;  %v1567_v15 = vshll.u32 %v1525_v60, 16 }
  0xa2   : > { %v1566_v61 = vrot.slane %v1564_v56, 4  ;;  %v1569_v47 = vrot.slane %v1567_v15, 5 }
  0xa4   : > { %v1570_v35 = vor.u32 %v1569_v47, %v1566_v61 }
  0xa6   : > { %v1571_v23 = vsel %vm402_vm10, %v1561_v16, %v1570_v35 }
  0xa7   : > { %3274 = vmatmul.mubr.msk.bf16.gmra.mrb[4].mxu0 %vm331_vm2, %v1431_v45 }
  0xa8   : > { %3279 = vmatprep.mubr.msk.bf16.mxu0 %vm331_vm2, %v1544_v54 }
  0xaf   : > { %3280 = vmatmul.mubr.msk.bf16.vlgmr.msra.gmra.mrb[0].mxu0 %vm331_vm2, %v1553_v58  ;;  %v1717_v58 = vld [vmem:[#allocation3] sm:$0xf0] }
  0xb0   : > { %3283 = vmatprep.mubr.msk.bf16.mxu0 %vm331_vm2, %v1562_v2  ;;  %v1711_v2 = vsel %vm438_vm15, %v1706_v19, 0  ;;  %v1725_v11 = vrot.slane %v1717_v58, 4 }
  0xb7   : > { %3284 = vmatmul.mubr.msk.bf16.gmra.mrb[4].mxu0 %vm331_vm2, %v1571_v23 }
 0x182   : > { %v3281_v38 = vpop.f32.mrb[0].mxu0 }
 0x183   : > { %v1669_v32 = vmul.f32 %v3281_v38, %v3039_v18  ;;  %v1621_v12 = vpop.f32.mrb[1].mxu0 }
 0x184   : > { %v1667_v37 = vmul.f32 %v3039_v18, %v1621_v12  ;;  %v3282_v0 = vpop.f32.mrb[2].mxu0 }
 0x185   : > { %v1684_v30 = vadd.f32 %v3040_v8, %v1669_v32  ;;  %v1670_v63 = vmul.f32 %v3282_v0, %v3039_v18  ;;  %v1624_v44 = vpop.f32.mrb[3].mxu0 }
 0x186   : > { %v1682_v33 = vadd.f32 %v3040_v8, %v1667_v37  ;;  %v1668_v34 = vmul.f32 %v3039_v18, %v1624_v44  ;;  %v1818_v37 = vshll.u32 %v1711_v2, 16 }
 0x187   : > { %v1685_v4 = vadd.f32 %v3040_v8, %v1670_v63  ;;  %v1692_v41 = vmax.f32 %v1684_v30, 0.0 }
 0x188   : > { %v1683_v39 = vadd.f32 %v3040_v8, %v1668_v34  ;;  %v1690_v36 = vmax.f32 %v1682_v33, 0.0  ;;  %v1871_v33 = vsel %vm457_vm1, %v1716_v14, 0 }
 0x189   : > { %v1693_v24 = vmax.f32 %v1685_v4, 0.0  ;;  %v3050_v4 = vld [vmem:[%s4446_s4 + $0x8] sm:$0xf] }
 0x18a   : > { %v1691_v52 = vmax.f32 %v1683_v39, 0.0  ;;  %v3285_v7 = vpop.f32.mrb[4].mxu0  ;;  %v1820_v39 = vrot.slane %v1818_v37, 4 }
 0x18b   : > { %v1699_v29 = vpack.c.bf16 %v1693_v24, %v1692_v41  ;;  %v1673_v62 = vmul.f32 %v3285_v7, %v3039_v18  ;;  %v1637_v31 = vpop.f32.mrb[5].mxu0 }
 0x18c   : > { %v1698_v27 = vpack.c.bf16 %v1691_v52, %v1690_v36  ;;  %v1671_v43 = vmul.f32 %v3039_v18, %v1637_v31  ;;  %v3286_v45 = vpop.f32.mrb[6].mxu0 }
 0x18d   : > { %1703 = vst.msk [vmem:[#allocation3 + $0x10] sm:$0xff] %vm331_vm2, %v1699_v29  ;;  %v1688_v48 = vadd.f32 %v3040_v8, %v1673_v62  ;;  %v1674_v22 = vmul.f32 %v3286_v45, %v3039_v18  ;;  %v1640_v54 = vpop.f32.mrb[7].mxu0 }
 0x18e   : > { %1702 = vst.msk [vmem:[#allocation3 + $0x8] sm:$0xff] %vm331_vm2, %v1698_v27  ;;  %v1686_v53 = vadd.f32 %v3040_v8, %v1671_v43  ;;  %v1672_v55 = vmul.f32 %v3039_v18, %v1640_v54 }
 0x18f   : > { %v1689_v60 = vadd.f32 %v3040_v8, %v1674_v22  ;;  %v1696_v15 = vmax.f32 %v1688_v48, 0.0 }
 0x190   : > { %v1687_v56 = vadd.f32 %v3040_v8, %v1672_v55  ;;  %v1694_v61 = vmax.f32 %v1686_v53, 0.0  ;;  %v1815_v8 = vshrl.u32 %v1711_v2, 16  ;;  %v1939_v55 = vsel %vm4485_vm12, %v1717_v58, 0 }
 0x191   : > { %v1697_v16 = vmax.f32 %v1689_v60, 0.0  ;;  %v1950_v2 = vshll.u32 %v1939_v55, 16  ;;  %vm4486_vm12 = vcmp.ne.s16.totalorder %v3947_v57, 0 }
 0x192   : > { %v1695_v47 = vmax.f32 %v1687_v56, 0.0  ;;  %v1817_v34 = vrot.slane %v1815_v8, 3 }
 0x193   : > { %v1701_v35 = vpack.c.bf16 %v1697_v16, %v1696_v15 }
 0x194   : > { %v1700_v23 = vpack.c.bf16 %v1695_v47, %v1694_v61  ;;  %v4189_v3 = vld [vmem:[#allocation3 + $0x10] sm:$0xff]  ;;  %v1821_v27 = vor.u32 %v1820_v39, %v1817_v34  ;;  %v1947_v47 = vshrl.u32 %v1939_v55, 16  ;;  %v3055_v34 = vld [vmem:[%s4446_s4 + $0xc] sm:$0xf] }
 0x195   : > { %1705 = vst.msk [vmem:[#allocation3 + $0x20] sm:$0xff] %vm331_vm2, %v1701_v35  ;;  %v4192_v38 = vld [vmem:[#allocation3 + $0x8] sm:$0xff]  ;;  %v4195_v18 = vrot.slane %v4189_v3, 4  ;;  %v1713_v36 = vsel %vm440_vm7, %v4189_v3, 0 }
 0x196   : > { %1704 = vst.msk [vmem:[#allocation3 + $0x18] sm:$0xff] %vm331_vm2, %v1700_v23  ;;  %v1726_v32 = vrot.slane %v4192_v38, 4  ;;  %v1712_v12 = vsel %vm439_vm5, %v4192_v38, 0  ;;  %v1832_v29 = vshrl.u32 %v1713_v36, 16  ;;  %v1835_v62 = vshll.u32 %v1713_v36, 16 }
 0x197   : > { %v1823_v0 = vshrl.u32 %v1712_v12, 16  ;;  %v1826_v30 = vshll.u32 %v1712_v12, 16  ;;  %v1940_v58 = vsel %vm4461_vm4, %v4192_v38, 0  ;;  %v1949_v37 = vrot.slane %v1947_v47, 4 }
 0x198   : > { %v1727_v63 = vsel %vm457_vm1, %v1725_v11, %v1726_v32  ;;  %v1729_v44 = vsel %vm457_vm1, %v1726_v32, %v4195_v18  ;;  %v1834_v60 = vrot.slane %v1832_v29, 3  ;;  %v1837_v19 = vrot.slane %v1835_v62, 4 }
 0x199   : > { %3289 = vmatprep.mubr.msk.bf16.mxu1 %vm331_vm2, %v1727_v63  ;;  %v1825_v41 = vrot.slane %v1823_v0, 3  ;;  %v1828_v24 = vrot.slane %v1826_v30, 4  ;;  %v1955_v32 = vshrl.u32 %v1940_v58, 16  ;;  %v1958_v12 = vshll.u32 %v1940_v58, 16 }
 0x19a   : > { %3290 = vmatmul.mubr.msk.bf16.vlgmr.msra.gmra.mrb[0].mxu1 %vm331_vm2, %v1729_v44  ;;  %v1838_v35 = vor.u32 %v1837_v19, %v1834_v60  ;;  %v2003_v0 = vsel %vm457_vm1, %v3050_v4, 0  ;;  %v1952_v30 = vrot.slane %v1950_v2, 5  ;;  %v1941_v36 = vsel %vm739_vm6, %v4189_v3, 0 }
 0x19b   : > { %3298 = vmatpush3.bf16.msra.mxu1 %v1871_v33  ;;  %v1829_v43 = vor.u32 %v1828_v24, %v1825_v41  ;;  %v1957_v41 = vrot.slane %v1955_v32, 4  ;;  %v1960_v24 = vrot.slane %v1958_v12, 5  ;;  %v1967_v29 = vshll.u32 %v1941_v36, 16 }
 0x19c   : > { %v1710_v52 = vld [vmem:[#allocation3 + $0x20] sm:$0xf]  ;;  %3516 = vmatprep.subr.msk.bf16.mxu1 %vm457_vm1, %v3050_v4  ;;  %v1953_v62 = vor.u32 %v1952_v30, %v1949_v37  ;;  %vm4487_vm4 = vcmp.ne.s16.totalorder %v3950_v25, 0  ;;  %v2136_v32 = vsel %vm457_vm1, %v3055_v34, 0 }
 0x19d   : > { %v4215_v14 = vld [vmem:[#allocation3 + $0x18] sm:$0xff]  ;;  %v1732_v7 = vrot.slane %v1710_v52, 4  ;;  %v1715_v56 = vsel %vm4462_vm11, %v1710_v52, 0  ;;  %v1830_v15 = vsel %vm548_vm14, %v1821_v27, %v1829_v43  ;;  %v1839_v63 = vsel %vm548_vm14, %v1829_v43, %v1838_v35  ;;  %v3060_v25 = vld [vmem:[%s4446_s4 + $0x10] sm:$0xf] }
 0x19e   : > { %v4218_v31 = vrot.slane %v4215_v14, 4  ;;  %v1714_v45 = vsel %vm441_vm8, %v4215_v14, 0  ;;  %v1850_v23 = vshrl.u32 %v1715_v56, 16  ;;  %v1853_v11 = vshll.u32 %v1715_v56, 16 }
 0x19f   : > { %v1841_v48 = vshrl.u32 %v1714_v45, 16  ;;  %v1844_v22 = vshll.u32 %v1714_v45, 16  ;;  %v1942_v4 = vsel %vm740_vm13, %v4215_v14, 0  ;;  %v1961_v27 = vor.u32 %v1960_v24, %v1957_v41 }
 0x1a0   : > { %v4226_v54 = vsel %vm457_vm1, %v4195_v18, %v4218_v31  ;;  %v1733_v53 = vsel %vm457_vm1, %v4218_v31, %v1732_v7  ;;  %v1852_v44 = vrot.slane %v1850_v23, 3  ;;  %v1855_v33 = vrot.slane %v1853_v11, 4 }
 0x1a1   : > { %3293 = vmatprep.mubr.msk.bf16.mxu1 %vm331_vm2, %v4226_v54  ;;  %v1843_v16 = vrot.slane %v1841_v48, 3  ;;  %v1846_v61 = vrot.slane %v1844_v22, 4  ;;  %v1964_v7 = vshrl.u32 %v1941_v36, 16  ;;  %v1973_v43 = vshrl.u32 %v1942_v4, 16  ;;  %v1938_v48 = vld [vmem:[#allocation3 + $0x20] sm:$0x1f] }
 0x1a2   : > { %3294 = vmatmul.mubr.msk.bf16.gmra.mrb[4].mxu1 %vm331_vm2, %v1733_v53  ;;  %v1856_v52 = vor.u32 %v1855_v33, %v1852_v44  ;;  %v1976_v45 = vshll.u32 %v1942_v4, 16  ;;  %v1969_v55 = vrot.slane %v1967_v29, 5  ;;  %v1962_v60 = vsel %vm402_vm10, %v1953_v62, %v1961_v27 }
 0x1a3   : > { %3299 = vmatprep.mubr.msk.bf16.mxu1 %vm331_vm2, %v1830_v15  ;;  %v1847_v8 = vor.u32 %v1846_v61, %v1843_v16  ;;  %v1966_v53 = vrot.slane %v1964_v7, 4  ;;  %v1975_v19 = vrot.slane %v1973_v43, 4  ;;  %v1943_v15 = vsel %vm4486_vm12, %v1938_v48, 0  ;;  %v2078_v16 = vld [vmem:[#allocation3] sm:$0x80] }
 0x1a4   : > { %v1978_v56 = vrot.slane %v1976_v45, 5  ;;  %v2081_v61 = vsel %vm4487_vm4, %v4192_v38, 0  ;;  %v1982_v47 = vshrl.u32 %v1943_v15, 16  ;;  %v1985_v2 = vshll.u32 %v1943_v15, 16 }
 0x1a5   : > { %v1848_v39 = vsel %vm548_vm14, %v1838_v35, %v1847_v8  ;;  %v1857_v22 = vsel %vm548_vm14, %v1847_v8, %v1856_v52  ;;  %v1970_v58 = vor.u32 %v1969_v55, %v1966_v53  ;;  %vm4488_vm11 = vcmp.ne.s16.totalorder %v3931_v49, 0  ;;  %v4268_v8 = vld [vmem:[#allocation3 + $0x20] sm:$0xff] }
 0x1a6   : > { %v2080_v35 = vsel %vm4488_vm11, %v2078_v16, 0  ;;  %v1979_v23 = vor.u32 %v1978_v56, %v1975_v19  ;;  %v2092_v11 = vshrl.u32 %v2081_v61, 16  ;;  %v1987_v30 = vrot.slane %v1985_v2, 5 }
 0x1a7   : > { %v2088_v12 = vshrl.u32 %v2080_v35, 16  ;;  %v1971_v37 = vsel %vm402_vm10, %v1961_v27, %v1970_v58  ;;  %vm4489_vm4 = vcmp.ne.s16.totalorder %v3988_v10, 0  ;;  %v2686_v33 = vsel %vm739_vm6, %v4215_v14, 0 }
 0x1a8   : > { %v2082_v49 = vsel %vm4489_vm4, %v4189_v3, 0  ;;  %v2094_v44 = vrot.slane %v2092_v11, 7  ;;  %vm4490_vm11 = vcmp.ne.s16.totalorder %v4003_v59, 0  ;;  %v2709_v24 = vshrl.u32 %v2686_v33, 16 }
 0x1a9   : > { %v2083_v10 = vsel %vm4490_vm11, %v4215_v14, 0  ;;  %v2100_v41 = vshrl.u32 %v2082_v49, 16  ;;  %v2712_v4 = vshll.u32 %v2686_v33, 16  ;;  %v2090_v7 = vrot.slane %v2088_v12, 7 }
 0x1aa   : > { %3300 = vmatmul.mubr.msk.bf16.vlgmr.msra.gmra.mrb[0].mxu1 %vm331_vm2, %v1839_v63  ;;  %v1980_v63 = vsel %vm402_vm10, %v1970_v58, %v1979_v23  ;;  %v2108_v26 = vshrl.u32 %v2083_v10, 16  ;;  %v2711_v62 = vrot.slane %v2709_v24, 4  ;;  %vm4491_vm6 = vsmask.f32 256 }
 0x1ab   : > { %3308 = vmatpush3.bf16.msra.mxu1 %v2003_v0  ;;  %3303 = vmatprep.mubr.msk.bf16.mxu1 %vm331_vm2, %v1848_v39  ;;  %v1984_v0 = vrot.slane %v1982_v47, 4  ;;  %v2095_v39 = vshll.u32 %v2081_v61, 16  ;;  %v2714_v27 = vrot.slane %v2712_v4, 5  ;;  %v2102_v59 = vrot.slane %v2100_v41, 7  ;;  %vm4493_vm12 = vmmov %vm4491_vm6  ;;  %v2305_v4 = vld [vmem:[#allocation3 + $0x28] sm:$0x1] }
 0x1ac   : > { %3517 = vmatprep.subr.msk.bf16.mxu1 %vm457_vm1, %v3055_v34  ;;  %v2687_v34 = vsel %vm740_vm13, %v4268_v8, 0  ;;  %vm4492_vm13 = vcmp.ne.s16.totalorder %v4007_v28, 0  ;;  %v2103_v56 = vshll.u32 %v2082_v49, 16  ;;  %v2111_v16 = vshll.u32 %v2083_v10, 16  ;;  %v3065_v28 = vld [vmem:[%s4446_s4 + $0x14] sm:$0xf]  ;;  %vm4494_vm4 = vmmov %vm4491_vm6 }
 0x1ad   : > { %v1988_v36 = vor.u32 %v1987_v30, %v1984_v0  ;;  %v2718_v9 = vshrl.u32 %v2687_v34, 16  ;;  %v2721_v52 = vshll.u32 %v2687_v34, 16  ;;  %v2097_v29 = vor.u32 %v2095_v39, %v2094_v44  ;;  %vm4495_vm11 = vmmov %vm4494_vm4  ;;  %v2437_v10 = vld [vmem:[#allocation3 + $0x8] sm:$0xf8] }
 0x1ae   : > { %v2084_v19 = vsel %vm4492_vm13, %v4268_v8, 0  ;;  %v2105_v61 = vor.u32 %v2103_v56, %v2102_v59  ;;  %v2226_v2 = vsel %vm457_vm1, %v3060_v25, 0  ;;  %vm4497_vm13 = vcmp.ne.s16.totalorder %v4049_v40, 0  ;;  %v3075_v56 = vld [vmem:[%s4446_s4 + $0x1c] sm:$0xf] }
 0x1af   : > { %v2720_v43 = vrot.slane %v2718_v9, 4  ;;  %v2723_v45 = vrot.slane %v2721_v52, 5  ;;  %v1989_v48 = vsel %vm402_vm10, %v1979_v23, %v1988_v36  ;;  %v2098_v55 = vsel %vm4491_vm6, %v2090_v7, %v2097_v29 }
 0x1b0   : > { %v2116_v58 = vshrl.u32 %v2084_v19, 16  ;;  %v2106_v35 = vsel %vm4493_vm12, %v2094_v44, %v2105_v61  ;;  %vm4496_vm6 = vcmp.ne.s16.totalorder %v4038_v50, 0  ;;  %v2307_v49 = vsel %vm4497_vm13, %v4189_v3, 0 }
 0x1b1   : > { %v4294_v53 = vor.u32 %v2723_v45, %v2720_v43  ;;  %v2306_v0 = vsel %vm4496_vm6, %v4192_v38, 0  ;;  %v2308_v50 = vsel %vm1140_vm0, %v4215_v14, 0  ;;  %v2321_v33 = vshll.u32 %v2307_v49, 16 }
 0x1b2   : > { %3304 = vmatmul.mubr.msk.bf16.gmra.mrb[4].mxu1 %vm331_vm2, %v1857_v22  ;;  %v4292_v22 = vor.u32 %v2714_v27, %v2711_v62  ;;  %v2118_v23 = vrot.slane %v2116_v58, 7  ;;  %v2316_v30 = vshll.u32 %v2306_v0, 16  ;;  %v2329_v34 = vshll.u32 %v2308_v50, 16 }
 0x1b3   : > { %3309 = vmatprep.mubr.msk.bf16.mxu1 %vm331_vm2, %v1962_v60  ;;  %v2110_v60 = vrot.slane %v2108_v26, 7  ;;  %v2323_v39 = vrot.slane %v2321_v33, 1  ;;  %v2309_v41 = vsel %vm1141_vm3, %v4268_v8, 0  ;;  %v2439_v46 = vsel %vm438_vm15, %v2437_v10, 0 }
 0x1b4   : > { %v4305_v15 = vsel %vm402_vm10, %v4292_v22, %v4294_v53  ;;  %v2318_v44 = vrot.slane %v2316_v30, 1  ;;  %v2331_v36 = vrot.slane %v2329_v34, 1  ;;  %v2440_v9 = vsel %vm439_vm5, %v4189_v3, 0 }
 0x1b5   : > { %v2113_v47 = vor.u32 %v2111_v16, %v2110_v60  ;;  %v2333_v52 = vshrl.u32 %v2308_v50, 16  ;;  %v2337_v7 = vshll.u32 %v2309_v41, 16  ;;  %v2325_v21 = vshrl.u32 %v2307_v49, 16 }
 0x1b6   : > { %v2447_v29 = vshrl.u32 %v2439_v46, 16  ;;  %v2450_v26 = vshll.u32 %v2439_v46, 16  ;;  %vm4498_vm0 = vcmp.ne.s16.totalorder %v4053_v51, 0  ;;  %v2455_v43 = vshrl.u32 %v2440_v9, 16 }
 0x1b7   : > { %v2114_v11 = vsel %vm4494_vm4, %v2102_v59, %v2113_v47  ;;  %v2335_v62 = vor.u32 %v2333_v52, %v2331_v36  ;;  %v2310_v27 = vsel %vm4498_vm0, %v2305_v4, 0  ;;  %v2458_v45 = vshll.u32 %v2440_v9, 16 }
 0x1b8   : > { %v2327_v42 = vor.u32 %v2325_v21, %v2323_v39  ;;  %v2339_v59 = vrot.slane %v2337_v7, 1  ;;  %v2449_v13 = vrot.slane %v2447_v29, 3  ;;  %v2457_v16 = vrot.slane %v2455_v43, 3 }
 0x1b9   : > { %v2460_v61 = vrot.slane %v2458_v45, 4  ;;  %v2441_v58 = vsel %vm440_vm7, %v4215_v14, 0  ;;  %v2341_v47 = vshrl.u32 %v2309_v41, 16  ;;  %vm4499_vm15 = vcmp.ne.s16.totalorder %v3792_v20, 0 }
 0x1ba   : > { %3310 = vmatmul.mubr.msk.bf16.vlgmr.msra.gmra.mrb[0].mxu1 %vm331_vm2, %v1971_v37  ;;  %v2340_v51 = vsel %vm883_vm9, %v2335_v62, %v2339_v59  ;;  %v2608_v34 = vsel %vm457_vm1, %v3075_v56, 0  ;;  %vm4500_vm5 = vcmp.ne.s16.totalorder %v3768_v1, 0  ;;  %vm4501_vm7 = vcmp.ne.s16.totalorder %v3902_v17, 0 }
 0x1bb   : > { %3318 = vmatpush3.bf16.msra.mxu1 %v2136_v32  ;;  %3313 = vmatprep.mubr.msk.bf16.mxu1 %vm331_vm2, %v1980_v63  ;;  %v2119_v32 = vshll.u32 %v2084_v19, 16  ;;  %v3070_v63 = vld [vmem:[%s4446_s4 + $0x18] sm:$0xf]  ;;  %v2452_v19 = vrot.slane %v2450_v26, 4  ;;  %v2685_v21 = vsel %vm4501_vm7, %v4189_v3, 0  ;;  %v2591_v29 = vrot.slane %v4268_v8, 4 }
 0x1bc   : > { %3518 = vmatprep.subr.msk.bf16.mxu1 %vm457_vm1, %v3060_v25  ;;  %v2362_v25 = vsel %vm457_vm1, %v3065_v28, 0  ;;  %v2703_v43 = vshll.u32 %v2685_v21, 16  ;;  %v2593_v17 = vrot.slane %v2438_v5, 4 }
 0x1bd   : > { %v2121_v12 = vor.u32 %v2119_v32, %v2118_v23  ;;  %v2453_v32 = vor.u32 %v2452_v19, %v2449_v13 }
 0x1bf   : > { %v2122_v37 = vsel %vm4495_vm11, %v2110_v60, %v2121_v12  ;;  %v2345_v60 = vshll.u32 %v2310_v27, 16  ;;  %v2461_v12 = vor.u32 %v2460_v61, %v2457_v16  ;;  %v2700_v27 = vshrl.u32 %v2685_v21, 16 }
 0x1c1   : > { %v2347_v23 = vrot.slane %v2345_v60, 1  ;;  %v2462_v6 = vsel %vm548_vm14, %v2453_v32, %v2461_v12  ;;  %v2594_v60 = vsel %vm457_vm1, %v2591_v29, %v2593_v17 }
 0x1c2   : > { %3314 = vmatmul.mubr.msk.bf16.gmra.mrb[4].mxu1 %vm331_vm2, %v1989_v48  ;;  %v2503_v48 = vsel %vm457_vm1, %v3070_v63, 0 }
 0x1c3   : > { %3319 = vmatprep.mubr.msk.bf16.mxu1 %vm331_vm2, %v2098_v55  ;;  %v2332_v55 = vsel %vm883_vm9, %v2327_v42, %v2331_v36  ;;  %v2578_v36 = vld [vmem:[#allocation3 + $0x8] sm:$0xf0] }
 0x1c4   : > { %v2586_v4 = vrot.slane %v2578_v36, 4  ;;  %v2684_v7 = vsel %vm4500_vm5, %v2578_v36, 0 }
 0x1c5   : > { %v2692_v26 = vshrl.u32 %v2684_v7, 16  ;;  %v2695_v62 = vshll.u32 %v2684_v7, 16 }
 0x1c6   : > { %v2588_v52 = vsel %vm457_vm1, %v2586_v4, %v4195_v18  ;;  %v2592_v18 = vsel %vm457_vm1, %v4218_v31, %v2591_v29 }
 0x1c7   : > { %v2694_v1 = vrot.slane %v2692_v26, 4  ;;  %v2697_v42 = vrot.slane %v2695_v62, 5 }
 0x1ca   : > { %3320 = vmatmul.mubr.msk.bf16.vlgmr.msra.gmra.mrb[0].mxu1 %vm331_vm2, %v2106_v35  ;;  %v2343_v35 = vor.u32 %v2341_v47, %v2339_v59  ;;  %v2705_v59 = vrot.slane %v2703_v43, 5 }
 0x1cb   : > { %3328 = vmatpush3.bf16.msra.mxu1 %v2226_v2  ;;  %3323 = vmatprep.mubr.msk.bf16.mxu1 %vm331_vm2, %v2114_v11  ;;  %v2442_v2 = vsel %vm441_vm8, %v4268_v8, 0  ;;  %v2467_v11 = vshll.u32 %v2441_v58, 16 }
 0x1cc   : > { %3519 = vmatprep.subr.msk.bf16.mxu1 %vm457_vm1, %v3065_v28  ;;  %v2464_v28 = vshrl.u32 %v2441_v58, 16  ;;  %v3085_v58 = vld [vmem:[%s4447_s5] ss:$0 sm:$0xff] }
 0x1ce   : > { %v2466_v30 = vrot.slane %v2464_v28, 3 }
 0x1d2   : > { %3324 = vmatmul.mubr.msk.bf16.gmra.mrb[4].mxu1 %vm331_vm2, %v2122_v37  ;;  %v2473_v37 = vshrl.u32 %v2442_v2, 16 }
 0x1d3   : > { %3329 = vmatprep.mubr.msk.bf16.mxu1 %vm331_vm2, %v4192_v38  ;;  %v2314_v38 = vshrl.u32 %v2306_v0, 16  ;;  %v2476_v0 = vshll.u32 %v2442_v2, 16 }
 0x1d4   : > { %v2475_v49 = vrot.slane %v2473_v37, 3 }
 0x1d5   : > { %v2319_v40 = vor.u32 %v2318_v44, %v2314_v38  ;;  %v2443_v44 = vsel %vm4499_vm15, %v2438_v5, 0 }
 0x1d6   : > { %v2482_v38 = vshrl.u32 %v2443_v44, 16  ;;  %v2485_v33 = vshll.u32 %v2443_v44, 16 }
 0x1d7   : > { %v2324_v24 = vsel %vm883_vm9, %v2319_v40, %v2323_v39 }
 0x1d8   : > { %v2484_v39 = vrot.slane %v2482_v38, 3  ;;  %v2487_v41 = vrot.slane %v2485_v33, 4 }
 0x1da   : > { %3330 = vmatmul.mubr.msk.bf16.vlgmr.msra.gmra.mrb[0].mxu1 %vm331_vm2, %v4189_v3  ;;  %v2488_v46 = vor.u32 %v2487_v41, %v2484_v39  ;;  %v2698_v3 = vor.u32 %v2697_v42, %v2694_v1 }
 0x1db   : > { %3338 = vmatpush3.bf16.msra.mxu1 %v2362_v25  ;;  %3333 = vmatprep.mubr.msk.bf16.mxu1 %vm331_vm2, %v4215_v14  ;;  %v2348_v14 = vsel %vm883_vm9, %v2343_v35, %v2347_v23  ;;  %v2469_v25 = vrot.slane %v2467_v11, 4  ;;  %v3541_v35 = vld [vmem:[%s3606_s30 + $0x8] sm:$0xff]   ;;  %v3542_v11 = vld [vmem:[%s3606_s30] sm:$0xff]  }
 0x1dc   : > { %3520 = vmatprep.subr.msk.bf16.mxu1 %vm457_vm1, %v3070_v63  ;;  %v2478_v63 = vrot.slane %v2476_v0, 4  ;;  %v2855_v23 = vunpack.c.l.bf16 %v3541_v35  ;;  %v2853_v32 = vunpack.c.l.bf16 %v3542_v11  ;;  %v2856_v0 = vunpack.c.h.bf16 %v3541_v35 }
 0x1dd   : > { %v2470_v50 = vor.u32 %v2469_v25, %v2466_v30  ;;  %v2854_v25 = vunpack.c.h.bf16 %v3542_v11 }
 0x1de   : > { %v2479_v40 = vor.u32 %v2478_v63, %v2475_v49 }
 0x1df   : > { %v2471_v10 = vsel %vm548_vm14, %v2461_v12, %v2470_v50 }
 0x1e0   : > { %v2480_v20 = vsel %vm548_vm14, %v2470_v50, %v2479_v40  ;;  %v2489_v9 = vsel %vm548_vm14, %v2479_v40, %v2488_v46  ;;  %vm4502_vm14 = vcmp.ne.s16.totalorder %v3947_v57, 0 }
 0x1e2   : > { %3334 = vmatmul.mubr.msk.bf16.gmra.mrb[4].mxu1 %vm331_vm2, %v4268_v8 }
 0x1e3   : > { %3339 = vmatprep.mubr.msk.bf16.mxu1 %vm331_vm2, %v2324_v24  ;;  %v3080_v24 = vld [vmem:[%s4446_s4 + $0x20] sm:$0xf] }
 0x1e4   : > { %v2748_v45 = vsel %vm457_vm1, %v3080_v24, 0 }
 0x1ea   : > { %3340 = vmatmul.mubr.msk.bf16.vlgmr.msra.gmra.mrb[0].mxu1 %vm331_vm2, %v2332_v55  ;;  %v2683_v55 = vld [vmem:[#allocation3 + $0x28] sm:$0x1f] }
 0x1eb   : > { %3348 = vmatpush3.bf16.msra.mxu1 %v2503_v48  ;;  %3343 = vmatprep.mubr.msk.bf16.mxu1 %vm331_vm2, %v2340_v51  ;;  %v2702_v48 = vrot.slane %v2700_v27, 4 }
 0x1ec   : > { %3521 = vmatprep.subr.msk.bf16.mxu1 %vm457_vm1, %v3075_v56 }
 0x1ed   : > { %v2706_v8 = vor.u32 %v2705_v59, %v2702_v48 }
 0x1ef   : > { %v2707_v31 = vsel %vm402_vm10, %v2698_v3, %v2706_v8  ;;  %v2716_v56 = vsel %vm402_vm10, %v2706_v8, %v4292_v22  ;;  %v3086_v22 = vld [vmem:[%s4448_s6] ss:$0 sm:$0xff] }
 0x1f2   : > { %3344 = vmatmul.mubr.msk.bf16.gmra.mrb[4].mxu1 %vm331_vm2, %v2348_v14 }
 0x1f3   : > { %3349 = vmatprep.mubr.msk.bf16.mxu1 %vm331_vm2, %v2462_v6 }
 0x1fa   : > { %3350 = vmatmul.mubr.msk.bf16.vlgmr.msra.gmra.mrb[0].mxu1 %vm331_vm2, %v2471_v10 }
 0x1fb   : > { %3358 = vmatpush3.bf16.msra.mxu1 %v2608_v34  ;;  %3353 = vmatprep.mubr.msk.bf16.mxu1 %vm331_vm2, %v2480_v20 }
 0x1fc   : > { %3522 = vmatprep.subr.msk.bf16.mxu1 %vm457_vm1, %v3080_v24  ;;  %vm2909_vm1 = vcmask 60416   ;;  %v3543_v24 = vld [vmem:[%s3606_s30 + $0x18] sm:$0xff]  }
 0x1fd   : > { %v2859_v20 = vunpack.c.l.bf16 %v3543_v24  ;;  %v2860_v27 = vunpack.c.h.bf16 %v3543_v24 }
 0x202   : > { %3354 = vmatmul.mubr.msk.bf16.gmra.mrb[4].mxu1 %vm331_vm2, %v2489_v9 }
 0x203   : > { %3359 = vmatprep.mubr.msk.bf16.mxu1 %vm331_vm2, %v2588_v52  ;;  %v3544_v52 = vld [vmem:[%s3606_s30 + $0x10] sm:$0xff]  }
 0x204   : > { %v2857_v7 = vunpack.c.l.bf16 %v3544_v52  ;;  %v2858_v42 = vunpack.c.h.bf16 %v3544_v52 }
 0x20a   : > { %3360 = vmatmul.mubr.msk.bf16.vlgmr.msra.gmra.mrb[0].mxu1 %vm331_vm2, %v4226_v54  ;;  %v2688_v54 = vsel %vm4502_vm14, %v2683_v55, 0 }
 0x20b   : > { %3368 = vmatpush3.bf16.msra.mxu1 %v2748_v45  ;;  %3363 = vmatprep.mubr.msk.bf16.mxu1 %vm331_vm2, %v2592_v18  ;;  %v2727_v13 = vshrl.u32 %v2688_v54, 16  ;;  %v2730_v19 = vshll.u32 %v2688_v54, 16 }
 0x20d   : > { %v2729_v51 = vrot.slane %v2727_v13, 4  ;;  %v2732_v16 = vrot.slane %v2730_v19, 5 }
 0x20f   : > { %v2733_v61 = vor.u32 %v2732_v16, %v2729_v51 }
 0x211   : > { %v2734_v57 = vsel %vm402_vm10, %v4294_v53, %v2733_v61 }
 0x212   : > { %3364 = vmatmul.mubr.msk.bf16.gmra.mrb[4].mxu1 %vm331_vm2, %v2594_v60 }
 0x213   : > { %3369 = vmatprep.mubr.msk.bf16.mxu1 %vm331_vm2, %v2707_v31 }
 0x21a   : > { %3370 = vmatmul.mubr.msk.bf16.vlgmr.msra.gmra.mrb[0].mxu1 %vm331_vm2, %v2716_v56 }
 0x21b   : > { %3373 = vmatprep.mubr.msk.bf16.mxu1 %vm331_vm2, %v4305_v15 }
 0x222   : > { %3374 = vmatmul.mubr.msk.bf16.gmra.mrb[4].mxu1 %vm331_vm2, %v2734_v57 }
 0x2ed   : > { %v3371_v47 = vpop.f32.mrb[0].mxu1 }
 0x2ee   : > { %v2832_v2 = vmul.f32 %v3371_v47, %v3085_v58  ;;  %v2784_v28 = vpop.f32.mrb[1].mxu1 }
 0x2ef   : > { %v2830_v15 = vmul.f32 %v3085_v58, %v2784_v28  ;;  %v3372_v12 = vpop.f32.mrb[2].mxu1 }
 0x2f0   : > { %v2847_v53 = vadd.f32 %v3086_v22, %v2832_v2  ;;  %v2833_v37 = vmul.f32 %v3372_v12, %v3085_v58  ;;  %v2787_v5 = vpop.f32.mrb[3].mxu1 }
 0x2f1   : > { %v2845_v14 = vadd.f32 %v3086_v22, %v2830_v15  ;;  %v2831_v30 = vmul.f32 %v3085_v58, %v2787_v5 }
 0x2f2   : > { %v2863_v6 = vadd.f32 %v2855_v23, %v2847_v53  ;;  %v2848_v49 = vadd.f32 %v3086_v22, %v2833_v37 }
 0x2f3   : > { %v2861_v63 = vadd.f32 %v2853_v32, %v2845_v14  ;;  %v2846_v44 = vadd.f32 %v3086_v22, %v2831_v30 }
 0x2f4   : > { %v2871_v50 = vmax.f32 %v2863_v6, 0.0  ;;  %v2864_v38 = vadd.f32 %v2856_v0, %v2848_v49 }
 0x2f5   : > { %v2869_v33 = vmax.f32 %v2861_v63, 0.0  ;;  %v2862_v40 = vadd.f32 %v2854_v25, %v2846_v44  ;;  %v3375_v34 = vpop.f32.mrb[4].mxu1 }
 0x2f6   : > { %v3101_v10 = vpack.c.bf16 %v2871_v50, %v2871_v50  ;;  %v2872_v39 = vmax.f32 %v2864_v38, 0.0  ;;  %v2836_v41 = vmul.f32 %v3375_v34, %v3085_v58  ;;  %v2800_v36 = vpop.f32.mrb[5].mxu1 }
 0x2f7   : > { %v3099_v46 = vpack.c.bf16 %v2869_v33, %v2869_v33  ;;  %v2870_v4 = vmax.f32 %v2862_v40, 0.0  ;;  %v2834_v9 = vmul.f32 %v3085_v58, %v2800_v36  ;;  %v3376_v21 = vpop.f32.mrb[6].mxu1 }
 0x2f8   : > { %2912 = vst.msk [vmem:[%s3611_s10 + $0x8] sm:$0xf] %vm2909_vm1, %v3101_v10  ;;  %v3102_v29 = vpack.c.bf16 %v2872_v39, %v2872_v39  ;;  %v2851_v26 = vadd.f32 %v3086_v22, %v2836_v41  ;;  %v2837_v62 = vmul.f32 %v3376_v21, %v3085_v58  ;;  %v2803_v43 = vpop.f32.mrb[7].mxu1 }
 0x2f9   : > { %2910 = vst.msk [vmem:[%s3611_s10] sm:$0xf] %vm2909_vm1, %v3099_v46  ;;  %v3100_v45 = vpack.c.bf16 %v2870_v4, %v2870_v4  ;;  %v2849_v18 = vadd.f32 %v3086_v22, %v2834_v9  ;;  %v2835_v1 = vmul.f32 %v3085_v58, %v2803_v43 }
 0x2fa   : > { %2913 = vst.msk [vmem:[%s3611_s10 + $0xc] sm:$0xf] %vm2909_vm1, %v3102_v29  ;;  %v2867_v48 = vadd.f32 %v2859_v20, %v2851_v26  ;;  %v2852_v59 = vadd.f32 %v3086_v22, %v2837_v62 }
 0x2fb   : > { %2911 = vst.msk [vmem:[%s3611_s10 + $0x4] sm:$0xf] %vm2909_vm1, %v3100_v45  ;;  %v2865_v17 = vadd.f32 %v2857_v7, %v2849_v18  ;;  %v2850_v3 = vadd.f32 %v3086_v22, %v2835_v1 }
 0x2fc   : > { %v2875_v8 = vmax.f32 %v2867_v48, 0.0  ;;  %v2868_v55 = vadd.f32 %v2860_v27, %v2852_v59 }
 0x2fd   : > { %v2873_v60 = vmax.f32 %v2865_v17, 0.0  ;;  %v2866_v31 = vadd.f32 %v2858_v42, %v2850_v3 }
 0x2fe   : > { %v3105_v54 = vpack.c.bf16 %v2875_v8, %v2875_v8  ;;  %v2876_v13 = vmax.f32 %v2868_v55, 0.0 }
 0x2ff   : > { %v3103_v19 = vpack.c.bf16 %v2873_v60, %v2873_v60  ;;  %v2874_v56 = vmax.f32 %v2866_v31, 0.0 }
 0x300   : > { %2916 = vst.msk [vmem:[%s3611_s10 + $0x18] sm:$0xf] %vm2909_vm1, %v3105_v54  ;;  %v3106_v51 = vpack.c.bf16 %v2876_v13, %v2876_v13 }
 0x301   : > { %2914 = vst.msk [vmem:[%s3611_s10 + $0x10] sm:$0xf] %vm2909_vm1, %v3103_v19  ;;  %v3104_v16 = vpack.c.bf16 %v2874_v56, %v2874_v56 }
 0x302   : > { %2917 = vst.msk [vmem:[%s3611_s10 + $0x1c] sm:$0xf] %vm2909_vm1, %v3106_v51 }
 0x303   : > { %2915 = vst.msk [vmem:[%s3611_s10 + $0x14] sm:$0xf] %vm2909_vm1, %v3104_v16 }
 0x304 PF: > { %s17_s24 = sadd.s32 1, %s3551_s24  }
 0x305   : > { %p14_p5 = scmp.ge.s32.totalorder %s17_s24, 4  }
 0x307   :  { %16 = sbr.rel (!%p14_p5) target bundleno = 1 (0x1), region = 98 }

// kernel: _lambda_.14
= control target key start
LH: loop header
LB: loop body
LE: loop exit
PB: predicated region body
PF: predicated region fallthrough
CT: control target
= control target key end

     0   :  { %s2135_s24 = smov 0   ;;  %s2414_s0 = inlined_call_operand.vmem [shape: bf16[2,16,16], index: 0, kind: input, shape index: {}]   ;;  %s2415_s1 = inlined_call_operand.vmem [shape: bf16[3,3,16,16], index: 1, kind: input, shape index: {}]   ;;  %s2416_s2 = inlined_call_operand.vmem [shape: f32[1,16], index: 2, kind: input, shape index: {}]   ;;  %s2417_s3 = inlined_call_operand.vmem [shape: f32[1,16], index: 3, kind: input, shape index: {}]   ;;  %s2418_s4 = inlined_call_operand.vmem [shape: bf16[3,3,16,16], index: 4, kind: input, shape index: {}]   ;;  %s2419_s5 = inlined_call_operand.vmem [shape: f32[1,16], index: 5, kind: input, shape index: {}]   ;;  %s2420_s6 = inlined_call_operand.vmem [shape: f32[1,16], index: 6, kind: input, shape index: {}]   ;;  %s2421_s7 = inlined_call_operand.vmem [shape: bf16[2,16,16], index: 7, kind: output, shape index: {}]  }
   0x1 LB: > { %s1749_s25 = sadd.s32 4294967295, %s2089_s24   ;;  %p1753_p0 = scmp.ge.s32.totalorder %s2089_s24, 1  ;;  %s2089_s24 = sphi %s2135_s24, %s17_s24  }
   0x2   : > { %p237_p1 = scmp.lt.s32.totalorder %s2089_s24, 3 }
   0x4   : > { %p238_p2 = pnand %p1753_p0, %p237_p1 }
   0x5   : > { %p269_p3 = scmp.lt.s32.totalorder (!%p238_p2), %s1749_s25, 1  ;;  %p1758_p4 = scmp.ne.s32.totalorder (!%p238_p2), %s1749_s25, 0 }
   0x6   : > { %241 = sbr.rel (%p238_p2) target bundleno = 691 (0x2b3), region = 48 }
   0xd   : > { %s270_s26 = scalar_select %p269_p3, %s1749_s25, 1 }
   0xe   : > { %285 = sbr.rel (%p1758_p4) target bundleno = 21 (0x15), region = 52  ;;  %vm286_vm0 = vcmask (!%p1758_p4), 130048   ;;  %v2091_v0 = vmov (!%p1758_p4), 0  }
   0xf   : > { %s1839_s27 = sshll.u32 %s270_s26, 3  ;;  %287 = vst.msk [vmem:[#allocation2] sm:$0xff] (!%p1758_p4), %vm286_vm0, %v2091_v0  ;;  %288 = vst.msk [vmem:[#allocation2 + $0x8] sm:$0xff] (!%p1758_p4), %vm286_vm0, %v2091_v0 }
  0x10   : > { %s273_s30 = scalar_lea.vmem %s2414_s0, %s1839_s27  ;;  %s2149_s10 = scalar_lea.vmem %s2421_s7, %s1839_s27  ;;  %289 = vst.msk [vmem:[#allocation3] sm:$0xff] (!%p1758_p4), %vm286_vm0, %v2091_v0  ;;  %290 = vst.msk [vmem:[#allocation3 + $0x8] sm:$0xff] (!%p1758_p4), %vm286_vm0, %v2091_v0 }
  0x15 PF: > { %v2063_v1 = vld [vmem:[%s2415_s1 + $0x8] sm:$0xff]   ;;  %v305_v2 = vlaneseq  ;;  %v2092_v3 = vmov 0.0   ;;  %v2155_v4 = vld [vmem:[%s273_s30] sm:$0xf]  ;;  %v2157_v5 = vld [vmem:[%s273_s30 + $0x4] sm:$0xf] }
  0x16   : > { %1879 = vmatprep.subr.bf16.mxu0 %v2092_v3  ;;  %vm301_vm1 = vcmask 130052   ;;  %1933 = vmatprep.subr.bf16.mxu1 %v2092_v3  ;;  %vm2093_vm2 = vmmov 0   ;;  %v1759_v6 = vcombine.low %v2155_v4, %v2155_v4  ;;  %v1760_v7 = vcombine.low %v2157_v5, %v2157_v5  ;;  %v2066_v23 = vld [vmem:[%s2415_s1] sm:$0xff]   ;;  %v2067_v54 = vld [vmem:[%s2415_s1 + $0x10] sm:$0xff]  }
  0x17   : > { %1880 = vmatpush3.bf16.msra.mxu0 %v2063_v1  ;;  %1881 = vmatprep.mubr.msk.bf16.mxu0 %vm2093_vm2, %v2092_v3  ;;  %vm303_vm3 = vcmask 125952   ;;  %v306_v8 = vshrl.u32 %v305_v2, 7  ;;  %v2094_v12 = vmov 0   ;;  %vm342_vm12 = vcmask 1045504  }
  0x18   : > { %1885 = vmatprep.subr.bf16.mxu0 %v2092_v3  ;;  %1935 = vmatprep.mubr.msk.bf16.mxu1 %vm2093_vm2, %v2092_v3  ;;  %302 = vst.msk [vmem:[#allocation2] sm:$0xf0] %vm301_vm1, %v1759_v6  ;;  %vm352_vm13 = vcmask 130048   ;;  %vm397_vm0 = vsmask.f32 6400 }
  0x19   : > { %304 = vst.msk [vmem:[#allocation2 + $0x8] sm:$0xf] %vm303_vm3, %v1760_v7  ;;  %v307_v9 = vadd.s32 8, %v306_v8  ;;  %v308_v10 = vand.u32 3, %v306_v8 }
  0x1b   : > { %v309_v11 = vand.u32 3, %v307_v9  ;;  %vm310_vm4 = vcmp.ge.s32.totalorder %v308_v10, 1  ;;  %vm312_vm5 = vcmp.le.s32.totalorder %v308_v10, 2 }
  0x1c   : > { %vm316_vm6 = vmpackc.low %vm310_vm4, %vm310_vm4 }
  0x1d   : > { %vm311_vm7 = vcmp.ge.s32.totalorder %v309_v11, 1  ;;  %vm313_vm8 = vcmp.le.s32.totalorder %v309_v11, 2  ;;  %v318_v13 = vsel %vm316_vm6, 65537, %v2094_v12  ;;  %vm466_vm9 = vmpackc.low %vm312_vm5, %vm312_vm5  ;;  %vm487_vm5 = vsmask.f32 5376 }
  0x1e   : > { %vm317_vm10 = vmpackc.low %vm311_vm7, %vm311_vm7  ;;  %v468_v14 = vsel %vm466_vm9, 65537, %v2094_v12  ;;  %vm568_vm6 = vsmask.f32 4352 }
  0x1f   : > { %v319_v15 = vsel %vm317_vm10, 65537, %v2094_v12  ;;  %vm467_vm11 = vmpackc.low %vm313_vm8, %vm313_vm8  ;;  %v336_v18 = vld [vmem:[#allocation2] sm:$0xfc]  ;;  %vm644_vm8 = vcmask 1043456   ;;  %vm2422_vm10 = vsmask.f32 3328 }
  0x20   : > { %v315_v16 = vld [vmem:[#allocation2 + $0x8] sm:$0x3]  ;;  %v1761_v17 = vcombine.low %v318_v13, %v319_v15  ;;  %v469_v19 = vsel %vm467_vm11, 65537, %v2094_v12  ;;  %v343_v20 = vrot.slane %v336_v18, 2  ;;  %v314_v34 = vld [vmem:[#allocation2] sm:$0xfe] }
  0x21   : > { %v344_v21 = vrot.slane %v315_v16, 2  ;;  %v1768_v22 = vcombine.low %v468_v14, %v469_v19  ;;  %v465_v36 = vld [vmem:[#allocation2 + $0x8] sm:$0x7]  ;;  %v557_v62 = vld [vmem:[#allocation2] sm:$0xf8]  ;;  %v2068_v14 = vld [vmem:[%s2415_s1 + $0x18] sm:$0xff]  }
  0x22   : > { %v2174_v24 = vshrl.u32 %v1761_v17, 16  ;;  %v2176_v25 = vshll.u32 %v1761_v17, 16  ;;  %v558_v1 = vld [vmem:[#allocation2 + $0x8] sm:$0xf]  ;;  %vm791_vm11 = vsmask.f32 2304 }
  0x23   : > { %v345_v26 = vsel %vm342_vm12, %v343_v20, %v344_v21  ;;  %v2179_v27 = vshrl.u32 %v1768_v22, 16  ;;  %v2181_v28 = vshll.u32 %v1768_v22, 16 }
  0x24   : > { %v326_v29 = vrot.slane %v2174_v24, 6  ;;  %v329_v30 = vrot.slane %v2176_v25, 7  ;;  %1882 = vmatmul.mubr.msk.bf16.vlgmr.msra.gmra.mrb[0].mxu0 %vm352_vm13, %v345_v26  ;;  %v559_v44 = vrot.slane %v2174_v24, 4  ;;  %v560_v45 = vrot.slane %v2176_v25, 5 }
  0x25   : > { %v476_v31 = vrot.slane %v2179_v27, 5  ;;  %v479_v32 = vrot.slane %v2181_v28, 6  ;;  %1886 = vmatpush3.bf16.msra.mxu0 %v2066_v23  ;;  %1887 = vmatprep.mubr.msk.bf16.mxu0 %vm2093_vm2, %v2092_v3  ;;  %v924_v2 = vrot.slane %v2179_v27, 1  ;;  %v925_v6 = vrot.slane %v2181_v28, 2 }
  0x26   : > { %v2190_v33 = vor.u32 %v329_v30, %v326_v29  ;;  %1891 = vmatprep.subr.bf16.mxu0 %v2092_v3  ;;  %v2210_v58 = vor.u32 %v560_v45, %v559_v44  ;;  %v701_v26 = vrot.slane %v2179_v27, 3  ;;  %v702_v29 = vrot.slane %v2181_v28, 4  ;;  %v700_v27 = vld [vmem:[#allocation2 + $0x8] sm:$0x1f] }
  0x27   : > { %v2193_v35 = vor.u32 %v479_v32, %v476_v31  ;;  %v2224_v11 = vor.u32 %v925_v6, %v924_v2  ;;  %v2069_v31 = vld [vmem:[%s2415_s1 + $0x20] sm:$0xff]  }
  0x28   : > { %vm331_vm14 = vcmp.ne.s16.totalorder %v2190_v33, 0  ;;  %vm562_vm4 = vcmp.ne.s16.totalorder %v2210_v58, 0  ;;  %v2240_v32 = vor.u32 %v702_v29, %v701_v26 }
  0x29   : > { %v333_v37 = vsel %vm331_vm14, %v315_v16, 0  ;;  %vm481_vm15 = vcmp.ne.s16.totalorder %v2193_v35, 0  ;;  %v332_v38 = vsel %vm331_vm14, %v314_v34, 0  ;;  %v563_v9 = vsel %vm562_vm4, %v557_v62, 0  ;;  %v638_v34 = vld [vmem:[#allocation2] sm:$0xf0] }
  0x2a   : > { %v407_v39 = vshrl.u32 %v333_v37, 16  ;;  %v410_v40 = vshll.u32 %v333_v37, 16  ;;  %v399_v41 = vshrl.u32 %v332_v38, 16  ;;  %v482_v42 = vsel %vm481_vm15, %v336_v18, 0 }
  0x2b   : > { %v402_v43 = vshll.u32 %v332_v38, 16  ;;  %v483_v49 = vsel %vm481_vm15, %v465_v36, 0  ;;  %v489_v51 = vshrl.u32 %v482_v42, 16  ;;  %v492_v52 = vshll.u32 %v482_v42, 16  ;;  %v2070_v42 = vld [vmem:[%s2415_s1 + $0x28] sm:$0xff]  }
  0x2c   : > { %v409_v46 = vrot.slane %v407_v39, 1  ;;  %v412_v47 = vrot.slane %v410_v40, 2  ;;  %v401_v48 = vrot.slane %v399_v41, 1  ;;  %v497_v56 = vshrl.u32 %v483_v49, 16 }
  0x2d   : > { %v404_v50 = vrot.slane %v402_v43, 2  ;;  %v500_v57 = vshll.u32 %v483_v49, 16  ;;  %v491_v60 = vrot.slane %v489_v51, 2  ;;  %v494_v61 = vrot.slane %v492_v52, 3  ;;  %v781_v51 = vld [vmem:[#allocation2 + $0x8] sm:$0x3f] }
  0x2e   : > { %v413_v53 = vor.u32 %v412_v47, %v409_v46  ;;  %v499_v63 = vrot.slane %v497_v56, 2  ;;  %v564_v10 = vsel %vm562_vm4, %v558_v1, 0  ;;  %v570_v12 = vshrl.u32 %v563_v9, 16 }
  0x2f   : > { %v405_v55 = vor.u32 %v404_v50, %v401_v48  ;;  %v502_v0 = vrot.slane %v500_v57, 3  ;;  %v495_v7 = vor.u32 %v494_v61, %v491_v60  ;;  %v573_v15 = vshll.u32 %v563_v9, 16  ;;  %v780_v50 = vld [vmem:[#allocation2] sm:$0xe0]  ;;  %v2072_v9 = vld [vmem:[%s2415_s1 + $0x38] sm:$0xff]  }
  0x30   : > { %v578_v16 = vshrl.u32 %v564_v10, 16  ;;  %v581_v17 = vshll.u32 %v564_v10, 16  ;;  %v572_v18 = vrot.slane %v570_v12, 3  ;;  %vm704_vm7 = vcmp.ne.s16.totalorder %v2240_v32, 0  ;;  %v861_v10 = vld [vmem:[#allocation2] sm:$0xc0] }
  0x31   : > { %v414_v59 = vsel %vm397_vm0, %v405_v55, %v413_v53  ;;  %v503_v8 = vor.u32 %v502_v0, %v499_v63  ;;  %v575_v19 = vrot.slane %v573_v15, 4  ;;  %v645_v28 = vrot.slane %v638_v34, 4  ;;  %v923_v12 = vld [vmem:[#allocation2 + $0x8] sm:$0x7f] }
  0x32   : > { %1888 = vmatmul.mubr.msk.bf16.vlgmr.msra.gmra.mrb[0].mxu0 %vm352_vm13, %v414_v59  ;;  %v580_v20 = vrot.slane %v578_v16, 3  ;;  %v583_v21 = vrot.slane %v581_v17, 4  ;;  %v646_v36 = vrot.slane %v558_v1, 4  ;;  %v705_v37 = vsel %vm704_vm7, %v638_v34, 0  ;;  %v2071_v59 = vld [vmem:[%s2415_s1 + $0x30] sm:$0xff]  }
  0x33   : > { %1892 = vmatpush3.bf16.msra.mxu0 %v2067_v54  ;;  %1893 = vmatprep.mubr.msk.bf16.mxu0 %vm2093_vm2, %v2092_v3  ;;  %v504_v13 = vsel %vm487_vm5, %v495_v7, %v503_v8  ;;  %v576_v22 = vor.u32 %v575_v19, %v572_v18  ;;  %v706_v38 = vsel %vm704_vm7, %v700_v27, 0  ;;  %v782_v39 = vrot.slane %v2174_v24, 2  ;;  %v2073_v18 = vld [vmem:[%s2415_s1 + $0x40] sm:$0xff]  }
  0x34   : > { %1897 = vmatprep.subr.bf16.mxu0 %v2092_v3  ;;  %v584_v23 = vor.u32 %v583_v21, %v580_v20  ;;  %v783_v40 = vrot.slane %v2176_v25, 3  ;;  %v647_v41 = vsel %vm644_vm8, %v645_v28, %v646_v36  ;;  %v712_v43 = vshrl.u32 %v705_v37, 16  ;;  %v2074_v28 = vld [vmem:[%s2418_s4 + $0x8] sm:$0xff]   ;;  %v1797_v36 = vld [vmem:[%s2416_s2] ss:$0 sm:$0xff] }
  0x35   : > { %v715_v44 = vshll.u32 %v705_v37, 16  ;;  %v720_v45 = vshrl.u32 %v706_v38, 16  ;;  %v723_v46 = vshll.u32 %v706_v38, 16  ;;  %1934 = vmatpush3.bf16.msra.mxu1 %v2074_v28  ;;  %v1798_v38 = vld [vmem:[%s2417_s3] ss:$0 sm:$0xff] }
  0x36   : > { %v585_v30 = vsel %vm568_vm6, %v576_v22, %v584_v23  ;;  %v2257_v47 = vor.u32 %v783_v40, %v782_v39  ;;  %v714_v24 = vrot.slane %v712_v43, 4  ;;  %1939 = vmatprep.subr.bf16.mxu1 %v2092_v3 }
  0x37   : > { %v717_v25 = vrot.slane %v715_v44, 5  ;;  %v722_v48 = vrot.slane %v720_v45, 4  ;;  %v725_v49 = vrot.slane %v723_v46, 5 }
  0x38   : > { %vm2423_vm9 = vcmp.ne.s16.totalorder %v2257_v47, 0 }
  0x39   : > { %v718_v52 = vor.u32 %v717_v25, %v714_v24  ;;  %v726_v53 = vor.u32 %v725_v49, %v722_v48  ;;  %v786_v54 = vsel %vm2423_vm9, %v780_v50, 0  ;;  %v787_v55 = vsel %vm2423_vm9, %v781_v51, 0 }
  0x3a   : > { %v793_v56 = vshrl.u32 %v786_v54, 16  ;;  %v796_v60 = vshll.u32 %v786_v54, 16  ;;  %v801_v61 = vshrl.u32 %v787_v55, 16  ;;  %v804_v62 = vshll.u32 %v787_v55, 16  ;;  %v2075_v55 = vld [vmem:[%s2418_s4] sm:$0xff]  }
  0x3b   : > { %v727_v57 = vsel %vm2422_vm10, %v718_v52, %v726_v53  ;;  %vm927_vm10 = vcmp.ne.s16.totalorder %v2224_v11, 0  ;;  %vm2424_vm9 = vcmask 1041408  }
  0x3c   : > { %v795_v63 = vrot.slane %v793_v56, 5  ;;  %v798_v0 = vrot.slane %v796_v60, 6  ;;  %v803_v1 = vrot.slane %v801_v61, 5  ;;  %v806_v2 = vrot.slane %v804_v62, 6 }
  0x3d   : > { %v928_v15 = vsel %vm927_vm10, %v861_v10, 0  ;;  %v929_v16 = vsel %vm927_vm10, %v923_v12, 0 }
  0x3e   : > { %1894 = vmatmul.mubr.msk.bf16.vlgmr.msra.gmra.mrb[0].mxu0 %vm352_vm13, %v504_v13  ;;  %v799_v6 = vor.u32 %v798_v0, %v795_v63  ;;  %v807_v7 = vor.u32 %v806_v2, %v803_v1  ;;  %v868_v13 = vrot.slane %v861_v10, 6  ;;  %v935_v19 = vshrl.u32 %v928_v15, 16  ;;  %v2076_v10 = vld [vmem:[%s2418_s4 + $0x10] sm:$0xff]  }
  0x3f   : > { %1898 = vmatpush3.bf16.msra.mxu0 %v2068_v14  ;;  %1899 = vmatprep.mubr.msk.bf16.mxu0 %vm2093_vm2, %v2092_v3  ;;  %v869_v14 = vrot.slane %v781_v51, 6  ;;  %v938_v20 = vshll.u32 %v928_v15, 16  ;;  %v943_v21 = vshrl.u32 %v929_v16, 16  ;;  %v946_v22 = vshll.u32 %v929_v16, 16 }
  0x40   : > { %1903 = vmatprep.subr.bf16.mxu0 %v2092_v3  ;;  %v808_v8 = vsel %vm791_vm11, %v799_v6, %v807_v7  ;;  %v937_v23 = vrot.slane %v935_v19, 6 }
  0x41   : > { %v870_v17 = vsel %vm2424_vm9, %v868_v13, %v869_v14  ;;  %v940_v26 = vrot.slane %v938_v20, 7  ;;  %v945_v29 = vrot.slane %v943_v21, 6  ;;  %vm933_vm9 = vsmask.f32 1280 }
  0x4a   : > { %1900 = vmatmul.mubr.msk.bf16.vlgmr.msra.gmra.mrb[0].mxu0 %vm352_vm13, %v585_v30  ;;  %v948_v30 = vrot.slane %v946_v22, 7 }
  0x4b   : > { %1904 = vmatpush3.bf16.msra.mxu0 %v2069_v31  ;;  %1905 = vmatprep.mubr.msk.bf16.mxu0 %vm2093_vm2, %v2092_v3  ;;  %v941_v31 = vor.u32 %v940_v26, %v937_v23 }
  0x4c   : > { %1909 = vmatprep.subr.bf16.mxu0 %v2092_v3  ;;  %v949_v34 = vor.u32 %v948_v30, %v945_v29  ;;  %v2077_v30 = vld [vmem:[%s2418_s4 + $0x18] sm:$0xff]  }
  0x4e   : > { %v950_v27 = vsel %vm933_vm9, %v941_v31, %v949_v34 }
  0x56   : > { %1906 = vmatmul.mubr.msk.bf16.vlgmr.msra.gmra.mrb[0].mxu0 %vm352_vm13, %v647_v41 }
  0x57   : > { %1910 = vmatpush3.bf16.msra.mxu0 %v2070_v42  ;;  %1911 = vmatprep.mubr.msk.bf16.mxu0 %vm2093_vm2, %v2092_v3 }
  0x58   : > { %1915 = vmatprep.subr.bf16.mxu0 %v2092_v3 }
  0x62   : > { %1912 = vmatmul.mubr.msk.bf16.vlgmr.msra.gmra.mrb[0].mxu0 %vm352_vm13, %v727_v57 }
  0x63   : > { %1916 = vmatpush3.bf16.msra.mxu0 %v2071_v59  ;;  %1917 = vmatprep.mubr.msk.bf16.mxu0 %vm2093_vm2, %v2092_v3 }
  0x64   : > { %1921 = vmatprep.subr.bf16.mxu0 %v2092_v3 }
  0x6e   : > { %1918 = vmatmul.mubr.msk.bf16.vlgmr.msra.gmra.mrb[0].mxu0 %vm352_vm13, %v808_v8 }
  0x6f   : > { %1922 = vmatpush3.bf16.msra.mxu0 %v2072_v9  ;;  %1923 = vmatprep.mubr.msk.bf16.mxu0 %vm2093_vm2, %v2092_v3 }
  0x70   : > { %1927 = vmatprep.subr.bf16.mxu0 %v2092_v3 }
  0x7a   : > { %1924 = vmatmul.mubr.msk.bf16.vlgmr.msra.gmra.mrb[0].mxu0 %vm352_vm13, %v870_v17 }
  0x7b   : > { %1928 = vmatpush3.bf16.msra.mxu0 %v2073_v18  ;;  %1929 = vmatprep.mubr.msk.bf16.mxu0 %vm2093_vm2, %v2092_v3 }
  0x86   : > { %1930 = vmatmul.mubr.msk.bf16.vlgmr.msra.gmra.mrb[0].mxu0 %vm352_vm13, %v950_v27 }
 0x159   : > { %v994_v37 = vpop.f32.mrb[0].mxu0 }
 0x15a   : > { %v1010_v39 = vmul.f32 %v1797_v36, %v994_v37  ;;  %v1931_v40 = vpop.f32.mrb[1].mxu0 }
 0x15b   : > { %v997_v41 = vpop.f32.mrb[2].mxu0 }
 0x15c   : > { %v1019_v42 = vadd.f32 %v1798_v38, %v1010_v39  ;;  %v1011_v43 = vmul.f32 %v1797_v36, %v997_v41  ;;  %v1932_v44 = vpop.f32.mrb[3].mxu0 }
 0x15e   : > { %v1020_v45 = vadd.f32 %v1798_v38, %v1011_v43  ;;  %v1021_v46 = vmax.f32 %v1019_v42, 0.0  ;;  %v2078_v42 = vld [vmem:[%s2418_s4 + $0x20] sm:$0xff]  }
 0x160   : > { %v1022_v24 = vmax.f32 %v1020_v45, 0.0 }
 0x162   : > { %v1023_v25 = vpack.c.bf16 %v1022_v24, %v1021_v46 }
 0x164   : > { %v1025_v48 = vrot.slane %v1023_v25, 4 }
 0x166   : > { %1027 = vst.msk [vmem:[#allocation3] sm:$0xf0] %vm301_vm1, %v1025_v48  ;;  %vm2425_vm1 = vcmp.ne.s16.totalorder %v2257_v47, 0 }
 0x167   : > { %1028 = vst.msk [vmem:[#allocation3 + $0x8] sm:$0xf] %vm303_vm3, %v1025_v48 }
 0x16d   : > { %v1035_v50 = vld [vmem:[#allocation3] sm:$0xfc] }
 0x16e   : > { %v1030_v49 = vld [vmem:[#allocation3 + $0x8] sm:$0x3]  ;;  %v1029_v51 = vld [vmem:[#allocation3] sm:$0xfe]  ;;  %v1041_v53 = vrot.slane %v1035_v50, 2  ;;  %v1162_v7 = vsel %vm481_vm15, %v1035_v50, 0 }
 0x16f   : > { %v1032_v52 = vsel %vm331_vm14, %v1030_v49, 0  ;;  %v1042_v54 = vrot.slane %v1030_v49, 2  ;;  %v1031_v60 = vsel %vm331_vm14, %v1029_v51, 0  ;;  %v1161_v6 = vld [vmem:[#allocation3 + $0x8] sm:$0x7]  ;;  %v1168_v12 = vshrl.u32 %v1162_v7, 16 }
 0x170   : > { %v1103_v57 = vshrl.u32 %v1032_v52, 16  ;;  %v1106_v59 = vshll.u32 %v1032_v52, 16  ;;  %v1095_v61 = vshrl.u32 %v1031_v60, 16  ;;  %v1098_v62 = vshll.u32 %v1031_v60, 16  ;;  %v1236_v20 = vld [vmem:[#allocation3] sm:$0xf8] }
 0x171   : > { %v1043_v56 = vsel %vm342_vm12, %v1041_v53, %v1042_v54  ;;  %v1163_v9 = vsel %vm481_vm15, %v1161_v6, 0  ;;  %v1171_v13 = vshll.u32 %v1162_v7, 16  ;;  %v1170_v35 = vrot.slane %v1168_v12, 2  ;;  %v1237_v21 = vld [vmem:[#allocation3 + $0x8] sm:$0xf]  ;;  %v2079_v49 = vld [vmem:[%s2418_s4 + $0x28] sm:$0xff]   ;;  %vm2426_vm12 = vmmov %vm2425_vm1 }
 0x172   : > { %1936 = vmatmul.mubr.msk.bf16.vlgmr.msra.gmra.mrb[0].mxu1 %vm352_vm13, %v1043_v56  ;;  %v1105_v63 = vrot.slane %v1103_v57, 1  ;;  %v1108_v0 = vrot.slane %v1106_v59, 2  ;;  %v1097_v1 = vrot.slane %v1095_v61, 1  ;;  %v1100_v2 = vrot.slane %v1098_v62, 2  ;;  %v1312_v44 = vld [vmem:[#allocation3] sm:$0xf0] }
 0x173   : > { %1940 = vmatpush3.bf16.msra.mxu1 %v2075_v55  ;;  %1941 = vmatprep.mubr.msk.bf16.mxu1 %vm2093_vm2, %v2092_v3  ;;  %v1176_v15 = vshrl.u32 %v1163_v9, 16  ;;  %v1179_v16 = vshll.u32 %v1163_v9, 16  ;;  %v1173_v17 = vrot.slane %v1171_v13, 3  ;;  %v1238_v26 = vsel %vm562_vm4, %v1236_v20, 0  ;;  %v1373_v45 = vld [vmem:[#allocation3 + $0x8] sm:$0x1f] }
 0x174   : > { %1945 = vmatprep.subr.bf16.mxu1 %v2092_v3  ;;  %v1101_v33 = vor.u32 %v1100_v2, %v1097_v1  ;;  %v1109_v8 = vor.u32 %v1108_v0, %v1105_v63  ;;  %v1239_v29 = vsel %vm562_vm4, %v1237_v21, 0  ;;  %v1244_v31 = vshrl.u32 %v1238_v26, 16  ;;  %v1448_v59 = vld [vmem:[#allocation3] sm:$0xe0]  ;;  %v1449_v60 = vld [vmem:[#allocation3 + $0x8] sm:$0x3f] }
 0x175   : > { %v1178_v18 = vrot.slane %v1176_v15, 2  ;;  %v1181_v19 = vrot.slane %v1179_v16, 3  ;;  %v1174_v22 = vor.u32 %v1173_v17, %v1170_v35  ;;  %v1247_v27 = vshll.u32 %v1238_v26, 16  ;;  %v2080_v1 = vld [vmem:[%s2418_s4 + $0x30] sm:$0xff]   ;;  %v2081_v15 = vld [vmem:[%s2418_s4 + $0x38] sm:$0xff]  }
 0x176   : > { %v1110_v14 = vsel %vm397_vm0, %v1101_v33, %v1109_v8  ;;  %v1252_v28 = vshrl.u32 %v1239_v29, 16  ;;  %v1255_v36 = vshll.u32 %v1239_v29, 16  ;;  %v1246_v58 = vrot.slane %v1244_v31, 3  ;;  %v1524_v35 = vld [vmem:[#allocation3] sm:$0xc0] }
 0x177   : > { %v1182_v23 = vor.u32 %v1181_v19, %v1178_v18  ;;  %v1249_v37 = vrot.slane %v1247_v27, 4  ;;  %v1318_v46 = vrot.slane %v1312_v44, 4  ;;  %v1319_v24 = vrot.slane %v1237_v21, 4  ;;  %v1585_v17 = vld [vmem:[#allocation3 + $0x8] sm:$0x7f] }
 0x178   : > { %v1254_v38 = vrot.slane %v1252_v28, 3  ;;  %v1257_v39 = vrot.slane %v1255_v36, 4  ;;  %v1374_v25 = vsel %vm704_vm7, %v1312_v44, 0  ;;  %v1375_v48 = vsel %vm704_vm7, %v1373_v45, 0 }
 0x179   : > { %v1183_v34 = vsel %vm487_vm5, %v1174_v22, %v1182_v23  ;;  %v1250_v40 = vor.u32 %v1249_v37, %v1246_v58  ;;  %v1320_v50 = vsel %vm644_vm8, %v1318_v46, %v1319_v24  ;;  %v1380_v51 = vshrl.u32 %v1374_v25, 16  ;;  %v2082_v22 = vld [vmem:[%s2418_s4 + $0x40] sm:$0xff]  }
 0x17a   : > { %v1258_v41 = vor.u32 %v1257_v39, %v1254_v38  ;;  %v1383_v52 = vshll.u32 %v1374_v25, 16  ;;  %v1388_v53 = vshrl.u32 %v1375_v48, 16  ;;  %v1391_v54 = vshll.u32 %v1375_v48, 16  ;;  %v1833_v38 = vld [vmem:[%s2419_s5] ss:$0 sm:$0xff] }
 0x17b   : > { %v1382_v32 = vrot.slane %v1380_v51, 4  ;;  %v1450_v63 = vsel %vm2425_vm1, %v1448_v59, 0  ;;  %v1451_v0 = vsel %vm2426_vm12, %v1449_v60, 0  ;;  %vm2427_vm14 = vsmask.f32 3328 }
 0x17c   : > { %v1259_v43 = vsel %vm568_vm6, %v1250_v40, %v1258_v41  ;;  %v1385_v55 = vrot.slane %v1383_v52, 5  ;;  %v1390_v56 = vrot.slane %v1388_v53, 4  ;;  %v1393_v57 = vrot.slane %v1391_v54, 5 }
 0x17d   : > { %v1456_v2 = vshrl.u32 %v1450_v63, 16  ;;  %v1459_v7 = vshll.u32 %v1450_v63, 16  ;;  %v1464_v33 = vshrl.u32 %v1451_v0, 16  ;;  %v1467_v8 = vshll.u32 %v1451_v0, 16 }
 0x17e   : > { %1942 = vmatmul.mubr.msk.bf16.vlgmr.msra.gmra.mrb[0].mxu1 %vm352_vm13, %v1110_v14  ;;  %v1386_v61 = vor.u32 %v1385_v55, %v1382_v32  ;;  %v1394_v62 = vor.u32 %v1393_v57, %v1390_v56  ;;  %v1530_v18 = vrot.slane %v1524_v35, 6  ;;  %v1531_v19 = vrot.slane %v1449_v60, 6 }
 0x17f   : > { %1946 = vmatpush3.bf16.msra.mxu1 %v2076_v10  ;;  %1947 = vmatprep.mubr.msk.bf16.mxu1 %vm2093_vm2, %v2092_v3  ;;  %v1458_v47 = vrot.slane %v1456_v2, 5  ;;  %v1461_v9 = vrot.slane %v1459_v7, 6  ;;  %v1466_v10 = vrot.slane %v1464_v33, 5  ;;  %v1469_v12 = vrot.slane %v1467_v8, 6 }
 0x180   : > { %1951 = vmatprep.subr.bf16.mxu1 %v2092_v3  ;;  %v1395_v6 = vsel %vm2427_vm14, %v1386_v61, %v1394_v62  ;;  %v1586_v20 = vsel %vm927_vm10, %v1524_v35, 0  ;;  %v1587_v21 = vsel %vm927_vm10, %v1585_v17, 0  ;;  %vm2428_vm15 = vcmask 1041408  }
 0x181   : > { %v1462_v13 = vor.u32 %v1461_v9, %v1458_v47  ;;  %v1470_v14 = vor.u32 %v1469_v12, %v1466_v10  ;;  %v1532_v23 = vsel %vm2428_vm15, %v1530_v18, %v1531_v19  ;;  %v1592_v26 = vshrl.u32 %v1586_v20, 16 }
 0x182   : > { %v1595_v29 = vshll.u32 %v1586_v20, 16  ;;  %v1603_v31 = vshll.u32 %v1587_v21, 16  ;;  %v1678_v41 = vunpack.c.l.bf16 %v2155_v4  ;;  %v1679_v46 = vunpack.c.l.bf16 %v2157_v5 }
 0x183   : > { %v1471_v16 = vsel %vm791_vm11, %v1462_v13, %v1470_v14 }
 0x184   : > { %v1597_v27 = vrot.slane %v1595_v29, 7  ;;  %v1605_v28 = vrot.slane %v1603_v31, 7 }
 0x18a   : > { %1948 = vmatmul.mubr.msk.bf16.vlgmr.msra.gmra.mrb[0].mxu1 %vm352_vm13, %v1183_v34  ;;  %v1594_v34 = vrot.slane %v1592_v26, 6 }
 0x18b   : > { %1952 = vmatpush3.bf16.msra.mxu1 %v2077_v30  ;;  %1953 = vmatprep.mubr.msk.bf16.mxu1 %vm2093_vm2, %v2092_v3  ;;  %v1600_v30 = vshrl.u32 %v1587_v21, 16 }
 0x18c   : > { %1957 = vmatprep.subr.bf16.mxu1 %v2092_v3  ;;  %v1598_v36 = vor.u32 %v1597_v27, %v1594_v34 }
 0x18d   : > { %v1602_v11 = vrot.slane %v1600_v30, 6 }
 0x18f   : > { %v1606_v58 = vor.u32 %v1605_v28, %v1602_v11 }
 0x191   : > { %v1607_v37 = vsel %vm933_vm9, %v1598_v36, %v1606_v58 }
 0x196   : > { %1954 = vmatmul.mubr.msk.bf16.vlgmr.msra.gmra.mrb[0].mxu1 %vm352_vm13, %v1259_v43 }
 0x197   : > { %1958 = vmatpush3.bf16.msra.mxu1 %v2078_v42  ;;  %1959 = vmatprep.mubr.msk.bf16.mxu1 %vm2093_vm2, %v2092_v3 }
 0x198   : > { %1963 = vmatprep.subr.bf16.mxu1 %v2092_v3 }
 0x1a2   : > { %1960 = vmatmul.mubr.msk.bf16.vlgmr.msra.gmra.mrb[0].mxu1 %vm352_vm13, %v1320_v50 }
 0x1a3   : > { %1964 = vmatpush3.bf16.msra.mxu1 %v2079_v49  ;;  %1965 = vmatprep.mubr.msk.bf16.mxu1 %vm2093_vm2, %v2092_v3 }
 0x1a4   : > { %1969 = vmatprep.subr.bf16.mxu1 %v2092_v3 }
 0x1ae   : > { %1966 = vmatmul.mubr.msk.bf16.vlgmr.msra.gmra.mrb[0].mxu1 %vm352_vm13, %v1395_v6 }
 0x1af   : > { %1970 = vmatpush3.bf16.msra.mxu1 %v2080_v1  ;;  %1971 = vmatprep.mubr.msk.bf16.mxu1 %vm2093_vm2, %v2092_v3 }
 0x1b0   : > { %1975 = vmatprep.subr.bf16.mxu1 %v2092_v3 }
 0x1ba   : > { %1972 = vmatmul.mubr.msk.bf16.vlgmr.msra.gmra.mrb[0].mxu1 %vm352_vm13, %v1471_v16 }
 0x1bb   : > { %1976 = vmatpush3.bf16.msra.mxu1 %v2081_v15  ;;  %1977 = vmatprep.mubr.msk.bf16.mxu1 %vm2093_vm2, %v2092_v3 }
 0x1bc   : > { %1981 = vmatprep.subr.bf16.mxu1 %v2092_v3 }
 0x1c6   : > { %1978 = vmatmul.mubr.msk.bf16.vlgmr.msra.gmra.mrb[0].mxu1 %vm352_vm13, %v1532_v23 }
 0x1c7   : > { %1982 = vmatpush3.bf16.msra.mxu1 %v2082_v22  ;;  %1983 = vmatprep.mubr.msk.bf16.mxu1 %vm2093_vm2, %v2092_v3  ;;  %v1834_v3 = vld [vmem:[%s2420_s6] ss:$0 sm:$0xff] }
 0x1d2   : > { %1984 = vmatmul.mubr.msk.bf16.vlgmr.msra.gmra.mrb[0].mxu1 %vm352_vm13, %v1607_v37 }
 0x2a5   : > { %v1651_v39 = vpop.f32.mrb[0].mxu1 }
 0x2a6   : > { %v1667_v40 = vmul.f32 %v1833_v38, %v1651_v39  ;;  %v1985_v42 = vpop.f32.mrb[1].mxu1 }
 0x2a7   : > { %v1654_v43 = vpop.f32.mrb[2].mxu1 }
 0x2a8   : > { %v1676_v44 = vadd.f32 %v1834_v3, %v1667_v40  ;;  %v1668_v45 = vmul.f32 %v1833_v38, %v1654_v43  ;;  %v1986_v24 = vpop.f32.mrb[3].mxu1 }
 0x2aa   : > { %v1680_v25 = vadd.f32 %v1678_v41, %v1676_v44  ;;  %v1677_v48 = vadd.f32 %v1834_v3, %v1668_v45 }
 0x2ac   : > { %v1682_v49 = vmax.f32 %v1680_v25, 0.0  ;;  %v1681_v50 = vadd.f32 %v1679_v46, %v1677_v48 }
 0x2ae   : > { %v1841_v51 = vpack.c.bf16 %v1682_v49, %v1682_v49  ;;  %v1683_v52 = vmax.f32 %v1681_v50, 0.0 }
 0x2b0   : > { %1692 = vst.msk [vmem:[%s2149_s10] sm:$0xf] %vm303_vm3, %v1841_v51  ;;  %v1842_v53 = vpack.c.bf16 %v1683_v52, %v1683_v52 }
 0x2b2   : > { %1693 = vst.msk [vmem:[%s2149_s10 + $0x4] sm:$0xf] %vm303_vm3, %v1842_v53 }
 0x2b3 PF: > { %s17_s24 = sadd.s32 1, %s2089_s24  }
 0x2b4   : > { %p14_p5 = scmp.ge.s32.totalorder %s17_s24, 4  }
 0x2b6   :  { %16 = sbr.rel (!%p14_p5) target bundleno = 1 (0x1), region = 98 }

// kernel: _lambda_.17
= control target key start
LH: loop header
LB: loop body
LE: loop exit
PB: predicated region body
PF: predicated region fallthrough
CT: control target
= control target key end

     0   :  { %s891_s17 = smov 0   ;;  %s991_s0 = inlined_call_operand.vmem [shape: bf16[2,1,144], index: 0, kind: input, shape index: {}]   ;;  %s992_s1 = inlined_call_operand.vmem [shape: bf16[2,1,16], index: 1, kind: input, shape index: {}]   ;;  %s993_s2 = inlined_call_operand.vmem [shape: bf16[144,32], index: 2, kind: input, shape index: {}]   ;;  %s994_s3 = inlined_call_operand.vmem [shape: f32[1,32], index: 3, kind: input, shape index: {}]   ;;  %s995_s4 = inlined_call_operand.vmem [shape: f32[1,32], index: 4, kind: input, shape index: {}]   ;;  %s996_s5 = inlined_call_operand.vmem [shape: bf16[3,3,32,32], index: 5, kind: input, shape index: {}]   ;;  %s997_s6 = inlined_call_operand.vmem [shape: f32[1,32], index: 6, kind: input, shape index: {}]   ;;  %s998_s7 = inlined_call_operand.vmem [shape: f32[1,32], index: 7, kind: input, shape index: {}]   ;;  %s999_s8 = inlined_call_operand.vmem [shape: bf16[16,32], index: 8, kind: input, shape index: {}]   ;;  %s1000_s9 = inlined_call_operand.vmem [shape: f32[1,32], index: 9, kind: input, shape index: {}]   ;;  %s1001_s10 = inlined_call_operand.vmem [shape: f32[1,32], index: 10, kind: input, shape index: {}]   ;;  %s1002_s11 = inlined_call_operand.vmem [shape: bf16[2,1,32], index: 11, kind: output, shape index: {}]  }
   0x1 LB: > { %s745_s18 = sadd.s32 4294967295, %s824_s17   ;;  %p749_p0 = scmp.ge.s32.totalorder %s824_s17, 1  ;;  %s824_s17 = sphi %s891_s17, %s21_s17  }
   0x2   : > { %p344_p1 = scmp.lt.s32.totalorder %s824_s17, 3 }
   0x4   : > { %p345_p2 = pnand %p749_p0, %p344_p1 }
   0x5   : > { %p384_p3 = scmp.lt.s32.totalorder (!%p345_p2), %s745_s18, 1  ;;  %p751_p4 = scmp.ne.s32.totalorder (!%p345_p2), %s745_s18, 0 }
   0x6   : > { %348 = sbr.rel (%p345_p2) target bundleno = 519 (0x207), region = 64 }
   0xd   : > { %s899_s19 = scalar_select %p384_p3, %s745_s18, 1 }
   0xe   : > { %398 = sbr.rel (%p751_p4) target bundleno = 21 (0x15), region = 68  ;;  %vm399_vm0 = vcmask (!%p751_p4), 257024   ;;  %vm402_vm1 = vcmask (!%p751_p4), 253952   ;;  %vm403_vm2 = vsmask.f32 (!%p751_p4), 256  ;;  %v826_v0 = vmov (!%p751_p4), 0  }
   0xf   : > { %s750_s20 = sshll.u32 %s899_s19, 1  ;;  %s390_s23 = scalar_lea.vmem %s992_s1, %s899_s19  ;;  %401 = vst.msk [vmem:[#allocation2 + $0x4] sm:$0xf] (!%p751_p4), %vm399_vm0, %v826_v0  ;;  %vm404_vm3 = vmand (!%p751_p4), %vm402_vm1, %vm403_vm2  ;;  %v405_v1 = vld [vmem:[#allocation2 + $0x8] sm:$0x1] (!%p751_p4) }
  0x10   : > { %s387_s26 = scalar_lea.vmem %s991_s0, %s750_s20  ;;  %s913_s29 = scalar_lea.vmem %s1002_s11, %s899_s19  ;;  %v406_v2 = vsel (!%p751_p4), %vm404_vm3, 0, %v405_v1 }
  0x11   : > { %407 = vst [vmem:[#allocation2 + $0x8] sm:$0x1] (!%p751_p4), %v406_v2 }
  0x15 PF: > { %v806_v3 = vld [vmem:[%s993_s2] sm:$0xff]   ;;  %v827_v4 = vmov 0   ;;  %v807_v5 = vld [vmem:[%s993_s2 + $0x8] sm:$0xff]   ;;  %v439_v6 = vlaneseq  ;;  %v808_v7 = vld [vmem:[%s993_s2 + $0x10] sm:$0xff]   ;;  %v828_v11 = vmov 1966171168  }
  0x16   : > { %509 = vmatprep.subr.bf16.mxu0 %v827_v4  ;;  %v809_v8 = vld [vmem:[%s993_s2 + $0x18] sm:$0xff]   ;;  %v752_v10 = vld.sshfl [vmem:[%s387_s26] sm:$0x11 pattern:$0x75316420]  ;;  %v437_v12 = vunpack.c.l.s4 %v828_v11  ;;  %vm505_vm4 = vcmask 130048  }
  0x17   : > { %510 = vmatpush1.bf16.msra.mxu0 %v806_v3  ;;  %v440_v9 = vshrl.u32 %v439_v6, 7  ;;  %v435_v13 = vcombine.high %v752_v10, %v752_v10  ;;  %v810_v15 = vld [vmem:[%s993_s2 + $0x20] sm:$0xff]   ;;  %v811_v18 = vld [vmem:[%s993_s2 + $0x28] sm:$0xff]   ;;  %v812_v19 = vld [vmem:[%s993_s2 + $0x30] sm:$0xff]   ;;  %v829_v24 = vmov 0.0   ;;  %vm830_vm5 = vmmov 0  }
  0x18   : > { %511 = vmatprep.subr.bf16.mxu0 %v827_v4  ;;  %v438_v14 = vunpack.c.0.s8 %v437_v12  ;;  %v813_v20 = vld [vmem:[%s993_s2 + $0x38] sm:$0xff]   ;;  %v814_v21 = vld [vmem:[%s993_s2 + $0x40] sm:$0xff]   ;;  %779 = vmatprep.subr.bf16.mxu1 %v829_v24  ;;  %v816_v25 = vld [vmem:[%s996_s5 + $0x48] sm:$0xff]   ;;  %vm555_vm6 = vcmask 253952   ;;  %vm556_vm7 = vsmask.f32 256 }
  0x19   : > { %v815_v23 = vld [vmem:[%s996_s5 + $0x40] sm:$0xff]   ;;  %783 = vmatprep.mubr.msk.bf16.mxu1 %vm830_vm5, %v829_v24  ;;  %vm956_vm8 = vmand %vm555_vm6, %vm556_vm7  ;;  %vm579_vm9 = vcmask 261120  }
  0x1a   : > { %v441_v16 = vsub.s32 %v438_v14, %v440_v9  ;;  %780 = vmatpush3.bf16.msra.mxu1 %v815_v23  ;;  %v549_v26 = vld [vmem:[%s994_s3] sm:$0x1]  ;;  %v558_v36 = vld [vmem:[#allocation2 + $0x4] sm:$0x1] }
  0x1b   : > { %512 = vmatpush1.bf16.msra.mxu0 %v807_v5  ;;  %781 = vmatprep.subr.bf16.mxu1 %v829_v24  ;;  %v551_v28 = vld [vmem:[%s995_s4] sm:$0x1] }
  0x1c   : > { %513 = vmatprep.subr.bf16.mxu0 %v827_v4  ;;  %v449_v17 = vrot.slane %v435_v13, %v441_v16  ;;  %v442_v22 = vrot.slane %v752_v10, %v441_v16  ;;  %v817_v39 = vld [vmem:[%s999_s8] sm:$0xff]  }
  0x1d   : > { %v627_v41 = vld [vmem:[%s390_s23] sm:$0x1] }
  0x1e   : > { %762 = vmatprep.mubr.msk.bf16.mxu0 %vm505_vm4, %v449_v17  ;;  %782 = vmatpush3.bf16.msra.mxu1 %v816_v25  ;;  %v623_v46 = vld [vmem:[%s997_s6] sm:$0x1] }
  0x1f   : > { %514 = vmatpush1.bf16.msra.mxu0 %v808_v7  ;;  %787 = vmatprep.subr.bf16.mxu1 %v829_v24  ;;  %v679_v47 = vld [vmem:[%s1000_s9] sm:$0x1] }
  0x20   : > { %515 = vmatprep.subr.bf16.mxu0 %v827_v4  ;;  %v625_v49 = vld [vmem:[%s998_s7] sm:$0x1] }
  0x21   : > { %v681_v51 = vld [vmem:[%s1001_s10] sm:$0x1] }
  0x22   : > { %v686_v60 = vld [vmem:[%s913_s29] sm:$0x1] }
  0x23   : > { %516 = vmatpush1.bf16.msra.mxu0 %v809_v8 }
  0x24   : > { %517 = vmatprep.subr.bf16.mxu0 %v827_v4 }
  0x27   : > { %518 = vmatpush1.bf16.msra.mxu0 %v810_v15 }
  0x28   : > { %519 = vmatprep.subr.bf16.mxu0 %v827_v4 }
  0x2b   : > { %520 = vmatpush1.bf16.msra.mxu0 %v811_v18 }
  0x2c   : > { %521 = vmatprep.subr.bf16.mxu0 %v827_v4 }
  0x2f   : > { %522 = vmatpush1.bf16.msra.mxu0 %v812_v19 }
  0x30   : > { %523 = vmatprep.subr.bf16.mxu0 %v827_v4 }
  0x33   : > { %524 = vmatpush1.bf16.msra.mxu0 %v813_v20 }
  0x34   : > { %525 = vmatprep.subr.bf16.mxu0 %v827_v4 }
  0x37   : > { %526 = vmatpush1.bf16.msra.mxu0 %v814_v21 }
  0x3a   : > { %542 = vmatmul.mubr.bf16.vlgmr.msra.gmra.mrb[0].mxu0 %v442_v22 }
 0x10d   : > { %v543_v27 = vpop.f32.mrb[0].mxu0 }
 0x10e   : > { %v550_v29 = vmul.f32 %v549_v26, %v543_v27  ;;  %v545_v30 = vpop.f32.mrb[1].mxu0 }
 0x10f   : > { %v546_v31 = vpop.f32.mrb[2].mxu0 }
 0x110   : > { %v552_v32 = vadd.f32 %v551_v28, %v550_v29  ;;  %v547_v33 = vpop.f32.mrb[3].mxu0 }
 0x112   : > { %v553_v34 = vmax.f32 %v552_v32, 0.0 }
 0x114   : > { %v554_v37 = vpack.c.bf16 %v553_v34, %v553_v34 }
 0x116   : > { %v559_v38 = vsel %vm956_vm8, %v554_v37, %v558_v36 }
 0x117   : > { %560 = vst [vmem:[#allocation2 + $0x4] sm:$0x1] %v559_v38 }
 0x11e   : > { %v561_v40 = vld [vmem:[#allocation2 + $0x4] sm:$0x1] }
 0x11f   : > { %784 = vmatmul.mubr.msk.bf16.vlgmr.msra.gmra.mrb[0].mxu1 %vm579_vm9, %v561_v40 }
 0x120   : > { %788 = vmatpush3.bf16.msra.mxu1 %v817_v39  ;;  %789 = vmatprep.mubr.msk.bf16.mxu1 %vm830_vm5, %v829_v24 }
 0x127   : > { %790 = vmatmul.mubr.msk.bf16.vlgmr.msra.gmra.mrb[4].mxu1 %vm505_vm4, %v627_v41 }
 0x1f2   : > { %v617_v42 = vpop.f32.mrb[0].mxu1 }
 0x1f3   : > { %v785_v43 = vpop.f32.mrb[1].mxu1  ;;  %v624_v48 = vmul.f32 %v623_v46, %v617_v42 }
 0x1f4   : > { %v620_v44 = vpop.f32.mrb[2].mxu1 }
 0x1f5   : > { %v786_v45 = vpop.f32.mrb[3].mxu1  ;;  %v626_v55 = vadd.f32 %v625_v49, %v624_v48 }
 0x1fa   : > { %v673_v50 = vpop.f32.mrb[4].mxu1 }
 0x1fb   : > { %v680_v52 = vmul.f32 %v679_v47, %v673_v50  ;;  %v791_v53 = vpop.f32.mrb[5].mxu1 }
 0x1fc   : > { %v676_v54 = vpop.f32.mrb[6].mxu1 }
 0x1fd   : > { %v682_v56 = vadd.f32 %v681_v51, %v680_v52  ;;  %v792_v57 = vpop.f32.mrb[7].mxu1 }
 0x1ff   : > { %v683_v58 = vadd.f32 %v682_v56, %v626_v55 }
 0x201   : > { %v684_v59 = vmax.f32 %v683_v58, 0.0 }
 0x203   : > { %v685_v61 = vpack.c.bf16 %v684_v59, %v684_v59 }
 0x205   : > { %v687_v62 = vsel %vm956_vm8, %v685_v61, %v686_v60 }
 0x206   : > { %688 = vst [vmem:[%s913_s29] sm:$0x1] %v687_v62 }
 0x207 PF: > { %s21_s17 = sadd.s32 1, %s824_s17  }
 0x208   : > { %p18_p5 = scmp.ge.s32.totalorder %s21_s17, 4  }
 0x20a   :  { %20 = sbr.rel (!%p18_p5) target bundleno = 1 (0x1), region = 102 }

// kernel: _lambda_.15
= control target key start
LH: loop header
LB: loop body
LE: loop exit
PB: predicated region body
PF: predicated region fallthrough
CT: control target
= control target key end

     0   :  { %s1619_s17 = smov 0   ;;  %s1798_s0 = inlined_call_operand.vmem [shape: bf16[2,4,144], index: 0, kind: input, shape index: {}]   ;;  %s1799_s1 = inlined_call_operand.vmem [shape: bf16[2,4,16], index: 1, kind: input, shape index: {}]   ;;  %s1800_s2 = inlined_call_operand.vmem [shape: bf16[144,16], index: 2, kind: input, shape index: {}]   ;;  %s1801_s3 = inlined_call_operand.vmem [shape: f32[1,16], index: 3, kind: input, shape index: {}]   ;;  %s1802_s4 = inlined_call_operand.vmem [shape: f32[1,16], index: 4, kind: input, shape index: {}]   ;;  %s1803_s5 = inlined_call_operand.vmem [shape: bf16[3,3,16,16], index: 5, kind: input, shape index: {}]   ;;  %s1804_s6 = inlined_call_operand.vmem [shape: f32[1,16], index: 6, kind: input, shape index: {}]   ;;  %s1805_s7 = inlined_call_operand.vmem [shape: f32[1,16], index: 7, kind: input, shape index: {}]   ;;  %s1806_s8 = inlined_call_operand.vmem [shape: bf16[16,16], index: 8, kind: input, shape index: {}]   ;;  %s1807_s9 = inlined_call_operand.vmem [shape: f32[1,16], index: 9, kind: input, shape index: {}]   ;;  %s1808_s10 = inlined_call_operand.vmem [shape: f32[1,16], index: 10, kind: input, shape index: {}]   ;;  %s1809_s11 = inlined_call_operand.vmem [shape: bf16[2,4,16], index: 11, kind: output, shape index: {}]  }
   0x1 LB: > { %s1331_s18 = sadd.s32 4294967295, %s1553_s17   ;;  %p1335_p0 = scmp.ge.s32.totalorder %s1553_s17, 1  ;;  %s1553_s17 = sphi %s1619_s17, %s21_s17  }
   0x2   : > { %p346_p1 = scmp.lt.s32.totalorder %s1553_s17, 3 }
   0x4   : > { %p347_p2 = pnand %p1335_p0, %p346_p1 }
   0x5   : > { %p389_p3 = scmp.lt.s32.totalorder (!%p347_p2), %s1331_s18, 1  ;;  %p1340_p4 = scmp.ne.s32.totalorder (!%p347_p2), %s1331_s18, 0 }
   0x6   : > { %350 = sbr.rel (%p347_p2) target bundleno = 604 (0x25c), region = 64 }
   0xd   : > { %s390_s19 = scalar_select %p389_p3, %s1331_s18, 1 }
   0xe   : > { %408 = sbr.rel (%p1340_p4) target bundleno = 21 (0x15), region = 68  ;;  %vm409_vm0 = vcmask (!%p1340_p4), 125952   ;;  %v1555_v0 = vmov (!%p1340_p4), 0  }
   0xf   : > { %s1404_s20 = sshll.u32 %s390_s19, 2  ;;  %s1338_s21 = sshll.u32 %s390_s19, 1  ;;  %410 = vst.msk [vmem:[#allocation2] sm:$0xf] (!%p1340_p4), %vm409_vm0, %v1555_v0  ;;  %411 = vst.msk [vmem:[#allocation2 + $0x4] sm:$0xf] (!%p1340_p4), %vm409_vm0, %v1555_v0 }
  0x10   : > { %s393_s24 = scalar_lea.vmem %s1798_s0, %s1404_s20  ;;  %s1633_s27 = scalar_lea.vmem %s1799_s1, %s1338_s21 }
  0x11   : > { %s1638_s30 = scalar_lea.vmem %s1809_s11, %s1338_s21 }
  0x15 PF: > { %v1526_v1 = vld [vmem:[%s1800_s2] sm:$0xff]   ;;  %v1556_v2 = vmov 0   ;;  %v1527_v3 = vld [vmem:[%s1800_s2 + $0x8] sm:$0xff]   ;;  %v1528_v4 = vld [vmem:[%s1800_s2 + $0x10] sm:$0xff]   ;;  %vm497_vm1 = vcmask 130048   ;;  %v561_v13 = vlaneseq  ;;  %v1557_v17 = vmov 0.0  }
  0x16   : > { %501 = vmatprep.subr.bf16.mxu0 %v1556_v2  ;;  %v1529_v5 = vld [vmem:[%s1800_s2 + $0x18] sm:$0xff]   ;;  %v1341_v6 = vld.sshfl [vmem:[%s393_s24] sm:$0x33 pattern:$0x76325410]  ;;  %v1531_v9 = vld [vmem:[%s1800_s2 + $0x28] sm:$0xff]   ;;  %1431 = vmatprep.subr.bf16.mxu1 %v1557_v17 }
  0x17   : > { %502 = vmatpush1.bf16.msra.mxu0 %v1526_v1  ;;  %v441_v7 = vcombine.high %v1341_v6, %v1341_v6  ;;  %v1530_v8 = vld [vmem:[%s1800_s2 + $0x20] sm:$0xff]   ;;  %v1532_v10 = vld [vmem:[%s1800_s2 + $0x30] sm:$0xff]   ;;  %v1533_v11 = vld [vmem:[%s1800_s2 + $0x38] sm:$0xff]   ;;  %v562_v14 = vshrl.u32 %v561_v13, 7  ;;  %vm1558_vm3 = vmmov 0   ;;  %vm559_vm7 = vcmask 123904  }
  0x18   : > { %503 = vmatprep.subr.bf16.mxu0 %v1556_v2  ;;  %v1534_v12 = vld [vmem:[%s1800_s2 + $0x40] sm:$0xff]   ;;  %v1535_v16 = vld [vmem:[%s1803_s5 + $0x8] sm:$0xff]   ;;  %1433 = vmatprep.mubr.msk.bf16.mxu1 %vm1558_vm3, %v1557_v17 }
  0x19   : > { %1351 = vmatprep.mubr.msk.bf16.mxu0 %vm497_vm1, %v441_v7  ;;  %v563_v15 = vand.u32 1, %v562_v14  ;;  %v1537_v23 = vld [vmem:[%s1803_s5] sm:$0xff]   ;;  %v1539_v14 = vld [vmem:[%s1803_s5 + $0x18] sm:$0xff]  }
  0x1a   : > { %1432 = vmatpush3.bf16.msra.mxu1 %v1537_v23  ;;  %v1352_v25 = vld [vmem:[%s1801_s3] ss:$0 sm:$0xff]  ;;  %v566_v45 = vld [vmem:[#allocation2] sm:$0xc] }
  0x1b   : > { %504 = vmatpush1.bf16.msra.mxu0 %v1527_v3  ;;  %vm565_vm2 = vcmp.le.s32.totalorder %v563_v15, 0  ;;  %1437 = vmatprep.subr.bf16.mxu1 %v1557_v17  ;;  %vm564_vm5 = vcmp.ge.s32.totalorder %v563_v15, 1  ;;  %v1353_v28 = vld [vmem:[%s1802_s4] ss:$0 sm:$0xff]  ;;  %v585_v46 = vld [vmem:[#allocation2] sm:$0x8] }
  0x1c   : > { %505 = vmatprep.subr.bf16.mxu0 %v1556_v2  ;;  %vm707_vm4 = vmpackc.low %vm565_vm2, %vm565_vm2  ;;  %v1546_v58 = vld [vmem:[%s1806_s8] sm:$0xff]   ;;  %v1538_v3 = vld [vmem:[%s1803_s5 + $0x10] sm:$0xff]  }
  0x1d   : > { %v708_v18 = vsel %vm707_vm4, 65537, %v1556_v2  ;;  %vm568_vm6 = vmpackc.low %vm564_vm5, %vm564_vm5  ;;  %v1194_v7 = vld [vmem:[%s1633_s27] sm:$0x3] }
  0x1e   : > { %v1678_v19 = vshll.u32 %v708_v18, 16  ;;  %v1680_v20 = vshrl.u32 %v708_v18, 16  ;;  %v569_v26 = vsel %vm568_vm6, 65537, %v1556_v2 }
  0x1f   : > { %506 = vmatpush1.bf16.msra.mxu0 %v1528_v4  ;;  %v1696_v32 = vshll.u32 %v569_v26, 16  ;;  %v1698_v33 = vshrl.u32 %v569_v26, 16  ;;  %v1540_v26 = vld [vmem:[%s1803_s5 + $0x20] sm:$0xff]  }
  0x20   : > { %507 = vmatprep.subr.bf16.mxu0 %v1556_v2  ;;  %v1109_v21 = vrot.slane %v1680_v20, 6  ;;  %v1110_v22 = vrot.slane %v1678_v19, 7  ;;  %v712_v39 = vrot.slane %v1678_v19, 5  ;;  %v715_v40 = vrot.slane %v1680_v20, 4 }
  0x21   : > { %v573_v36 = vrot.slane %v1698_v33, 5  ;;  %v576_v37 = vrot.slane %v1696_v32, 6  ;;  %v788_v51 = vrot.slane %v1696_v32, 5  ;;  %v789_v57 = vrot.slane %v1698_v33, 4 }
  0x22   : > { %v1687_v24 = vor.u32 %v1110_v22, %v1109_v21  ;;  %v716_v44 = vor.u32 %v715_v40, %v712_v39  ;;  %vm1706_vm10 = vcmp.ne.s16.totalorder %v712_v39, 0 }
  0x23   : > { %508 = vmatpush1.bf16.msra.mxu0 %v1529_v5  ;;  %v577_v42 = vor.u32 %v576_v37, %v573_v36  ;;  %v578_v43 = vrot.slane %v573_v36, 4  ;;  %v720_v62 = vsel %vm1706_vm10, %v585_v46, 0  ;;  %vm792_vm12 = vcmp.ne.s16.totalorder %v788_v51, 0 }
  0x24   : > { %509 = vmatprep.subr.bf16.mxu0 %v1556_v2  ;;  %v717_v47 = vrot.slane %v716_v44, 4  ;;  %vm1112_vm0 = vcmp.ne.s16.totalorder %v1687_v24, 0 }
  0x25   : > { %vm579_vm8 = vcmp.ne.s16.totalorder %v577_v42, 0  ;;  %vm580_vm9 = vcmp.ne.s16.totalorder %v578_v43, 0  ;;  %v1543_v43 = vld [vmem:[%s1803_s5 + $0x38] sm:$0xff]  }
  0x26   : > { %v581_v48 = vsel %vm579_vm8, %v566_v45, 0  ;;  %vm1710_vm11 = vcmp.ne.s16.totalorder %v717_v47, 0 }
  0x27   : > { %510 = vmatpush1.bf16.msra.mxu0 %v1530_v8 }
  0x28   : > { %511 = vmatprep.subr.bf16.mxu0 %v1556_v2 }
  0x2b   : > { %512 = vmatpush1.bf16.msra.mxu0 %v1531_v9 }
  0x2c   : > { %513 = vmatprep.subr.bf16.mxu0 %v1556_v2 }
  0x2f   : > { %514 = vmatpush1.bf16.msra.mxu0 %v1532_v10 }
  0x30   : > { %515 = vmatprep.subr.bf16.mxu0 %v1556_v2 }
  0x33   : > { %516 = vmatpush1.bf16.msra.mxu0 %v1533_v11 }
  0x34   : > { %517 = vmatprep.subr.bf16.mxu0 %v1556_v2  ;;  %v790_v2 = vor.u32 %v789_v57, %v788_v51 }
  0x37   : > { %518 = vmatpush1.bf16.msra.mxu0 %v1534_v12  ;;  %v794_v12 = vsel %vm792_vm12, %v585_v46, 0 }
  0x38   : > { %1425 = vmatprep.subr.bf16.mxu0 %v1557_v17 }
  0x3a   : > { %534 = vmatmul.mubr.bf16.vlgmr.msra.gmra.mrb[0].mxu0 %v1341_v6  ;;  %v791_v6 = vrot.slane %v790_v2, 4  ;;  %v1396_v2 = vld [vmem:[%s1804_s6] ss:$0 sm:$0xff] }
  0x3b   : > { %1427 = vmatprep.mubr.msk.bf16.mxu0 %vm1558_vm3, %v1557_v17  ;;  %1426 = vmatpush3.bf16.msra.mxu0 %v1535_v16 }
  0x3c   : > { %1479 = vmatprep.subr.bf16.mxu0 %v1557_v17  ;;  %vm793_vm13 = vcmp.ne.s16.totalorder %v791_v6, 0 }
 0x10d   : > { %v535_v27 = vpop.f32.mrb[0].mxu0 }
 0x10e   : > { %v548_v29 = vmul.f32 %v1352_v25, %v535_v27  ;;  %v537_v30 = vpop.f32.mrb[1].mxu0  ;;  %v916_v25 = vrot.slane %v1680_v20, 7  ;;  %v983_v20 = vrot.slane %v1698_v33, 7 }
 0x10f   : > { %v538_v31 = vpop.f32.mrb[2].mxu0 }
 0x110   : > { %v556_v34 = vadd.f32 %v1353_v28, %v548_v29  ;;  %v539_v35 = vpop.f32.mrb[3].mxu0  ;;  %v917_v28 = vor.u32 %v916_v25, %v1678_v19  ;;  %v1541_v31 = vld [vmem:[%s1803_s5 + $0x28] sm:$0xff]   ;;  %v984_v19 = vor.u32 %v983_v20, %v1696_v32 }
 0x112   : > { %v557_v38 = vmax.f32 %v556_v34, 0.0  ;;  %vm918_vm14 = vcmp.ne.s16.totalorder %v917_v28, 0  ;;  %vm985_vm15 = vcmp.ne.s16.totalorder %v984_v19, 0 }
 0x114   : > { %v558_v41 = vpack.c.bf16 %v557_v38, %v557_v38  ;;  %v1542_v38 = vld [vmem:[%s1803_s5 + $0x30] sm:$0xff]  }
 0x116   : > { %560 = vst.msk [vmem:[#allocation2 + $0x4] sm:$0x3] %vm559_vm7, %v558_v41 }
 0x11d   : > { %v567_v49 = vld [vmem:[#allocation2 + $0x4] sm:$0x1]  ;;  %v1108_v45 = vld [vmem:[#allocation2 + $0x4] sm:$0xe] }
 0x11e   : > { %v1356_v50 = vcombine.low %v585_v46, %v567_v49  ;;  %v582_v52 = vsel %vm580_vm9, %v567_v49, 0  ;;  %v706_v55 = vld [vmem:[#allocation2 + $0x4] sm:$0x3]  ;;  %v1113_v47 = vsel %vm1112_vm0, %v1108_v45, 0 }
 0x11f   : > { %v1359_v54 = vcombine.low %v581_v48, %v582_v52  ;;  %v721_v63 = vsel %vm1710_vm11, %v706_v55, 0  ;;  %v795_v13 = vsel %vm793_vm13, %v706_v55, 0  ;;  %v915_v29 = vld [vmem:[#allocation2 + $0x4] sm:$0x7] }
 0x120   : > { %v594_v59 = vrot.slane %v1356_v50, 3  ;;  %v1364_v5 = vcombine.low %v720_v62, %v721_v63  ;;  %v1369_v16 = vcombine.low %v794_v12, %v795_v13  ;;  %v919_v30 = vsel %vm918_vm14, %v915_v29, 0  ;;  %v1544_v46 = vld [vmem:[#allocation2 + $0x4] ss:$0 sps:$4 sm:$0x66]  }
 0x121   : > { %v650_v60 = vshrl.u32 %v1359_v54, 16  ;;  %v653_v61 = vshll.u32 %v1359_v54, 16  ;;  %v1378_v34 = vcombine.low %v919_v30, %v919_v30  ;;  %v986_v37 = vsel %vm985_vm15, %v915_v29, 0  ;;  %v1545_v48 = vld [vmem:[%s1803_s5 + $0x40] sm:$0xff]  }
 0x122   : > { %1428 = vmatmul.mubr.msk.bf16.vlgmr.msra.gmra.mrb[4].mxu0 %vm497_vm1, %v594_v59  ;;  %v731_v8 = vshrl.u32 %v1364_v5, 16  ;;  %v734_v9 = vshll.u32 %v1364_v5, 16  ;;  %v805_v18 = vshrl.u32 %v1369_v16, 16  ;;  %v808_v21 = vshll.u32 %v1369_v16, 16  ;;  %v1400_v63 = vld [vmem:[%s1807_s9] ss:$0 sm:$0xff] }
 0x123   : > { %v652_v0 = vrot.slane %v650_v60, 2  ;;  %v655_v1 = vrot.slane %v653_v61, 3  ;;  %1480 = vmatpush3.bf16.msra.mxu0 %v1546_v58  ;;  %1481 = vmatprep.mubr.msk.bf16.mxu0 %vm1558_vm3, %v1557_v17  ;;  %v929_v35 = vshll.u32 %v1378_v34, 16  ;;  %v927_v33 = vshrl.u32 %v1378_v34, 16  ;;  %v1397_v5 = vld [vmem:[%s1805_s7] ss:$0 sm:$0xff] }
 0x124   : > { %v733_v10 = vrot.slane %v731_v8, 3  ;;  %v736_v11 = vrot.slane %v734_v9, 4  ;;  %v807_v22 = vrot.slane %v805_v18, 3  ;;  %v810_v23 = vrot.slane %v808_v21, 4 }
 0x125   : > { %v656_v4 = vor.u32 %v655_v1, %v652_v0  ;;  %v931_v36 = vrot.slane %v929_v35, 1  ;;  %v1383_v40 = vcombine.low %v986_v37, %v986_v37  ;;  %v1057_v49 = vrot.slane %v1544_v46, 1  ;;  %v1401_v0 = vld [vmem:[%s1808_s10] ss:$0 sm:$0xff] }
 0x126   : > { %v737_v15 = vor.u32 %v736_v11, %v733_v10  ;;  %v811_v27 = vor.u32 %v810_v23, %v807_v22  ;;  %v1393_v50 = vcombine.low %v1113_v47, %v1113_v47 }
 0x127   : > { %1434 = vmatmul.mubr.msk.bf16.vlgmr.msra.gmra.mrb[0].mxu1 %vm497_vm1, %v656_v4  ;;  %v932_v39 = vor.u32 %v931_v36, %v927_v33  ;;  %v996_v32 = vshll.u32 %v1383_v40, 16  ;;  %v994_v42 = vshrl.u32 %v1383_v40, 16 }
 0x128   : > { %1438 = vmatpush3.bf16.msra.mxu1 %v1538_v3  ;;  %1439 = vmatprep.mubr.msk.bf16.mxu1 %vm1558_vm3, %v1557_v17  ;;  %v1121_v51 = vshrl.u32 %v1393_v50, 16  ;;  %v1124_v52 = vshll.u32 %v1393_v50, 16 }
 0x129   : > { %1443 = vmatprep.subr.bf16.mxu1 %v1557_v17  ;;  %v998_v41 = vrot.slane %v996_v32, 1 }
 0x12a   : > { %1482 = vmatmul.mubr.msk.bf16.vlgmr.msra.gmra.mrb[8].mxu0 %vm497_vm1, %v1194_v7  ;;  %v1123_v53 = vrot.slane %v1121_v51, 1  ;;  %v1126_v54 = vrot.slane %v1124_v52, 2 }
 0x12b   : > { %v999_v44 = vor.u32 %v998_v41, %v994_v42 }
 0x133   : > { %1440 = vmatmul.mubr.msk.bf16.vlgmr.msra.gmra.mrb[0].mxu1 %vm497_vm1, %v737_v15 }
 0x134   : > { %1444 = vmatpush3.bf16.msra.mxu1 %v1539_v14  ;;  %1445 = vmatprep.mubr.msk.bf16.mxu1 %vm1558_vm3, %v1557_v17 }
 0x135   : > { %1449 = vmatprep.subr.bf16.mxu1 %v1557_v17 }
 0x13f   : > { %1446 = vmatmul.mubr.msk.bf16.vlgmr.msra.gmra.mrb[0].mxu1 %vm497_vm1, %v811_v27 }
 0x140   : > { %1450 = vmatpush3.bf16.msra.mxu1 %v1540_v26  ;;  %1451 = vmatprep.mubr.msk.bf16.mxu1 %vm1558_vm3, %v1557_v17 }
 0x141   : > { %1455 = vmatprep.subr.bf16.mxu1 %v1557_v17 }
 0x14b   : > { %1452 = vmatmul.mubr.msk.bf16.vlgmr.msra.gmra.mrb[0].mxu1 %vm497_vm1, %v706_v55  ;;  %v1127_v55 = vor.u32 %v1126_v54, %v1123_v53 }
 0x14c   : > { %1456 = vmatpush3.bf16.msra.mxu1 %v1541_v31  ;;  %1457 = vmatprep.mubr.msk.bf16.mxu1 %vm1558_vm3, %v1557_v17 }
 0x14d   : > { %1461 = vmatprep.subr.bf16.mxu1 %v1557_v17 }
 0x157   : > { %1458 = vmatmul.mubr.msk.bf16.vlgmr.msra.gmra.mrb[0].mxu1 %vm497_vm1, %v932_v39 }
 0x158   : > { %1462 = vmatpush3.bf16.msra.mxu1 %v1542_v38  ;;  %1463 = vmatprep.mubr.msk.bf16.mxu1 %vm1558_vm3, %v1557_v17 }
 0x159   : > { %1467 = vmatprep.subr.bf16.mxu1 %v1557_v17 }
 0x163   : > { %1464 = vmatmul.mubr.msk.bf16.vlgmr.msra.gmra.mrb[0].mxu1 %vm497_vm1, %v999_v44 }
 0x164   : > { %1468 = vmatpush3.bf16.msra.mxu1 %v1543_v43  ;;  %1469 = vmatprep.mubr.msk.bf16.mxu1 %vm1558_vm3, %v1557_v17 }
 0x165   : > { %1473 = vmatprep.subr.bf16.mxu1 %v1557_v17 }
 0x16f   : > { %1470 = vmatmul.mubr.msk.bf16.vlgmr.msra.gmra.mrb[0].mxu1 %vm497_vm1, %v1057_v49 }
 0x170   : > { %1474 = vmatpush3.bf16.msra.mxu1 %v1545_v48  ;;  %1475 = vmatprep.mubr.msk.bf16.mxu1 %vm1558_vm3, %v1557_v17 }
 0x17b   : > { %1476 = vmatmul.mubr.msk.bf16.vlgmr.msra.gmra.mrb[0].mxu1 %vm497_vm1, %v1127_v55 }
 0x1f5   : > { %v638_v24 = vpop.f32.mrb[4].mxu0 }
 0x1f6   : > { %v1429_v56 = vpop.f32.mrb[5].mxu0 }
 0x1f7   : > { %v641_v57 = vpop.f32.mrb[6].mxu0 }
 0x1f8   : > { %v1430_v58 = vpop.f32.mrb[7].mxu0 }
 0x1fd   : > { %v1240_v59 = vpop.f32.mrb[8].mxu0 }
 0x1fe   : > { %v1483_v60 = vpop.f32.mrb[9].mxu0  ;;  %v1253_v17 = vmul.f32 %v1400_v63, %v1240_v59 }
 0x1ff   : > { %v1243_v61 = vpop.f32.mrb[10].mxu0 }
 0x200   : > { %v1484_v62 = vpop.f32.mrb[11].mxu0  ;;  %v1261_v7 = vadd.f32 %v1401_v0, %v1253_v17 }
 0x24e   : > { %v1171_v1 = vpop.f32.mrb[0].mxu1 }
 0x24f   : > { %v1485_v3 = vadd.f32 %v1171_v1, %v638_v24  ;;  %v1477_v4 = vpop.f32.mrb[1].mxu1 }
 0x250   : > { %v1174_v6 = vpop.f32.mrb[2].mxu1 }
 0x251   : > { %v1185_v8 = vmul.f32 %v1485_v3, %v1396_v2  ;;  %v1478_v9 = vpop.f32.mrb[3].mxu1 }
 0x253   : > { %v1193_v10 = vadd.f32 %v1397_v5, %v1185_v8 }
 0x255   : > { %v1262_v11 = vadd.f32 %v1261_v7, %v1193_v10 }
 0x257   : > { %v1263_v12 = vmax.f32 %v1262_v11, 0.0 }
 0x259   : > { %v1264_v13 = vpack.c.bf16 %v1263_v12, %v1263_v12 }
 0x25b   : > { %1265 = vst.msk [vmem:[%s1638_s30] sm:$0x3] %vm559_vm7, %v1264_v13 }
 0x25c PF: > { %s21_s17 = sadd.s32 1, %s1553_s17  }
 0x25d   : > { %p18_p5 = scmp.ge.s32.totalorder %s21_s17, 4  }
 0x25f   :  { %20 = sbr.rel (!%p18_p5) target bundleno = 1 (0x1), region = 109 }

// kernel: _lambda_.18
= control target key start
LH: loop header
LB: loop body
LE: loop exit
PB: predicated region body
PF: predicated region fallthrough
CT: control target
= control target key end

     0   :  { %s592_s24 = smov 0   ;;  %s649_s0 = inlined_call_operand.vmem [shape: bf16[2,1,32], index: 0, kind: input, shape index: {}]   ;;  %s650_s1 = inlined_call_operand.vmem [shape: bf16[3,3,32,32], index: 1, kind: input, shape index: {}]   ;;  %s651_s2 = inlined_call_operand.vmem [shape: f32[1,32], index: 2, kind: input, shape index: {}]   ;;  %s652_s3 = inlined_call_operand.vmem [shape: f32[1,32], index: 3, kind: input, shape index: {}]   ;;  %s653_s4 = inlined_call_operand.vmem [shape: bf16[3,3,32,32], index: 4, kind: input, shape index: {}]   ;;  %s654_s5 = inlined_call_operand.vmem [shape: f32[1,32], index: 5, kind: input, shape index: {}]   ;;  %s655_s6 = inlined_call_operand.vmem [shape: f32[1,32], index: 6, kind: input, shape index: {}]   ;;  %s656_s7 = inlined_call_operand.vmem [shape: bf16[2,1,32], index: 7, kind: output, shape index: {}]  }
   0x1 LB: > { %s482_s25 = sadd.s32 4294967295, %s547_s24   ;;  %p486_p0 = scmp.ge.s32.totalorder %s547_s24, 1  ;;  %s547_s24 = sphi %s592_s24, %s17_s24  }
   0x2   : > { %p235_p1 = scmp.lt.s32.totalorder %s547_s24, 3 }
   0x4   : > { %p236_p2 = pnand %p486_p0, %p235_p1 }
   0x5   : > { %p263_p3 = scmp.lt.s32.totalorder (!%p236_p2), %s482_s25, 1  ;;  %p487_p4 = scmp.ne.s32.totalorder (!%p236_p2), %s482_s25, 0 }
   0x6   : > { %239 = sbr.rel (%p236_p2) target bundleno = 486 (0x1e6), region = 48 }
   0xd   : > { %s264_s26 = scalar_select %p263_p3, %s482_s25, 1 }
   0xe   : > { %273 = sbr.rel (%p487_p4) target bundleno = 21 (0x15), region = 52  ;;  %vm274_vm0 = vcmask (!%p487_p4), 257024   ;;  %vm277_vm1 = vcmask (!%p487_p4), 253952   ;;  %vm278_vm2 = vsmask.f32 (!%p487_p4), 256  ;;  %v549_v0 = vmov (!%p487_p4), 0  }
   0xf   : > { %s265_s29 = scalar_lea.vmem %s649_s0, %s264_s26  ;;  %s606_s9 = scalar_lea.vmem %s656_s7, %s264_s26  ;;  %276 = vst.msk [vmem:[#allocation2 + $0x4] sm:$0xf] (!%p487_p4), %vm274_vm0, %v549_v0  ;;  %284 = vst.msk [vmem:[#allocation3 + $0x4] sm:$0xf] (!%p487_p4), %vm274_vm0, %v549_v0  ;;  %v280_v1 = vld [vmem:[#allocation2 + $0x8] sm:$0x1] (!%p487_p4) }
  0x10   : > { %vm279_vm3 = vmand (!%p487_p4), %vm277_vm1, %vm278_vm2  ;;  %v285_v2 = vld [vmem:[#allocation3 + $0x8] sm:$0x1] (!%p487_p4) }
  0x11   : > { %v281_v3 = vsel (!%p487_p4), %vm279_vm3, 0, %v280_v1  ;;  %v286_v4 = vsel (!%p487_p4), %vm279_vm3, 0, %v285_v2 }
  0x12   : > { %282 = vst [vmem:[#allocation2 + $0x8] sm:$0x1] (!%p487_p4), %v281_v3  ;;  %287 = vst [vmem:[#allocation3 + $0x8] sm:$0x1] (!%p487_p4), %v286_v4 }
  0x15 PF: > { %v537_v5 = vld [vmem:[%s650_s1 + $0x40] sm:$0xff]   ;;  %v550_v6 = vmov 0.0   ;;  %v538_v7 = vld [vmem:[%s650_s1 + $0x48] sm:$0xff]   ;;  %vm551_vm4 = vmmov 0   ;;  %vm289_vm5 = vcmask 253952   ;;  %vm313_vm8 = vcmask 261120  }
  0x16   : > { %510 = vmatprep.subr.bf16.mxu0 %v550_v6  ;;  %518 = vmatprep.subr.bf16.mxu1 %v550_v6  ;;  %v288_v8 = vld [vmem:[%s265_s29] sm:$0x1]  ;;  %vm290_vm6 = vsmask.f32 256  ;;  %v292_v10 = vld [vmem:[#allocation2 + $0x4] sm:$0x1] }
  0x17   : > { %511 = vmatpush3.bf16.msra.mxu0 %v537_v5  ;;  %514 = vmatprep.mubr.msk.bf16.mxu0 %vm551_vm4, %v550_v6  ;;  %vm614_vm7 = vmand %vm289_vm5, %vm290_vm6  ;;  %v539_v13 = vld [vmem:[%s653_s4 + $0x40] sm:$0xff]   ;;  %v540_v14 = vld [vmem:[%s653_s4 + $0x48] sm:$0xff]   ;;  %v431_v32 = vunpack.c.l.bf16 %v288_v8 }
  0x18   : > { %512 = vmatprep.subr.bf16.mxu0 %v550_v6  ;;  %522 = vmatprep.mubr.msk.bf16.mxu1 %vm551_vm4, %v550_v6  ;;  %v293_v11 = vsel %vm614_vm7, %v288_v8, %v292_v10  ;;  %v357_v15 = vld [vmem:[%s651_s2] sm:$0x1]  ;;  %v363_v24 = vld [vmem:[#allocation3 + $0x4] sm:$0x1] }
  0x19   : > { %294 = vst [vmem:[#allocation2 + $0x4] sm:$0x1] %v293_v11  ;;  %519 = vmatpush3.bf16.msra.mxu1 %v539_v13  ;;  %v359_v17 = vld [vmem:[%s652_s3] sm:$0x1] }
  0x1a   : > { %520 = vmatprep.subr.bf16.mxu1 %v550_v6  ;;  %v427_v28 = vld [vmem:[%s654_s5] sm:$0x1] }
  0x1b   : > { %513 = vmatpush3.bf16.msra.mxu0 %v538_v7  ;;  %v429_v30 = vld [vmem:[%s655_s6] sm:$0x1] }
  0x1c   : > { %v435_v39 = vld [vmem:[%s606_s9] sm:$0x1] }
  0x1d   : > { %521 = vmatpush3.bf16.msra.mxu1 %v540_v14 }
  0x20   : > { %v295_v12 = vld [vmem:[#allocation2 + $0x4] sm:$0x1] }
  0x21   : > { %515 = vmatmul.mubr.msk.bf16.vlgmr.msra.gmra.mrb[0].mxu0 %vm313_vm8, %v295_v12 }
  0xf4   : > { %v351_v16 = vpop.f32.mrb[0].mxu0 }
  0xf5   : > { %v358_v18 = vmul.f32 %v357_v15, %v351_v16  ;;  %v516_v19 = vpop.f32.mrb[1].mxu0 }
  0xf6   : > { %v354_v20 = vpop.f32.mrb[2].mxu0 }
  0xf7   : > { %v360_v21 = vadd.f32 %v359_v17, %v358_v18  ;;  %v517_v22 = vpop.f32.mrb[3].mxu0 }
  0xf9   : > { %v361_v23 = vmax.f32 %v360_v21, 0.0 }
  0xfb   : > { %v362_v25 = vpack.c.bf16 %v361_v23, %v361_v23 }
  0xfd   : > { %v364_v26 = vsel %vm614_vm7, %v362_v25, %v363_v24 }
  0xfe   : > { %365 = vst [vmem:[#allocation3 + $0x4] sm:$0x1] %v364_v26 }
 0x105   : > { %v366_v27 = vld [vmem:[#allocation3 + $0x4] sm:$0x1] }
 0x106   : > { %523 = vmatmul.mubr.msk.bf16.vlgmr.msra.gmra.mrb[0].mxu1 %vm313_vm8, %v366_v27 }
 0x1d9   : > { %v421_v29 = vpop.f32.mrb[0].mxu1 }
 0x1da   : > { %v428_v31 = vmul.f32 %v427_v28, %v421_v29  ;;  %v524_v33 = vpop.f32.mrb[1].mxu1 }
 0x1db   : > { %v424_v34 = vpop.f32.mrb[2].mxu1 }
 0x1dc   : > { %v430_v35 = vadd.f32 %v429_v30, %v428_v31  ;;  %v525_v36 = vpop.f32.mrb[3].mxu1 }
 0x1de   : > { %v432_v37 = vadd.f32 %v431_v32, %v430_v35 }
 0x1e0   : > { %v433_v38 = vmax.f32 %v432_v37, 0.0 }
 0x1e2   : > { %v434_v40 = vpack.c.bf16 %v433_v38, %v433_v38 }
 0x1e4   : > { %v436_v41 = vsel %vm614_vm7, %v434_v40, %v435_v39 }
 0x1e5   : > { %437 = vst [vmem:[%s606_s9] sm:$0x1] %v436_v41 }
 0x1e6 PF: > { %s17_s24 = sadd.s32 1, %s547_s24  }
 0x1e7   : > { %p14_p5 = scmp.ge.s32.totalorder %s17_s24, 4  }
 0x1e9   :  { %16 = sbr.rel (!%p14_p5) target bundleno = 1 (0x1), region = 84 }

// kernel: _lambda_.19
= control target key start
LH: loop header
LB: loop body
LE: loop exit
PB: predicated region body
PF: predicated region fallthrough
CT: control target
= control target key end

     0   :  { %v176_v1 = vmov 0.0   ;;  %vm177_vm0 = vmmov 0   ;;  %s234_s0 = inlined_call_operand.vmem [shape: bf16[2,1,32], index: 0, kind: input, shape index: {}]   ;;  %s235_s1 = inlined_call_operand.vmem [shape: bf16[32,32], index: 1, kind: input, shape index: {}]   ;;  %s236_s2 = inlined_call_operand.vmem [shape: f32[1,32], index: 2, kind: input, shape index: {}]   ;;  %s237_s3 = inlined_call_operand.vmem [shape: f32[1,32], index: 3, kind: input, shape index: {}]   ;;  %s238_s4 = inlined_call_operand.hbm [shape: f32[2,32], index: 4, kind: output, shape index: {}]  }
   0x1   :  { %v148_v0 = vld [vmem:[%s235_s1] sm:$0xff]   ;;  %137 = vmatprep.subr.bf16.mxu0 %v176_v1  ;;  %v149_v2 = vld [vmem:[%s235_s1 + $0x8] sm:$0xff]   ;;  %141 = vmatprep.mubr.msk.bf16.mxu0 %vm177_vm0, %v176_v1 }
   0x2   :  { %138 = vmatpush3.bf16.msra.mxu0 %v148_v0  ;;  %v150_v3 = vld [vmem:[%s234_s0] ss:$0 sps:$4 sm:$0x11]   ;;  %v151_v4 = vld [vmem:[%s234_s0 + $0x1] ss:$0 sps:$4 sm:$0x11]  }
   0x3   :  { %139 = vmatprep.subr.bf16.mxu0 %v176_v1 }
   0x4   :  { %9 = vsyncpa [#allocation3], 0  ;;  %v33_v5 = vunpack.c.l.b16 %v150_v3  ;;  %v34_v6 = vunpack.c.l.b16 %v151_v4  ;;  %vm36_vm1 = vcmask 1041409   ;;  %vm51_vm2 = vcmask 261120   ;;  %v132_v10 = vld [vmem:[%s236_s2] ss:$0 sm:$0xff] }
   0x5   :  { %v133_v12 = vld [vmem:[%s237_s3] ss:$0 sm:$0xff]  ;;  %s178_s0 = smov [#allocation2]   ;;  %vm111_vm3 = vcmask 254976  }
   0x6   :  { %140 = vmatpush3.bf16.msra.mxu0 %v149_v2  ;;  %v35_v7 = vrot.slane %v34_v6, 7  ;;  %s119_s26 = sshll.u32 %s178_s0, 4  ;;  %s120_s26 = int_to_ptr.vmem [resolvable:$true] %s119_s26 }
   0x7   :  { %s152_s27 = scalar_lea.vmem %s120_s26, 32  ;;  %p157_p1 = scmp.lt.s32.totalorder %s120_s26, %s120_s26 }
   0x8   :  { %v37_v8 = vsel %vm36_vm1, %v35_v7, %v33_v5  ;;  %p153_p0 = scmp.ne.s32.totalorder %s120_s26, %s152_s27  ;;  %p158_p2 = scmp.lt.s32.totalorder %s152_s27, %s152_s27 }
   0x9   :  { %v38_v9 = vpack.c.b16 %v37_v8, %v37_v8 }
   0xa   :  { %p159_p3 = por %p158_p2, %p157_p1 }
   0xb   :  { %142 = vmatmul.mubr.msk.bf16.vlgmr.msra.gmra.mrb[0].mxu0 %vm51_vm2, %v38_v9 }
   0xc   :  { %p160_p4 = pnand %p159_p3, %p153_p0 }
  0xde   :  { %v89_v11 = vpop.f32.mrb[0].mxu0 }
  0xdf   :  { %v102_v13 = vmul.f32 %v132_v10, %v89_v11  ;;  %v143_v14 = vpop.f32.mrb[1].mxu0 }
  0xe0   :  { %v92_v15 = vpop.f32.mrb[2].mxu0 }
  0xe1   :  { %v110_v16 = vadd.f32 %v133_v12, %v102_v13  ;;  %v144_v17 = vpop.f32.mrb[3].mxu0 }
  0xe3   :  { %112 = vst.msk [vmem:[#allocation2] sm:$0x3] %vm111_vm3, %v110_v16 }
  0xe4   :  { %163 = shalt.err (!%p160_p4)
}
  0xe5   :  { %s164_s3 = scalar_lea.hbm %s238_s4, 32 }
  0xe6   :  { %p165_p5 = scmp.ne.s32.totalorder %s238_s4, %s164_s3  ;;  %p168_p6 = scmp.lt.u32.totalorder %s164_s3, %s238_s4 }
  0xe8   :  { %p170_p7 = pnand %p168_p6, %p165_p5 }
  0xea   :  { %173 = shalt.err (!%p170_p7)
}
  0xeb   :  { %122 = dma.vmem_to_hbm [thread:$0]  %s120_s26, 32, %s238_s4, [#allocation3]  }
  0xec   :  { %174 = dma.done.wait [#allocation3], 32  }
  0xed   :  { %175 = vsyncadd [#allocation3], 4294967264 }
  0xee   :  { %126 = vsyncpa [#allocation3], 1 }

// kernel: _lambda_.16
= control target key start
LH: loop header
LB: loop body
LE: loop exit
PB: predicated region body
PF: predicated region fallthrough
CT: control target
= control target key end

     0   :  { %s1965_s24 = smov 0   ;;  %s2222_s0 = inlined_call_operand.vmem [shape: bf16[2,4,16], index: 0, kind: input, shape index: {}]   ;;  %s2223_s1 = inlined_call_operand.vmem [shape: bf16[3,3,16,16], index: 1, kind: input, shape index: {}]   ;;  %s2224_s2 = inlined_call_operand.vmem [shape: f32[1,16], index: 2, kind: input, shape index: {}]   ;;  %s2225_s3 = inlined_call_operand.vmem [shape: f32[1,16], index: 3, kind: input, shape index: {}]   ;;  %s2226_s4 = inlined_call_operand.vmem [shape: bf16[3,3,16,16], index: 4, kind: input, shape index: {}]   ;;  %s2227_s5 = inlined_call_operand.vmem [shape: f32[1,16], index: 5, kind: input, shape index: {}]   ;;  %s2228_s6 = inlined_call_operand.vmem [shape: f32[1,16], index: 6, kind: input, shape index: {}]   ;;  %s2229_s7 = inlined_call_operand.vmem [shape: bf16[2,4,16], index: 7, kind: output, shape index: {}]  }
   0x1 LB: > { %s1573_s25 = sadd.s32 4294967295, %s1919_s24   ;;  %p1577_p0 = scmp.ge.s32.totalorder %s1919_s24, 1  ;;  %s1919_s24 = sphi %s1965_s24, %s17_s24  }
   0x2   : > { %p236_p1 = scmp.lt.s32.totalorder %s1919_s24, 3 }
   0x4   : > { %p237_p2 = pnand %p1577_p0, %p236_p1 }
   0x5   : > { %p266_p3 = scmp.lt.s32.totalorder (!%p237_p2), %s1573_s25, 1  ;;  %p1580_p4 = scmp.ne.s32.totalorder (!%p237_p2), %s1573_s25, 0 }
   0x6   : > { %240 = sbr.rel (%p237_p2) target bundleno = 681 (0x2a9), region = 48 }
   0xd   : > { %s267_s26 = scalar_select %p266_p3, %s1573_s25, 1 }
   0xe   : > { %280 = sbr.rel (%p1580_p4) target bundleno = 21 (0x15), region = 52  ;;  %vm281_vm0 = vcmask (!%p1580_p4), 125952   ;;  %v1921_v0 = vmov (!%p1580_p4), 0  }
   0xf   : > { %s1578_s27 = sshll.u32 %s267_s26, 1  ;;  %282 = vst.msk [vmem:[#allocation2] sm:$0xf] (!%p1580_p4), %vm281_vm0, %v1921_v0  ;;  %283 = vst.msk [vmem:[#allocation2 + $0x4] sm:$0xf] (!%p1580_p4), %vm281_vm0, %v1921_v0 }
  0x10   : > { %s269_s30 = scalar_lea.vmem %s2222_s0, %s1578_s27  ;;  %s1979_s10 = scalar_lea.vmem %s2229_s7, %s1578_s27  ;;  %286 = vst.msk [vmem:[#allocation3] sm:$0xf] (!%p1580_p4), %vm281_vm0, %v1921_v0  ;;  %287 = vst.msk [vmem:[#allocation3 + $0x4] sm:$0xf] (!%p1580_p4), %vm281_vm0, %v1921_v0 }
  0x15 PF: > { %v1891_v1 = vld [vmem:[%s2223_s1 + $0x8] sm:$0xff]   ;;  %v292_v2 = vlaneseq  ;;  %v1922_v3 = vmov 0.0   ;;  %v1985_v4 = vld [vmem:[%s269_s30] sm:$0x3]  ;;  %vm290_vm1 = vcmask 123904   ;;  %vm1923_vm2 = vmmov 0  }
  0x16   : > { %1707 = vmatprep.subr.bf16.mxu0 %v1922_v3  ;;  %1761 = vmatprep.subr.bf16.mxu1 %v1922_v3  ;;  %291 = vst.msk [vmem:[#allocation2 + $0x4] sm:$0x3] %vm290_vm1, %v1985_v4  ;;  %v1995_v7 = vld [vmem:[#allocation2] sm:$0x8]  ;;  %v1924_v8 = vmov 0   ;;  %vm332_vm7 = vcmask 130048  }
  0x17   : > { %1708 = vmatpush3.bf16.msra.mxu0 %v1891_v1  ;;  %1709 = vmatprep.mubr.msk.bf16.mxu0 %vm1923_vm2, %v1922_v3  ;;  %v293_v5 = vshrl.u32 %v292_v2, 7  ;;  %v1893_v15 = vld [vmem:[%s2223_s1] sm:$0xff]   ;;  %v1894_v46 = vld [vmem:[%s2223_s1 + $0x10] sm:$0xff]   ;;  %v1895_v60 = vld [vmem:[%s2223_s1 + $0x18] sm:$0xff]  }
  0x18   : > { %1713 = vmatprep.subr.bf16.mxu0 %v1922_v3  ;;  %1763 = vmatprep.mubr.msk.bf16.mxu1 %vm1923_vm2, %v1922_v3  ;;  %v297_v20 = vld [vmem:[#allocation2] sm:$0xc] }
  0x19   : > { %v294_v6 = vand.u32 1, %v293_v5  ;;  %v1896_v5 = vld [vmem:[%s2223_s1 + $0x20] sm:$0xff]  }
  0x1a   : > { %v1907_v53 = vld [vmem:[%s2226_s4 + $0x20] sm:$0xff]  }
  0x1b   : > { %vm295_vm3 = vcmp.ge.s32.totalorder %v294_v6, 1  ;;  %vm296_vm4 = vcmp.le.s32.totalorder %v294_v6, 0 }
  0x1c   : > { %vm299_vm5 = vmpackc.low %vm295_vm3, %vm295_vm3 }
  0x1d   : > { %v300_v9 = vsel %vm299_vm5, 65537, %v1924_v8  ;;  %vm439_vm6 = vmpackc.low %vm296_vm4, %vm296_vm4  ;;  %v298_v10 = vld [vmem:[#allocation2 + $0x4] sm:$0x1] }
  0x1e   : > { %v1997_v11 = vshrl.u32 %v300_v9, 16  ;;  %v1999_v12 = vshll.u32 %v300_v9, 16  ;;  %v1583_v13 = vcombine.low %v1995_v7, %v298_v10  ;;  %v440_v14 = vsel %vm439_vm6, 65537, %v1924_v8  ;;  %v438_v33 = vld [vmem:[#allocation2 + $0x4] sm:$0x3] }
  0x1f   : > { %v2007_v18 = vshll.u32 %v440_v14, 16  ;;  %v2009_v19 = vshrl.u32 %v440_v14, 16 }
  0x20   : > { %v304_v16 = vrot.slane %v1997_v11, 5  ;;  %v307_v17 = vrot.slane %v1999_v12, 6  ;;  %v325_v21 = vrot.slane %v1583_v13, 3  ;;  %v520_v27 = vrot.slane %v1999_v12, 5  ;;  %v1897_v13 = vld [vmem:[%s2223_s1 + $0x28] sm:$0xff]  }
  0x21   : > { %v444_v24 = vrot.slane %v2007_v18, 5  ;;  %v447_v25 = vrot.slane %v2009_v19, 4  ;;  %v521_v31 = vrot.slane %v1997_v11, 4  ;;  %v841_v44 = vrot.slane %v2009_v19, 6 }
  0x22   : > { %v2011_v22 = vor.u32 %v307_v17, %v304_v16  ;;  %v2013_v23 = vrot.slane %v304_v16, 4  ;;  %1710 = vmatmul.mubr.msk.bf16.vlgmr.msra.gmra.mrb[0].mxu0 %vm332_vm7, %v325_v21  ;;  %v842_v47 = vrot.slane %v2007_v18, 7  ;;  %vm2052_vm12 = vcmp.ne.s16.totalorder %v520_v27, 0 }
  0x23   : > { %v448_v26 = vor.u32 %v447_v25, %v444_v24  ;;  %1714 = vmatpush3.bf16.msra.mxu0 %v1893_v15  ;;  %1715 = vmatprep.mubr.msk.bf16.mxu0 %vm1923_vm2, %v1922_v3  ;;  %vm2027_vm10 = vcmp.ne.s16.totalorder %v444_v24, 0  ;;  %v522_v40 = vor.u32 %v521_v31, %v520_v27  ;;  %v526_v56 = vsel %vm2052_vm12, %v1995_v7, 0  ;;  %v840_v27 = vld [vmem:[#allocation2 + $0x4] sm:$0xe] }
  0x24   : > { %vm310_vm8 = vcmp.ne.s16.totalorder %v2011_v22, 0  ;;  %vm311_vm9 = vcmp.ne.s16.totalorder %v2013_v23, 0  ;;  %1719 = vmatprep.subr.bf16.mxu0 %v1922_v3  ;;  %v452_v38 = vsel %vm2027_vm10, %v1995_v7, 0  ;;  %v2048_v51 = vor.u32 %v842_v47, %v841_v44  ;;  %v647_v7 = vld [vmem:[#allocation2 + $0x4] sm:$0x7] }
  0x25   : > { %v312_v28 = vsel %vm310_vm8, %v297_v20, 0  ;;  %v313_v29 = vsel %vm311_vm9, %v298_v10, 0  ;;  %v449_v34 = vrot.slane %v448_v26, 4  ;;  %v523_v48 = vrot.slane %v522_v40, 4  ;;  %v1899_v26 = vld [vmem:[%s2223_s1 + $0x38] sm:$0xff]   ;;  %v1902_v40 = vld [vmem:[%s2226_s4 + $0x8] sm:$0xff]  }
  0x26   : > { %v1586_v32 = vcombine.low %v312_v28, %v313_v29  ;;  %v648_v1 = vrot.slane %v2009_v19, 7  ;;  %v715_v9 = vrot.slane %v1997_v11, 7  ;;  %vm844_vm0 = vcmp.ne.s16.totalorder %v2048_v51, 0  ;;  %v1900_v28 = vld [vmem:[#allocation2 + $0x4] ss:$0 sps:$4 sm:$0x66]   ;;  %1762 = vmatpush3.bf16.msra.mxu1 %v1902_v40 }
  0x27   : > { %vm2033_vm11 = vcmp.ne.s16.totalorder %v449_v34, 0  ;;  %vm2056_vm13 = vcmp.ne.s16.totalorder %v523_v48, 0  ;;  %v845_v29 = vsel %vm844_vm0, %v840_v27, 0  ;;  %v789_v31 = vrot.slane %v1900_v28, 1  ;;  %1767 = vmatprep.subr.bf16.mxu1 %v1922_v3  ;;  %v1667_v51 = vld [vmem:[%s2227_s5] ss:$0 sm:$0xff] }
  0x28   : > { %v382_v35 = vshrl.u32 %v1586_v32, 16  ;;  %v385_v36 = vshll.u32 %v1586_v32, 16  ;;  %v453_v39 = vsel %vm2033_vm11, %v438_v33, 0  ;;  %v527_v57 = vsel %vm2056_vm13, %v438_v33, 0 }
  0x29   : > { %v1591_v43 = vcombine.low %v452_v38, %v453_v39  ;;  %v1596_v58 = vcombine.low %v526_v56, %v527_v57  ;;  %v2078_v6 = vor.u32 %v648_v1, %v2007_v18  ;;  %v2092_v14 = vor.u32 %v715_v9, %v1999_v12  ;;  %v1898_v12 = vld [vmem:[%s2223_s1 + $0x30] sm:$0xff]  }
  0x2a   : > { %v384_v41 = vrot.slane %v382_v35, 2  ;;  %v387_v42 = vrot.slane %v385_v36, 3  ;;  %v1620_v32 = vcombine.low %v845_v29, %v845_v29 }
  0x2b   : > { %v463_v49 = vshrl.u32 %v1591_v43, 16  ;;  %v466_v50 = vshll.u32 %v1591_v43, 16  ;;  %v537_v61 = vshrl.u32 %v1596_v58, 16  ;;  %v540_v62 = vshll.u32 %v1596_v58, 16  ;;  %v1624_v43 = vld [vmem:[%s2225_s3] ss:$0 sm:$0xff] }
  0x2c   : > { %v388_v45 = vor.u32 %v387_v42, %v384_v41  ;;  %vm650_vm14 = vcmp.ne.s16.totalorder %v2078_v6, 0  ;;  %vm717_vm15 = vcmp.ne.s16.totalorder %v2092_v14, 0  ;;  %v853_v34 = vshrl.u32 %v1620_v32, 16  ;;  %v1623_v41 = vld [vmem:[%s2224_s2] ss:$0 sm:$0xff]  ;;  %v1910_v14 = vld [vmem:[%s2226_s4 + $0x38] sm:$0xff]  }
  0x2d   : > { %v465_v54 = vrot.slane %v463_v49, 3  ;;  %v468_v55 = vrot.slane %v466_v50, 4  ;;  %v539_v63 = vrot.slane %v537_v61, 3  ;;  %v542_v0 = vrot.slane %v540_v62, 4 }
  0x2e   : > { %1716 = vmatmul.mubr.msk.bf16.vlgmr.msra.gmra.mrb[0].mxu0 %vm332_vm7, %v388_v45  ;;  %v651_v8 = vsel %vm650_vm14, %v647_v7, 0  ;;  %v718_v17 = vsel %vm717_vm15, %v647_v7, 0  ;;  %v856_v35 = vshll.u32 %v1620_v32, 16  ;;  %v855_v36 = vrot.slane %v853_v34, 1  ;;  %v1905_v7 = vld [vmem:[%s2226_s4 + $0x10] sm:$0xff]  }
  0x2f   : > { %1720 = vmatpush3.bf16.msra.mxu0 %v1894_v46  ;;  %1721 = vmatprep.mubr.msk.bf16.mxu0 %vm1923_vm2, %v1922_v3  ;;  %v469_v59 = vor.u32 %v468_v55, %v465_v54  ;;  %v543_v2 = vor.u32 %v542_v0, %v539_v63  ;;  %v1605_v10 = vcombine.low %v651_v8, %v651_v8  ;;  %v929_v54 = vld [vmem:[#allocation3] sm:$0xc]  ;;  %v1909_v32 = vld [vmem:[%s2226_s4 + $0x30] sm:$0xff]  }
  0x30   : > { %1725 = vmatprep.subr.bf16.mxu0 %v1922_v3  ;;  %v1610_v19 = vcombine.low %v718_v17, %v718_v17  ;;  %v858_v38 = vrot.slane %v856_v35, 2  ;;  %v935_v55 = vld [vmem:[#allocation3] sm:$0x8]  ;;  %v931_v57 = vsel %vm310_vm8, %v929_v54, 0 }
  0x31   : > { %v661_v15 = vshll.u32 %v1605_v10, 16  ;;  %v659_v11 = vshrl.u32 %v1605_v10, 16  ;;  %v1125_v37 = vsel %vm2052_vm12, %v935_v55, 0 }
  0x32   : > { %v728_v20 = vshll.u32 %v1610_v19, 16  ;;  %v726_v21 = vshrl.u32 %v1610_v19, 16  ;;  %v859_v39 = vor.u32 %v858_v38, %v855_v36 }
  0x33   : > { %v663_v16 = vrot.slane %v661_v15, 1 }
  0x34   : > { %v730_v24 = vrot.slane %v728_v20, 1 }
  0x35   : > { %v664_v18 = vor.u32 %v663_v16, %v659_v11  ;;  %v1906_v16 = vld [vmem:[%s2226_s4 + $0x18] sm:$0xff]  }
  0x36   : > { %v731_v25 = vor.u32 %v730_v24, %v726_v21 }
  0x3a   : > { %1722 = vmatmul.mubr.msk.bf16.vlgmr.msra.gmra.mrb[0].mxu0 %vm332_vm7, %v469_v59 }
  0x3b   : > { %1726 = vmatpush3.bf16.msra.mxu0 %v1895_v60  ;;  %1727 = vmatprep.mubr.msk.bf16.mxu0 %vm1923_vm2, %v1922_v3  ;;  %v1904_v60 = vld [vmem:[%s2226_s4] sm:$0xff]  }
  0x3c   : > { %1731 = vmatprep.subr.bf16.mxu0 %v1922_v3 }
  0x46   : > { %1728 = vmatmul.mubr.msk.bf16.vlgmr.msra.gmra.mrb[0].mxu0 %vm332_vm7, %v543_v2  ;;  %v1057_v2 = vsel %vm2027_vm10, %v935_v55, 0 }
  0x47   : > { %1732 = vmatpush3.bf16.msra.mxu0 %v1896_v5  ;;  %1733 = vmatprep.mubr.msk.bf16.mxu0 %vm1923_vm2, %v1922_v3 }
  0x48   : > { %1737 = vmatprep.subr.bf16.mxu0 %v1922_v3 }
  0x52   : > { %1734 = vmatmul.mubr.msk.bf16.vlgmr.msra.gmra.mrb[0].mxu0 %vm332_vm7, %v438_v33  ;;  %v1901_v33 = vld [vmem:[%s2223_s1 + $0x40] sm:$0xff]  }
  0x53   : > { %1738 = vmatpush3.bf16.msra.mxu0 %v1897_v13  ;;  %1739 = vmatprep.mubr.msk.bf16.mxu0 %vm1923_vm2, %v1922_v3 }
  0x54   : > { %1743 = vmatprep.subr.bf16.mxu0 %v1922_v3 }
  0x5e   : > { %1740 = vmatmul.mubr.msk.bf16.vlgmr.msra.gmra.mrb[0].mxu0 %vm332_vm7, %v664_v18 }
  0x5f   : > { %1744 = vmatpush3.bf16.msra.mxu0 %v1898_v12  ;;  %1745 = vmatprep.mubr.msk.bf16.mxu0 %vm1923_vm2, %v1922_v3 }
  0x60   : > { %1749 = vmatprep.subr.bf16.mxu0 %v1922_v3 }
  0x6a   : > { %1746 = vmatmul.mubr.msk.bf16.vlgmr.msra.gmra.mrb[0].mxu0 %vm332_vm7, %v731_v25 }
  0x6b   : > { %1750 = vmatpush3.bf16.msra.mxu0 %v1899_v26  ;;  %1751 = vmatprep.mubr.msk.bf16.mxu0 %vm1923_vm2, %v1922_v3  ;;  %v1908_v26 = vld [vmem:[%s2226_s4 + $0x28] sm:$0xff]  }
  0x6c   : > { %1755 = vmatprep.subr.bf16.mxu0 %v1922_v3 }
  0x76   : > { %1752 = vmatmul.mubr.msk.bf16.vlgmr.msra.gmra.mrb[0].mxu0 %vm332_vm7, %v789_v31 }
  0x77   : > { %1756 = vmatpush3.bf16.msra.mxu0 %v1901_v33  ;;  %1757 = vmatprep.mubr.msk.bf16.mxu0 %vm1923_vm2, %v1922_v3 }
  0x82   : > { %1758 = vmatmul.mubr.msk.bf16.vlgmr.msra.gmra.mrb[0].mxu0 %vm332_vm7, %v859_v39 }
 0x155   : > { %v903_v42 = vpop.f32.mrb[0].mxu0 }
 0x156   : > { %v917_v44 = vmul.f32 %v1623_v41, %v903_v42  ;;  %v1759_v45 = vpop.f32.mrb[1].mxu0 }
 0x157   : > { %v906_v46 = vpop.f32.mrb[2].mxu0 }
 0x158   : > { %v925_v47 = vadd.f32 %v1624_v43, %v917_v44  ;;  %v1760_v48 = vpop.f32.mrb[3].mxu0  ;;  %v1912_v43 = vld [vmem:[%s2226_s4 + $0x40] sm:$0xff]  }
 0x15a   : > { %v926_v49 = vmax.f32 %v925_v47, 0.0 }
 0x15c   : > { %v927_v50 = vpack.c.bf16 %v926_v49, %v926_v49 }
 0x15e   : > { %928 = vst.msk [vmem:[#allocation3 + $0x4] sm:$0x3] %vm290_vm1, %v927_v50 }
 0x165   : > { %v930_v56 = vld [vmem:[#allocation3 + $0x4] sm:$0x1]  ;;  %v1433_v40 = vld [vmem:[#allocation3 + $0x4] sm:$0xe] }
 0x166   : > { %v932_v58 = vsel %vm311_vm9, %v930_v56, 0  ;;  %v1627_v59 = vcombine.low %v935_v55, %v930_v56  ;;  %v1056_v22 = vld [vmem:[#allocation3 + $0x4] sm:$0x3]  ;;  %v1434_v42 = vsel %vm844_vm0, %v1433_v40, 0  ;;  %v1668_v55 = vld [vmem:[%s2228_s6] ss:$0 sm:$0xff] }
 0x167   : > { %v1630_v62 = vcombine.low %v931_v57, %v932_v58  ;;  %v1058_v5 = vsel %vm2033_vm11, %v1056_v22, 0  ;;  %v1126_v11 = vsel %vm2056_vm13, %v1056_v22, 0  ;;  %v1246_v24 = vld [vmem:[#allocation3 + $0x4] sm:$0x7]  ;;  %v1664_v45 = vcombine.low %v1434_v42, %v1434_v42 }
 0x168   : > { %v944_v61 = vrot.slane %v1627_v59, 3  ;;  %v1635_v8 = vcombine.low %v1057_v2, %v1058_v5  ;;  %v1640_v17 = vcombine.low %v1125_v37, %v1126_v11  ;;  %v1247_v25 = vsel %vm650_vm14, %v1246_v24, 0  ;;  %v1911_v41 = vld [vmem:[#allocation3 + $0x4] ss:$0 sps:$4 sm:$0x66]  }
 0x169   : > { %v1000_v63 = vshrl.u32 %v1630_v62, 16  ;;  %v1003_v0 = vshll.u32 %v1630_v62, 16  ;;  %v1649_v27 = vcombine.low %v1247_v25, %v1247_v25  ;;  %v1311_v31 = vsel %vm717_vm15, %v1246_v24, 0 }
 0x16a   : > { %1764 = vmatmul.mubr.msk.bf16.vlgmr.msra.gmra.mrb[0].mxu1 %vm332_vm7, %v944_v61  ;;  %v1068_v10 = vshrl.u32 %v1635_v8, 16  ;;  %v1071_v30 = vshll.u32 %v1635_v8, 16  ;;  %v1136_v19 = vshrl.u32 %v1640_v17, 16  ;;  %v1139_v52 = vshll.u32 %v1640_v17, 16 }
 0x16b   : > { %1768 = vmatpush3.bf16.msra.mxu1 %v1904_v60  ;;  %1769 = vmatprep.mubr.msk.bf16.mxu1 %vm1923_vm2, %v1922_v3  ;;  %v1002_v23 = vrot.slane %v1000_v63, 2  ;;  %v1005_v1 = vrot.slane %v1003_v0, 3  ;;  %v1257_v28 = vshll.u32 %v1649_v27, 16  ;;  %v1255_v6 = vshrl.u32 %v1649_v27, 16 }
 0x16c   : > { %1773 = vmatprep.subr.bf16.mxu1 %v1922_v3  ;;  %v1070_v13 = vrot.slane %v1068_v10, 3  ;;  %v1073_v15 = vrot.slane %v1071_v30, 4  ;;  %v1138_v12 = vrot.slane %v1136_v19, 3  ;;  %v1141_v20 = vrot.slane %v1139_v52, 4 }
 0x16d   : > { %v1006_v9 = vor.u32 %v1005_v1, %v1002_v23  ;;  %v1259_v29 = vrot.slane %v1257_v28, 1  ;;  %v1654_v34 = vcombine.low %v1311_v31, %v1311_v31  ;;  %v1382_v44 = vrot.slane %v1911_v41, 1 }
 0x16e   : > { %v1074_v18 = vor.u32 %v1073_v15, %v1070_v13  ;;  %v1142_v21 = vor.u32 %v1141_v20, %v1138_v12  ;;  %v1442_v46 = vshrl.u32 %v1664_v45, 16  ;;  %v1445_v47 = vshll.u32 %v1664_v45, 16 }
 0x16f   : > { %v1260_v33 = vor.u32 %v1259_v29, %v1255_v6  ;;  %v1321_v35 = vshll.u32 %v1654_v34, 16  ;;  %v1319_v38 = vshrl.u32 %v1654_v34, 16 }
 0x170   : > { %v1444_v48 = vrot.slane %v1442_v46, 1  ;;  %v1447_v49 = vrot.slane %v1445_v47, 2 }
 0x171   : > { %v1323_v36 = vrot.slane %v1321_v35, 1 }
 0x172   : > { %v1448_v50 = vor.u32 %v1447_v49, %v1444_v48 }
 0x173   : > { %v1324_v39 = vor.u32 %v1323_v36, %v1319_v38 }
 0x176   : > { %1770 = vmatmul.mubr.msk.bf16.vlgmr.msra.gmra.mrb[0].mxu1 %vm332_vm7, %v1006_v9 }
 0x177   : > { %1774 = vmatpush3.bf16.msra.mxu1 %v1905_v7  ;;  %1775 = vmatprep.mubr.msk.bf16.mxu1 %vm1923_vm2, %v1922_v3 }
 0x178   : > { %1779 = vmatprep.subr.bf16.mxu1 %v1922_v3 }
 0x182   : > { %1776 = vmatmul.mubr.msk.bf16.vlgmr.msra.gmra.mrb[0].mxu1 %vm332_vm7, %v1074_v18 }
 0x183   : > { %1780 = vmatpush3.bf16.msra.mxu1 %v1906_v16  ;;  %1781 = vmatprep.mubr.msk.bf16.mxu1 %vm1923_vm2, %v1922_v3 }
 0x184   : > { %1785 = vmatprep.subr.bf16.mxu1 %v1922_v3 }
 0x18e   : > { %1782 = vmatmul.mubr.msk.bf16.vlgmr.msra.gmra.mrb[0].mxu1 %vm332_vm7, %v1142_v21 }
 0x18f   : > { %1786 = vmatpush3.bf16.msra.mxu1 %v1907_v53  ;;  %1787 = vmatprep.mubr.msk.bf16.mxu1 %vm1923_vm2, %v1922_v3 }
 0x190   : > { %1791 = vmatprep.subr.bf16.mxu1 %v1922_v3 }
 0x19a   : > { %1788 = vmatmul.mubr.msk.bf16.vlgmr.msra.gmra.mrb[0].mxu1 %vm332_vm7, %v1056_v22 }
 0x19b   : > { %1792 = vmatpush3.bf16.msra.mxu1 %v1908_v26  ;;  %1793 = vmatprep.mubr.msk.bf16.mxu1 %vm1923_vm2, %v1922_v3 }
 0x19c   : > { %1797 = vmatprep.subr.bf16.mxu1 %v1922_v3 }
 0x1a6   : > { %1794 = vmatmul.mubr.msk.bf16.vlgmr.msra.gmra.mrb[0].mxu1 %vm332_vm7, %v1260_v33 }
 0x1a7   : > { %1798 = vmatpush3.bf16.msra.mxu1 %v1909_v32  ;;  %1799 = vmatprep.mubr.msk.bf16.mxu1 %vm1923_vm2, %v1922_v3 }
 0x1a8   : > { %1803 = vmatprep.subr.bf16.mxu1 %v1922_v3 }
 0x1b2   : > { %1800 = vmatmul.mubr.msk.bf16.vlgmr.msra.gmra.mrb[0].mxu1 %vm332_vm7, %v1324_v39 }
 0x1b3   : > { %1804 = vmatpush3.bf16.msra.mxu1 %v1910_v14  ;;  %1805 = vmatprep.mubr.msk.bf16.mxu1 %vm1923_vm2, %v1922_v3 }
 0x1b4   : > { %1809 = vmatprep.subr.bf16.mxu1 %v1922_v3 }
 0x1be   : > { %1806 = vmatmul.mubr.msk.bf16.vlgmr.msra.gmra.mrb[0].mxu1 %vm332_vm7, %v1382_v44 }
 0x1bf   : > { %1810 = vmatpush3.bf16.msra.mxu1 %v1912_v43  ;;  %1811 = vmatprep.mubr.msk.bf16.mxu1 %vm1923_vm2, %v1922_v3  ;;  %v1515_v3 = vunpack.c.l.bf16 %v1985_v4 }
 0x1ca   : > { %1812 = vmatmul.mubr.msk.bf16.vlgmr.msra.gmra.mrb[0].mxu1 %vm332_vm7, %v1448_v50 }
 0x29d   : > { %v1492_v54 = vpop.f32.mrb[0].mxu1 }
 0x29e   : > { %v1506_v56 = vmul.f32 %v1667_v51, %v1492_v54  ;;  %v1813_v57 = vpop.f32.mrb[1].mxu1 }
 0x29f   : > { %v1495_v58 = vpop.f32.mrb[2].mxu1 }
 0x2a0   : > { %v1514_v59 = vadd.f32 %v1668_v55, %v1506_v56  ;;  %v1814_v60 = vpop.f32.mrb[3].mxu1 }
 0x2a2   : > { %v1516_v61 = vadd.f32 %v1515_v3, %v1514_v59 }
 0x2a4   : > { %v1517_v62 = vmax.f32 %v1516_v61, 0.0 }
 0x2a6   : > { %v1518_v63 = vpack.c.bf16 %v1517_v62, %v1517_v62 }
 0x2a8   : > { %1519 = vst.msk [vmem:[%s1979_s10] sm:$0x3] %vm290_vm1, %v1518_v63 }
 0x2a9 PF: > { %s17_s24 = sadd.s32 1, %s1919_s24  }
 0x2aa   : > { %p14_p5 = scmp.ge.s32.totalorder %s17_s24, 4  }
 0x2ac   :  { %16 = sbr.rel (!%p14_p5) target bundleno = 1 (0x1), region = 98 }

</bundles_post_ra>
